<compile_context>
chip_gen: v7x
topology: tpu7x:2x2x1
jax: 0.10.0
libtpu: 0.0.40
codegen_flags: <defaults>
</compile_context>

<pallas_src>
import functools

import jax
import jax.numpy as jnp
from jax.experimental import pallas as pl
from jax.experimental.pallas import tpu as pltpu

_MXU_DTYPE = jnp.bfloat16   # MXU operand / VMEM activation dtype; accumulation stays f32.
_GUARD = 128                # lane guard on each side of the padded-flat data region


def _rup(a, m):
    return (a + m - 1) // m * m


# ----------------------------------------------------------------------------
# In-kernel helpers
# ----------------------------------------------------------------------------
def _conv3x3_acc(src_ref, w_ref, w_base, acc, *, wp, p128, gs, lead=None):
    """acc += 3x3 conv of `src_ref` using per-tap weights w_ref[w_base + t].

    src_ref: (Cin8, L) [or (1, Cin8, L) with lead=0] padded-flat bf16 source.
    w_ref:   (T, Cout8, Cin8) per-tap weight stack (t = ky*3 + kx).
    Each tap is a static lane-offset slice of the source feeding one small MXU dot with
    f32 accumulation — no (9*Cin, P) tap-concat buffer is ever materialized.
    """
    for ky in range(3):
        for kx in range(3):
            d = (ky - 1) * wp + (kx - 1)
            if lead is None:
                s = src_ref[:, pl.ds(gs + d, p128)]
            else:
                s = src_ref[lead, :, pl.ds(gs + d, p128)]
            acc = acc + jnp.dot(w_ref[w_base + ky * 3 + kx], s,
                                preferred_element_type=jnp.float32)
    return acc


def _fused_kernel(x_ref, skip_ref, u_ref, w1_ref, b1_ref, w2_ref, b2_ref,
                  w3_ref, b3_ref, m_ref, o_ref, xup_ref, y1_ref, y2_ref,
                  *, wp, p128, gs, gr):
    f32 = jnp.float32

    # Zero ONLY the two 128-lane guard strips of each scratch (one vreg-column each, not a
    # full-block memset): border/tail output taps read into them and NaN * 0 == NaN.
    for scr in (xup_ref, y1_ref, y2_ref):
        c = scr.shape[0]
        scr[:, pl.ds(0, gs)] = jnp.zeros((c, gs), scr.dtype)
        scr[:, pl.ds(gs + p128, gr)] = jnp.zeros((c, gr), scr.dtype)

    # --- bilinear x2 upsample (align_corners=True); conv zero-pad + flattening baked in U ---
    xup = jnp.dot(x_ref[0], u_ref[...], preferred_element_type=f32)        # (C8, P128) f32
    xup_ref[:, pl.ds(gs, p128)] = xup.astype(xup_ref.dtype)                # aligned dense store

    # --- conv1 (no activation) ---
    acc = jnp.zeros((y1_ref.shape[0], p128), f32)
    acc = _conv3x3_acc(xup_ref, w1_ref, 0, acc, wp=wp, p128=p128, gs=gs)
    acc = (acc + b1_ref[...]) * m_ref[...]            # mask re-zeros pad border / lane tail
    y1_ref[:, pl.ds(gs, p128)] = acc.astype(y1_ref.dtype)

    # --- conv2 over concat([y1, skip], channel) + ReLU; concat folded into 18 taps ---
    acc = jnp.zeros((y2_ref.shape[0], p128), f32)
    acc = _conv3x3_acc(y1_ref, w2_ref, 0, acc, wp=wp, p128=p128, gs=gs)
    acc = _conv3x3_acc(skip_ref, w2_ref, 9, acc, wp=wp, p128=p128, gs=gs, lead=0)
    acc = jnp.maximum(acc + b2_ref[...], 0.0) * m_ref[...]
    y2_ref[:, pl.ds(gs, p128)] = acc.astype(y2_ref.dtype)

    # --- conv3 + ReLU, straight to the HBM output block (border cropped host-side) ---
    acc = jnp.zeros((o_ref.shape[1], p128), f32)
    acc = _conv3x3_acc(y2_ref, w3_ref, 0, acc, wp=wp, p128=p128, gs=gs)
    o_ref[0] = jnp.maximum(acc + b3_ref[...], 0.0).astype(o_ref.dtype)


# ----------------------------------------------------------------------------
# Host-side (XLA) constant / layout preparation
# ----------------------------------------------------------------------------
def _interp_matrix(n_in, n_out):
    # Bilinear, align_corners=True (as specified by the PyTorch module): src = o*(n_in-1)/(n_out-1)
    src = jnp.arange(n_out, dtype=jnp.float32) * (n_in - 1) / (n_out - 1)
    i0 = jnp.clip(jnp.floor(src).astype(jnp.int32), 0, n_in - 1)
    i1 = jnp.minimum(i0 + 1, n_in - 1)
    frac = src - i0.astype(jnp.float32)
    eye = jnp.eye(n_in, dtype=jnp.float32)
    return (1.0 - frac)[:, None] * eye[i0] + frac[:, None] * eye[i1]       # (n_out, n_in)


def _wtaps(w, cout_pad, cin_pad):
    # (Cout, Cin, 3, 3) -> (9, cout_pad, cin_pad), tap index t = ky*3 + kx.
    cout, cin = w.shape[:2]
    wt = jnp.transpose(w, (2, 3, 0, 1)).reshape(9, cout, cin)
    wt = jnp.pad(wt, ((0, 0), (0, cout_pad - cout), (0, cin_pad - cin)))
    return wt.astype(_MXU_DTYPE)


def _bvec(b, cout_pad):
    return jnp.pad(b, (0, cout_pad - b.shape[0])).reshape(cout_pad, 1).astype(jnp.float32)


# ----------------------------------------------------------------------------
# ExpandingBlock forward
# ----------------------------------------------------------------------------
def expanding_block_forward(x, skip, params):
    N, C, H, W = x.shape
    CH = C // 2
    Ho, Wo = 2 * H, 2 * W
    Hp, Wp = Ho + 2, Wo + 2            # conv zero-padding stored explicitly
    P = Hp * Wp                        # flattened padded spatial length
    P128 = _rup(P, 128)                # lane-dense stored width (tail masked via mask)
    GS, GR = _GUARD, _GUARD            # left / right zero guards
    assert GS >= Wp + 1 and GR >= Wp + 1, "guards must cover the 3x3 tap reach"
    L = GS + P128 + GR
    C8 = _rup(C, 8)
    CH8 = _rup(CH, 8)
    HW = H * W
    f32 = jnp.float32

    # --- constants: upsample matrix (upsample + pad + flatten baked in), border mask ---
    Uyp = jnp.pad(_interp_matrix(H, Ho), ((1, 1), (0, 0)))                 # (Hp, H)
    Uxp = jnp.pad(_interp_matrix(W, Wo), ((1, 1), (0, 0)))                 # (Wp, W)
    U = jnp.einsum('rh,qw->hwrq', Uyp, Uxp).reshape(HW, P)
    U = jnp.pad(U, ((0, 0), (0, P128 - P))).astype(_MXU_DTYPE)             # (HW, P128)

    rr = (jnp.arange(Hp) >= 1) & (jnp.arange(Hp) <= Ho)
    qq = (jnp.arange(Wp) >= 1) & (jnp.arange(Wp) <= Wo)
    mask = (rr[:, None] & qq[None, :]).astype(f32).reshape(1, P)
    mask = jnp.pad(mask, ((0, 0), (0, P128 - P)))                          # (1, P128)

    # --- weights: per-tap stacks; conv2 split along its input channels (y1 | skip) ---
    w1t = _wtaps(params["w1"], CH8, C8)                                     # (9,  CH8, C8)
    w2t = jnp.concatenate([_wtaps(params["w2"][:, :CH], CH8, CH8),
                           _wtaps(params["w2"][:, CH:], CH8, CH8)], axis=0)  # (18, CH8, CH8)
    w3t = _wtaps(params["w3"], CH8, CH8)                                    # (9,  CH8, CH8)
    b1 = _bvec(params["b1"], CH8)
    b2 = _bvec(params["b2"], CH8)
    b3 = _bvec(params["b3"], CH8)

    # --- input layout prep (cheap single-pass XLA ops, no transposes), bf16 operands ---
    x_cf = jnp.pad(x, ((0, 0), (0, C8 - C), (0, 0), (0, 0))).reshape(N, C8, HW)
    x_cf = x_cf.astype(_MXU_DTYPE)
    skip_cf = jnp.pad(skip, ((0, 0), (0, CH8 - CH), (1, 1), (1, 1))).reshape(N, CH8, P)
    skip_cf = jnp.pad(skip_cf, ((0, 0), (0, 0), (GS, L - GS - P))).astype(_MXU_DTYPE)

    kernel = functools.partial(_fused_kernel, wp=Wp, p128=P128, gs=GS, gr=GR)
    const2 = lambda n: (0, 0)
    const3 = lambda n: (0, 0, 0)

    y3 = pl.pallas_call(
        kernel,
        out_shape=jax.ShapeDtypeStruct((N, CH8, P128), f32),
        grid=(N,),
        in_specs=[
            pl.BlockSpec((1, C8, HW), lambda n: (n, 0, 0)),       # x (channel-major flat)
            pl.BlockSpec((1, CH8, L), lambda n: (n, 0, 0)),       # skip (padded-flat + guards)
            pl.BlockSpec((HW, P128), const2),                     # upsample matrix
            pl.BlockSpec((9, CH8, C8), const3),                   # conv1 taps
            pl.BlockSpec((CH8, 1), const2),                       # b1
            pl.BlockSpec((18, CH8, CH8), const3),                 # conv2 taps (y1 | skip)
            pl.BlockSpec((CH8, 1), const2),                       # b2
            pl.BlockSpec((9, CH8, CH8), const3),                  # conv3 taps
            pl.BlockSpec((CH8, 1), const2),                       # b3
            pl.BlockSpec((1, P128), const2),                      # border/tail mask
        ],
        out_specs=pl.BlockSpec((1, CH8, P128), lambda n: (n, 0, 0)),
        scratch_shapes=[
            pltpu.VMEM((C8, L), _MXU_DTYPE),    # xup
            pltpu.VMEM((CH8, L), _MXU_DTYPE),   # y1
            pltpu.VMEM((CH8, L), _MXU_DTYPE),   # y2
        ],
        compiler_params=pltpu.CompilerParams(
            dimension_semantics=("parallel",),
            vmem_limit_bytes=32 * 1024 * 1024,  # explicit, generation-safe budget (usage ~2 MB)
        ),
    )(x_cf, skip_cf, U, w1t, b1, w2t, b2, w3t, b3, mask)

    # --- unpack to NCHW (cheap slice/reshape; kernel output is already channel-major) ---
    out = y3[:, :CH, :P].reshape(N, CH, Hp, Wp)[:, :, 1:1 + Ho, 1:1 + Wo]
    return out


# ----------------------------------------------------------------------------
# Parameter init (PyTorch Conv2d default scale) and pure-JAX reference
# ----------------------------------------------------------------------------
def init_params(key, input_channels):
    c = input_channels
    half = c // 2

    def conv_init(k, cout, cin):
        k1, k2 = jax.random.split(k)
        fan_in = cin * 9
        bound = 1.0 / jnp.sqrt(jnp.float32(fan_in))
        w = jax.random.uniform(k1, (cout, cin, 3, 3), jnp.float32, -bound, bound)
        b = jax.random.uniform(k2, (cout,), jnp.float32, -bound, bound)
        return w, b

    k1, k2, k3 = jax.random.split(key, 3)
    w1, b1 = conv_init(k1, half, c)      # conv1: C -> C//2
    w2, b2 = conv_init(k2, half, c)      # conv2: C (after concat) -> C//2
    w3, b3 = conv_init(k3, half, half)   # conv3: C//2 -> C//2
    return dict(w1=w1, b1=b1, w2=w2, b2=b2, w3=w3, b3=b3)


def _reference_forward(x, skip, params):
    # Pure-JAX fp32 reference of the PyTorch module (correctness check).
    N, C, H, W = x.shape
    Uy = _interp_matrix(H, 2 * H)
    Ux = _interp_matrix(W, 2 * W)
    xup = jnp.einsum('oh,nchw,pw->ncop', Uy, x, Ux,
                     precision=jax.lax.Precision.HIGHEST)

    def conv(v, w, b):
        y = jax.lax.conv_general_dilated(
            v, w, window_strides=(1, 1), padding=((1, 1), (1, 1)),
            dimension_numbers=('NCHW', 'OIHW', 'NCHW'),
            precision=jax.lax.Precision.HIGHEST)
        return y + b[None, :, None, None]

    y1 = conv(xup, params["w1"], params["b1"])
    cat = jnp.concatenate([y1, skip], axis=1)
    y2 = jax.nn.relu(conv(cat, params["w2"], params["b2"]))
    y3 = jax.nn.relu(conv(y2, params["w3"], params["b3"]))
    return y3


if __name__ == "__main__":
    key = jax.random.PRNGKey(0)
    kx, ks, kp = jax.random.split(key, 3)

    N, C, H, W = 2, 4, 16, 16
    x = jax.random.normal(kx, (N, C, H, W), jnp.float32)                    # input
    skip = jax.random.normal(ks, (N, C // 2, 2 * H, 2 * W), jnp.float32)    # skip connection
    params = init_params(kp, C)

    # Snap test data / weights to bf16-representable f32 so the fp32-HIGHEST reference
    # isolates the kernel's bf16-MXU rounding (intermediate storage) from input quantization.
    q = lambda a: a.astype(jnp.bfloat16).astype(jnp.float32)
    x, skip = q(x), q(skip)
    params = {k: q(v) for k, v in params.items()}

    fwd = jax.jit(expanding_block_forward)
    out = fwd(x, skip, params)
    jax.block_until_ready(out)
    assert out.shape == (N, C // 2, 2 * H, 2 * W), out.shape

    ref = _reference_forward(x, skip, params)
    err = float(jnp.max(jnp.abs(out - ref)))
    # 3e-2 tolerance reflects bf16 MXU operands / bf16-stored intermediates (f32 accumulation).
    assert err < 3e-2, f"max abs error vs reference: {err}"
    print("KERNEL_OK")
</pallas_src>

<mosaic_0001>
module attributes {stable_mosaic.version = 11 : i64} {
  func.func @_fused_kernel(%arg0: i32, %arg1: memref<1x8x256xbf16, #tpu.memory_space<vmem>>, %arg2: memref<1x8x1536xbf16, #tpu.memory_space<vmem>>, %arg3: memref<256x1280xbf16, #tpu.memory_space<vmem>>, %arg4: memref<9x8x8xbf16, #tpu.memory_space<vmem>>, %arg5: memref<8x1xf32, #tpu.memory_space<vmem>>, %arg6: memref<18x8x8xbf16, #tpu.memory_space<vmem>>, %arg7: memref<8x1xf32, #tpu.memory_space<vmem>>, %arg8: memref<9x8x8xbf16, #tpu.memory_space<vmem>>, %arg9: memref<8x1xf32, #tpu.memory_space<vmem>>, %arg10: memref<1x1280xf32, #tpu.memory_space<vmem>>, %arg11: memref<1x8x1280xf32, #tpu.memory_space<vmem>>, %arg12: memref<8x1536xbf16, #tpu.memory_space<vmem>>, %arg13: memref<8x1536xbf16, #tpu.memory_space<vmem>>, %arg14: memref<8x1536xbf16, #tpu.memory_space<vmem>>) attributes {dimension_semantics = [#tpu.dimension_semantics<parallel>], iteration_bounds = array<i64: 2>, scalar_prefetch = 0 : i64, scratch_operands = 3 : i64, tpu.core_type = #tpu.core_type<tc>, window_params = [{transform_indices = @transform_0, window_bounds = array<i64: 1, 8, 256>}, {transform_indices = @transform_1, window_bounds = array<i64: 1, 8, 1536>}, {pipeline_mode = #tpu.pipeline_mode<synchronous>, transform_indices = @transform_2, window_bounds = array<i64: 256, 1280>}, {pipeline_mode = #tpu.pipeline_mode<synchronous>, transform_indices = @transform_3, window_bounds = array<i64: 9, 8, 8>}, {pipeline_mode = #tpu.pipeline_mode<synchronous>, transform_indices = @transform_4, window_bounds = array<i64: 8, 1>}, {pipeline_mode = #tpu.pipeline_mode<synchronous>, transform_indices = @transform_5, window_bounds = array<i64: 18, 8, 8>}, {pipeline_mode = #tpu.pipeline_mode<synchronous>, transform_indices = @transform_6, window_bounds = array<i64: 8, 1>}, {pipeline_mode = #tpu.pipeline_mode<synchronous>, transform_indices = @transform_7, window_bounds = array<i64: 9, 8, 8>}, {pipeline_mode = #tpu.pipeline_mode<synchronous>, transform_indices = @transform_8, window_bounds = array<i64: 8, 1>}, {pipeline_mode = #tpu.pipeline_mode<synchronous>, transform_indices = @transform_9, window_bounds = array<i64: 1, 1280>}, {transform_indices = @transform_10, window_bounds = array<i64: 1, 8, 1280>}]} {
    %cst = arith.constant 0.000000e+00 : bf16
    %0 = vector.broadcast %cst : bf16 to vector<8x128xbf16>
    %c0 = arith.constant 0 : index
    %c0_0 = arith.constant 0 : index
    %1 = vector.load %arg12[%c0, %c0_0] : memref<8x1536xbf16, #tpu.memory_space<vmem>>, vector<8x128xbf16>
    tpu.vector_store %arg12[%c0, %c0_0], %0 {strides = array<i32>} : memref<8x1536xbf16, #tpu.memory_space<vmem>>, vector<8x128xbf16>,
    %cst_1 = arith.constant 0.000000e+00 : bf16
    %2 = vector.broadcast %cst_1 : bf16 to vector<8x128xbf16>
    %c0_2 = arith.constant 0 : index
    %c1408 = arith.constant 1408 : index
    %3 = vector.load %arg12[%c0_2, %c1408] : memref<8x1536xbf16, #tpu.memory_space<vmem>>, vector<8x128xbf16>
    tpu.vector_store %arg12[%c0_2, %c1408], %2 {strides = array<i32>} : memref<8x1536xbf16, #tpu.memory_space<vmem>>, vector<8x128xbf16>,
    %cst_3 = arith.constant 0.000000e+00 : bf16
    %4 = vector.broadcast %cst_3 : bf16 to vector<8x128xbf16>
    %c0_4 = arith.constant 0 : index
    %c0_5 = arith.constant 0 : index
    %5 = vector.load %arg13[%c0_4, %c0_5] : memref<8x1536xbf16, #tpu.memory_space<vmem>>, vector<8x128xbf16>
    tpu.vector_store %arg13[%c0_4, %c0_5], %4 {strides = array<i32>} : memref<8x1536xbf16, #tpu.memory_space<vmem>>, vector<8x128xbf16>,
    %cst_6 = arith.constant 0.000000e+00 : bf16
    %6 = vector.broadcast %cst_6 : bf16 to vector<8x128xbf16>
    %c0_7 = arith.constant 0 : index
    %c1408_8 = arith.constant 1408 : index
    %7 = vector.load %arg13[%c0_7, %c1408_8] : memref<8x1536xbf16, #tpu.memory_space<vmem>>, vector<8x128xbf16>
    tpu.vector_store %arg13[%c0_7, %c1408_8], %6 {strides = array<i32>} : memref<8x1536xbf16, #tpu.memory_space<vmem>>, vector<8x128xbf16>,
    %cst_9 = arith.constant 0.000000e+00 : bf16
    %8 = vector.broadcast %cst_9 : bf16 to vector<8x128xbf16>
    %c0_10 = arith.constant 0 : index
    %c0_11 = arith.constant 0 : index
    %9 = vector.load %arg14[%c0_10, %c0_11] : memref<8x1536xbf16, #tpu.memory_space<vmem>>, vector<8x128xbf16>
    tpu.vector_store %arg14[%c0_10, %c0_11], %8 {strides = array<i32>} : memref<8x1536xbf16, #tpu.memory_space<vmem>>, vector<8x128xbf16>,
    %cst_12 = arith.constant 0.000000e+00 : bf16
    %10 = vector.broadcast %cst_12 : bf16 to vector<8x128xbf16>
    %c0_13 = arith.constant 0 : index
    %c1408_14 = arith.constant 1408 : index
    %11 = vector.load %arg14[%c0_13, %c1408_14] : memref<8x1536xbf16, #tpu.memory_space<vmem>>, vector<8x128xbf16>
    tpu.vector_store %arg14[%c0_13, %c1408_14], %10 {strides = array<i32>} : memref<8x1536xbf16, #tpu.memory_space<vmem>>, vector<8x128xbf16>,
    %c0_15 = arith.constant 0 : index
    %c0_16 = arith.constant 0 : index
    %c0_17 = arith.constant 0 : index
    %12 = vector.load %arg1[%c0_15, %c0_16, %c0_17] : memref<1x8x256xbf16, #tpu.memory_space<vmem>>, vector<1x8x256xbf16>
    %13 = vector.shape_cast %12 : vector<1x8x256xbf16> to vector<8x256xbf16>
    %c0_18 = arith.constant 0 : index
    %c0_19 = arith.constant 0 : index
    %14 = vector.load %arg3[%c0_18, %c0_19] : memref<256x1280xbf16, #tpu.memory_space<vmem>>, vector<256x1280xbf16>
    %cst_20 = arith.constant dense<0.000000e+00> : vector<8x1280xf32>
    %15 = tpu.matmul %13, %14, %cst_20 {dimension_numbers = #tpu.dot_dimension_numbers<[1], [0], [0], [1], [0, 0, 1, 1], [], []>} : vector<8x256xbf16>, vector<256x1280xbf16>, vector<8x1280xf32> -> vector<8x1280xf32>
    %16 = arith.truncf %15 : vector<8x1280xf32> to vector<8x1280xbf16>
    %c0_21 = arith.constant 0 : index
    %c128 = arith.constant 128 : index
    %17 = vector.load %arg12[%c0_21, %c128] : memref<8x1536xbf16, #tpu.memory_space<vmem>>, vector<8x1280xbf16>
    tpu.vector_store %arg12[%c0_21, %c128], %16 {strides = array<i32>} : memref<8x1536xbf16, #tpu.memory_space<vmem>>, vector<8x1280xbf16>,
    %cst_22 = arith.constant 0.000000e+00 : f32
    %18 = vector.broadcast %cst_22 : f32 to vector<8x1280xf32>
    %c0_23 = arith.constant 0 : index
    %c93 = arith.constant 93 : index
    %19 = vector.load %arg12[%c0_23, %c93] : memref<8x1536xbf16, #tpu.memory_space<vmem>>, vector<8x1280xbf16>
    %c0_24 = arith.constant 0 : index
    %c0_25 = arith.constant 0 : index
    %c0_26 = arith.constant 0 : index
    %20 = vector.load %arg4[%c0_24, %c0_25, %c0_26] : memref<9x8x8xbf16, #tpu.memory_space<vmem>>, vector<1x8x8xbf16>
    %21 = vector.shape_cast %20 : vector<1x8x8xbf16> to vector<8x8xbf16>
    %cst_27 = arith.constant dense<0.000000e+00> : vector<8x1280xf32>
    %22 = tpu.matmul %21, %19, %cst_27 {dimension_numbers = #tpu.dot_dimension_numbers<[1], [0], [0], [1], [0, 0, 1, 1], [], []>} : vector<8x8xbf16>, vector<8x1280xbf16>, vector<8x1280xf32> -> vector<8x1280xf32>
    %23 = arith.addf %18, %22 : vector<8x1280xf32>
    %c0_28 = arith.constant 0 : index
    %c94 = arith.constant 94 : index
    %24 = vector.load %arg12[%c0_28, %c94] : memref<8x1536xbf16, #tpu.memory_space<vmem>>, vector<8x1280xbf16>
    %c1 = arith.constant 1 : index
    %c0_29 = arith.constant 0 : index
    %c0_30 = arith.constant 0 : index
    %25 = vector.load %arg4[%c1, %c0_29, %c0_30] : memref<9x8x8xbf16, #tpu.memory_space<vmem>>, vector<1x8x8xbf16>
    %26 = vector.shape_cast %25 : vector<1x8x8xbf16> to vector<8x8xbf16>
    %cst_31 = arith.constant dense<0.000000e+00> : vector<8x1280xf32>
    %27 = tpu.matmul %26, %24, %cst_31 {dimension_numbers = #tpu.dot_dimension_numbers<[1], [0], [0], [1], [0, 0, 1, 1], [], []>} : vector<8x8xbf16>, vector<8x1280xbf16>, vector<8x1280xf32> -> vector<8x1280xf32>
    %28 = arith.addf %23, %27 : vector<8x1280xf32>
    %c0_32 = arith.constant 0 : index
    %c95 = arith.constant 95 : index
    %29 = vector.load %arg12[%c0_32, %c95] : memref<8x1536xbf16, #tpu.memory_space<vmem>>, vector<8x1280xbf16>
    %c2 = arith.constant 2 : index
    %c0_33 = arith.constant 0 : index
    %c0_34 = arith.constant 0 : index
    %30 = vector.load %arg4[%c2, %c0_33, %c0_34] : memref<9x8x8xbf16, #tpu.memory_space<vmem>>, vector<1x8x8xbf16>
    %31 = vector.shape_cast %30 : vector<1x8x8xbf16> to vector<8x8xbf16>
    %cst_35 = arith.constant dense<0.000000e+00> : vector<8x1280xf32>
    %32 = tpu.matmul %31, %29, %cst_35 {dimension_numbers = #tpu.dot_dimension_numbers<[1], [0], [0], [1], [0, 0, 1, 1], [], []>} : vector<8x8xbf16>, vector<8x1280xbf16>, vector<8x1280xf32> -> vector<8x1280xf32>
    %33 = arith.addf %28, %32 : vector<8x1280xf32>
    %c0_36 = arith.constant 0 : index
    %c127 = arith.constant 127 : index
    %34 = vector.load %arg12[%c0_36, %c127] : memref<8x1536xbf16, #tpu.memory_space<vmem>>, vector<8x1280xbf16>
    %c3 = arith.constant 3 : index
    %c0_37 = arith.constant 0 : index
    %c0_38 = arith.constant 0 : index
    %35 = vector.load %arg4[%c3, %c0_37, %c0_38] : memref<9x8x8xbf16, #tpu.memory_space<vmem>>, vector<1x8x8xbf16>
    %36 = vector.shape_cast %35 : vector<1x8x8xbf16> to vector<8x8xbf16>
    %cst_39 = arith.constant dense<0.000000e+00> : vector<8x1280xf32>
    %37 = tpu.matmul %36, %34, %cst_39 {dimension_numbers = #tpu.dot_dimension_numbers<[1], [0], [0], [1], [0, 0, 1, 1], [], []>} : vector<8x8xbf16>, vector<8x1280xbf16>, vector<8x1280xf32> -> vector<8x1280xf32>
    %38 = arith.addf %33, %37 : vector<8x1280xf32>
    %c0_40 = arith.constant 0 : index
    %c128_41 = arith.constant 128 : index
    %39 = vector.load %arg12[%c0_40, %c128_41] : memref<8x1536xbf16, #tpu.memory_space<vmem>>, vector<8x1280xbf16>
    %c4 = arith.constant 4 : index
    %c0_42 = arith.constant 0 : index
    %c0_43 = arith.constant 0 : index
    %40 = vector.load %arg4[%c4, %c0_42, %c0_43] : memref<9x8x8xbf16, #tpu.memory_space<vmem>>, vector<1x8x8xbf16>
    %41 = vector.shape_cast %40 : vector<1x8x8xbf16> to vector<8x8xbf16>
    %cst_44 = arith.constant dense<0.000000e+00> : vector<8x1280xf32>
    %42 = tpu.matmul %41, %39, %cst_44 {dimension_numbers = #tpu.dot_dimension_numbers<[1], [0], [0], [1], [0, 0, 1, 1], [], []>} : vector<8x8xbf16>, vector<8x1280xbf16>, vector<8x1280xf32> -> vector<8x1280xf32>
    %43 = arith.addf %38, %42 : vector<8x1280xf32>
    %c0_45 = arith.constant 0 : index
    %c129 = arith.constant 129 : index
    %44 = vector.load %arg12[%c0_45, %c129] : memref<8x1536xbf16, #tpu.memory_space<vmem>>, vector<8x1280xbf16>
    %c5 = arith.constant 5 : index
    %c0_46 = arith.constant 0 : index
    %c0_47 = arith.constant 0 : index
    %45 = vector.load %arg4[%c5, %c0_46, %c0_47] : memref<9x8x8xbf16, #tpu.memory_space<vmem>>, vector<1x8x8xbf16>
    %46 = vector.shape_cast %45 : vector<1x8x8xbf16> to vector<8x8xbf16>
    %cst_48 = arith.constant dense<0.000000e+00> : vector<8x1280xf32>
    %47 = tpu.matmul %46, %44, %cst_48 {dimension_numbers = #tpu.dot_dimension_numbers<[1], [0], [0], [1], [0, 0, 1, 1], [], []>} : vector<8x8xbf16>, vector<8x1280xbf16>, vector<8x1280xf32> -> vector<8x1280xf32>
    %48 = arith.addf %43, %47 : vector<8x1280xf32>
    %c0_49 = arith.constant 0 : index
    %c161 = arith.constant 161 : index
    %49 = vector.load %arg12[%c0_49, %c161] : memref<8x1536xbf16, #tpu.memory_space<vmem>>, vector<8x1280xbf16>
    %c6 = arith.constant 6 : index
    %c0_50 = arith.constant 0 : index
    %c0_51 = arith.constant 0 : index
    %50 = vector.load %arg4[%c6, %c0_50, %c0_51] : memref<9x8x8xbf16, #tpu.memory_space<vmem>>, vector<1x8x8xbf16>
    %51 = vector.shape_cast %50 : vector<1x8x8xbf16> to vector<8x8xbf16>
    %cst_52 = arith.constant dense<0.000000e+00> : vector<8x1280xf32>
    %52 = tpu.matmul %51, %49, %cst_52 {dimension_numbers = #tpu.dot_dimension_numbers<[1], [0], [0], [1], [0, 0, 1, 1], [], []>} : vector<8x8xbf16>, vector<8x1280xbf16>, vector<8x1280xf32> -> vector<8x1280xf32>
    %53 = arith.addf %48, %52 : vector<8x1280xf32>
    %c0_53 = arith.constant 0 : index
    %c162 = arith.constant 162 : index
    %54 = vector.load %arg12[%c0_53, %c162] : memref<8x1536xbf16, #tpu.memory_space<vmem>>, vector<8x1280xbf16>
    %c7 = arith.constant 7 : index
    %c0_54 = arith.constant 0 : index
    %c0_55 = arith.constant 0 : index
    %55 = vector.load %arg4[%c7, %c0_54, %c0_55] : memref<9x8x8xbf16, #tpu.memory_space<vmem>>, vector<1x8x8xbf16>
    %56 = vector.shape_cast %55 : vector<1x8x8xbf16> to vector<8x8xbf16>
    %cst_56 = arith.constant dense<0.000000e+00> : vector<8x1280xf32>
    %57 = tpu.matmul %56, %54, %cst_56 {dimension_numbers = #tpu.dot_dimension_numbers<[1], [0], [0], [1], [0, 0, 1, 1], [], []>} : vector<8x8xbf16>, vector<8x1280xbf16>, vector<8x1280xf32> -> vector<8x1280xf32>
    %58 = arith.addf %53, %57 : vector<8x1280xf32>
    %c0_57 = arith.constant 0 : index
    %c163 = arith.constant 163 : index
    %59 = vector.load %arg12[%c0_57, %c163] : memref<8x1536xbf16, #tpu.memory_space<vmem>>, vector<8x1280xbf16>
    %c8 = arith.constant 8 : index
    %c0_58 = arith.constant 0 : index
    %c0_59 = arith.constant 0 : index
    %60 = vector.load %arg4[%c8, %c0_58, %c0_59] : memref<9x8x8xbf16, #tpu.memory_space<vmem>>, vector<1x8x8xbf16>
    %61 = vector.shape_cast %60 : vector<1x8x8xbf16> to vector<8x8xbf16>
    %cst_60 = arith.constant dense<0.000000e+00> : vector<8x1280xf32>
    %62 = tpu.matmul %61, %59, %cst_60 {dimension_numbers = #tpu.dot_dimension_numbers<[1], [0], [0], [1], [0, 0, 1, 1], [], []>} : vector<8x8xbf16>, vector<8x1280xbf16>, vector<8x1280xf32> -> vector<8x1280xf32>
    %63 = arith.addf %58, %62 : vector<8x1280xf32>
    %c0_61 = arith.constant 0 : index
    %c0_62 = arith.constant 0 : index
    %64 = vector.load %arg5[%c0_61, %c0_62] : memref<8x1xf32, #tpu.memory_space<vmem>>, vector<8x1xf32>
    %65 = vector.broadcast %64 : vector<8x1xf32> to vector<8x1280xf32>
    %66 = arith.addf %63, %65 : vector<8x1280xf32>
    %c0_63 = arith.constant 0 : index
    %c0_64 = arith.constant 0 : index
    %67 = vector.load %arg10[%c0_63, %c0_64] : memref<1x1280xf32, #tpu.memory_space<vmem>>, vector<1x1280xf32>
    %68 = vector.broadcast %67 : vector<1x1280xf32> to vector<8x1280xf32>
    %69 = arith.mulf %66, %68 : vector<8x1280xf32>
    %70 = arith.truncf %69 : vector<8x1280xf32> to vector<8x1280xbf16>
    %c0_65 = arith.constant 0 : index
    %c128_66 = arith.constant 128 : index
    %71 = vector.load %arg13[%c0_65, %c128_66] : memref<8x1536xbf16, #tpu.memory_space<vmem>>, vector<8x1280xbf16>
    tpu.vector_store %arg13[%c0_65, %c128_66], %70 {strides = array<i32>} : memref<8x1536xbf16, #tpu.memory_space<vmem>>, vector<8x1280xbf16>,
    %cst_67 = arith.constant 0.000000e+00 : f32
    %72 = vector.broadcast %cst_67 : f32 to vector<8x1280xf32>
    %c0_68 = arith.constant 0 : index
    %c93_69 = arith.constant 93 : index
    %73 = vector.load %arg13[%c0_68, %c93_69] : memref<8x1536xbf16, #tpu.memory_space<vmem>>, vector<8x1280xbf16>
    %c0_70 = arith.constant 0 : index
    %c0_71 = arith.constant 0 : index
    %c0_72 = arith.constant 0 : index
    %74 = vector.load %arg6[%c0_70, %c0_71, %c0_72] : memref<18x8x8xbf16, #tpu.memory_space<vmem>>, vector<1x8x8xbf16>
    %75 = vector.shape_cast %74 : vector<1x8x8xbf16> to vector<8x8xbf16>
    %cst_73 = arith.constant dense<0.000000e+00> : vector<8x1280xf32>
    %76 = tpu.matmul %75, %73, %cst_73 {dimension_numbers = #tpu.dot_dimension_numbers<[1], [0], [0], [1], [0, 0, 1, 1], [], []>} : vector<8x8xbf16>, vector<8x1280xbf16>, vector<8x1280xf32> -> vector<8x1280xf32>
    %77 = arith.addf %72, %76 : vector<8x1280xf32>
    %c0_74 = arith.constant 0 : index
    %c94_75 = arith.constant 94 : index
    %78 = vector.load %arg13[%c0_74, %c94_75] : memref<8x1536xbf16, #tpu.memory_space<vmem>>, vector<8x1280xbf16>
    %c1_76 = arith.constant 1 : index
    %c0_77 = arith.constant 0 : index
    %c0_78 = arith.constant 0 : index
    %79 = vector.load %arg6[%c1_76, %c0_77, %c0_78] : memref<18x8x8xbf16, #tpu.memory_space<vmem>>, vector<1x8x8xbf16>
    %80 = vector.shape_cast %79 : vector<1x8x8xbf16> to vector<8x8xbf16>
    %cst_79 = arith.constant dense<0.000000e+00> : vector<8x1280xf32>
    %81 = tpu.matmul %80, %78, %cst_79 {dimension_numbers = #tpu.dot_dimension_numbers<[1], [0], [0], [1], [0, 0, 1, 1], [], []>} : vector<8x8xbf16>, vector<8x1280xbf16>, vector<8x1280xf32> -> vector<8x1280xf32>
    %82 = arith.addf %77, %81 : vector<8x1280xf32>
    %c0_80 = arith.constant 0 : index
    %c95_81 = arith.constant 95 : index
    %83 = vector.load %arg13[%c0_80, %c95_81] : memref<8x1536xbf16, #tpu.memory_space<vmem>>, vector<8x1280xbf16>
    %c2_82 = arith.constant 2 : index
    %c0_83 = arith.constant 0 : index
    %c0_84 = arith.constant 0 : index
    %84 = vector.load %arg6[%c2_82, %c0_83, %c0_84] : memref<18x8x8xbf16, #tpu.memory_space<vmem>>, vector<1x8x8xbf16>
    %85 = vector.shape_cast %84 : vector<1x8x8xbf16> to vector<8x8xbf16>
    %cst_85 = arith.constant dense<0.000000e+00> : vector<8x1280xf32>
    %86 = tpu.matmul %85, %83, %cst_85 {dimension_numbers = #tpu.dot_dimension_numbers<[1], [0], [0], [1], [0, 0, 1, 1], [], []>} : vector<8x8xbf16>, vector<8x1280xbf16>, vector<8x1280xf32> -> vector<8x1280xf32>
    %87 = arith.addf %82, %86 : vector<8x1280xf32>
    %c0_86 = arith.constant 0 : index
    %c127_87 = arith.constant 127 : index
    %88 = vector.load %arg13[%c0_86, %c127_87] : memref<8x1536xbf16, #tpu.memory_space<vmem>>, vector<8x1280xbf16>
    %c3_88 = arith.constant 3 : index
    %c0_89 = arith.constant 0 : index
    %c0_90 = arith.constant 0 : index
    %89 = vector.load %arg6[%c3_88, %c0_89, %c0_90] : memref<18x8x8xbf16, #tpu.memory_space<vmem>>, vector<1x8x8xbf16>
    %90 = vector.shape_cast %89 : vector<1x8x8xbf16> to vector<8x8xbf16>
    %cst_91 = arith.constant dense<0.000000e+00> : vector<8x1280xf32>
    %91 = tpu.matmul %90, %88, %cst_91 {dimension_numbers = #tpu.dot_dimension_numbers<[1], [0], [0], [1], [0, 0, 1, 1], [], []>} : vector<8x8xbf16>, vector<8x1280xbf16>, vector<8x1280xf32> -> vector<8x1280xf32>
    %92 = arith.addf %87, %91 : vector<8x1280xf32>
    %c0_92 = arith.constant 0 : index
    %c128_93 = arith.constant 128 : index
    %93 = vector.load %arg13[%c0_92, %c128_93] : memref<8x1536xbf16, #tpu.memory_space<vmem>>, vector<8x1280xbf16>
    %c4_94 = arith.constant 4 : index
    %c0_95 = arith.constant 0 : index
    %c0_96 = arith.constant 0 : index
    %94 = vector.load %arg6[%c4_94, %c0_95, %c0_96] : memref<18x8x8xbf16, #tpu.memory_space<vmem>>, vector<1x8x8xbf16>
    %95 = vector.shape_cast %94 : vector<1x8x8xbf16> to vector<8x8xbf16>
    %cst_97 = arith.constant dense<0.000000e+00> : vector<8x1280xf32>
    %96 = tpu.matmul %95, %93, %cst_97 {dimension_numbers = #tpu.dot_dimension_numbers<[1], [0], [0], [1], [0, 0, 1, 1], [], []>} : vector<8x8xbf16>, vector<8x1280xbf16>, vector<8x1280xf32> -> vector<8x1280xf32>
    %97 = arith.addf %92, %96 : vector<8x1280xf32>
    %c0_98 = arith.constant 0 : index
    %c129_99 = arith.constant 129 : index
    %98 = vector.load %arg13[%c0_98, %c129_99] : memref<8x1536xbf16, #tpu.memory_space<vmem>>, vector<8x1280xbf16>
    %c5_100 = arith.constant 5 : index
    %c0_101 = arith.constant 0 : index
    %c0_102 = arith.constant 0 : index
    %99 = vector.load %arg6[%c5_100, %c0_101, %c0_102] : memref<18x8x8xbf16, #tpu.memory_space<vmem>>, vector<1x8x8xbf16>
    %100 = vector.shape_cast %99 : vector<1x8x8xbf16> to vector<8x8xbf16>
    %cst_103 = arith.constant dense<0.000000e+00> : vector<8x1280xf32>
    %101 = tpu.matmul %100, %98, %cst_103 {dimension_numbers = #tpu.dot_dimension_numbers<[1], [0], [0], [1], [0, 0, 1, 1], [], []>} : vector<8x8xbf16>, vector<8x1280xbf16>, vector<8x1280xf32> -> vector<8x1280xf32>
    %102 = arith.addf %97, %101 : vector<8x1280xf32>
    %c0_104 = arith.constant 0 : index
    %c161_105 = arith.constant 161 : index
    %103 = vector.load %arg13[%c0_104, %c161_105] : memref<8x1536xbf16, #tpu.memory_space<vmem>>, vector<8x1280xbf16>
    %c6_106 = arith.constant 6 : index
    %c0_107 = arith.constant 0 : index
    %c0_108 = arith.constant 0 : index
    %104 = vector.load %arg6[%c6_106, %c0_107, %c0_108] : memref<18x8x8xbf16, #tpu.memory_space<vmem>>, vector<1x8x8xbf16>
    %105 = vector.shape_cast %104 : vector<1x8x8xbf16> to vector<8x8xbf16>
    %cst_109 = arith.constant dense<0.000000e+00> : vector<8x1280xf32>
    %106 = tpu.matmul %105, %103, %cst_109 {dimension_numbers = #tpu.dot_dimension_numbers<[1], [0], [0], [1], [0, 0, 1, 1], [], []>} : vector<8x8xbf16>, vector<8x1280xbf16>, vector<8x1280xf32> -> vector<8x1280xf32>
    %107 = arith.addf %102, %106 : vector<8x1280xf32>
    %c0_110 = arith.constant 0 : index
    %c162_111 = arith.constant 162 : index
    %108 = vector.load %arg13[%c0_110, %c162_111] : memref<8x1536xbf16, #tpu.memory_space<vmem>>, vector<8x1280xbf16>
    %c7_112 = arith.constant 7 : index
    %c0_113 = arith.constant 0 : index
    %c0_114 = arith.constant 0 : index
    %109 = vector.load %arg6[%c7_112, %c0_113, %c0_114] : memref<18x8x8xbf16, #tpu.memory_space<vmem>>, vector<1x8x8xbf16>
    %110 = vector.shape_cast %109 : vector<1x8x8xbf16> to vector<8x8xbf16>
    %cst_115 = arith.constant dense<0.000000e+00> : vector<8x1280xf32>
    %111 = tpu.matmul %110, %108, %cst_115 {dimension_numbers = #tpu.dot_dimension_numbers<[1], [0], [0], [1], [0, 0, 1, 1], [], []>} : vector<8x8xbf16>, vector<8x1280xbf16>, vector<8x1280xf32> -> vector<8x1280xf32>
    %112 = arith.addf %107, %111 : vector<8x1280xf32>
    %c0_116 = arith.constant 0 : index
    %c163_117 = arith.constant 163 : index
    %113 = vector.load %arg13[%c0_116, %c163_117] : memref<8x1536xbf16, #tpu.memory_space<vmem>>, vector<8x1280xbf16>
    %c8_118 = arith.constant 8 : index
    %c0_119 = arith.constant 0 : index
    %c0_120 = arith.constant 0 : index
    %114 = vector.load %arg6[%c8_118, %c0_119, %c0_120] : memref<18x8x8xbf16, #tpu.memory_space<vmem>>, vector<1x8x8xbf16>
    %115 = vector.shape_cast %114 : vector<1x8x8xbf16> to vector<8x8xbf16>
    %cst_121 = arith.constant dense<0.000000e+00> : vector<8x1280xf32>
    %116 = tpu.matmul %115, %113, %cst_121 {dimension_numbers = #tpu.dot_dimension_numbers<[1], [0], [0], [1], [0, 0, 1, 1], [], []>} : vector<8x8xbf16>, vector<8x1280xbf16>, vector<8x1280xf32> -> vector<8x1280xf32>
    %117 = arith.addf %112, %116 : vector<8x1280xf32>
    %c0_122 = arith.constant 0 : index
    %c0_123 = arith.constant 0 : index
    %c93_124 = arith.constant 93 : index
    %118 = vector.load %arg2[%c0_122, %c0_123, %c93_124] : memref<1x8x1536xbf16, #tpu.memory_space<vmem>>, vector<1x8x1280xbf16>
    %119 = vector.shape_cast %118 : vector<1x8x1280xbf16> to vector<8x1280xbf16>
    %c9 = arith.constant 9 : index
    %c0_125 = arith.constant 0 : index
    %c0_126 = arith.constant 0 : index
    %120 = vector.load %arg6[%c9, %c0_125, %c0_126] : memref<18x8x8xbf16, #tpu.memory_space<vmem>>, vector<1x8x8xbf16>
    %121 = vector.shape_cast %120 : vector<1x8x8xbf16> to vector<8x8xbf16>
    %cst_127 = arith.constant dense<0.000000e+00> : vector<8x1280xf32>
    %122 = tpu.matmul %121, %119, %cst_127 {dimension_numbers = #tpu.dot_dimension_numbers<[1], [0], [0], [1], [0, 0, 1, 1], [], []>} : vector<8x8xbf16>, vector<8x1280xbf16>, vector<8x1280xf32> -> vector<8x1280xf32>
    %123 = arith.addf %117, %122 : vector<8x1280xf32>
    %c0_128 = arith.constant 0 : index
    %c0_129 = arith.constant 0 : index
    %c94_130 = arith.constant 94 : index
    %124 = vector.load %arg2[%c0_128, %c0_129, %c94_130] : memref<1x8x1536xbf16, #tpu.memory_space<vmem>>, vector<1x8x1280xbf16>
    %125 = vector.shape_cast %124 : vector<1x8x1280xbf16> to vector<8x1280xbf16>
    %c10 = arith.constant 10 : index
    %c0_131 = arith.constant 0 : index
    %c0_132 = arith.constant 0 : index
    %126 = vector.load %arg6[%c10, %c0_131, %c0_132] : memref<18x8x8xbf16, #tpu.memory_space<vmem>>, vector<1x8x8xbf16>
    %127 = vector.shape_cast %126 : vector<1x8x8xbf16> to vector<8x8xbf16>
    %cst_133 = arith.constant dense<0.000000e+00> : vector<8x1280xf32>
    %128 = tpu.matmul %127, %125, %cst_133 {dimension_numbers = #tpu.dot_dimension_numbers<[1], [0], [0], [1], [0, 0, 1, 1], [], []>} : vector<8x8xbf16>, vector<8x1280xbf16>, vector<8x1280xf32> -> vector<8x1280xf32>
    %129 = arith.addf %123, %128 : vector<8x1280xf32>
    %c0_134 = arith.constant 0 : index
    %c0_135 = arith.constant 0 : index
    %c95_136 = arith.constant 95 : index
    %130 = vector.load %arg2[%c0_134, %c0_135, %c95_136] : memref<1x8x1536xbf16, #tpu.memory_space<vmem>>, vector<1x8x1280xbf16>
    %131 = vector.shape_cast %130 : vector<1x8x1280xbf16> to vector<8x1280xbf16>
    %c11 = arith.constant 11 : index
    %c0_137 = arith.constant 0 : index
    %c0_138 = arith.constant 0 : index
    %132 = vector.load %arg6[%c11, %c0_137, %c0_138] : memref<18x8x8xbf16, #tpu.memory_space<vmem>>, vector<1x8x8xbf16>
    %133 = vector.shape_cast %132 : vector<1x8x8xbf16> to vector<8x8xbf16>
    %cst_139 = arith.constant dense<0.000000e+00> : vector<8x1280xf32>
    %134 = tpu.matmul %133, %131, %cst_139 {dimension_numbers = #tpu.dot_dimension_numbers<[1], [0], [0], [1], [0, 0, 1, 1], [], []>} : vector<8x8xbf16>, vector<8x1280xbf16>, vector<8x1280xf32> -> vector<8x1280xf32>
    %135 = arith.addf %129, %134 : vector<8x1280xf32>
    %c0_140 = arith.constant 0 : index
    %c0_141 = arith.constant 0 : index
    %c127_142 = arith.constant 127 : index
    %136 = vector.load %arg2[%c0_140, %c0_141, %c127_142] : memref<1x8x1536xbf16, #tpu.memory_space<vmem>>, vector<1x8x1280xbf16>
    %137 = vector.shape_cast %136 : vector<1x8x1280xbf16> to vector<8x1280xbf16>
    %c12 = arith.constant 12 : index
    %c0_143 = arith.constant 0 : index
    %c0_144 = arith.constant 0 : index
    %138 = vector.load %arg6[%c12, %c0_143, %c0_144] : memref<18x8x8xbf16, #tpu.memory_space<vmem>>, vector<1x8x8xbf16>
    %139 = vector.shape_cast %138 : vector<1x8x8xbf16> to vector<8x8xbf16>
    %cst_145 = arith.constant dense<0.000000e+00> : vector<8x1280xf32>
    %140 = tpu.matmul %139, %137, %cst_145 {dimension_numbers = #tpu.dot_dimension_numbers<[1], [0], [0], [1], [0, 0, 1, 1], [], []>} : vector<8x8xbf16>, vector<8x1280xbf16>, vector<8x1280xf32> -> vector<8x1280xf32>
    %141 = arith.addf %135, %140 : vector<8x1280xf32>
    %c0_146 = arith.constant 0 : index
    %c0_147 = arith.constant 0 : index
    %c128_148 = arith.constant 128 : index
    %142 = vector.load %arg2[%c0_146, %c0_147, %c128_148] : memref<1x8x1536xbf16, #tpu.memory_space<vmem>>, vector<1x8x1280xbf16>
    %143 = vector.shape_cast %142 : vector<1x8x1280xbf16> to vector<8x1280xbf16>
    %c13 = arith.constant 13 : index
    %c0_149 = arith.constant 0 : index
    %c0_150 = arith.constant 0 : index
    %144 = vector.load %arg6[%c13, %c0_149, %c0_150] : memref<18x8x8xbf16, #tpu.memory_space<vmem>>, vector<1x8x8xbf16>
    %145 = vector.shape_cast %144 : vector<1x8x8xbf16> to vector<8x8xbf16>
    %cst_151 = arith.constant dense<0.000000e+00> : vector<8x1280xf32>
    %146 = tpu.matmul %145, %143, %cst_151 {dimension_numbers = #tpu.dot_dimension_numbers<[1], [0], [0], [1], [0, 0, 1, 1], [], []>} : vector<8x8xbf16>, vector<8x1280xbf16>, vector<8x1280xf32> -> vector<8x1280xf32>
    %147 = arith.addf %141, %146 : vector<8x1280xf32>
    %c0_152 = arith.constant 0 : index
    %c0_153 = arith.constant 0 : index
    %c129_154 = arith.constant 129 : index
    %148 = vector.load %arg2[%c0_152, %c0_153, %c129_154] : memref<1x8x1536xbf16, #tpu.memory_space<vmem>>, vector<1x8x1280xbf16>
    %149 = vector.shape_cast %148 : vector<1x8x1280xbf16> to vector<8x1280xbf16>
    %c14 = arith.constant 14 : index
    %c0_155 = arith.constant 0 : index
    %c0_156 = arith.constant 0 : index
    %150 = vector.load %arg6[%c14, %c0_155, %c0_156] : memref<18x8x8xbf16, #tpu.memory_space<vmem>>, vector<1x8x8xbf16>
    %151 = vector.shape_cast %150 : vector<1x8x8xbf16> to vector<8x8xbf16>
    %cst_157 = arith.constant dense<0.000000e+00> : vector<8x1280xf32>
    %152 = tpu.matmul %151, %149, %cst_157 {dimension_numbers = #tpu.dot_dimension_numbers<[1], [0], [0], [1], [0, 0, 1, 1], [], []>} : vector<8x8xbf16>, vector<8x1280xbf16>, vector<8x1280xf32> -> vector<8x1280xf32>
    %153 = arith.addf %147, %152 : vector<8x1280xf32>
    %c0_158 = arith.constant 0 : index
    %c0_159 = arith.constant 0 : index
    %c161_160 = arith.constant 161 : index
    %154 = vector.load %arg2[%c0_158, %c0_159, %c161_160] : memref<1x8x1536xbf16, #tpu.memory_space<vmem>>, vector<1x8x1280xbf16>
    %155 = vector.shape_cast %154 : vector<1x8x1280xbf16> to vector<8x1280xbf16>
    %c15 = arith.constant 15 : index
    %c0_161 = arith.constant 0 : index
    %c0_162 = arith.constant 0 : index
    %156 = vector.load %arg6[%c15, %c0_161, %c0_162] : memref<18x8x8xbf16, #tpu.memory_space<vmem>>, vector<1x8x8xbf16>
    %157 = vector.shape_cast %156 : vector<1x8x8xbf16> to vector<8x8xbf16>
    %cst_163 = arith.constant dense<0.000000e+00> : vector<8x1280xf32>
    %158 = tpu.matmul %157, %155, %cst_163 {dimension_numbers = #tpu.dot_dimension_numbers<[1], [0], [0], [1], [0, 0, 1, 1], [], []>} : vector<8x8xbf16>, vector<8x1280xbf16>, vector<8x1280xf32> -> vector<8x1280xf32>
    %159 = arith.addf %153, %158 : vector<8x1280xf32>
    %c0_164 = arith.constant 0 : index
    %c0_165 = arith.constant 0 : index
    %c162_166 = arith.constant 162 : index
    %160 = vector.load %arg2[%c0_164, %c0_165, %c162_166] : memref<1x8x1536xbf16, #tpu.memory_space<vmem>>, vector<1x8x1280xbf16>
    %161 = vector.shape_cast %160 : vector<1x8x1280xbf16> to vector<8x1280xbf16>
    %c16 = arith.constant 16 : index
    %c0_167 = arith.constant 0 : index
    %c0_168 = arith.constant 0 : index
    %162 = vector.load %arg6[%c16, %c0_167, %c0_168] : memref<18x8x8xbf16, #tpu.memory_space<vmem>>, vector<1x8x8xbf16>
    %163 = vector.shape_cast %162 : vector<1x8x8xbf16> to vector<8x8xbf16>
    %cst_169 = arith.constant dense<0.000000e+00> : vector<8x1280xf32>
    %164 = tpu.matmul %163, %161, %cst_169 {dimension_numbers = #tpu.dot_dimension_numbers<[1], [0], [0], [1], [0, 0, 1, 1], [], []>} : vector<8x8xbf16>, vector<8x1280xbf16>, vector<8x1280xf32> -> vector<8x1280xf32>
    %165 = arith.addf %159, %164 : vector<8x1280xf32>
    %c0_170 = arith.constant 0 : index
    %c0_171 = arith.constant 0 : index
    %c163_172 = arith.constant 163 : index
    %166 = vector.load %arg2[%c0_170, %c0_171, %c163_172] : memref<1x8x1536xbf16, #tpu.memory_space<vmem>>, vector<1x8x1280xbf16>
    %167 = vector.shape_cast %166 : vector<1x8x1280xbf16> to vector<8x1280xbf16>
    %c17 = arith.constant 17 : index
    %c0_173 = arith.constant 0 : index
    %c0_174 = arith.constant 0 : index
    %168 = vector.load %arg6[%c17, %c0_173, %c0_174] : memref<18x8x8xbf16, #tpu.memory_space<vmem>>, vector<1x8x8xbf16>
    %169 = vector.shape_cast %168 : vector<1x8x8xbf16> to vector<8x8xbf16>
    %cst_175 = arith.constant dense<0.000000e+00> : vector<8x1280xf32>
    %170 = tpu.matmul %169, %167, %cst_175 {dimension_numbers = #tpu.dot_dimension_numbers<[1], [0], [0], [1], [0, 0, 1, 1], [], []>} : vector<8x8xbf16>, vector<8x1280xbf16>, vector<8x1280xf32> -> vector<8x1280xf32>
    %171 = arith.addf %165, %170 : vector<8x1280xf32>
    %c0_176 = arith.constant 0 : index
    %c0_177 = arith.constant 0 : index
    %172 = vector.load %arg7[%c0_176, %c0_177] : memref<8x1xf32, #tpu.memory_space<vmem>>, vector<8x1xf32>
    %173 = vector.broadcast %172 : vector<8x1xf32> to vector<8x1280xf32>
    %174 = arith.addf %171, %173 : vector<8x1280xf32>
    %cst_178 = arith.constant 0.000000e+00 : f32
    %175 = vector.broadcast %cst_178 : f32 to vector<8x1280xf32>
    %176 = arith.maximumf %174, %175 : vector<8x1280xf32>
    %c0_179 = arith.constant 0 : index
    %c0_180 = arith.constant 0 : index
    %177 = vector.load %arg10[%c0_179, %c0_180] : memref<1x1280xf32, #tpu.memory_space<vmem>>, vector<1x1280xf32>
    %178 = vector.broadcast %177 : vector<1x1280xf32> to vector<8x1280xf32>
    %179 = arith.mulf %176, %178 : vector<8x1280xf32>
    %180 = arith.truncf %179 : vector<8x1280xf32> to vector<8x1280xbf16>
    %c0_181 = arith.constant 0 : index
    %c128_182 = arith.constant 128 : index
    %181 = vector.load %arg14[%c0_181, %c128_182] : memref<8x1536xbf16, #tpu.memory_space<vmem>>, vector<8x1280xbf16>
    tpu.vector_store %arg14[%c0_181, %c128_182], %180 {strides = array<i32>} : memref<8x1536xbf16, #tpu.memory_space<vmem>>, vector<8x1280xbf16>,
    %cst_183 = arith.constant 0.000000e+00 : f32
    %182 = vector.broadcast %cst_183 : f32 to vector<8x1280xf32>
    %c0_184 = arith.constant 0 : index
    %c93_185 = arith.constant 93 : index
    %183 = vector.load %arg14[%c0_184, %c93_185] : memref<8x1536xbf16, #tpu.memory_space<vmem>>, vector<8x1280xbf16>
    %c0_186 = arith.constant 0 : index
    %c0_187 = arith.constant 0 : index
    %c0_188 = arith.constant 0 : index
    %184 = vector.load %arg8[%c0_186, %c0_187, %c0_188] : memref<9x8x8xbf16, #tpu.memory_space<vmem>>, vector<1x8x8xbf16>
    %185 = vector.shape_cast %184 : vector<1x8x8xbf16> to vector<8x8xbf16>
    %cst_189 = arith.constant dense<0.000000e+00> : vector<8x1280xf32>
    %186 = tpu.matmul %185, %183, %cst_189 {dimension_numbers = #tpu.dot_dimension_numbers<[1], [0], [0], [1], [0, 0, 1, 1], [], []>} : vector<8x8xbf16>, vector<8x1280xbf16>, vector<8x1280xf32> -> vector<8x1280xf32>
    %187 = arith.addf %182, %186 : vector<8x1280xf32>
    %c0_190 = arith.constant 0 : index
    %c94_191 = arith.constant 94 : index
    %188 = vector.load %arg14[%c0_190, %c94_191] : memref<8x1536xbf16, #tpu.memory_space<vmem>>, vector<8x1280xbf16>
    %c1_192 = arith.constant 1 : index
    %c0_193 = arith.constant 0 : index
    %c0_194 = arith.constant 0 : index
    %189 = vector.load %arg8[%c1_192, %c0_193, %c0_194] : memref<9x8x8xbf16, #tpu.memory_space<vmem>>, vector<1x8x8xbf16>
    %190 = vector.shape_cast %189 : vector<1x8x8xbf16> to vector<8x8xbf16>
    %cst_195 = arith.constant dense<0.000000e+00> : vector<8x1280xf32>
    %191 = tpu.matmul %190, %188, %cst_195 {dimension_numbers = #tpu.dot_dimension_numbers<[1], [0], [0], [1], [0, 0, 1, 1], [], []>} : vector<8x8xbf16>, vector<8x1280xbf16>, vector<8x1280xf32> -> vector<8x1280xf32>
    %192 = arith.addf %187, %191 : vector<8x1280xf32>
    %c0_196 = arith.constant 0 : index
    %c95_197 = arith.constant 95 : index
    %193 = vector.load %arg14[%c0_196, %c95_197] : memref<8x1536xbf16, #tpu.memory_space<vmem>>, vector<8x1280xbf16>
    %c2_198 = arith.constant 2 : index
    %c0_199 = arith.constant 0 : index
    %c0_200 = arith.constant 0 : index
    %194 = vector.load %arg8[%c2_198, %c0_199, %c0_200] : memref<9x8x8xbf16, #tpu.memory_space<vmem>>, vector<1x8x8xbf16>
    %195 = vector.shape_cast %194 : vector<1x8x8xbf16> to vector<8x8xbf16>
    %cst_201 = arith.constant dense<0.000000e+00> : vector<8x1280xf32>
    %196 = tpu.matmul %195, %193, %cst_201 {dimension_numbers = #tpu.dot_dimension_numbers<[1], [0], [0], [1], [0, 0, 1, 1], [], []>} : vector<8x8xbf16>, vector<8x1280xbf16>, vector<8x1280xf32> -> vector<8x1280xf32>
    %197 = arith.addf %192, %196 : vector<8x1280xf32>
    %c0_202 = arith.constant 0 : index
    %c127_203 = arith.constant 127 : index
    %198 = vector.load %arg14[%c0_202, %c127_203] : memref<8x1536xbf16, #tpu.memory_space<vmem>>, vector<8x1280xbf16>
    %c3_204 = arith.constant 3 : index
    %c0_205 = arith.constant 0 : index
    %c0_206 = arith.constant 0 : index
    %199 = vector.load %arg8[%c3_204, %c0_205, %c0_206] : memref<9x8x8xbf16, #tpu.memory_space<vmem>>, vector<1x8x8xbf16>
    %200 = vector.shape_cast %199 : vector<1x8x8xbf16> to vector<8x8xbf16>
    %cst_207 = arith.constant dense<0.000000e+00> : vector<8x1280xf32>
    %201 = tpu.matmul %200, %198, %cst_207 {dimension_numbers = #tpu.dot_dimension_numbers<[1], [0], [0], [1], [0, 0, 1, 1], [], []>} : vector<8x8xbf16>, vector<8x1280xbf16>, vector<8x1280xf32> -> vector<8x1280xf32>
    %202 = arith.addf %197, %201 : vector<8x1280xf32>
    %c0_208 = arith.constant 0 : index
    %c128_209 = arith.constant 128 : index
    %203 = vector.load %arg14[%c0_208, %c128_209] : memref<8x1536xbf16, #tpu.memory_space<vmem>>, vector<8x1280xbf16>
    %c4_210 = arith.constant 4 : index
    %c0_211 = arith.constant 0 : index
    %c0_212 = arith.constant 0 : index
    %204 = vector.load %arg8[%c4_210, %c0_211, %c0_212] : memref<9x8x8xbf16, #tpu.memory_space<vmem>>, vector<1x8x8xbf16>
    %205 = vector.shape_cast %204 : vector<1x8x8xbf16> to vector<8x8xbf16>
    %cst_213 = arith.constant dense<0.000000e+00> : vector<8x1280xf32>
    %206 = tpu.matmul %205, %203, %cst_213 {dimension_numbers = #tpu.dot_dimension_numbers<[1], [0], [0], [1], [0, 0, 1, 1], [], []>} : vector<8x8xbf16>, vector<8x1280xbf16>, vector<8x1280xf32> -> vector<8x1280xf32>
    %207 = arith.addf %202, %206 : vector<8x1280xf32>
    %c0_214 = arith.constant 0 : index
    %c129_215 = arith.constant 129 : index
    %208 = vector.load %arg14[%c0_214, %c129_215] : memref<8x1536xbf16, #tpu.memory_space<vmem>>, vector<8x1280xbf16>
    %c5_216 = arith.constant 5 : index
    %c0_217 = arith.constant 0 : index
    %c0_218 = arith.constant 0 : index
    %209 = vector.load %arg8[%c5_216, %c0_217, %c0_218] : memref<9x8x8xbf16, #tpu.memory_space<vmem>>, vector<1x8x8xbf16>
    %210 = vector.shape_cast %209 : vector<1x8x8xbf16> to vector<8x8xbf16>
    %cst_219 = arith.constant dense<0.000000e+00> : vector<8x1280xf32>
    %211 = tpu.matmul %210, %208, %cst_219 {dimension_numbers = #tpu.dot_dimension_numbers<[1], [0], [0], [1], [0, 0, 1, 1], [], []>} : vector<8x8xbf16>, vector<8x1280xbf16>, vector<8x1280xf32> -> vector<8x1280xf32>
    %212 = arith.addf %207, %211 : vector<8x1280xf32>
    %c0_220 = arith.constant 0 : index
    %c161_221 = arith.constant 161 : index
    %213 = vector.load %arg14[%c0_220, %c161_221] : memref<8x1536xbf16, #tpu.memory_space<vmem>>, vector<8x1280xbf16>
    %c6_222 = arith.constant 6 : index
    %c0_223 = arith.constant 0 : index
    %c0_224 = arith.constant 0 : index
    %214 = vector.load %arg8[%c6_222, %c0_223, %c0_224] : memref<9x8x8xbf16, #tpu.memory_space<vmem>>, vector<1x8x8xbf16>
    %215 = vector.shape_cast %214 : vector<1x8x8xbf16> to vector<8x8xbf16>
    %cst_225 = arith.constant dense<0.000000e+00> : vector<8x1280xf32>
    %216 = tpu.matmul %215, %213, %cst_225 {dimension_numbers = #tpu.dot_dimension_numbers<[1], [0], [0], [1], [0, 0, 1, 1], [], []>} : vector<8x8xbf16>, vector<8x1280xbf16>, vector<8x1280xf32> -> vector<8x1280xf32>
    %217 = arith.addf %212, %216 : vector<8x1280xf32>
    %c0_226 = arith.constant 0 : index
    %c162_227 = arith.constant 162 : index
    %218 = vector.load %arg14[%c0_226, %c162_227] : memref<8x1536xbf16, #tpu.memory_space<vmem>>, vector<8x1280xbf16>
    %c7_228 = arith.constant 7 : index
    %c0_229 = arith.constant 0 : index
    %c0_230 = arith.constant 0 : index
    %219 = vector.load %arg8[%c7_228, %c0_229, %c0_230] : memref<9x8x8xbf16, #tpu.memory_space<vmem>>, vector<1x8x8xbf16>
    %220 = vector.shape_cast %219 : vector<1x8x8xbf16> to vector<8x8xbf16>
    %cst_231 = arith.constant dense<0.000000e+00> : vector<8x1280xf32>
    %221 = tpu.matmul %220, %218, %cst_231 {dimension_numbers = #tpu.dot_dimension_numbers<[1], [0], [0], [1], [0, 0, 1, 1], [], []>} : vector<8x8xbf16>, vector<8x1280xbf16>, vector<8x1280xf32> -> vector<8x1280xf32>
    %222 = arith.addf %217, %221 : vector<8x1280xf32>
    %c0_232 = arith.constant 0 : index
    %c163_233 = arith.constant 163 : index
    %223 = vector.load %arg14[%c0_232, %c163_233] : memref<8x1536xbf16, #tpu.memory_space<vmem>>, vector<8x1280xbf16>
    %c8_234 = arith.constant 8 : index
    %c0_235 = arith.constant 0 : index
    %c0_236 = arith.constant 0 : index
    %224 = vector.load %arg8[%c8_234, %c0_235, %c0_236] : memref<9x8x8xbf16, #tpu.memory_space<vmem>>, vector<1x8x8xbf16>
    %225 = vector.shape_cast %224 : vector<1x8x8xbf16> to vector<8x8xbf16>
    %cst_237 = arith.constant dense<0.000000e+00> : vector<8x1280xf32>
    %226 = tpu.matmul %225, %223, %cst_237 {dimension_numbers = #tpu.dot_dimension_numbers<[1], [0], [0], [1], [0, 0, 1, 1], [], []>} : vector<8x8xbf16>, vector<8x1280xbf16>, vector<8x1280xf32> -> vector<8x1280xf32>
    %227 = arith.addf %222, %226 : vector<8x1280xf32>
    %c0_238 = arith.constant 0 : index
    %c0_239 = arith.constant 0 : index
    %228 = vector.load %arg9[%c0_238, %c0_239] : memref<8x1xf32, #tpu.memory_space<vmem>>, vector<8x1xf32>
    %229 = vector.broadcast %228 : vector<8x1xf32> to vector<8x1280xf32>
    %230 = arith.addf %227, %229 : vector<8x1280xf32>
    %cst_240 = arith.constant 0.000000e+00 : f32
    %231 = vector.broadcast %cst_240 : f32 to vector<8x1280xf32>
    %232 = arith.maximumf %230, %231 : vector<8x1280xf32>
    %c0_241 = arith.constant 0 : index
    %c0_242 = arith.constant 0 : index
    %c0_243 = arith.constant 0 : index
    %233 = vector.load %arg11[%c0_241, %c0_242, %c0_243] : memref<1x8x1280xf32, #tpu.memory_space<vmem>>, vector<1x8x1280xf32>
    %234 = vector.shape_cast %233 : vector<1x8x1280xf32> to vector<8x1280xf32>
    %235 = vector.shape_cast %232 : vector<8x1280xf32> to vector<1x8x1280xf32>
    tpu.vector_store %arg11[%c0_241, %c0_242, %c0_243], %235 {strides = array<i32>} : memref<1x8x1280xf32, #tpu.memory_space<vmem>>, vector<1x8x1280xf32>,
    return
  }
  func.func @transform_0(%arg0: i32) -> (i32, i32, i32) {
    %c0_i32 = arith.constant 0 : i32
    %c0_i32_0 = arith.constant 0 : i32
    %c0_i32_1 = arith.constant 0 : i32
    return %arg0, %c0_i32, %c0_i32_0 : i32, i32, i32
  }
  func.func @transform_1(%arg0: i32) -> (i32, i32, i32) {
    %c0_i32 = arith.constant 0 : i32
    %c0_i32_0 = arith.constant 0 : i32
    %c0_i32_1 = arith.constant 0 : i32
    return %arg0, %c0_i32, %c0_i32_0 : i32, i32, i32
  }
  func.func @transform_2(%arg0: i32) -> (i32, i32) {
    %c0_i32 = arith.constant 0 : i32
    %c0_i32_0 = arith.constant 0 : i32
    %c0_i32_1 = arith.constant 0 : i32
    return %c0_i32, %c0_i32_0 : i32, i32
  }
  func.func @transform_3(%arg0: i32) -> (i32, i32, i32) {
    %c0_i32 = arith.constant 0 : i32
    %c0_i32_0 = arith.constant 0 : i32
    %c0_i32_1 = arith.constant 0 : i32
    %c0_i32_2 = arith.constant 0 : i32
    return %c0_i32, %c0_i32_0, %c0_i32_1 : i32, i32, i32
  }
  func.func @transform_4(%arg0: i32) -> (i32, i32) {
    %c0_i32 = arith.constant 0 : i32
    %c0_i32_0 = arith.constant 0 : i32
    %c0_i32_1 = arith.constant 0 : i32
    return %c0_i32, %c0_i32_0 : i32, i32
  }
  func.func @transform_5(%arg0: i32) -> (i32, i32, i32) {
    %c0_i32 = arith.constant 0 : i32
    %c0_i32_0 = arith.constant 0 : i32
    %c0_i32_1 = arith.constant 0 : i32
    %c0_i32_2 = arith.constant 0 : i32
    return %c0_i32, %c0_i32_0, %c0_i32_1 : i32, i32, i32
  }
  func.func @transform_6(%arg0: i32) -> (i32, i32) {
    %c0_i32 = arith.constant 0 : i32
    %c0_i32_0 = arith.constant 0 : i32
    %c0_i32_1 = arith.constant 0 : i32
    return %c0_i32, %c0_i32_0 : i32, i32
  }
  func.func @transform_7(%arg0: i32) -> (i32, i32, i32) {
    %c0_i32 = arith.constant 0 : i32
    %c0_i32_0 = arith.constant 0 : i32
    %c0_i32_1 = arith.constant 0 : i32
    %c0_i32_2 = arith.constant 0 : i32
    return %c0_i32, %c0_i32_0, %c0_i32_1 : i32, i32, i32
  }
  func.func @transform_8(%arg0: i32) -> (i32, i32) {
    %c0_i32 = arith.constant 0 : i32
    %c0_i32_0 = arith.constant 0 : i32
    %c0_i32_1 = arith.constant 0 : i32
    return %c0_i32, %c0_i32_0 : i32, i32
  }
  func.func @transform_9(%arg0: i32) -> (i32, i32) {
    %c0_i32 = arith.constant 0 : i32
    %c0_i32_0 = arith.constant 0 : i32
    %c0_i32_1 = arith.constant 0 : i32
    return %c0_i32, %c0_i32_0 : i32, i32
  }
  func.func @transform_10(%arg0: i32) -> (i32, i32, i32) {
    %c0_i32 = arith.constant 0 : i32
    %c0_i32_0 = arith.constant 0 : i32
    %c0_i32_1 = arith.constant 0 : i32
    return %arg0, %c0_i32, %c0_i32_0 : i32, i32, i32
  }
}

</mosaic_0001>

<bundles_post_ra>
// kernel: expanding_block_forward.1
= control target key start
LH: loop header
LB: loop body
LE: loop exit
PB: predicated region body
PF: predicated region fallthrough
CT: control target
= control target key end

     0   :  { %s13479_s13 = smov 0   ;;  %s16551_s0 = inlined_call_operand.vmem [shape: bf16[2,8,256], index: 0, kind: input, shape index: {}]   ;;  %s16552_s1 = inlined_call_operand.vmem [shape: bf16[2,8,1536], index: 1, kind: input, shape index: {}]   ;;  %s16553_s2 = inlined_call_operand.vmem [shape: bf16[256,1280], index: 2, kind: input, shape index: {}]   ;;  %s16554_s3 = inlined_call_operand.vmem [shape: bf16[9,8,8], index: 3, kind: input, shape index: {}]   ;;  %s16555_s4 = inlined_call_operand.vmem [shape: f32[8,1], index: 4, kind: input, shape index: {}]   ;;  %s16556_s5 = inlined_call_operand.vmem [shape: bf16[18,8,8], index: 5, kind: input, shape index: {}]   ;;  %s16557_s6 = inlined_call_operand.vmem [shape: f32[8,1], index: 6, kind: input, shape index: {}]   ;;  %s16558_s7 = inlined_call_operand.vmem [shape: bf16[9,8,8], index: 7, kind: input, shape index: {}]   ;;  %s16559_s8 = inlined_call_operand.vmem [shape: f32[8,1], index: 8, kind: input, shape index: {}]   ;;  %s16560_s9 = inlined_call_operand.vmem [shape: f32[1,1280], index: 9, kind: input, shape index: {}]   ;;  %s16561_s10 = inlined_call_operand.vmem [shape: f32[2,8,1280], index: 10, kind: output, shape index: {}]  }
   0x1 LB: > { %s12331_s14 = sadd.s32 4294967295, %s13413_s13   ;;  %p12335_p0 = scmp.ge.s32.totalorder %s13413_s13, 1  ;;  %s13413_s13 = sphi %s13479_s13, %s20_s13  }
   0x2   : > { %p322_p1 = scmp.lt.s32.totalorder %s13413_s13, 3 }
   0x4   : > { %p323_p2 = pnand %p12335_p0, %p322_p1 }
   0x5   : > { %v13077_v0 = vld [vmem:[%s16553_s2 + $0x4] ss:$40 sps:$4 sm:$0xff] (!%p323_p2)   ;;  %v13081_v2 = vld [vmem:[%s16553_s2] ss:$40 sps:$4 sm:$0xff] (!%p323_p2)   ;;  %v13083_v4 = vld [vmem:[%s16553_s2 + $0x54] ss:$40 sps:$4 sm:$0xff] (!%p323_p2)  }
   0x6   : > { %326 = sbr.rel (%p323_p2) target bundleno = 2171 (0x87b), region = 60  ;;  %v13079_v1 = vld [vmem:[%s16553_s2 + $0xc] ss:$40 sps:$4 sm:$0xff] (!%p323_p2)   ;;  %1355 = vmatprep.subr.bf16.mxu0 (!%p323_p2), %v13077_v0  ;;  %v13082_v3 = vld [vmem:[%s16553_s2 + $0x8] ss:$40 sps:$4 sm:$0xff] (!%p323_p2)   ;;  %p365_p3 = scmp.lt.s32.totalorder (!%p323_p2), %s12331_s14, 1 }
   0x7   : > { %1396 = vmatprep.subr.bf16.mxu1 (!%p323_p2), %v13079_v1  ;;  %1356 = vmatpush1.bf16.msra.mxu0 (!%p323_p2), %v13081_v2  ;;  %v13085_v5 = vld [vmem:[%s16553_s2 + $0x5c] ss:$40 sps:$4 sm:$0xff] (!%p323_p2)   ;;  %v13087_v6 = vld [vmem:[%s16553_s2 + $0x50] ss:$40 sps:$4 sm:$0xff] (!%p323_p2)   ;;  %v13091_v9 = vld [vmem:[%s16553_s2 + $0xac] ss:$40 sps:$4 sm:$0xff] (!%p323_p2)  }
   0x8   : > { %1397 = vmatpush1.bf16.msra.mxu1 (!%p323_p2), %v13082_v3  ;;  %1357 = vmatprep.subr.bf16.mxu0 (!%p323_p2), %v13083_v4  ;;  %v13088_v7 = vld [vmem:[%s16553_s2 + $0x58] ss:$40 sps:$4 sm:$0xff] (!%p323_p2)   ;;  %v13089_v8 = vld [vmem:[%s16553_s2 + $0xa4] ss:$40 sps:$4 sm:$0xff] (!%p323_p2)   ;;  %v13094_v11 = vld [vmem:[%s16553_s2 + $0xa8] ss:$40 sps:$4 sm:$0xff] (!%p323_p2)  }
   0x9   : > { %1398 = vmatprep.subr.bf16.mxu1 (!%p323_p2), %v13085_v5  ;;  %v13093_v10 = vld [vmem:[%s16553_s2 + $0xa0] ss:$40 sps:$4 sm:$0xff] (!%p323_p2)   ;;  %v13095_v12 = vld [vmem:[%s16553_s2 + $0xf4] ss:$40 sps:$4 sm:$0xff] (!%p323_p2)   ;;  %v13099_v14 = vld [vmem:[%s16553_s2 + $0xf0] ss:$40 sps:$4 sm:$0xff] (!%p323_p2)  }
   0xa   : > { %v13097_v13 = vld [vmem:[%s16553_s2 + $0xfc] ss:$40 sps:$4 sm:$0xff] (!%p323_p2)   ;;  %v13100_v15 = vld [vmem:[%s16553_s2 + $0xf8] ss:$40 sps:$4 sm:$0xff] (!%p323_p2)   ;;  %v13103_v17 = vld [vmem:[%s16553_s2 + $0x14c] ss:$40 sps:$4 sm:$0xff] (!%p323_p2)  }
   0xb   : > { %1358 = vmatpush1.bf16.msra.mxu0 (!%p323_p2), %v13087_v6  ;;  %v13101_v16 = vld [vmem:[%s16553_s2 + $0x144] ss:$40 sps:$4 sm:$0xff] (!%p323_p2)   ;;  %v13105_v18 = vld [vmem:[%s16553_s2 + $0x140] ss:$40 sps:$4 sm:$0xff] (!%p323_p2)   ;;  %v13107_v20 = vld [vmem:[%s16553_s2 + $0x194] ss:$40 sps:$4 sm:$0xff] (!%p323_p2)  }
   0xc   : > { %1399 = vmatpush1.bf16.msra.mxu1 (!%p323_p2), %v13088_v7  ;;  %1359 = vmatprep.subr.bf16.mxu0 (!%p323_p2), %v13089_v8  ;;  %v13106_v19 = vld [vmem:[%s16553_s2 + $0x148] ss:$40 sps:$4 sm:$0xff] (!%p323_p2)   ;;  %v13109_v21 = vld [vmem:[%s16553_s2 + $0x19c] ss:$40 sps:$4 sm:$0xff] (!%p323_p2)   ;;  %v13112_v23 = vld [vmem:[%s16553_s2 + $0x198] ss:$40 sps:$4 sm:$0xff] (!%p323_p2)  }
   0xd   : > { %1400 = vmatprep.subr.bf16.mxu1 %v13091_v9  ;;  %v13111_v22 = vld [vmem:[%s16553_s2 + $0x190] ss:$40 sps:$4 sm:$0xff]   ;;  %v13113_v24 = vld [vmem:[%s16553_s2 + $0x1e4] ss:$40 sps:$4 sm:$0xff]   ;;  %v13117_v26 = vld [vmem:[%s16553_s2 + $0x1e0] ss:$40 sps:$4 sm:$0xff]  }
   0xe   : > { %v13115_v25 = vld [vmem:[%s16553_s2 + $0x1ec] ss:$40 sps:$4 sm:$0xff]   ;;  %v13118_v27 = vld [vmem:[%s16553_s2 + $0x1e8] ss:$40 sps:$4 sm:$0xff]   ;;  %v13121_v29 = vld [vmem:[%s16553_s2 + $0x23c] ss:$40 sps:$4 sm:$0xff]  }
   0xf   : > { %1360 = vmatpush1.bf16.msra.mxu0 %v13093_v10  ;;  %v13119_v28 = vld [vmem:[%s16553_s2 + $0x234] ss:$40 sps:$4 sm:$0xff]   ;;  %v13123_v30 = vld [vmem:[%s16553_s2 + $0x230] ss:$40 sps:$4 sm:$0xff]   ;;  %v13125_v32 = vld [vmem:[%s16553_s2 + $0x284] ss:$40 sps:$4 sm:$0xff]  }
  0x10   : > { %1401 = vmatpush1.bf16.msra.mxu1 %v13094_v11  ;;  %1361 = vmatprep.subr.bf16.mxu0 %v13095_v12  ;;  %v13124_v31 = vld [vmem:[%s16553_s2 + $0x238] ss:$40 sps:$4 sm:$0xff]   ;;  %v13127_v33 = vld [vmem:[%s16553_s2 + $0x28c] ss:$40 sps:$4 sm:$0xff]   ;;  %v13130_v35 = vld [vmem:[%s16553_s2 + $0x288] ss:$40 sps:$4 sm:$0xff]  }
  0x11   : > { %1402 = vmatprep.subr.bf16.mxu1 %v13097_v13  ;;  %v13129_v34 = vld [vmem:[%s16553_s2 + $0x280] ss:$40 sps:$4 sm:$0xff]   ;;  %v13131_v36 = vld [vmem:[%s16553_s2 + $0x2d4] ss:$40 sps:$4 sm:$0xff]   ;;  %s16563_s14 = smov (!%p365_p3, %s12331_s14), 1  ;;  %s13416_s24 = smov 34  }
  0x12   : > { %v13133_v37 = vld [vmem:[%s16553_s2 + $0x2dc] ss:$40 sps:$4 sm:$0xff]   ;;  %v13135_v38 = vld [vmem:[%s16553_s2 + $0x2d0] ss:$40 sps:$4 sm:$0xff]   ;;  %s13040_s25 = sshll.u32 %s16563_s14, 3  ;;  %s13056_s15 = smul.u32 48, %s16563_s14 }
  0x13   : > { %1362 = vmatpush1.bf16.msra.mxu0 %v13099_v14  ;;  %v13136_v39 = vld [vmem:[%s16553_s2 + $0x2d8] ss:$40 sps:$4 sm:$0xff]   ;;  %v13137_v40 = vld [vmem:[%s16553_s2 + $0x324] ss:$40 sps:$4 sm:$0xff]   ;;  %v13142_v43 = vld [vmem:[%s16553_s2 + $0x328] ss:$40 sps:$4 sm:$0xff]   ;;  %s369_s16 = scalar_lea.vmem %s16551_s0, %s13040_s25 }
  0x14   : > { %1403 = vmatpush1.bf16.msra.mxu1 %v13100_v15  ;;  %1363 = vmatprep.subr.bf16.mxu0 %v13101_v16  ;;  %v13139_v41 = vld [vmem:[%s16553_s2 + $0x32c] ss:$40 sps:$4 sm:$0xff]   ;;  %v13141_v42 = vld [vmem:[%s16553_s2 + $0x320] ss:$40 sps:$4 sm:$0xff]   ;;  %v13145_v45 = vld [vmem:[%s16553_s2 + $0x37c] ss:$40 sps:$4 sm:$0xff]   ;;  %s13841_s26 = scalar_lea.vmem %s16552_s1, %s13056_s15 }
  0x15   : > { %1404 = vmatprep.subr.bf16.mxu1 %v13103_v17  ;;  %v13143_v44 = vld [vmem:[%s16553_s2 + $0x374] ss:$40 sps:$4 sm:$0xff]   ;;  %v387_v46 = vld [vmem:[%s369_s16] sm:$0xff]  ;;  %v13147_v47 = vld [vmem:[%s16553_s2 + $0x370] ss:$40 sps:$4 sm:$0xff]   ;;  %vm1664_vm0 = vcmask 277504  }
  0x16   : > { %v13638_v48 = vcombine.high %v387_v46, %v387_v46  ;;  %v13148_v49 = vld [vmem:[%s16553_s2 + $0x378] ss:$40 sps:$4 sm:$0xff]   ;;  %v13149_v50 = vld [vmem:[%s16553_s2 + $0x3c4] ss:$40 sps:$4 sm:$0xff]   ;;  %v13154_v53 = vld [vmem:[%s16553_s2 + $0x3c8] ss:$40 sps:$4 sm:$0xff]   ;;  %v13699_v4 = vcombine.low %v387_v46, %v387_v46 }
  0x17   : > { %1364 = vmatpush1.bf16.msra.mxu0 %v13105_v18  ;;  %v13151_v51 = vld [vmem:[%s16553_s2 + $0x3cc] ss:$40 sps:$4 sm:$0xff]   ;;  %v13153_v52 = vld [vmem:[%s16553_s2 + $0x3c0] ss:$40 sps:$4 sm:$0xff]   ;;  %v13157_v55 = vld [vmem:[%s16553_s2 + $0x41c] ss:$40 sps:$4 sm:$0xff]  }
  0x18   : > { %1405 = vmatpush1.bf16.msra.mxu1 %v13106_v19  ;;  %1365 = vmatprep.subr.bf16.mxu0 %v13107_v20  ;;  %v13155_v54 = vld [vmem:[%s16553_s2 + $0x414] ss:$40 sps:$4 sm:$0xff]   ;;  %v13159_v56 = vld [vmem:[%s16553_s2 + $0x410] ss:$40 sps:$4 sm:$0xff]   ;;  %v13161_v58 = vld [vmem:[%s16553_s2 + $0x464] ss:$40 sps:$4 sm:$0xff]  }
  0x19   : > { %1406 = vmatprep.subr.bf16.mxu1 %v13109_v21  ;;  %1387 = vmatprep.mubr.bf16.mxu0 %v13638_v48  ;;  %v13160_v57 = vld [vmem:[%s16553_s2 + $0x418] ss:$40 sps:$4 sm:$0xff]   ;;  %v13163_v59 = vld [vmem:[%s16553_s2 + $0x46c] ss:$40 sps:$4 sm:$0xff]   ;;  %v13166_v61 = vld [vmem:[%s16553_s2 + $0x468] ss:$40 sps:$4 sm:$0xff]  }
  0x1a   : > { %1428 = vmatprep.mubr.bf16.mxu1 %v13638_v48  ;;  %v13165_v60 = vld [vmem:[%s16553_s2 + $0x460] ss:$40 sps:$4 sm:$0xff]   ;;  %v13167_v62 = vld [vmem:[%s16553_s2 + $0x4b4] ss:$40 sps:$4 sm:$0xff]   ;;  %v13171_v0 = vld [vmem:[%s16553_s2 + $0x4b0] ss:$40 sps:$4 sm:$0xff]  }
  0x1b   : > { %1366 = vmatpush1.bf16.msra.mxu0 %v13111_v22  ;;  %v13169_v63 = vld [vmem:[%s16553_s2 + $0x4bc] ss:$40 sps:$4 sm:$0xff]   ;;  %v13172_v1 = vld [vmem:[%s16553_s2 + $0x4b8] ss:$40 sps:$4 sm:$0xff]   ;;  %v13186_v8 = vld [vmem:[%s16553_s2 + $0x6c] ss:$40 sps:$4 sm:$0xff]  }
  0x1c   : > { %1407 = vmatpush1.bf16.msra.mxu1 %v13112_v23  ;;  %1367 = vmatprep.subr.bf16.mxu0 %v13113_v24  ;;  %v13177_v2 = vld [vmem:[%s16553_s2 + $0x14] ss:$40 sps:$4 sm:$0xff]   ;;  %v13175_v5 = vld [vmem:[%s16553_s2 + $0x10] ss:$40 sps:$4 sm:$0xff]   ;;  %v13183_v7 = vld [vmem:[%s16553_s2 + $0x64] ss:$40 sps:$4 sm:$0xff]  }
  0x1d   : > { %1408 = vmatprep.subr.bf16.mxu1 %v13115_v25  ;;  %v13180_v3 = vld [vmem:[%s16553_s2 + $0x1c] ss:$40 sps:$4 sm:$0xff]   ;;  %v13178_v6 = vld [vmem:[%s16553_s2 + $0x18] ss:$40 sps:$4 sm:$0xff]   ;;  %v13184_v10 = vld [vmem:[%s16553_s2 + $0x68] ss:$40 sps:$4 sm:$0xff]  }
  0x1e   : > { %v13181_v9 = vld [vmem:[%s16553_s2 + $0x60] ss:$40 sps:$4 sm:$0xff]   ;;  %v13189_v11 = vld [vmem:[%s16553_s2 + $0xb4] ss:$40 sps:$4 sm:$0xff]   ;;  %v13187_v13 = vld [vmem:[%s16553_s2 + $0xb0] ss:$40 sps:$4 sm:$0xff]  }
  0x1f   : > { %1368 = vmatpush1.bf16.msra.mxu0 %v13117_v26  ;;  %v13192_v12 = vld [vmem:[%s16553_s2 + $0xbc] ss:$40 sps:$4 sm:$0xff]   ;;  %v13190_v14 = vld [vmem:[%s16553_s2 + $0xb8] ss:$40 sps:$4 sm:$0xff]   ;;  %v13198_v16 = vld [vmem:[%s16553_s2 + $0x10c] ss:$40 sps:$4 sm:$0xff]  }
  0x20   : > { %1409 = vmatpush1.bf16.msra.mxu1 %v13118_v27  ;;  %1369 = vmatprep.subr.bf16.mxu0 %v13119_v28  ;;  %v13195_v15 = vld [vmem:[%s16553_s2 + $0x104] ss:$40 sps:$4 sm:$0xff]   ;;  %v13193_v17 = vld [vmem:[%s16553_s2 + $0x100] ss:$40 sps:$4 sm:$0xff]   ;;  %v13201_v19 = vld [vmem:[%s16553_s2 + $0x154] ss:$40 sps:$4 sm:$0xff]  }
  0x21   : > { %1410 = vmatprep.subr.bf16.mxu1 %v13121_v29  ;;  %v13196_v18 = vld [vmem:[%s16553_s2 + $0x108] ss:$40 sps:$4 sm:$0xff]   ;;  %v13204_v20 = vld [vmem:[%s16553_s2 + $0x15c] ss:$40 sps:$4 sm:$0xff]   ;;  %v13202_v22 = vld [vmem:[%s16553_s2 + $0x158] ss:$40 sps:$4 sm:$0xff]  }
  0x22   : > { %v13199_v21 = vld [vmem:[%s16553_s2 + $0x150] ss:$40 sps:$4 sm:$0xff]   ;;  %v13207_v23 = vld [vmem:[%s16553_s2 + $0x1a4] ss:$40 sps:$4 sm:$0xff]   ;;  %v13205_v25 = vld [vmem:[%s16553_s2 + $0x1a0] ss:$40 sps:$4 sm:$0xff]  }
  0x23   : > { %1370 = vmatpush1.bf16.msra.mxu0 %v13123_v30  ;;  %v13210_v24 = vld [vmem:[%s16553_s2 + $0x1ac] ss:$40 sps:$4 sm:$0xff]   ;;  %v13208_v26 = vld [vmem:[%s16553_s2 + $0x1a8] ss:$40 sps:$4 sm:$0xff]   ;;  %v13216_v28 = vld [vmem:[%s16553_s2 + $0x1fc] ss:$40 sps:$4 sm:$0xff]  }
  0x24   : > { %1411 = vmatpush1.bf16.msra.mxu1 %v13124_v31  ;;  %1371 = vmatprep.subr.bf16.mxu0 %v13125_v32  ;;  %v13213_v27 = vld [vmem:[%s16553_s2 + $0x1f4] ss:$40 sps:$4 sm:$0xff]   ;;  %v13211_v29 = vld [vmem:[%s16553_s2 + $0x1f0] ss:$40 sps:$4 sm:$0xff]   ;;  %v13219_v31 = vld [vmem:[%s16553_s2 + $0x244] ss:$40 sps:$4 sm:$0xff]  }
  0x25   : > { %1412 = vmatprep.subr.bf16.mxu1 %v13127_v33  ;;  %v13214_v30 = vld [vmem:[%s16553_s2 + $0x1f8] ss:$40 sps:$4 sm:$0xff]   ;;  %v13222_v32 = vld [vmem:[%s16553_s2 + $0x24c] ss:$40 sps:$4 sm:$0xff]   ;;  %vm1679_vm1 = vcmask 1043456   ;;  %vm1675_vm2 = vcmask 64512  }
  0x26   : > { %v13217_v33 = vld [vmem:[%s16553_s2 + $0x240] ss:$40 sps:$4 sm:$0xff]   ;;  %s13417_s28 = smov 35   ;;  %s13418_s29 = smov 33   ;;  %vm1937_vm3 = vcmask 285696   ;;  %vm2210_vm4 = vcmask 269312  }
  0x27   : > { %1372 = vmatpush1.bf16.msra.mxu0 %v13129_v34  ;;  %v13220_v34 = vld [vmem:[%s16553_s2 + $0x248] ss:$40 sps:$4 sm:$0xff]   ;;  %v13238_v46 = vld [vmem:[%s16553_s2 + $0x338] ss:$40 sps:$4 sm:$0xff]   ;;  %s13419_s30 = smov 1   ;;  %s13420_s11 = smov 127  }
  0x28   : > { %1413 = vmatpush1.bf16.msra.mxu1 %v13130_v35  ;;  %1373 = vmatprep.subr.bf16.mxu0 %v13131_v36  ;;  %v13225_v35 = vld [vmem:[%s16553_s2 + $0x294] ss:$40 sps:$4 sm:$0xff]   ;;  %s13421_s12 = smov 95   ;;  %s13422_s16 = smov 94   ;;  %vm2493_vm5 = vcmask 7168   ;;  %vm3090_vm6 = vcmask 1039360  }
  0x29   : > { %1414 = vmatprep.subr.bf16.mxu1 %v13133_v37  ;;  %v13228_v36 = vld [vmem:[%s16553_s2 + $0x29c] ss:$40 sps:$4 sm:$0xff]   ;;  %v13223_v37 = vld [vmem:[%s16553_s2 + $0x290] ss:$40 sps:$4 sm:$0xff]   ;;  %s13423_s17 = smov 93   ;;  %vm3373_vm7 = vcmask 777216  }
  0x2a   : > { %vm3656_vm8 = vcmask 769024   ;;  %vm3939_vm9 = vcmask 760832  }
  0x2b   : > { %1374 = vmatpush1.bf16.msra.mxu0 %v13135_v38  ;;  %v13226_v38 = vld [vmem:[%s16553_s2 + $0x298] ss:$40 sps:$4 sm:$0xff]  }
  0x2c   : > { %1415 = vmatpush1.bf16.msra.mxu1 %v13136_v39  ;;  %1375 = vmatprep.subr.bf16.mxu0 %v13137_v40  ;;  %v13231_v39 = vld [vmem:[%s16553_s2 + $0x2e4] ss:$40 sps:$4 sm:$0xff]  }
  0x2d   : > { %1416 = vmatprep.subr.bf16.mxu1 %v13139_v41  ;;  %v13234_v40 = vld [vmem:[%s16553_s2 + $0x2ec] ss:$40 sps:$4 sm:$0xff]   ;;  %v13229_v41 = vld [vmem:[%s16553_s2 + $0x2e0] ss:$40 sps:$4 sm:$0xff]  }
  0x2f   : > { %1376 = vmatpush1.bf16.msra.mxu0 %v13141_v42  ;;  %v13232_v42 = vld [vmem:[%s16553_s2 + $0x2e8] ss:$40 sps:$4 sm:$0xff]  }
  0x30   : > { %1417 = vmatpush1.bf16.msra.mxu1 %v13142_v43  ;;  %1377 = vmatprep.subr.bf16.mxu0 %v13143_v44  ;;  %v13237_v43 = vld [vmem:[%s16553_s2 + $0x334] ss:$40 sps:$4 sm:$0xff]  }
  0x31   : > { %1418 = vmatprep.subr.bf16.mxu1 %v13145_v45  ;;  %v13240_v44 = vld [vmem:[%s16553_s2 + $0x33c] ss:$40 sps:$4 sm:$0xff]   ;;  %v13235_v45 = vld [vmem:[%s16553_s2 + $0x330] ss:$40 sps:$4 sm:$0xff]  }
  0x33   : > { %1378 = vmatpush1.bf16.msra.mxu0 %v13147_v47  ;;  %v13243_v47 = vld [vmem:[%s16553_s2 + $0x384] ss:$40 sps:$4 sm:$0xff]  }
  0x34   : > { %1419 = vmatpush1.bf16.msra.mxu1 %v13148_v49  ;;  %1379 = vmatprep.subr.bf16.mxu0 %v13149_v50  ;;  %v13246_v49 = vld [vmem:[%s16553_s2 + $0x38c] ss:$40 sps:$4 sm:$0xff]   ;;  %v13241_v50 = vld [vmem:[%s16553_s2 + $0x380] ss:$40 sps:$4 sm:$0xff]  }
  0x35   : > { %1420 = vmatprep.subr.bf16.mxu1 %v13151_v51  ;;  %v13244_v51 = vld [vmem:[%s16553_s2 + $0x388] ss:$40 sps:$4 sm:$0xff]  }
  0x37   : > { %1380 = vmatpush1.bf16.msra.mxu0 %v13153_v52  ;;  %v13249_v52 = vld [vmem:[%s16553_s2 + $0x3d4] ss:$40 sps:$4 sm:$0xff]  }
  0x38   : > { %1421 = vmatpush1.bf16.msra.mxu1 %v13154_v53  ;;  %1381 = vmatprep.subr.bf16.mxu0 %v13155_v54  ;;  %v13252_v53 = vld [vmem:[%s16553_s2 + $0x3dc] ss:$40 sps:$4 sm:$0xff]   ;;  %v13247_v54 = vld [vmem:[%s16553_s2 + $0x3d0] ss:$40 sps:$4 sm:$0xff]  }
  0x39   : > { %1422 = vmatprep.subr.bf16.mxu1 %v13157_v55  ;;  %v13250_v55 = vld [vmem:[%s16553_s2 + $0x3d8] ss:$40 sps:$4 sm:$0xff]  }
  0x3b   : > { %1382 = vmatpush1.bf16.msra.mxu0 %v13159_v56  ;;  %v13255_v56 = vld [vmem:[%s16553_s2 + $0x424] ss:$40 sps:$4 sm:$0xff]  }
  0x3c   : > { %1423 = vmatpush1.bf16.msra.mxu1 %v13160_v57  ;;  %1383 = vmatprep.subr.bf16.mxu0 %v13161_v58  ;;  %v13258_v57 = vld [vmem:[%s16553_s2 + $0x42c] ss:$40 sps:$4 sm:$0xff]   ;;  %v13253_v58 = vld [vmem:[%s16553_s2 + $0x420] ss:$40 sps:$4 sm:$0xff]  }
  0x3d   : > { %1424 = vmatprep.subr.bf16.mxu1 %v13163_v59  ;;  %v13256_v59 = vld [vmem:[%s16553_s2 + $0x428] ss:$40 sps:$4 sm:$0xff]  }
  0x3f   : > { %1384 = vmatpush1.bf16.msra.mxu0 %v13165_v60  ;;  %v13261_v60 = vld [vmem:[%s16553_s2 + $0x474] ss:$40 sps:$4 sm:$0xff]  }
  0x40   : > { %1425 = vmatpush1.bf16.msra.mxu1 %v13166_v61  ;;  %1385 = vmatprep.subr.bf16.mxu0 %v13167_v62  ;;  %v13264_v61 = vld [vmem:[%s16553_s2 + $0x47c] ss:$40 sps:$4 sm:$0xff]   ;;  %v13259_v62 = vld [vmem:[%s16553_s2 + $0x470] ss:$40 sps:$4 sm:$0xff]  }
  0x41   : > { %1426 = vmatprep.subr.bf16.mxu1 %v13169_v63  ;;  %v13262_v63 = vld [vmem:[%s16553_s2 + $0x478] ss:$40 sps:$4 sm:$0xff]  }
  0x43   : > { %1386 = vmatpush1.bf16.msra.mxu0 %v13171_v0  ;;  %v13267_v0 = vld [vmem:[%s16553_s2 + $0x4c4] ss:$40 sps:$4 sm:$0xff]  }
  0x44   : > { %1427 = vmatpush1.bf16.msra.mxu1 %v13172_v1  ;;  %1437 = vmatprep.subr.bf16.mxu0 %v13177_v2  ;;  %v13270_v1 = vld [vmem:[%s16553_s2 + $0x4cc] ss:$40 sps:$4 sm:$0xff]   ;;  %v13265_v2 = vld [vmem:[%s16553_s2 + $0x4c0] ss:$40 sps:$4 sm:$0xff]  }
  0x45   : > { %1478 = vmatprep.subr.bf16.mxu1 %v13180_v3  ;;  %v13268_v3 = vld [vmem:[%s16553_s2 + $0x4c8] ss:$40 sps:$4 sm:$0xff]  }
  0x46   : > { %1388 = vmatmul.mubr.bf16.vlgmr.msra.gmra.mrb[0].mxu0 %v13699_v4 }
  0x47   : > { %1429 = vmatmul.mubr.bf16.vlgmr.msra.gmra.mrb[0].mxu1 %v13699_v4  ;;  %1438 = vmatpush1.bf16.msra.mxu0 %v13175_v5  ;;  %v13273_v5 = vld [vmem:[%s16553_s2 + $0x24] ss:$40 sps:$4 sm:$0xff]  }
  0x48   : > { %1479 = vmatpush1.bf16.msra.mxu1 %v13178_v6  ;;  %1439 = vmatprep.subr.bf16.mxu0 %v13183_v7  ;;  %v13271_v6 = vld [vmem:[%s16553_s2 + $0x20] ss:$40 sps:$4 sm:$0xff]   ;;  %v13276_v7 = vld [vmem:[%s16553_s2 + $0x74] ss:$40 sps:$4 sm:$0xff]  }
  0x49   : > { %1480 = vmatprep.subr.bf16.mxu1 %v13186_v8  ;;  %1469 = vmatprep.mubr.bf16.mxu0 %v13638_v48  ;;  %v13274_v8 = vld [vmem:[%s16553_s2 + $0x70] ss:$40 sps:$4 sm:$0xff]  }
  0x4a   : > { %1510 = vmatprep.mubr.bf16.mxu1 %v13638_v48 }
  0x4b   : > { %1440 = vmatpush1.bf16.msra.mxu0 %v13181_v9  ;;  %v13279_v9 = vld [vmem:[%s16553_s2 + $0xc4] ss:$40 sps:$4 sm:$0xff]  }
  0x4c   : > { %1481 = vmatpush1.bf16.msra.mxu1 %v13184_v10  ;;  %1441 = vmatprep.subr.bf16.mxu0 %v13189_v11  ;;  %v13277_v10 = vld [vmem:[%s16553_s2 + $0xc0] ss:$40 sps:$4 sm:$0xff]   ;;  %v13282_v11 = vld [vmem:[%s16553_s2 + $0x114] ss:$40 sps:$4 sm:$0xff]  }
  0x4d   : > { %1482 = vmatprep.subr.bf16.mxu1 %v13192_v12  ;;  %v13285_v12 = vld [vmem:[%s16553_s2 + $0x164] ss:$40 sps:$4 sm:$0xff]  }
  0x4f   : > { %1442 = vmatpush1.bf16.msra.mxu0 %v13187_v13  ;;  %v13283_v13 = vld [vmem:[%s16553_s2 + $0x160] ss:$40 sps:$4 sm:$0xff]  }
  0x50   : > { %1483 = vmatpush1.bf16.msra.mxu1 %v13190_v14  ;;  %1443 = vmatprep.subr.bf16.mxu0 %v13195_v15  ;;  %v13288_v14 = vld [vmem:[%s16553_s2 + $0x1b4] ss:$40 sps:$4 sm:$0xff]   ;;  %v13286_v15 = vld [vmem:[%s16553_s2 + $0x1b0] ss:$40 sps:$4 sm:$0xff]  }
  0x51   : > { %1484 = vmatprep.subr.bf16.mxu1 %v13198_v16  ;;  %v13291_v16 = vld [vmem:[%s16553_s2 + $0x204] ss:$40 sps:$4 sm:$0xff]  }
  0x53   : > { %1444 = vmatpush1.bf16.msra.mxu0 %v13193_v17  ;;  %v13289_v17 = vld [vmem:[%s16553_s2 + $0x200] ss:$40 sps:$4 sm:$0xff]  }
  0x54   : > { %1485 = vmatpush1.bf16.msra.mxu1 %v13196_v18  ;;  %1445 = vmatprep.subr.bf16.mxu0 %v13201_v19  ;;  %v13294_v18 = vld [vmem:[%s16553_s2 + $0x254] ss:$40 sps:$4 sm:$0xff]   ;;  %v13415_v19 = vmov 0  }
  0x55   : > { %1486 = vmatprep.subr.bf16.mxu1 %v13204_v20  ;;  %381 = vst [vmem:[#allocation2] sm:$0xf] %v13415_v19  ;;  %382 = vst [vmem:[#allocation2 + $0x2c] sm:$0xf] %v13415_v19  ;;  %13075 = vset.pattern.permute.xlu0 %v13415_v19  ;;  %v13292_v20 = vld [vmem:[%s16553_s2 + $0x250] ss:$40 sps:$4 sm:$0xff]  }
  0x56   : > { %383 = vst [vmem:[#allocation3] sm:$0xf] %v13415_v19  ;;  %384 = vst [vmem:[#allocation3 + $0x2c] sm:$0xf] %v13415_v19  ;;  %13076 = vset.pattern.permute.xlu1 %v13415_v19 }
  0x57   : > { %1446 = vmatpush1.bf16.msra.mxu0 %v13199_v21  ;;  %385 = vst [vmem:[#allocation4] sm:$0xf] %v13415_v19  ;;  %386 = vst [vmem:[#allocation4 + $0x2c] sm:$0xf] %v13415_v19  ;;  %v13297_v21 = vld [vmem:[%s16553_s2 + $0x2a4] ss:$40 sps:$4 sm:$0xff]  }
  0x58   : > { %1487 = vmatpush1.bf16.msra.mxu1 %v13202_v22  ;;  %1447 = vmatprep.subr.bf16.mxu0 %v13207_v23  ;;  %v13295_v22 = vld [vmem:[%s16553_s2 + $0x2a0] ss:$40 sps:$4 sm:$0xff]   ;;  %v13300_v23 = vld [vmem:[%s16553_s2 + $0x2f4] ss:$40 sps:$4 sm:$0xff]  }
  0x59   : > { %1488 = vmatprep.subr.bf16.mxu1 %v13210_v24  ;;  %v13298_v24 = vld [vmem:[%s16553_s2 + $0x2f0] ss:$40 sps:$4 sm:$0xff]  }
  0x5b   : > { %1448 = vmatpush1.bf16.msra.mxu0 %v13205_v25  ;;  %v13303_v25 = vld [vmem:[%s16553_s2 + $0x344] ss:$40 sps:$4 sm:$0xff]  }
  0x5c   : > { %1489 = vmatpush1.bf16.msra.mxu1 %v13208_v26  ;;  %1449 = vmatprep.subr.bf16.mxu0 %v13213_v27  ;;  %v13301_v26 = vld [vmem:[%s16553_s2 + $0x340] ss:$40 sps:$4 sm:$0xff]   ;;  %v13306_v27 = vld [vmem:[%s16553_s2 + $0x394] ss:$40 sps:$4 sm:$0xff]  }
  0x5d   : > { %1490 = vmatprep.subr.bf16.mxu1 %v13216_v28  ;;  %v13304_v28 = vld [vmem:[%s16553_s2 + $0x390] ss:$40 sps:$4 sm:$0xff]  }
  0x5f   : > { %1450 = vmatpush1.bf16.msra.mxu0 %v13211_v29  ;;  %v13309_v29 = vld [vmem:[%s16553_s2 + $0x3e4] ss:$40 sps:$4 sm:$0xff]  }
  0x60   : > { %1491 = vmatpush1.bf16.msra.mxu1 %v13214_v30  ;;  %1451 = vmatprep.subr.bf16.mxu0 %v13219_v31  ;;  %v13307_v30 = vld [vmem:[%s16553_s2 + $0x3e0] ss:$40 sps:$4 sm:$0xff]   ;;  %v13312_v31 = vld [vmem:[%s16553_s2 + $0x434] ss:$40 sps:$4 sm:$0xff]  }
  0x61   : > { %1492 = vmatprep.subr.bf16.mxu1 %v13222_v32  ;;  %v13310_v32 = vld [vmem:[%s16553_s2 + $0x430] ss:$40 sps:$4 sm:$0xff]  }
  0x63   : > { %1452 = vmatpush1.bf16.msra.mxu0 %v13217_v33  ;;  %v13315_v33 = vld [vmem:[%s16553_s2 + $0x484] ss:$40 sps:$4 sm:$0xff]  }
  0x64   : > { %1493 = vmatpush1.bf16.msra.mxu1 %v13220_v34  ;;  %1453 = vmatprep.subr.bf16.mxu0 %v13225_v35  ;;  %v13313_v34 = vld [vmem:[%s16553_s2 + $0x480] ss:$40 sps:$4 sm:$0xff]   ;;  %v13318_v35 = vld [vmem:[%s16553_s2 + $0x4d4] ss:$40 sps:$4 sm:$0xff]  }
  0x65   : > { %1494 = vmatprep.subr.bf16.mxu1 %v13228_v36  ;;  %v13316_v36 = vld [vmem:[%s16553_s2 + $0x4d0] ss:$40 sps:$4 sm:$0xff]  }
  0x67   : > { %1454 = vmatpush1.bf16.msra.mxu0 %v13223_v37 }
  0x68   : > { %1495 = vmatpush1.bf16.msra.mxu1 %v13226_v38  ;;  %1455 = vmatprep.subr.bf16.mxu0 %v13231_v39 }
  0x69   : > { %1496 = vmatprep.subr.bf16.mxu1 %v13234_v40 }
  0x6b   : > { %1456 = vmatpush1.bf16.msra.mxu0 %v13229_v41 }
  0x6c   : > { %1497 = vmatpush1.bf16.msra.mxu1 %v13232_v42  ;;  %1457 = vmatprep.subr.bf16.mxu0 %v13237_v43 }
  0x6d   : > { %1498 = vmatprep.subr.bf16.mxu1 %v13240_v44 }
  0x6f   : > { %1458 = vmatpush1.bf16.msra.mxu0 %v13235_v45 }
  0x70   : > { %1499 = vmatpush1.bf16.msra.mxu1 %v13238_v46  ;;  %1459 = vmatprep.subr.bf16.mxu0 %v13243_v47 }
  0x71   : > { %1500 = vmatprep.subr.bf16.mxu1 %v13246_v49 }
  0x73   : > { %1460 = vmatpush1.bf16.msra.mxu0 %v13241_v50 }
  0x74   : > { %1501 = vmatpush1.bf16.msra.mxu1 %v13244_v51  ;;  %1461 = vmatprep.subr.bf16.mxu0 %v13249_v52 }
  0x75   : > { %1502 = vmatprep.subr.bf16.mxu1 %v13252_v53 }
  0x77   : > { %1462 = vmatpush1.bf16.msra.mxu0 %v13247_v54 }
  0x78   : > { %1503 = vmatpush1.bf16.msra.mxu1 %v13250_v55  ;;  %1463 = vmatprep.subr.bf16.mxu0 %v13255_v56 }
  0x79   : > { %1504 = vmatprep.subr.bf16.mxu1 %v13258_v57 }
  0x7b   : > { %1464 = vmatpush1.bf16.msra.mxu0 %v13253_v58 }
  0x7c   : > { %1505 = vmatpush1.bf16.msra.mxu1 %v13256_v59  ;;  %1465 = vmatprep.subr.bf16.mxu0 %v13261_v60 }
  0x7d   : > { %1506 = vmatprep.subr.bf16.mxu1 %v13264_v61 }
  0x7f   : > { %1466 = vmatpush1.bf16.msra.mxu0 %v13259_v62 }
  0x80   : > { %1507 = vmatpush1.bf16.msra.mxu1 %v13262_v63  ;;  %1467 = vmatprep.subr.bf16.mxu0 %v13267_v0 }
  0x81   : > { %1508 = vmatprep.subr.bf16.mxu1 %v13270_v1 }
  0x83   : > { %1468 = vmatpush1.bf16.msra.mxu0 %v13265_v2 }
  0x84   : > { %1509 = vmatpush1.bf16.msra.mxu1 %v13268_v3  ;;  %1519 = vmatprep.subr.bf16.mxu0 %v13273_v5 }
  0x86   : > { %1470 = vmatmul.mubr.bf16.vlgmr.msra.gmra.mrb[4].mxu0 %v13699_v4 }
  0x87   : > { %1511 = vmatmul.mubr.bf16.vlgmr.msra.gmra.mrb[4].mxu1 %v13699_v4  ;;  %1520 = vmatpush1.bf16.msra.mxu0 %v13271_v6 }
  0x88   : > { %1551 = vmatprep.mubr.bf16.mxu0 %v13638_v48  ;;  %1521 = vmatprep.subr.bf16.mxu0 %v13276_v7  ;;  %v13280_v48 = vld [vmem:[%s16553_s2 + $0x110] ss:$40 sps:$4 sm:$0xff]  }
  0x89   : > { %1742 = vmatprep.mubr.bf16.mxu1 %v13415_v19 }
  0x8b   : > { %1522 = vmatpush1.bf16.msra.mxu0 %v13274_v8 }
  0x8c   : > { %1523 = vmatprep.subr.bf16.mxu0 %v13279_v9 }
  0x8f   : > { %1524 = vmatpush1.bf16.msra.mxu0 %v13277_v10 }
  0x90   : > { %1525 = vmatprep.subr.bf16.mxu0 %v13282_v11 }
  0x93   : > { %1526 = vmatpush1.bf16.msra.mxu0 %v13280_v48 }
  0x94   : > { %1527 = vmatprep.subr.bf16.mxu0 %v13285_v12 }
  0x97   : > { %1528 = vmatpush1.bf16.msra.mxu0 %v13283_v13 }
  0x98   : > { %1529 = vmatprep.subr.bf16.mxu0 %v13288_v14 }
  0x9b   : > { %1530 = vmatpush1.bf16.msra.mxu0 %v13286_v15 }
  0x9c   : > { %1531 = vmatprep.subr.bf16.mxu0 %v13291_v16  ;;  %v14076_v16 = vld [vmem:[%s16554_s3 + $0x4] sm:$0xf] }
  0x9f   : > { %1532 = vmatpush1.bf16.msra.mxu0 %v13289_v17 }
  0xa0   : > { %1533 = vmatprep.subr.bf16.mxu0 %v13294_v18 }
  0xa3   : > { %1534 = vmatpush1.bf16.msra.mxu0 %v13292_v20 }
  0xa4   : > { %1535 = vmatprep.subr.bf16.mxu0 %v13297_v21 }
  0xa7   : > { %1536 = vmatpush1.bf16.msra.mxu0 %v13295_v22 }
  0xa8   : > { %1537 = vmatprep.subr.bf16.mxu0 %v13300_v23 }
  0xab   : > { %1538 = vmatpush1.bf16.msra.mxu0 %v13298_v24 }
  0xac   : > { %1539 = vmatprep.subr.bf16.mxu0 %v13303_v25 }
  0xaf   : > { %1540 = vmatpush1.bf16.msra.mxu0 %v13301_v26 }
  0xb0   : > { %1541 = vmatprep.subr.bf16.mxu0 %v13306_v27 }
  0xb3   : > { %1542 = vmatpush1.bf16.msra.mxu0 %v13304_v28 }
  0xb4   : > { %1543 = vmatprep.subr.bf16.mxu0 %v13309_v29 }
  0xb7   : > { %1544 = vmatpush1.bf16.msra.mxu0 %v13307_v30 }
  0xb8   : > { %1545 = vmatprep.subr.bf16.mxu0 %v13312_v31 }
  0xbb   : > { %1546 = vmatpush1.bf16.msra.mxu0 %v13310_v32 }
  0xbc   : > { %1547 = vmatprep.subr.bf16.mxu0 %v13315_v33 }
  0xbf   : > { %1548 = vmatpush1.bf16.msra.mxu0 %v13313_v34 }
  0xc0   : > { %1549 = vmatprep.subr.bf16.mxu0 %v13318_v35 }
  0xc3   : > { %1550 = vmatpush1.bf16.msra.mxu0 %v13316_v36 }
  0xc6   : > { %1552 = vmatmul.mubr.bf16.vlgmr.msra.gmra.mrb[8].mxu0 %v13699_v4 }
  0xc7   : > { %2136 = vmatprep.mubr.bf16.mxu0 %v13415_v19 }
 0x119   : > { %v14007_v37 = vpop.f32.mrb[0].mxu0 }
 0x11a   : > { %v14009_v38 = vpop.f32.mrb[0].mxu1  ;;  %v14011_v39 = vpop.f32.mrb[1].mxu0  ;;  %v14161_v33 = vpack.c.bf16 %v14007_v37, %v14007_v37 }
 0x11b   : > { %v14013_v40 = vpop.f32.mrb[1].mxu1  ;;  %v13041_v41 = vpack.c.bf16 %v14011_v39, %v14007_v37  ;;  %v1393_v43 = vpop.f32.mrb[2].mxu0  ;;  %v14157_v32 = vpack.c.bf16 %v14011_v39, %v14011_v39  ;;  %v14173_v35 = vpack.c.bf16 %v14009_v38, %v14009_v38 }
 0x11c   : > { %v13042_v42 = vpack.c.bf16 %v14013_v40, %v14009_v38  ;;  %v1434_v44 = vpop.f32.mrb[2].mxu1  ;;  %v1394_v45 = vpop.f32.mrb[3].mxu0  ;;  %v14169_v34 = vpack.c.bf16 %v14013_v40, %v14013_v40  ;;  %v14203_v40 = vld [vmem:[#allocation2 + $0x2c] ss:$0 sps:$4 sm:$0xff]  }
 0x11d   : > { %v1435_v4 = vpop.f32.mrb[3].mxu1  ;;  %1600 = vst [vmem:[#allocation2 + $0x4] sm:$0xff] %v13041_v41 }
 0x11e   : > { %1601 = vst [vmem:[#allocation2 + $0xc] sm:$0xff] %v13042_v42 }
 0x124   : > { %v1605_v47 = vld [vmem:[#allocation2] sm:$0xff] }
 0x125   : > { %v1606_v46 = vld [vmem:[#allocation2 + $0x8] sm:$0xff]  ;;  %v14021_v50 = vcombine.low %v1605_v47, %v1605_v47  ;;  %v14029_v52 = vcombine.high %v1605_v47, %v1605_v47 }
 0x126   : > { %v14019_v49 = vcombine.low %v1606_v46, %v1606_v46  ;;  %v14027_v51 = vcombine.high %v1606_v46, %v1606_v46 }
 0x127   : > { %1642 = vrot.lane.b32.xlu0 %v14021_v50, %s13416_s24 }
 0x128   : > { %1646 = vrot.lane.b32.xlu1 %v14019_v49, %s13416_s24 }
 0x12b   : > { %1644 = vrot.lane.b32.xlu0 %v14029_v52, %s13416_s24 }
 0x12c   : > { %1648 = vrot.lane.b32.xlu1 %v14027_v51, %s13416_s24 }
 0x159   : > { %v14035_v53 = vpop.f32.mrb[4].mxu0 }
 0x15a   : > { %v14037_v54 = vpop.f32.mrb[4].mxu1  ;;  %v14039_v55 = vpop.f32.mrb[5].mxu0  ;;  %v14185_v37 = vpack.c.bf16 %v14035_v53, %v14035_v53 }
 0x15b   : > { %v14041_v56 = vpop.f32.mrb[5].mxu1  ;;  %v13043_v57 = vpack.c.bf16 %v14039_v55, %v14035_v53  ;;  %v1475_v59 = vpop.f32.mrb[6].mxu0  ;;  %v14181_v36 = vpack.c.bf16 %v14039_v55, %v14039_v55  ;;  %v14197_v39 = vpack.c.bf16 %v14037_v54, %v14037_v54 }
 0x15c   : > { %v13044_v58 = vpack.c.bf16 %v14041_v56, %v14037_v54  ;;  %v1516_v60 = vpop.f32.mrb[6].mxu1  ;;  %v1476_v61 = vpop.f32.mrb[7].mxu0  ;;  %v14193_v38 = vpack.c.bf16 %v14041_v56, %v14041_v56 }
 0x15d   : > { %v1517_v62 = vpop.f32.mrb[7].mxu1  ;;  %1602 = vst [vmem:[#allocation2 + $0x14] sm:$0xff] %v13043_v57 }
 0x15e   : > { %1603 = vst [vmem:[#allocation2 + $0x1c] sm:$0xff] %v13044_v58 }
 0x164   : > { %v1607_v63 = vld [vmem:[#allocation2 + $0x10] sm:$0xff] }
 0x165   : > { %v14047_v0 = vcombine.high %v1607_v63, %v1607_v63  ;;  %v14049_v1 = vcombine.low %v1607_v63, %v1607_v63  ;;  %v1608_v2 = vld [vmem:[#allocation2 + $0x18] sm:$0xff] }
 0x166   : > { %v14055_v3 = vcombine.high %v1608_v2, %v1608_v2  ;;  %v14057_v5 = vcombine.low %v1608_v2, %v1608_v2 }
 0x167   : > { %1652 = vrot.lane.b32.xlu1 %v14047_v0, %s13416_s24  ;;  %1650 = vrot.lane.b32.xlu0 %v14049_v1, %s13416_s24 }
 0x16b   : > { %1656 = vrot.lane.b32.xlu1 %v14055_v3, %s13416_s24  ;;  %1654 = vrot.lane.b32.xlu0 %v14057_v5, %s13416_s24 }
 0x199   : > { %v1643_v6 = vpop.permute.xlu0 %1642  ;;  %v14063_v7 = vpop.f32.mrb[8].mxu0 }
 0x19a   : > { %v14065_v8 = vpop.f32.mrb[9].mxu0  ;;  %v1647_v48 = vpop.permute.xlu1 %1646  ;;  %v14219_v42 = vpack.c.bf16 %v14063_v7, %v14063_v7 }
 0x19b   : > { %v13045_v9 = vpack.c.bf16 %v14065_v8, %v14063_v7  ;;  %v1557_v10 = vpop.f32.mrb[10].mxu0  ;;  %v14215_v41 = vpack.c.bf16 %v14065_v8, %v14065_v8 }
 0x19c   : > { %v1558_v11 = vpop.f32.mrb[11].mxu0 }
 0x19d   : > { %1604 = vst [vmem:[#allocation2 + $0x24] sm:$0xff] %v13045_v9  ;;  %v1645_v12 = vpop.permute.xlu0 %1644 }
 0x19e   : > { %v1665_v13 = vsel %vm1664_vm0, %v1643_v6, %v1645_v12  ;;  %v1666_v14 = vsel %vm1664_vm0, %v1645_v12, %v1647_v48  ;;  %v1649_v22 = vpop.permute.xlu1 %1648 }
 0x19f   : > { %12519 = vmatprep.subr.msk.bf16.mxu1 %vm1679_vm1, %v1666_v14  ;;  %v1681_v15 = vsel %vm1679_vm1, %v1665_v13, 0  ;;  %v1667_v23 = vsel %vm1664_vm0, %v1647_v48, %v1649_v22 }
 0x1a0   : > { %1711 = vmatpush1.bf16.msra.mxu1 %v1681_v15  ;;  %v1687_v27 = vsel %vm1679_vm1, %v1667_v23, 0 }
 0x1a3   : > { %12520 = vmatmul.mubr.msk.bf16.vlgmr.msra.gmra.mrb[8].mxu1 %vm1675_vm2, %v14076_v16 }
 0x1a4   : > { %v1609_v17 = vld [vmem:[#allocation2 + $0x20] sm:$0xff]  ;;  %1783 = vmatprep.mubr.bf16.mxu1 %v13415_v19  ;;  %v13329_v21 = vld [vmem:[#allocation2 + $0x28] ss:$0 sps:$4 sm:$0xff]  }
 0x1a5   : > { %v12517_v18 = vcombine.high %v1609_v17, %v1609_v17  ;;  %v12516_v20 = vcombine.low %v1609_v17, %v1609_v17 }
 0x1a7   : > { %1660 = vrot.lane.b32.xlu1 %v12517_v18, %s13416_s24  ;;  %1658 = vrot.lane.b32.xlu0 %v12516_v20, %s13416_s24 }
 0x1ab   : > { %1915 = vrot.lane.b32.xlu1 %v14021_v50, %s13417_s28  ;;  %1662 = vrot.lane.b32.xlu0 %v13329_v21, %s13416_s24 }
 0x1af   : > { %1919 = vrot.lane.b32.xlu1 %v14019_v49, %s13417_s28  ;;  %1917 = vrot.lane.b32.xlu0 %v14029_v52, %s13417_s28 }
 0x1b3   : > { %1923 = vrot.lane.b32.xlu1 %v14049_v1, %s13417_s28  ;;  %1921 = vrot.lane.b32.xlu0 %v14027_v51, %s13417_s28 }
 0x1b7   : > { %1927 = vrot.lane.b32.xlu1 %v14057_v5, %s13417_s28  ;;  %1925 = vrot.lane.b32.xlu0 %v14047_v0, %s13417_s28 }
 0x1bb   : > { %2190 = vrot.lane.b32.xlu1 %v14029_v52, %s13418_s29  ;;  %1929 = vrot.lane.b32.xlu0 %v14055_v3, %s13417_s28 }
 0x1bf   : > { %1931 = vrot.lane.b32.xlu1 %v12516_v20, %s13417_s28  ;;  %2188 = vrot.lane.b32.xlu0 %v14021_v50, %s13418_s29 }
 0x1c3   : > { %1935 = vrot.lane.b32.xlu1 %v13329_v21, %s13417_s28  ;;  %1933 = vrot.lane.b32.xlu0 %v12517_v18, %s13417_s28 }
 0x1c7   : > { %2194 = vrot.lane.b32.xlu1 %v14027_v51, %s13418_s29  ;;  %2192 = vrot.lane.b32.xlu0 %v14019_v49, %s13418_s29 }
 0x1cb   : > { %2198 = vrot.lane.b32.xlu1 %v14047_v0, %s13418_s29  ;;  %2196 = vrot.lane.b32.xlu0 %v14049_v1, %s13418_s29 }
 0x1cf   : > { %2202 = vrot.lane.b32.xlu1 %v14055_v3, %s13418_s29  ;;  %2200 = vrot.lane.b32.xlu0 %v14057_v5, %s13418_s29 }
 0x1d3   : > { %2471 = vrot.lane.b32.xlu1 %v14021_v50, %s13419_s30  ;;  %2204 = vrot.lane.b32.xlu0 %v12516_v20, %s13418_s29 }
 0x1d7   : > { %2475 = vrot.lane.b32.xlu1 %v14019_v49, %s13419_s30  ;;  %2473 = vrot.lane.b32.xlu0 %v14029_v52, %s13419_s30 }
 0x1d9   : > { %v1651_v24 = vpop.permute.xlu0 %1650  ;;  %v1653_v26 = vpop.permute.xlu1 %1652 }
 0x1da   : > { %v1668_v25 = vsel %vm1664_vm0, %v1649_v22, %v1651_v24  ;;  %v1669_v29 = vsel %vm1664_vm0, %v1651_v24, %v1653_v26 }
 0x1db   : > { %12521 = vmatprep.subr.msk.bf16.mxu1 %vm1679_vm1, %v1668_v25  ;;  %2206 = vrot.lane.b32.xlu1 %v12517_v18, %s13418_s29  ;;  %v1693_v31 = vsel %vm1679_vm1, %v1669_v29, 0  ;;  %v12539_v25 = vld [vmem:[%s16554_s3 + $0x8] sm:$0xf] }
 0x1dc   : > { %2208 = vrot.lane.b32.xlu0 %v13329_v21, %s13418_s29  ;;  %1752 = vmatpush1.bf16.msra.mxu1 %v1687_v27 }
 0x1dd   : > { %v1655_v28 = vpop.permute.xlu0 %1654  ;;  %v1657_v43 = vpop.permute.xlu1 %1656 }
 0x1de   : > { %v1670_v30 = vsel %vm1664_vm0, %v1653_v26, %v1655_v28  ;;  %v1671_v44 = vsel %vm1664_vm0, %v1655_v28, %v1657_v43 }
 0x1df   : > { %12523 = vmatprep.subr.msk.bf16.mxu1 %vm1679_vm1, %v1670_v30  ;;  %2479 = vrot.lane.b32.xlu1 %v14049_v1, %s13419_s30  ;;  %v1699_v47 = vsel %vm1679_vm1, %v1671_v44, 0 }
 0x1e0   : > { %2477 = vrot.lane.b32.xlu0 %v14027_v51, %s13419_s30  ;;  %12522 = vmatmul.mubr.msk.bf16.vlgmr.msra.gmra.mrb[12].mxu1 %vm1675_vm2, %v14076_v16 }
 0x1e1   : > { %1793 = vmatpush1.bf16.msra.mxu1 %v1693_v31  ;;  %1824 = vmatprep.mubr.bf16.mxu1 %v13415_v19 }
 0x1e3   : > { %2483 = vrot.lane.b32.xlu1 %v14057_v5, %s13419_s30 }
 0x1e4   : > { %2481 = vrot.lane.b32.xlu0 %v14047_v0, %s13419_s30 }
 0x1e7   : > { %2487 = vrot.lane.b32.xlu1 %v12516_v20, %s13419_s30 }
 0x1e8   : > { %2485 = vrot.lane.b32.xlu0 %v14055_v3, %s13419_s30  ;;  %12524 = vmatmul.mubr.msk.bf16.vlgmr.msra.gmra.mrb[16].mxu1 %vm1675_vm2, %v14076_v16  ;;  %v14285_v3 = vld [vmem:[%s16554_s3] sm:$0xf] }
 0x1e9   : > { %1865 = vmatprep.mubr.bf16.mxu1 %v13415_v19 }
 0x1eb   : > { %2491 = vrot.lane.b32.xlu1 %v13329_v21, %s13419_s30 }
 0x1ec   : > { %2489 = vrot.lane.b32.xlu0 %v12517_v18, %s13419_s30 }
 0x1ef   : > { %3070 = vrot.lane.b32.xlu1 %v14157_v32, %s13420_s11 }
 0x1f0   : > { %3068 = vrot.lane.b32.xlu0 %v14161_v33, %s13420_s11 }
 0x1f3   : > { %3074 = vrot.lane.b32.xlu1 %v14169_v34, %s13420_s11 }
 0x1f4   : > { %3072 = vrot.lane.b32.xlu0 %v14173_v35, %s13420_s11 }
 0x1f7   : > { %3078 = vrot.lane.b32.xlu1 %v14181_v36, %s13420_s11 }
 0x1f8   : > { %3076 = vrot.lane.b32.xlu0 %v14185_v37, %s13420_s11 }
 0x1fb   : > { %3082 = vrot.lane.b32.xlu1 %v14193_v38, %s13420_s11 }
 0x1fc   : > { %3080 = vrot.lane.b32.xlu0 %v14197_v39, %s13420_s11 }
 0x1ff   : > { %3351 = vrot.lane.b32.xlu1 %v14161_v33, %s13421_s12 }
 0x200   : > { %3088 = vrot.lane.b32.xlu0 %v14203_v40, %s13420_s11 }
 0x203   : > { %3355 = vrot.lane.b32.xlu1 %v14173_v35, %s13421_s12 }
 0x204   : > { %3353 = vrot.lane.b32.xlu0 %v14157_v32, %s13421_s12 }
 0x207   : > { %3086 = vrot.lane.b32.xlu1 %v14215_v41, %s13420_s11 }
 0x208   : > { %3084 = vrot.lane.b32.xlu0 %v14219_v42, %s13420_s11 }
 0x20b   : > { %3359 = vrot.lane.b32.xlu1 %v14185_v37, %s13421_s12 }
 0x20c   : > { %3357 = vrot.lane.b32.xlu0 %v14169_v34, %s13421_s12 }
 0x20f   : > { %3363 = vrot.lane.b32.xlu1 %v14197_v39, %s13421_s12 }
 0x210   : > { %3361 = vrot.lane.b32.xlu0 %v14181_v36, %s13421_s12 }
 0x213   : > { %3371 = vrot.lane.b32.xlu1 %v14203_v40, %s13421_s12 }
 0x214   : > { %3365 = vrot.lane.b32.xlu0 %v14193_v38, %s13421_s12 }
 0x217   : > { %3367 = vrot.lane.b32.xlu1 %v14219_v42, %s13421_s12 }
 0x218   : > { %3634 = vrot.lane.b32.xlu0 %v14161_v33, %s13422_s16 }
 0x219   : > { %v1661_v45 = vpop.permute.xlu1 %1660  ;;  %v1659_v4 = vpop.permute.xlu0 %1658 }
 0x21a   : > { %v1672_v46 = vsel %vm1664_vm0, %v1657_v43, %v1659_v4  ;;  %v1673_v49 = vsel %vm1664_vm0, %v1659_v4, %v1661_v45 }
 0x21b   : > { %3636 = vrot.lane.b32.xlu1 %v14157_v32, %s13422_s16  ;;  %12525 = vmatprep.subr.msk.bf16.mxu1 %vm1679_vm1, %v1672_v46  ;;  %v1705_v53 = vsel %vm1679_vm1, %v1673_v49, 0 }
 0x21c   : > { %3638 = vrot.lane.b32.xlu0 %v14173_v35, %s13422_s16  ;;  %1834 = vmatpush1.bf16.msra.mxu1 %v1699_v47 }
 0x21d   : > { %v1916_v50 = vpop.permute.xlu1 %1915  ;;  %v1663_v51 = vpop.permute.xlu0 %1662 }
 0x21e   : > { %v1674_v52 = vsel %vm1664_vm0, %v1661_v45, %v1663_v51 }
 0x21f   : > { %3640 = vrot.lane.b32.xlu1 %v14169_v34, %s13422_s16  ;;  %12526 = vmatmul.mubr.msk.bf16.vlgmr.msra.gmra.mrb[20].mxu1 %vm1675_vm2, %v14076_v16 }
 0x220   : > { %3369 = vrot.lane.b32.xlu0 %v14215_v41, %s13421_s12  ;;  %12527 = vmatprep.subr.msk.bf16.mxu1 %vm1679_vm1, %v1674_v52 }
 0x221   : > { %1875 = vmatpush1.bf16.msra.mxu1 %v1705_v53  ;;  %v1920_v54 = vpop.permute.xlu1 %1919  ;;  %v1918_v55 = vpop.permute.xlu0 %1917  ;;  %1906 = vmatprep.mubr.bf16.mxu1 %v13415_v19 }
 0x222   : > { %v1939_v56 = vsel %vm1937_vm3, %v1918_v55, %v1920_v54  ;;  %v1938_v57 = vsel %vm1937_vm3, %v1916_v50, %v1918_v55 }
 0x223   : > { %3644 = vrot.lane.b32.xlu1 %v14181_v36, %s13422_s16  ;;  %12529 = vmatprep.subr.msk.bf16.mxu1 %vm1679_vm1, %v1939_v56  ;;  %v1952_v61 = vsel %vm1679_vm1, %v1938_v57, 0 }
 0x224   : > { %3642 = vrot.lane.b32.xlu0 %v14185_v37, %s13422_s16 }
 0x225   : > { %v1924_v58 = vpop.permute.xlu1 %1923  ;;  %v1922_v59 = vpop.permute.xlu0 %1921 }
 0x226   : > { %v1941_v60 = vsel %vm1937_vm3, %v1922_v59, %v1924_v58  ;;  %v1940_v0 = vsel %vm1937_vm3, %v1920_v54, %v1922_v59 }
 0x227   : > { %3648 = vrot.lane.b32.xlu1 %v14193_v38, %s13422_s16  ;;  %12528 = vmatmul.mubr.msk.bf16.vlgmr.msra.gmra.mrb[24].mxu1 %vm1675_vm2, %v14076_v16  ;;  %v1958_v5 = vsel %vm1679_vm1, %v1940_v0, 0 }
 0x228   : > { %3646 = vrot.lane.b32.xlu0 %v14197_v39, %s13422_s16  ;;  %1982 = vmatpush1.bf16.msra.mxu1 %v1952_v61 }
 0x229   : > { %v1928_v62 = vpop.permute.xlu1 %1927  ;;  %v1926_v63 = vpop.permute.xlu0 %1925  ;;  %2013 = vmatprep.mubr.bf16.mxu1 %v13415_v19  ;;  %12531 = vmatprep.subr.msk.bf16.mxu1 %vm1679_vm1, %v1941_v60 }
 0x22a   : > { %v1943_v7 = vsel %vm1937_vm3, %v1926_v63, %v1928_v62  ;;  %v1942_v48 = vsel %vm1937_vm3, %v1924_v58, %v1926_v63 }
 0x22b   : > { %3917 = vrot.lane.b32.xlu1 %v14161_v33, %s13423_s17  ;;  %v1964_v15 = vsel %vm1679_vm1, %v1942_v48, 0 }
 0x22c   : > { %3654 = vrot.lane.b32.xlu0 %v14203_v40, %s13422_s16 }
 0x22d   : > { %v2191_v1 = vpop.permute.xlu1 %2190  ;;  %v1930_v2 = vpop.permute.xlu0 %1929 }
 0x22e   : > { %v1944_v6 = vsel %vm1937_vm3, %v1928_v62, %v1930_v2 }
 0x22f   : > { %3652 = vrot.lane.b32.xlu1 %v14215_v41, %s13422_s16  ;;  %12530 = vmatmul.mubr.msk.bf16.vlgmr.msra.gmra.mrb[28].mxu1 %vm1675_vm2, %v14285_v3  ;;  %v1970_v11 = vsel %vm1679_vm1, %v1944_v6, 0 }
 0x230   : > { %3650 = vrot.lane.b32.xlu0 %v14219_v42, %s13422_s16  ;;  %2023 = vmatpush1.bf16.msra.mxu1 %v1958_v5  ;;  %v12550_v5 = vld [vmem:[%s16554_s3 + $0xc] sm:$0xf] }
 0x231   : > { %v1932_v8 = vpop.permute.xlu1 %1931  ;;  %v2189_v9 = vpop.permute.xlu0 %2188  ;;  %2054 = vmatprep.mubr.bf16.mxu1 %v13415_v19  ;;  %12533 = vmatprep.subr.msk.bf16.mxu1 %vm1679_vm1, %v1943_v7 }
 0x232   : > { %v1945_v10 = vsel %vm1937_vm3, %v1930_v2, %v1932_v8  ;;  %v2211_v16 = vsel %vm2210_vm4, %v2189_v9, %v2191_v1 }
 0x233   : > { %3921 = vrot.lane.b32.xlu1 %v14173_v35, %s13423_s17  ;;  %12535 = vmatprep.subr.msk.bf16.mxu0 %vm1679_vm1, %v1945_v10  ;;  %v2225_v21 = vsel %vm1679_vm1, %v2211_v16, 0 }
 0x234   : > { %3919 = vrot.lane.b32.xlu0 %v14157_v32, %s13423_s17  ;;  %2105 = vmatpush1.bf16.msra.mxu0 %v1970_v11 }
 0x235   : > { %v1936_v12 = vpop.permute.xlu1 %1935  ;;  %v1934_v13 = vpop.permute.xlu0 %1933 }
 0x236   : > { %v1947_v14 = vsel %vm1937_vm3, %v1934_v13, %v1936_v12  ;;  %v1946_v22 = vsel %vm1937_vm3, %v1932_v8, %v1934_v13 }
 0x237   : > { %3925 = vrot.lane.b32.xlu1 %v14185_v37, %s13423_s17  ;;  %12532 = vmatmul.mubr.msk.bf16.vlgmr.msra.gmra.mrb[32].mxu1 %vm1675_vm2, %v14285_v3  ;;  %v1976_v27 = vsel %vm1679_vm1, %v1946_v22, 0  ;;  %v12561_v22 = vld [vmem:[%s16554_s3 + $0x10] sm:$0xf] }
 0x238   : > { %3923 = vrot.lane.b32.xlu0 %v14169_v34, %s13423_s17  ;;  %12536 = vmatmul.mubr.msk.bf16.vlgmr.msra.gmra.mrb[12].mxu0 %vm1675_vm2, %v14285_v3 }
 0x239   : > { %2064 = vmatpush1.bf16.msra.mxu1 %v1964_v15  ;;  %v2195_v17 = vpop.permute.xlu1 %2194  ;;  %v2193_v18 = vpop.permute.xlu0 %2192  ;;  %2095 = vmatprep.mubr.bf16.mxu1 %v13415_v19 }
 0x23a   : > { %12537 = vmatprep.subr.msk.bf16.mxu1 %vm1679_vm1, %v1947_v14  ;;  %v2212_v20 = vsel %vm2210_vm4, %v2191_v1, %v2193_v18  ;;  %2286 = vmatprep.mubr.bf16.mxu0 %v13415_v19  ;;  %v2213_v44 = vsel %vm2210_vm4, %v2193_v18, %v2195_v17 }
 0x23b   : > { %3929 = vrot.lane.b32.xlu1 %v14197_v39, %s13423_s17  ;;  %12540 = vmatprep.subr.msk.bf16.mxu0 %vm1679_vm1, %v2212_v20  ;;  %v2231_v47 = vsel %vm1679_vm1, %v2213_v44, 0 }
 0x23c   : > { %3927 = vrot.lane.b32.xlu0 %v14181_v36, %s13423_s17  ;;  %2255 = vmatpush1.bf16.msra.mxu0 %v2225_v21 }
 0x23d   : > { %v2199_v23 = vpop.permute.xlu1 %2198  ;;  %v2197_v24 = vpop.permute.xlu0 %2196 }
 0x23e   : > { %v2214_v26 = vsel %vm2210_vm4, %v2195_v17, %v2197_v24  ;;  %v2215_v28 = vsel %vm2210_vm4, %v2197_v24, %v2199_v23  ;;  %v2788_v17 = vsel %vm1679_vm1, %v14161_v33, 0 }
 0x23f   : > { %3933 = vrot.lane.b32.xlu1 %v14219_v42, %s13423_s17  ;;  %12534 = vmatmul.mubr.msk.bf16.vlgmr.msra.gmra.mrb[36].mxu1 %vm1675_vm2, %v14285_v3  ;;  %v2237_v43 = vsel %vm1679_vm1, %v2215_v28, 0 }
 0x240   : > { %3931 = vrot.lane.b32.xlu0 %v14193_v38, %s13423_s17  ;;  %12541 = vmatmul.mubr.msk.bf16.vlgmr.msra.gmra.mrb[16].mxu0 %vm1675_vm2, %v12539_v25 }
 0x241   : > { %2146 = vmatpush1.bf16.msra.mxu1 %v1976_v27  ;;  %v2203_v29 = vpop.permute.xlu1 %2202  ;;  %v2201_v30 = vpop.permute.xlu0 %2200  ;;  %2177 = vmatprep.mubr.bf16.mxu1 %v13415_v19 }
 0x242   : > { %12542 = vmatprep.subr.msk.bf16.mxu1 %vm1679_vm1, %v2214_v26  ;;  %v2216_v31 = vsel %vm2210_vm4, %v2199_v23, %v2201_v30  ;;  %2368 = vmatprep.mubr.bf16.mxu0 %v13415_v19  ;;  %v2217_v50 = vsel %vm2210_vm4, %v2201_v30, %v2203_v29  ;;  %v2794_v26 = vsel %vm1679_vm1, %v14173_v35, 0 }
 0x243   : > { %3937 = vrot.lane.b32.xlu1 %v14203_v40, %s13423_s17  ;;  %12544 = vmatprep.subr.msk.bf16.mxu0 %vm1679_vm1, %v2216_v31  ;;  %v2243_v56 = vsel %vm1679_vm1, %v2217_v50, 0 }
 0x244   : > { %3935 = vrot.lane.b32.xlu0 %v14215_v41, %s13423_s17  ;;  %2337 = vmatpush1.bf16.msra.mxu0 %v2237_v43 }
 0x245   : > { %v2472_v45 = vpop.permute.xlu1 %2471  ;;  %v2205_v4 = vpop.permute.xlu0 %2204 }
 0x246   : > { %v2218_v46 = vsel %vm2210_vm4, %v2203_v29, %v2205_v4 }
 0x247   : > { %12538 = vmatmul.mubr.msk.bf16.vlgmr.msra.gmra.mrb[40].mxu1 %vm1675_vm2, %v14285_v3 }
 0x248   : > { %12545 = vmatmul.mubr.msk.bf16.vlgmr.msra.gmra.mrb[20].mxu0 %vm1675_vm2, %v12539_v25  ;;  %2296 = vmatpush1.bf16.msra.mxu1 %v2231_v47 }
 0x249   : > { %v2476_v40 = vpop.permute.xlu1 %2475  ;;  %v2474_v49 = vpop.permute.xlu0 %2473  ;;  %2327 = vmatprep.mubr.bf16.mxu1 %v13415_v19  ;;  %12546 = vmatprep.subr.msk.bf16.mxu1 %vm1679_vm1, %v2218_v46 }
 0x24a   : > { %2450 = vmatprep.mubr.bf16.mxu0 %v13415_v19  ;;  %v2495_v57 = vsel %vm2493_vm5, %v2474_v49, %v2476_v40  ;;  %v2494_v63 = vsel %vm2493_vm5, %v2472_v45, %v2474_v49 }
 0x24b   : > { %v2508_v3 = vsel %vm1679_vm1, %v2494_v63, 0 }
 0x24d   : > { %v2207_v51 = vpop.permute.xlu1 %2206 }
 0x24e   : > { %v2209_v52 = vpop.permute.xlu0 %2208  ;;  %v2219_v53 = vsel %vm2210_vm4, %v2205_v4, %v2207_v51 }
 0x24f   : > { %v2220_v54 = vsel %vm2210_vm4, %v2207_v51, %v2209_v52  ;;  %v2249_v55 = vsel %vm1679_vm1, %v2219_v53, 0  ;;  %12543 = vmatmul.mubr.msk.bf16.vlgmr.msra.gmra.mrb[44].mxu1 %vm1675_vm2, %v12539_v25  ;;  %v12582_v52 = vld [vmem:[%s16554_s3 + $0x14] sm:$0xf] }
 0x250   : > { %12548 = vmatprep.subr.msk.bf16.mxu0 %vm1679_vm1, %v2220_v54  ;;  %2378 = vmatpush1.bf16.msra.mxu1 %v2243_v56 }
 0x251   : > { %2419 = vmatpush1.bf16.msra.mxu0 %v2249_v55  ;;  %v2480_v58 = vpop.permute.xlu1 %2479  ;;  %2409 = vmatprep.mubr.bf16.mxu1 %v13415_v19 }
 0x252   : > { %v2478_v59 = vpop.permute.xlu0 %2477  ;;  %12551 = vmatprep.subr.msk.bf16.mxu1 %vm1679_vm1, %v2495_v57 }
 0x253   : > { %v2496_v60 = vsel %vm2493_vm5, %v2476_v40, %v2478_v59  ;;  %v2497_v61 = vsel %vm2493_vm5, %v2478_v59, %v2480_v58 }
 0x254   : > { %12549 = vmatmul.mubr.msk.bf16.vlgmr.msra.gmra.mrb[24].mxu0 %vm1675_vm2, %v12539_v25  ;;  %12553 = vmatprep.subr.msk.bf16.mxu0 %vm1679_vm1, %v2497_v61  ;;  %v2514_v62 = vsel %vm1679_vm1, %v2496_v60, 0 }
 0x255   : > { %2579 = vmatpush1.bf16.msra.mxu0 %v2514_v62  ;;  %2610 = vmatprep.mubr.bf16.mxu0 %v13415_v19  ;;  %v2484_v0 = vpop.permute.xlu1 %2483 }
 0x256   : > { %v2482_v1 = vpop.permute.xlu0 %2481 }
 0x257   : > { %v2499_v2 = vsel %vm2493_vm5, %v2482_v1, %v2484_v0  ;;  %12547 = vmatmul.mubr.msk.bf16.vlgmr.msra.gmra.mrb[48].mxu1 %vm1675_vm2, %v12539_v25  ;;  %v2498_v11 = vsel %vm2493_vm5, %v2480_v58, %v2482_v1 }
 0x258   : > { %2538 = vmatpush1.bf16.msra.mxu1 %v2508_v3  ;;  %2569 = vmatprep.mubr.bf16.mxu1 %v13415_v19  ;;  %v2520_v14 = vsel %vm1679_vm1, %v2498_v11, 0  ;;  %v12604_v11 = vld [vmem:[%s16554_s3 + $0x18] sm:$0xf] }
 0x259   : > { %v2488_v6 = vpop.permute.xlu1 %2487  ;;  %12555 = vmatprep.subr.msk.bf16.mxu1 %vm1679_vm1, %v2499_v2 }
 0x25a   : > { %v2486_v7 = vpop.permute.xlu0 %2485 }
 0x25b   : > { %v2500_v8 = vsel %vm2493_vm5, %v2484_v0, %v2486_v7  ;;  %v2501_v9 = vsel %vm2493_vm5, %v2486_v7, %v2488_v6 }
 0x25c   : > { %12554 = vmatmul.mubr.msk.bf16.vlgmr.msra.gmra.mrb[28].mxu0 %vm1675_vm2, %v12550_v5  ;;  %12557 = vmatprep.subr.msk.bf16.mxu0 %vm1679_vm1, %v2501_v9  ;;  %v2526_v10 = vsel %vm1679_vm1, %v2500_v8, 0  ;;  %v4198_v8 = vld [vmem:[%s16555_s4] sm:$0xff] }
 0x25d   : > { %2661 = vmatpush1.bf16.msra.mxu0 %v2526_v10  ;;  %2692 = vmatprep.mubr.bf16.mxu0 %v13415_v19  ;;  %v2492_v48 = vpop.permute.xlu1 %2491 }
 0x25e   : > { %12572 = vmatprep.subr.msk.bf16.mxu0 %vm1679_vm1, %v14157_v32  ;;  %v2490_v12 = vpop.permute.xlu0 %2489  ;;  %4201 = vperm.xlu0 %13075, %v4198_v8  }
 0x25f   : > { %v2503_v13 = vsel %vm2493_vm5, %v2490_v12, %v2492_v48  ;;  %12552 = vmatmul.mubr.msk.bf16.vlgmr.msra.gmra.mrb[52].mxu1 %vm1675_vm2, %v12550_v5  ;;  %v2502_v32 = vsel %vm2493_vm5, %v2488_v6, %v2490_v12 }
 0x260   : > { %2620 = vmatpush1.bf16.msra.mxu1 %v2520_v14  ;;  %2651 = vmatprep.mubr.bf16.mxu1 %v13415_v19  ;;  %v2532_v21 = vsel %vm1679_vm1, %v2502_v32, 0 }
 0x261   : > { %v3071_v15 = vpop.permute.xlu1 %3070  ;;  %12559 = vmatprep.subr.msk.bf16.mxu1 %vm1679_vm1, %v2503_v13 }
 0x262   : > { %v3069_v16 = vpop.permute.xlu0 %3068 }
 0x264   : > { %12558 = vmatmul.mubr.msk.bf16.vlgmr.msra.gmra.mrb[32].mxu0 %vm1675_vm2, %v12550_v5 }
 0x265   : > { %2818 = vmatpush1.bf16.msra.mxu0 %v2788_v17  ;;  %2849 = vmatprep.mubr.bf16.mxu0 %v13415_v19  ;;  %v3075_v18 = vpop.permute.xlu1 %3074 }
 0x266   : > { %12576 = vmatprep.subr.msk.bf16.mxu0 %vm1679_vm1, %v14181_v36  ;;  %v3073_v20 = vpop.permute.xlu0 %3072  ;;  %v2800_v36 = vsel %vm1679_vm1, %v14185_v37, 0  ;;  %v2812_v37 = vsel %vm1679_vm1, %v14219_v42, 0  ;;  %v2806_v42 = vsel %vm1679_vm1, %v14197_v39, 0  ;;  %v3091_v39 = vsel %vm3090_vm6, %v3069_v16, %v3071_v15 }
 0x267   : > { %12556 = vmatmul.mubr.msk.bf16.vlgmr.msra.gmra.mrb[56].mxu1 %vm1675_vm2, %v12550_v5  ;;  %v3093_v30 = vsel %vm3090_vm6, %v3073_v20, %v3075_v18  ;;  %v3092_v43 = vsel %vm3090_vm6, %v3071_v15, %v3073_v20  ;;  %v3105_v50 = vsel %vm1679_vm1, %v3091_v39, 0 }
 0x268   : > { %2702 = vmatpush1.bf16.msra.mxu1 %v2532_v21  ;;  %2733 = vmatprep.mubr.bf16.mxu1 %v13415_v19  ;;  %v3111_v47 = vsel %vm1679_vm1, %v3093_v30, 0 }
 0x269   : > { %v14411_v33 = vpop.permute.xlu1 %3078  ;;  %12574 = vmatprep.subr.msk.bf16.mxu1 %vm1679_vm1, %v14169_v34 }
 0x26a   : > { %v14413_v23 = vpop.permute.xlu0 %3076 }
 0x26b   : > { %v3095_v58 = vsel %vm3090_vm6, %v14413_v23, %v14411_v33 }
 0x26c   : > { %12573 = vmatmul.mubr.msk.bf16.vlgmr.msra.gmra.mrb[36].mxu0 %vm1675_vm2, %v12561_v22  ;;  %v3117_v62 = vsel %vm1679_vm1, %v3095_v58, 0 }
 0x26d   : > { %2900 = vmatpush1.bf16.msra.mxu0 %v2800_v36  ;;  %2931 = vmatprep.mubr.bf16.mxu0 %v13415_v19  ;;  %v3083_v24 = vpop.permute.xlu1 %3082 }
 0x26e   : > { %12580 = vmatprep.subr.msk.bf16.mxu0 %vm1679_vm1, %v14215_v41  ;;  %v3081_v25 = vpop.permute.xlu0 %3080  ;;  %v3094_v41 = vsel %vm3090_vm6, %v3075_v18, %v14413_v23 }
 0x26f   : > { %12560 = vmatmul.mubr.msk.bf16.vlgmr.msra.gmra.mrb[60].mxu1 %vm1675_vm2, %v12550_v5  ;;  %v3097_v51 = vsel %vm3090_vm6, %v3081_v25, %v3083_v24  ;;  %v3096_v53 = vsel %vm3090_vm6, %v14411_v33, %v3081_v25 }
 0x270   : > { %2859 = vmatpush1.bf16.msra.mxu1 %v2794_v26  ;;  %2890 = vmatprep.mubr.bf16.mxu1 %v13415_v19  ;;  %v3123_v56 = vsel %vm1679_vm1, %v3097_v51, 0 }
 0x271   : > { %v3352_v34 = vpop.permute.xlu1 %3351  ;;  %12578 = vmatprep.subr.msk.bf16.mxu1 %vm1679_vm1, %v14193_v38 }
 0x272   : > { %v3089_v27 = vpop.permute.xlu0 %3088 }
 0x274   : > { %12577 = vmatmul.mubr.msk.bf16.vlgmr.msra.gmra.mrb[40].mxu0 %vm1675_vm2, %v12561_v22 }
 0x275   : > { %2982 = vmatpush1.bf16.msra.mxu0 %v2812_v37  ;;  %3013 = vmatprep.mubr.bf16.mxu0 %v13415_v19  ;;  %v14437_v35 = vpop.permute.xlu1 %3355 }
 0x276   : > { %12596 = vmatprep.subr.msk.bf16.mxu0 %vm1679_vm1, %v3094_v41  ;;  %v3354_v28 = vpop.permute.xlu0 %3353  ;;  %v14439_v29 = vpop.f32.mrb[8].mxu1 }
 0x277   : > { %v14441_v38 = vpop.f32.mrb[9].mxu1  ;;  %12575 = vmatmul.mubr.msk.bf16.vlgmr.msra.gmra.mrb[64].mxu1 %vm1675_vm2, %v12561_v22  ;;  %v3375_v57 = vsel %vm3373_vm7, %v3354_v28, %v14437_v35  ;;  %v3374_v61 = vsel %vm3373_vm7, %v3352_v34, %v3354_v28 }
 0x278   : > { %v1748_v31 = vpop.f32.mrb[10].mxu1  ;;  %2941 = vmatpush1.bf16.msra.mxu1 %v2806_v42  ;;  %2972 = vmatprep.mubr.bf16.mxu1 %v13415_v19  ;;  %v3388_v2 = vsel %vm1679_vm1, %v3374_v61, 0 }
 0x279   : > { %v3087_v44 = vpop.permute.xlu1 %3086  ;;  %12594 = vmatprep.subr.msk.bf16.mxu1 %vm1679_vm1, %v3092_v43  ;;  %v1749_v46 = vpop.f32.mrb[11].mxu1 }
 0x27a   : > { %v3085_v45 = vpop.permute.xlu0 %3084  ;;  %v3100_v63 = vsel %vm3090_vm6, %v3087_v44, %v3089_v27 }
 0x27b   : > { %v3098_v4 = vsel %vm3090_vm6, %v3083_v24, %v3085_v45  ;;  %v3099_v5 = vsel %vm3090_vm6, %v3085_v45, %v3087_v44 }
 0x27c   : > { %12581 = vmatmul.mubr.msk.bf16.vlgmr.msra.gmra.mrb[44].mxu0 %vm1675_vm2, %v12561_v22  ;;  %v3129_v10 = vsel %vm1679_vm1, %v3099_v5, 0 }
 0x27d   : > { %3176 = vmatpush1.bf16.msra.mxu0 %v3111_v47  ;;  %3207 = vmatprep.mubr.bf16.mxu0 %v13415_v19  ;;  %v3360_v40 = vpop.permute.xlu1 %3359 }
 0x27e   : > { %12600 = vmatprep.subr.msk.bf16.mxu0 %vm1679_vm1, %v3098_v4  ;;  %v3358_v49 = vpop.permute.xlu0 %3357  ;;  %v12615_v4 = vld [vmem:[%s16554_s3 + $0x1c] sm:$0xf] }
 0x27f   : > { %12579 = vmatmul.mubr.msk.bf16.vlgmr.msra.gmra.mrb[68].mxu1 %vm1675_vm2, %v12561_v22  ;;  %v3377_v48 = vsel %vm3373_vm7, %v3358_v49, %v3360_v40  ;;  %v3376_v16 = vsel %vm3373_vm7, %v14437_v35, %v3358_v49 }
 0x280   : > { %3135 = vmatpush1.bf16.msra.mxu1 %v3105_v50  ;;  %3166 = vmatprep.mubr.bf16.mxu1 %v13415_v19  ;;  %v3394_v20 = vsel %vm1679_vm1, %v3376_v16, 0 }
 0x281   : > { %v14464_v54 = vpop.permute.xlu1 %3363  ;;  %12598 = vmatprep.subr.msk.bf16.mxu1 %vm1679_vm1, %v3096_v53 }
 0x282   : > { %v3362_v55 = vpop.permute.xlu0 %3361 }
 0x283   : > { %v3379_v3 = vsel %vm3373_vm7, %v3362_v55, %v14464_v54  ;;  %v3378_v9 = vsel %vm3373_vm7, %v3360_v40, %v3362_v55 }
 0x284   : > { %12597 = vmatmul.mubr.msk.bf16.vlgmr.msra.gmra.mrb[48].mxu0 %vm1675_vm2, %v12582_v52  ;;  %v3400_v15 = vsel %vm1679_vm1, %v3378_v9, 0 }
 0x285   : > { %3258 = vmatpush1.bf16.msra.mxu0 %v3123_v56  ;;  %3289 = vmatprep.mubr.bf16.mxu0 %v13415_v19  ;;  %v3372_v59 = vpop.permute.xlu1 %3371 }
 0x286   : > { %12605 = vmatprep.subr.msk.bf16.mxu0 %vm1679_vm1, %v3375_v57  ;;  %v3366_v60 = vpop.permute.xlu0 %3365 }
 0x287   : > { %12595 = vmatmul.mubr.msk.bf16.vlgmr.msra.gmra.mrb[72].mxu1 %vm1675_vm2, %v12582_v52  ;;  %v3380_v24 = vsel %vm3373_vm7, %v14464_v54, %v3366_v60 }
 0x288   : > { %3217 = vmatpush1.bf16.msra.mxu1 %v3117_v62  ;;  %3248 = vmatprep.mubr.bf16.mxu1 %v13415_v19  ;;  %v3406_v27 = vsel %vm1679_vm1, %v3380_v24, 0 }
 0x289   : > { %v3368_v0 = vpop.permute.xlu1 %3367  ;;  %12602 = vmatprep.subr.msk.bf16.mxu1 %vm1679_vm1, %v3100_v63 }
 0x28a   : > { %v14481_v1 = vpop.permute.xlu0 %3634  ;;  %v3381_v21 = vsel %vm3373_vm7, %v3366_v60, %v3368_v0 }
 0x28c   : > { %12601 = vmatmul.mubr.msk.bf16.vlgmr.msra.gmra.mrb[52].mxu0 %vm1675_vm2, %v12582_v52 }
 0x28d   : > { %3418 = vmatpush1.bf16.msra.mxu0 %v3388_v2  ;;  %3449 = vmatprep.mubr.bf16.mxu0 %v13415_v19  ;;  %v3637_v6 = vpop.permute.xlu1 %3636 }
 0x28e   : > { %12609 = vmatprep.subr.msk.bf16.mxu0 %vm1679_vm1, %v3379_v3  ;;  %v3639_v7 = vpop.permute.xlu0 %3638  ;;  %v3657_v42 = vsel %vm3656_vm8, %v14481_v1, %v3637_v6  ;;  %v12626_v3 = vld [vmem:[%s16554_s3 + $0x20] sm:$0xf] }
 0x28f   : > { %12599 = vmatmul.mubr.msk.bf16.vlgmr.msra.gmra.mrb[76].mxu1 %vm1675_vm2, %v12582_v52  ;;  %v3658_v37 = vsel %vm3656_vm8, %v3637_v6, %v3639_v7  ;;  %v3671_v45 = vsel %vm1679_vm1, %v3657_v42, 0 }
 0x290   : > { %3299 = vmatpush1.bf16.msra.mxu1 %v3129_v10  ;;  %3330 = vmatprep.mubr.bf16.mxu1 %v13415_v19 }
 0x291   : > { %v3641_v12 = vpop.permute.xlu1 %3640  ;;  %12607 = vmatprep.subr.msk.bf16.mxu1 %vm1679_vm1, %v3377_v48 }
 0x292   : > { %v3370_v13 = vpop.permute.xlu0 %3369  ;;  %v3659_v34 = vsel %vm3656_vm8, %v3639_v7, %v3641_v12 }
 0x293   : > { %v3383_v14 = vsel %vm3373_vm7, %v3370_v13, %v3372_v59  ;;  %v3382_v18 = vsel %vm3373_vm7, %v3368_v0, %v3370_v13  ;;  %v3677_v30 = vsel %vm1679_vm1, %v3659_v34, 0 }
 0x294   : > { %12606 = vmatmul.mubr.msk.bf16.vlgmr.msra.gmra.mrb[56].mxu0 %vm1675_vm2, %v12604_v11  ;;  %v3412_v23 = vsel %vm1679_vm1, %v3382_v18, 0 }
 0x295   : > { %3500 = vmatpush1.bf16.msra.mxu0 %v3400_v15  ;;  %3531 = vmatprep.mubr.bf16.mxu0 %v13415_v19  ;;  %v3645_v17 = vpop.permute.xlu1 %3644 }
 0x296   : > { %12613 = vmatprep.subr.msk.bf16.mxu0 %vm1679_vm1, %v3383_v14  ;;  %v3643_v32 = vpop.permute.xlu0 %3642 }
 0x297   : > { %12603 = vmatmul.mubr.msk.bf16.vlgmr.msra.gmra.mrb[80].mxu1 %vm1675_vm2, %v12582_v52  ;;  %v3660_v36 = vsel %vm3656_vm8, %v3641_v12, %v3643_v32  ;;  %v3661_v50 = vsel %vm3656_vm8, %v3643_v32, %v3645_v17 }
 0x298   : > { %3459 = vmatpush1.bf16.msra.mxu1 %v3394_v20  ;;  %3490 = vmatprep.mubr.bf16.mxu1 %v13415_v19  ;;  %v3683_v54 = vsel %vm1679_vm1, %v3661_v50, 0 }
 0x299   : > { %v3649_v22 = vpop.permute.xlu1 %3648  ;;  %12611 = vmatprep.subr.msk.bf16.mxu1 %vm1679_vm1, %v3381_v21 }
 0x29a   : > { %v3647_v33 = vpop.permute.xlu0 %3646 }
 0x29b   : > { %v3663_v44 = vsel %vm3656_vm8, %v3647_v33, %v3649_v22  ;;  %v3662_v46 = vsel %vm3656_vm8, %v3645_v17, %v3647_v33 }
 0x29c   : > { %12610 = vmatmul.mubr.msk.bf16.vlgmr.msra.gmra.mrb[60].mxu0 %vm1675_vm2, %v12604_v11  ;;  %v3689_v40 = vsel %vm1679_vm1, %v3663_v44, 0 }
 0x29d   : > { %3582 = vmatpush1.bf16.msra.mxu0 %v3412_v23  ;;  %3613 = vmatprep.mubr.bf16.mxu0 %v13415_v19  ;;  %v3918_v25 = vpop.permute.xlu1 %3917 }
 0x29e   : > { %12618 = vmatprep.subr.msk.bf16.mxu0 %vm1679_vm1, %v3660_v36  ;;  %v3655_v26 = vpop.permute.xlu0 %3654 }
 0x29f   : > { %12608 = vmatmul.mubr.msk.bf16.vlgmr.msra.gmra.mrb[84].mxu1 %vm1675_vm2, %v12604_v11 }
 0x2a0   : > { %3541 = vmatpush1.bf16.msra.mxu1 %v3406_v27  ;;  %3572 = vmatprep.mubr.bf16.mxu1 %v13415_v19 }
 0x2a1   : > { %v3653_v41 = vpop.permute.xlu1 %3652  ;;  %12616 = vmatprep.subr.msk.bf16.mxu1 %vm1679_vm1, %v3658_v37 }
 0x2a2   : > { %v3651_v35 = vpop.permute.xlu0 %3650  ;;  %v3666_v55 = vsel %vm3656_vm8, %v3653_v41, %v3655_v26 }
 0x2a3   : > { %v3664_v28 = vsel %vm3656_vm8, %v3649_v22, %v3651_v35  ;;  %v3665_v62 = vsel %vm3656_vm8, %v3651_v35, %v3653_v41 }
 0x2a4   : > { %12614 = vmatmul.mubr.msk.bf16.vlgmr.msra.gmra.mrb[64].mxu0 %vm1675_vm2, %v12604_v11  ;;  %v3695_v2 = vsel %vm1679_vm1, %v3665_v62, 0 }
 0x2a5   : > { %3742 = vmatpush1.bf16.msra.mxu0 %v3677_v30  ;;  %3773 = vmatprep.mubr.bf16.mxu0 %v13415_v19  ;;  %v3922_v31 = vpop.permute.xlu1 %3921 }
 0x2a6   : > { %12622 = vmatprep.subr.msk.bf16.mxu0 %vm1679_vm1, %v3664_v28  ;;  %v3920_v43 = vpop.permute.xlu0 %3919 }
 0x2a7   : > { %12612 = vmatmul.mubr.msk.bf16.vlgmr.msra.gmra.mrb[88].mxu1 %vm1675_vm2, %v12604_v11  ;;  %v3941_v49 = vsel %vm3939_vm9, %v3920_v43, %v3922_v31  ;;  %v3940_v53 = vsel %vm3939_vm9, %v3918_v25, %v3920_v43 }
 0x2a8   : > { %3701 = vmatpush1.bf16.msra.mxu1 %v3671_v45  ;;  %3732 = vmatprep.mubr.bf16.mxu1 %v13415_v19  ;;  %v3954_v58 = vsel %vm1679_vm1, %v3940_v53, 0 }
 0x2a9   : > { %v3926_v47 = vpop.permute.xlu1 %3925  ;;  %12620 = vmatprep.subr.msk.bf16.mxu1 %vm1679_vm1, %v3662_v46 }
 0x2aa   : > { %v3924_v39 = vpop.permute.xlu0 %3923 }
 0x2ab   : > { %v3943_v7 = vsel %vm3939_vm9, %v3924_v39, %v3926_v47  ;;  %v3942_v48 = vsel %vm3939_vm9, %v3922_v31, %v3924_v39 }
 0x2ac   : > { %12619 = vmatmul.mubr.msk.bf16.vlgmr.msra.gmra.mrb[68].mxu0 %vm1675_vm2, %v12615_v4  ;;  %v3960_v15 = vsel %vm1679_vm1, %v3942_v48, 0 }
 0x2ad   : > { %3824 = vmatpush1.bf16.msra.mxu0 %v3689_v40  ;;  %3855 = vmatprep.mubr.bf16.mxu0 %v13415_v19  ;;  %v3930_v51 = vpop.permute.xlu1 %3929 }
 0x2ae   : > { %12627 = vmatprep.subr.msk.bf16.mxu0 %vm1679_vm1, %v3941_v49  ;;  %v3928_v52 = vpop.permute.xlu0 %3927 }
 0x2af   : > { %12617 = vmatmul.mubr.msk.bf16.vlgmr.msra.gmra.mrb[92].mxu1 %vm1675_vm2, %v12615_v4  ;;  %v3945_v60 = vsel %vm3939_vm9, %v3928_v52, %v3930_v51  ;;  %v3944_v1 = vsel %vm3939_vm9, %v3926_v47, %v3928_v52 }
 0x2b0   : > { %3783 = vmatpush1.bf16.msra.mxu1 %v3683_v54  ;;  %3814 = vmatprep.mubr.bf16.mxu1 %v13415_v19  ;;  %v3966_v8 = vsel %vm1679_vm1, %v3944_v1, 0 }
 0x2b1   : > { %12624 = vmatprep.subr.msk.bf16.mxu1 %vm1679_vm1, %v3666_v55  ;;  %v3934_v56 = vpop.permute.xlu1 %3933 }
 0x2b2   : > { %v3932_v57 = vpop.permute.xlu0 %3931 }
 0x2b3   : > { %v14560_v59 = vpop.f32.mrb[12].mxu1  ;;  %v3947_v16 = vsel %vm3939_vm9, %v3932_v57, %v3934_v56  ;;  %v3946_v32 = vsel %vm3939_vm9, %v3930_v51, %v3932_v57 }
 0x2b4   : > { %12623 = vmatmul.mubr.msk.bf16.vlgmr.msra.gmra.mrb[72].mxu0 %vm1675_vm2, %v12615_v4  ;;  %v14564_v61 = vpop.f32.mrb[13].mxu1  ;;  %v3972_v18 = vsel %vm1679_vm1, %v3946_v32, 0 }
 0x2b5   : > { %3984 = vmatpush1.bf16.msra.mxu0 %v3954_v58  ;;  %4015 = vmatprep.mubr.bf16.mxu0 %v13415_v19  ;;  %v1789_v63 = vpop.f32.mrb[14].mxu1  ;;  %v3938_v5 = vpop.permute.xlu1 %3937 }
 0x2b6   : > { %12631 = vmatprep.subr.msk.bf16.mxu0 %vm1679_vm1, %v3945_v60  ;;  %v1790_v0 = vpop.f32.mrb[15].mxu1  ;;  %v3936_v6 = vpop.permute.xlu0 %3935 }
 0x2b7   : > { %12621 = vmatmul.mubr.msk.bf16.vlgmr.msra.gmra.mrb[96].mxu1 %vm1675_vm2, %v12615_v4  ;;  %v3949_v10 = vsel %vm3939_vm9, %v3936_v6, %v3938_v5  ;;  %v3948_v14 = vsel %vm3939_vm9, %v3934_v56, %v3936_v6 }
 0x2b8   : > { %3865 = vmatpush1.bf16.msra.mxu1 %v3695_v2  ;;  %3896 = vmatprep.mubr.bf16.mxu1 %v13415_v19  ;;  %v3978_v17 = vsel %vm1679_vm1, %v3948_v14, 0 }
 0x2b9   : > { %12629 = vmatprep.subr.msk.bf16.mxu1 %vm1679_vm1, %v3943_v7 }
 0x2bb   : > { %v1826_v9 = vpop.f32.mrb[16].mxu1 }
 0x2bc   : > { %12628 = vmatmul.mubr.msk.bf16.vlgmr.msra.gmra.mrb[76].mxu0 %vm1675_vm2, %v12626_v3  ;;  %v1828_v11 = vpop.f32.mrb[17].mxu1 }
 0x2bd   : > { %4066 = vmatpush1.bf16.msra.mxu0 %v3966_v8  ;;  %4097 = vmatprep.mubr.bf16.mxu0 %v13415_v19  ;;  %v1830_v12 = vpop.f32.mrb[18].mxu1 }
 0x2be   : > { %12635 = vmatprep.subr.msk.bf16.mxu0 %vm1679_vm1, %v3949_v10  ;;  %v1831_v13 = vpop.f32.mrb[19].mxu1 }
 0x2bf   : > { %12625 = vmatmul.mubr.msk.bf16.vlgmr.msra.gmra.mrb[100].mxu1 %vm1675_vm2, %v12615_v4 }
 0x2c0   : > { %4025 = vmatpush1.bf16.msra.mxu1 %v3960_v15  ;;  %4056 = vmatprep.mubr.bf16.mxu1 %v13415_v19 }
 0x2c1   : > { %12633 = vmatprep.subr.msk.bf16.mxu1 %vm1679_vm1, %v3947_v16 }
 0x2c4   : > { %12632 = vmatmul.mubr.msk.bf16.vlgmr.msra.gmra.mrb[80].mxu0 %vm1675_vm2, %v12626_v3 }
 0x2c5   : > { %4148 = vmatpush1.bf16.msra.mxu0 %v3978_v17  ;;  %4179 = vmatprep.mubr.bf16.mxu0 %v13415_v19 }
 0x2c7   : > { %12630 = vmatmul.mubr.msk.bf16.vlgmr.msra.gmra.mrb[104].mxu1 %vm1675_vm2, %v12626_v3 }
 0x2c8   : > { %4107 = vmatpush1.bf16.msra.mxu1 %v3972_v18  ;;  %4138 = vmatprep.mubr.bf16.mxu1 %v13415_v19 }
 0x2cc   : > { %12636 = vmatmul.mubr.msk.bf16.vlgmr.msra.gmra.mrb[84].mxu0 %vm1675_vm2, %v12626_v3 }
 0x2cd   : > { %4498 = vmatprep.mubr.bf16.mxu0 %v13415_v19 }
 0x2cf   : > { %12634 = vmatmul.mubr.msk.bf16.vlgmr.msra.gmra.mrb[108].mxu1 %vm1675_vm2, %v12626_v3 }
 0x2d0   : > { %4457 = vmatprep.mubr.bf16.mxu1 %v13415_v19 }
 0x2f2   : > { %v1867_v20 = vpop.f32.mrb[20].mxu1 }
 0x2f3   : > { %v1869_v21 = vpop.f32.mrb[21].mxu1 }
 0x2f4   : > { %v1871_v22 = vpop.f32.mrb[22].mxu1 }
 0x2f5   : > { %v1872_v33 = vpop.f32.mrb[23].mxu1 }
 0x2fa   : > { %v1908_v23 = vpop.f32.mrb[24].mxu1 }
 0x2fb   : > { %v1910_v36 = vpop.f32.mrb[25].mxu1 }
 0x2fc   : > { %v1912_v24 = vpop.f32.mrb[26].mxu1 }
 0x2fd   : > { %v1913_v25 = vpop.f32.mrb[27].mxu1 }
 0x302   : > { %v2015_v26 = vpop.f32.mrb[28].mxu1 }
 0x303   : > { %v2016_v34 = vadd.f32 %v2015_v26, %v14439_v29  ;;  %v2017_v27 = vpop.f32.mrb[29].mxu1 }
 0x304   : > { %v2018_v37 = vadd.f32 %v2017_v27, %v14441_v38  ;;  %v2019_v41 = vpop.f32.mrb[30].mxu1 }
 0x305   : > { %v2020_v35 = vpop.f32.mrb[31].mxu1 }
 0x30a   : > { %v2056_v28 = vpop.f32.mrb[32].mxu1 }
 0x30b   : > { %v2138_v30 = vpop.f32.mrb[12].mxu0  ;;  %v2057_v42 = vadd.f32 %v2056_v28, %v14560_v59  ;;  %v2058_v43 = vpop.f32.mrb[33].mxu1 }
 0x30c   : > { %v2139_v31 = vadd.f32 %v2138_v30, %v1867_v20  ;;  %v2140_v44 = vpop.f32.mrb[13].mxu0  ;;  %v2059_v45 = vadd.f32 %v2058_v43, %v14564_v61  ;;  %v2060_v47 = vpop.f32.mrb[34].mxu1 }
 0x30d   : > { %v2141_v4 = vadd.f32 %v2140_v44, %v1869_v21  ;;  %v2142_v46 = vpop.f32.mrb[14].mxu0  ;;  %v2061_v40 = vpop.f32.mrb[35].mxu1 }
 0x30e   : > { %v2143_v39 = vpop.f32.mrb[15].mxu0 }
 0x312   : > { %v2097_v29 = vpop.f32.mrb[36].mxu1 }
 0x313   : > { %v2288_v49 = vpop.f32.mrb[16].mxu0  ;;  %v2098_v50 = vadd.f32 %v2097_v29, %v1826_v9  ;;  %v2099_v51 = vpop.f32.mrb[37].mxu1 }
 0x314   : > { %v2459_v38 = vadd.f32 %v2288_v49, %v2016_v34  ;;  %v2290_v52 = vpop.f32.mrb[17].mxu0  ;;  %v2100_v53 = vadd.f32 %v2099_v51, %v1828_v11  ;;  %v2101_v56 = vpop.f32.mrb[38].mxu1 }
 0x315   : > { %v2460_v54 = vadd.f32 %v2290_v52, %v2018_v37  ;;  %v2292_v55 = vpop.f32.mrb[18].mxu0  ;;  %v2102_v58 = vpop.f32.mrb[39].mxu1 }
 0x316   : > { %v2293_v57 = vpop.f32.mrb[19].mxu0 }
 0x31a   : > { %v2179_v59 = vpop.f32.mrb[40].mxu1 }
 0x31b   : > { %v2370_v60 = vpop.f32.mrb[20].mxu0  ;;  %v2180_v61 = vadd.f32 %v2179_v59, %v1908_v23  ;;  %v2181_v63 = vpop.f32.mrb[41].mxu1 }
 0x31c   : > { %v2463_v62 = vadd.f32 %v2370_v60, %v2098_v50  ;;  %v2372_v0 = vpop.f32.mrb[21].mxu0  ;;  %v2182_v1 = vadd.f32 %v2181_v63, %v1910_v36  ;;  %v2183_v5 = vpop.f32.mrb[42].mxu1 }
 0x31d   : > { %v2464_v2 = vadd.f32 %v2372_v0, %v2100_v53  ;;  %v2374_v3 = vpop.f32.mrb[22].mxu0  ;;  %v2184_v7 = vpop.f32.mrb[43].mxu1 }
 0x31e   : > { %v2375_v6 = vpop.f32.mrb[23].mxu0 }
 0x322   : > { %v2329_v8 = vpop.f32.mrb[44].mxu1 }
 0x323   : > { %v2461_v9 = vadd.f32 %v2329_v8, %v2057_v42  ;;  %v2331_v10 = vpop.f32.mrb[45].mxu1 }
 0x324   : > { %v2462_v11 = vadd.f32 %v2331_v10, %v2059_v45  ;;  %v2333_v48 = vpop.f32.mrb[46].mxu1 }
 0x325   : > { %v2334_v13 = vpop.f32.mrb[47].mxu1 }
 0x327   : > { %v2452_v12 = vpop.f32.mrb[24].mxu0 }
 0x328   : > { %v2467_v14 = vadd.f32 %v2452_v12, %v2180_v61  ;;  %v2454_v15 = vpop.f32.mrb[25].mxu0 }
 0x329   : > { %v2468_v16 = vadd.f32 %v2454_v15, %v2182_v1  ;;  %v2456_v17 = vpop.f32.mrb[26].mxu0 }
 0x32a   : > { %v2457_v32 = vpop.f32.mrb[27].mxu0  ;;  %v2411_v18 = vpop.f32.mrb[48].mxu1 }
 0x32b   : > { %v2465_v20 = vadd.f32 %v2411_v18, %v2139_v31  ;;  %v2413_v21 = vpop.f32.mrb[49].mxu1 }
 0x32c   : > { %v2466_v22 = vadd.f32 %v2413_v21, %v2141_v4  ;;  %v2415_v33 = vpop.f32.mrb[50].mxu1 }
 0x32d   : > { %v2416_v36 = vpop.f32.mrb[51].mxu1 }
 0x32f   : > { %v2612_v23 = vpop.f32.mrb[28].mxu0 }
 0x330   : > { %v2744_v24 = vadd.f32 %v2612_v23, %v2461_v9  ;;  %v2614_v25 = vpop.f32.mrb[29].mxu0 }
 0x331   : > { %v2745_v26 = vadd.f32 %v2614_v25, %v2462_v11  ;;  %v2616_v34 = vpop.f32.mrb[30].mxu0 }
 0x332   : > { %v2617_v27 = vpop.f32.mrb[31].mxu0  ;;  %v2571_v37 = vpop.f32.mrb[52].mxu1 }
 0x333   : > { %v2742_v41 = vadd.f32 %v2571_v37, %v2459_v38  ;;  %v2573_v35 = vpop.f32.mrb[53].mxu1 }
 0x334   : > { %v2743_v28 = vadd.f32 %v2573_v35, %v2460_v54  ;;  %v2575_v30 = vpop.f32.mrb[54].mxu1 }
 0x335   : > { %v2576_v43 = vpop.f32.mrb[55].mxu1 }
 0x337   : > { %v2694_v42 = vpop.f32.mrb[32].mxu0 }
 0x338   : > { %v2748_v44 = vadd.f32 %v2694_v42, %v2465_v20  ;;  %v2696_v45 = vpop.f32.mrb[33].mxu0 }
 0x339   : > { %v2749_v31 = vadd.f32 %v2696_v45, %v2466_v22  ;;  %v2698_v46 = vpop.f32.mrb[34].mxu0 }
 0x33a   : > { %v2699_v4 = vpop.f32.mrb[35].mxu0  ;;  %v2653_v47 = vpop.f32.mrb[56].mxu1 }
 0x33b   : > { %v2746_v39 = vadd.f32 %v2653_v47, %v2463_v62  ;;  %v2655_v40 = vpop.f32.mrb[57].mxu1 }
 0x33c   : > { %v2747_v29 = vadd.f32 %v2655_v40, %v2464_v2  ;;  %v2657_v49 = vpop.f32.mrb[58].mxu1 }
 0x33d   : > { %v2658_v51 = vpop.f32.mrb[59].mxu1 }
 0x33f   : > { %v2851_v50 = vpop.f32.mrb[36].mxu0 }
 0x340   : > { %v3022_v52 = vadd.f32 %v2851_v50, %v2742_v41  ;;  %v2853_v53 = vpop.f32.mrb[37].mxu0 }
 0x341   : > { %v3023_v38 = vadd.f32 %v2853_v53, %v2743_v28  ;;  %v2855_v55 = vpop.f32.mrb[38].mxu0 }
 0x342   : > { %v2856_v54 = vpop.f32.mrb[39].mxu0  ;;  %v2735_v56 = vpop.f32.mrb[60].mxu1 }
 0x343   : > { %v2750_v57 = vadd.f32 %v2735_v56, %v2467_v14  ;;  %v2737_v58 = vpop.f32.mrb[61].mxu1 }
 0x344   : > { %v2751_v59 = vadd.f32 %v2737_v58, %v2468_v16  ;;  %v2739_v60 = vpop.f32.mrb[62].mxu1 }
 0x345   : > { %v2740_v63 = vpop.f32.mrb[63].mxu1 }
 0x347   : > { %v2933_v61 = vpop.f32.mrb[40].mxu0 }
 0x348   : > { %v3026_v0 = vadd.f32 %v2933_v61, %v2746_v39  ;;  %v2935_v1 = vpop.f32.mrb[41].mxu0 }
 0x349   : > { %v3027_v62 = vadd.f32 %v2935_v1, %v2747_v29  ;;  %v2937_v3 = vpop.f32.mrb[42].mxu0 }
 0x34a   : > { %v2938_v2 = vpop.f32.mrb[43].mxu0  ;;  %v2892_v5 = vpop.f32.mrb[64].mxu1 }
 0x34b   : > { %v3024_v6 = vadd.f32 %v2892_v5, %v2744_v24  ;;  %v2894_v7 = vpop.f32.mrb[65].mxu1 }
 0x34c   : > { %v3025_v8 = vadd.f32 %v2894_v7, %v2745_v26  ;;  %v2896_v9 = vpop.f32.mrb[66].mxu1 }
 0x34d   : > { %v2897_v11 = vpop.f32.mrb[67].mxu1 }
 0x34f   : > { %v3015_v10 = vpop.f32.mrb[44].mxu0 }
 0x350   : > { %v3030_v48 = vadd.f32 %v3015_v10, %v2750_v57  ;;  %v3017_v12 = vpop.f32.mrb[45].mxu0 }
 0x351   : > { %v3031_v13 = vadd.f32 %v3017_v12, %v2751_v59  ;;  %v3019_v14 = vpop.f32.mrb[46].mxu0 }
 0x352   : > { %v3020_v15 = vpop.f32.mrb[47].mxu0  ;;  %v2974_v16 = vpop.f32.mrb[68].mxu1 }
 0x353   : > { %v3028_v17 = vadd.f32 %v2974_v16, %v2748_v44  ;;  %v2976_v32 = vpop.f32.mrb[69].mxu1 }
 0x354   : > { %v3029_v18 = vadd.f32 %v2976_v32, %v2749_v31  ;;  %v2978_v20 = vpop.f32.mrb[70].mxu1 }
 0x355   : > { %v2979_v22 = vpop.f32.mrb[71].mxu1 }
 0x357   : > { %v3209_v21 = vpop.f32.mrb[48].mxu0 }
 0x358   : > { %v3341_v33 = vadd.f32 %v3209_v21, %v3024_v6  ;;  %v3211_v23 = vpop.f32.mrb[49].mxu0 }
 0x359   : > { %v3342_v36 = vadd.f32 %v3211_v23, %v3025_v8  ;;  %v3213_v24 = vpop.f32.mrb[50].mxu0 }
 0x35a   : > { %v3214_v25 = vpop.f32.mrb[51].mxu0  ;;  %v3168_v26 = vpop.f32.mrb[72].mxu1  ;;  %v4218_v24 = vlaneseq }
 0x35b   : > { %v3339_v34 = vadd.f32 %v3168_v26, %v3022_v52  ;;  %v3170_v27 = vpop.f32.mrb[73].mxu1 }
 0x35c   : > { %v3340_v37 = vadd.f32 %v3170_v27, %v3023_v38  ;;  %v3172_v41 = vpop.f32.mrb[74].mxu1 }
 0x35d   : > { %v3173_v28 = vpop.f32.mrb[75].mxu1 }
 0x35f   : > { %v3291_v35 = vpop.f32.mrb[52].mxu0 }
 0x360   : > { %v3345_v30 = vadd.f32 %v3291_v35, %v3028_v17  ;;  %v3293_v42 = vpop.f32.mrb[53].mxu0 }
 0x361   : > { %v3346_v43 = vadd.f32 %v3293_v42, %v3029_v18  ;;  %v3295_v44 = vpop.f32.mrb[54].mxu0 }
 0x362   : > { %v3296_v45 = vpop.f32.mrb[55].mxu0  ;;  %v3250_v31 = vpop.f32.mrb[76].mxu1 }
 0x363   : > { %v3343_v46 = vadd.f32 %v3250_v31, %v3026_v0  ;;  %v3252_v4 = vpop.f32.mrb[77].mxu1 }
 0x364   : > { %v3344_v47 = vadd.f32 %v3252_v4, %v3027_v62  ;;  %v3254_v39 = vpop.f32.mrb[78].mxu1 }
 0x365   : > { %v3255_v29 = vpop.f32.mrb[79].mxu1 }
 0x367   : > { %v3451_v40 = vpop.f32.mrb[56].mxu0 }
 0x368   : > { %v3622_v49 = vadd.f32 %v3451_v40, %v3339_v34  ;;  %v3453_v50 = vpop.f32.mrb[57].mxu0 }
 0x369   : > { %v3623_v51 = vadd.f32 %v3453_v50, %v3340_v37  ;;  %v3455_v52 = vpop.f32.mrb[58].mxu0 }
 0x36a   : > { %v3456_v53 = vpop.f32.mrb[59].mxu0  ;;  %v3332_v38 = vpop.f32.mrb[80].mxu1 }
 0x36b   : > { %v3347_v55 = vadd.f32 %v3332_v38, %v3030_v48  ;;  %v3334_v54 = vpop.f32.mrb[81].mxu1 }
 0x36c   : > { %v3348_v56 = vadd.f32 %v3334_v54, %v3031_v13  ;;  %v3336_v57 = vpop.f32.mrb[82].mxu1 }
 0x36d   : > { %v3337_v59 = vpop.f32.mrb[83].mxu1 }
 0x36f   : > { %v3533_v58 = vpop.f32.mrb[60].mxu0 }
 0x370   : > { %v3626_v60 = vadd.f32 %v3533_v58, %v3343_v46  ;;  %v3535_v61 = vpop.f32.mrb[61].mxu0 }
 0x371   : > { %v3627_v63 = vadd.f32 %v3535_v61, %v3344_v47  ;;  %v3537_v0 = vpop.f32.mrb[62].mxu0  ;;  %v14620_v47 = vld [vmem:[%s16560_s9] sm:$0xff] }
 0x372   : > { %v3538_v1 = vpop.f32.mrb[63].mxu0  ;;  %v3492_v62 = vpop.f32.mrb[84].mxu1 }
 0x373   : > { %v3624_v3 = vadd.f32 %v3492_v62, %v3341_v33  ;;  %v3494_v2 = vpop.f32.mrb[85].mxu1 }
 0x374   : > { %v3625_v5 = vadd.f32 %v3494_v2, %v3342_v36  ;;  %v3496_v6 = vpop.f32.mrb[86].mxu1 }
 0x375   : > { %v3497_v8 = vpop.f32.mrb[87].mxu1 }
 0x377   : > { %v3615_v7 = vpop.f32.mrb[64].mxu0 }
 0x378   : > { %v3630_v9 = vadd.f32 %v3615_v7, %v3347_v55  ;;  %v3617_v10 = vpop.f32.mrb[65].mxu0 }
 0x379   : > { %v3631_v11 = vadd.f32 %v3617_v10, %v3348_v56  ;;  %v3619_v48 = vpop.f32.mrb[66].mxu0 }
 0x37a   : > { %v3620_v12 = vpop.f32.mrb[67].mxu0  ;;  %v3574_v13 = vpop.f32.mrb[88].mxu1 }
 0x37b   : > { %v3628_v14 = vadd.f32 %v3574_v13, %v3345_v30  ;;  %v3576_v15 = vpop.f32.mrb[89].mxu1  ;;  %v14610_v30 = vshrl.u32 %v4218_v24, 7 }
 0x37c   : > { %v3629_v16 = vadd.f32 %v3576_v15, %v3346_v43  ;;  %v3578_v17 = vpop.f32.mrb[90].mxu1 }
 0x37d   : > { %v3579_v18 = vpop.f32.mrb[91].mxu1  ;;  %v14615_v31 = vsub.s32 0, %v14610_v30  ;;  %v14623_v39 = vsub.s32 1, %v14610_v30  ;;  %v4236_v61 = vsub.s32 4, %v14610_v30  ;;  %v4240_v62 = vsub.s32 5, %v14610_v30 }
 0x37e   : > { %v4232_v17 = vsub.s32 3, %v14610_v30 }
 0x37f   : > { %v3775_v32 = vpop.f32.mrb[68].mxu0  ;;  %v4221_v38 = vrot.slane %v14620_v47, %v14615_v31  ;;  %v4225_v56 = vrot.slane %v14620_v47, %v14623_v39  ;;  %v4237_v48 = vrot.slane %v14620_v47, %v4236_v61 }
 0x380   : > { %v14604_v20 = vadd.f32 %v3775_v32, %v3624_v3  ;;  %v3777_v21 = vpop.f32.mrb[69].mxu0 }
 0x381   : > { %v14606_v22 = vadd.f32 %v3777_v21, %v3625_v5  ;;  %v3779_v33 = vpop.f32.mrb[70].mxu0 }
 0x382   : > { %v3780_v23 = vpop.f32.mrb[71].mxu0  ;;  %v3734_v36 = vpop.f32.mrb[92].mxu1 }
 0x383   : > { %v3905_v25 = vadd.f32 %v3734_v36, %v3622_v49  ;;  %v3736_v26 = vpop.f32.mrb[93].mxu1  ;;  %v14625_v49 = vpop.permute.xlu0 %4201 }
 0x384   : > { %v3906_v34 = vadd.f32 %v3736_v26, %v3623_v51  ;;  %v3738_v27 = vpop.f32.mrb[94].mxu1 }
 0x385   : > { %v3739_v41 = vpop.f32.mrb[95].mxu1 }
 0x387   : > { %v3857_v37 = vpop.f32.mrb[72].mxu0 }
 0x388   : > { %v14608_v35 = vadd.f32 %v3857_v37, %v3628_v14  ;;  %v3859_v28 = vpop.f32.mrb[73].mxu0 }
 0x389   : > { %v14612_v42 = vadd.f32 %v3859_v28, %v3629_v16  ;;  %v3861_v43 = vpop.f32.mrb[74].mxu0 }
 0x38a   : > { %v3862_v44 = vpop.f32.mrb[75].mxu0  ;;  %v3816_v45 = vpop.f32.mrb[96].mxu1 }
 0x38b   : > { %v3909_v46 = vadd.f32 %v3816_v45, %v3626_v60  ;;  %v3818_v4 = vpop.f32.mrb[97].mxu1 }
 0x38c   : > { %v3910_v40 = vadd.f32 %v3818_v4, %v3627_v63  ;;  %v3820_v29 = vpop.f32.mrb[98].mxu1 }
 0x38d   : > { %v3821_v51 = vpop.f32.mrb[99].mxu1 }
 0x38e   : > { %v4244_v51 = vsub.s32 6, %v14610_v30 }
 0x38f   : > { %v4017_v50 = vpop.f32.mrb[76].mxu0 }
 0x390   : > { %v4188_v52 = vadd.f32 %v4017_v50, %v3905_v25  ;;  %v4019_v53 = vpop.f32.mrb[77].mxu0  ;;  %v4215_v25 = vld [vmem:[%s16560_s9 + $0x8] sm:$0x3] }
 0x391   : > { %v4189_v55 = vadd.f32 %v4019_v53, %v3906_v34  ;;  %v4021_v54 = vpop.f32.mrb[78].mxu0  ;;  %v4233_v34 = vrot.slane %v14620_v47, %v4232_v17  ;;  %v4253_v45 = vrot.slane %v4215_v25, %v14615_v31 }
 0x392   : > { %v4022_v57 = vpop.f32.mrb[79].mxu0  ;;  %v4204_v58 = vadd.f32 %v14625_v49, %v4188_v52  ;;  %v3898_v60 = vpop.f32.mrb[100].mxu1  ;;  %v4248_v54 = vsub.s32 7, %v14610_v30 }
 0x393   : > { %v4205_v59 = vadd.f32 %v14625_v49, %v4189_v55  ;;  %v3913_v0 = vadd.f32 %v3898_v60, %v3630_v9  ;;  %v3900_v1 = vpop.f32.mrb[101].mxu1  ;;  %v4241_v9 = vrot.slane %v14620_v47, %v4240_v62 }
 0x394   : > { %v14634_v63 = vmul.f32 %v4221_v38, %v4204_v58  ;;  %v3914_v2 = vadd.f32 %v3900_v1, %v3631_v11  ;;  %v3902_v5 = vpop.f32.mrb[102].mxu1  ;;  %v4228_v11 = vsub.s32 2, %v14610_v30  ;;  %v4245_v1 = vrot.slane %v14620_v47, %v4244_v51 }
 0x395   : > { %v14637_v3 = vmul.f32 %v4225_v56, %v4205_v59  ;;  %v3903_v7 = vpop.f32.mrb[103].mxu1 }
 0x396   : > { %v4229_v36 = vrot.slane %v14620_v47, %v4228_v11  ;;  %v4249_v7 = vrot.slane %v14620_v47, %v4248_v54 }
 0x397   : > { %v4099_v6 = vpop.f32.mrb[80].mxu0  ;;  %v13046_v8 = vpack.c.bf16 %v14637_v3, %v14634_v63 }
 0x398   : > { %v4192_v10 = vadd.f32 %v4099_v6, %v3909_v46  ;;  %v4101_v12 = vpop.f32.mrb[81].mxu0 }
 0x399   : > { %v4193_v13 = vadd.f32 %v4101_v12, %v3910_v40  ;;  %v4103_v14 = vpop.f32.mrb[82].mxu0  ;;  %4318 = vst [vmem:[#allocation3 + $0x4] sm:$0xff] %v13046_v8 }
 0x39a   : > { %v4208_v15 = vadd.f32 %v14625_v49, %v4192_v10  ;;  %v4104_v16 = vpop.f32.mrb[83].mxu0  ;;  %v4058_v21 = vpop.f32.mrb[104].mxu1 }
 0x39b   : > { %v4209_v32 = vadd.f32 %v14625_v49, %v4193_v13  ;;  %v4190_v23 = vadd.f32 %v4058_v21, %v14604_v20  ;;  %v4060_v24 = vpop.f32.mrb[105].mxu1 }
 0x39c   : > { %v14651_v18 = vmul.f32 %v4237_v48, %v4208_v15  ;;  %v4191_v26 = vadd.f32 %v4060_v24, %v14606_v22  ;;  %v4062_v27 = vpop.f32.mrb[106].mxu1  ;;  %v4257_v22 = vrot.slane %v4215_v25, %v14623_v39 }
 0x39d   : > { %v14653_v33 = vmul.f32 %v4241_v9, %v4209_v32  ;;  %v4206_v20 = vadd.f32 %v14625_v49, %v4190_v23  ;;  %v4063_v28 = vpop.f32.mrb[107].mxu1  ;;  %v14754_v27 = vpack.c.bf16 %v14637_v3, %v14637_v3 }
 0x39e   : > { %v4207_v43 = vadd.f32 %v14625_v49, %v4191_v26 }
 0x39f   : > { %v13048_v37 = vpack.c.bf16 %v14653_v33, %v14651_v18  ;;  %v4181_v41 = vpop.f32.mrb[84].mxu0  ;;  %v14672_v40 = vmul.f32 %v4229_v36, %v4206_v20  ;;  %v14768_v20 = vpack.c.bf16 %v14634_v63, %v14634_v63  ;;  %v14772_v3 = vpack.c.bf16 %v14653_v33, %v14653_v33 }
 0x3a0   : > { %v4196_v44 = vadd.f32 %v4181_v41, %v3913_v0  ;;  %v4183_v46 = vpop.f32.mrb[85].mxu0  ;;  %v4323_v4 = vld [vmem:[#allocation3] sm:$0xff]  ;;  %v14677_v53 = vmul.f32 %v4233_v34, %v4207_v43  ;;  %v14792_v63 = vpack.c.bf16 %v14651_v18, %v14651_v18  ;;  %v14804_v43 = vld [vmem:[#allocation3 + $0x2c] ss:$0 sps:$4 sm:$0xff]  }
 0x3a1   : > { %4320 = vst [vmem:[#allocation3 + $0x14] sm:$0xff] %v13048_v37  ;;  %v4197_v29 = vadd.f32 %v4183_v46, %v3914_v2  ;;  %v4185_v50 = vpop.f32.mrb[86].mxu0  ;;  %v14675_v52 = vcombine.low %v4323_v4, %v4323_v4  ;;  %v12644_v5 = vcombine.high %v4323_v4, %v4323_v4  ;;  %v14780_v41 = vpack.c.bf16 %v14672_v40, %v14672_v40 }
 0x3a2   : > { %v4212_v38 = vadd.f32 %v14625_v49, %v4196_v44  ;;  %v4186_v55 = vpop.f32.mrb[87].mxu0  ;;  %v13047_v57 = vpack.c.bf16 %v14677_v53, %v14672_v40  ;;  %v4140_v59 = vpop.f32.mrb[108].mxu1  ;;  %v14761_v37 = vpack.c.bf16 %v14677_v53, %v14677_v53 }
 0x3a3   : > { %v4213_v56 = vadd.f32 %v14625_v49, %v4197_v29  ;;  %4360 = vrot.lane.b32.xlu1 %v14675_v52, %s13416_s24  ;;  %v4194_v0 = vadd.f32 %v4140_v59, %v14608_v35  ;;  %v4142_v2 = vpop.f32.mrb[109].mxu1 }
 0x3a4   : > { %v14686_v58 = vmul.f32 %v4253_v45, %v4212_v38  ;;  %4319 = vst [vmem:[#allocation3 + $0xc] sm:$0xff] %v13047_v57  ;;  %v4195_v6 = vadd.f32 %v4142_v2, %v14612_v42  ;;  %v4144_v8 = vpop.f32.mrb[110].mxu1  ;;  %v12642_v57 = vld [vmem:[%s16556_s5 + $0x4] sm:$0xf] }
 0x3a5   : > { %v14688_v60 = vmul.f32 %v4257_v22, %v4213_v56  ;;  %v4210_v48 = vadd.f32 %v14625_v49, %v4194_v0  ;;  %v4145_v35 = vpop.f32.mrb[111].mxu1 }
 0x3a6   : > { %v4211_v12 = vadd.f32 %v14625_v49, %v4195_v6  ;;  %v14800_v33 = vpack.c.bf16 %v14686_v58, %v14686_v58 }
 0x3a7   : > { %v13050_v10 = vpack.c.bf16 %v14688_v60, %v14686_v58  ;;  %4362 = vrot.lane.b32.xlu1 %v12644_v5, %s13416_s24  ;;  %v14703_v13 = vmul.f32 %v4245_v1, %v4210_v48  ;;  %v14784_v28 = vpack.c.bf16 %v14688_v60, %v14688_v60 }
 0x3a8   : > { %v14705_v9 = vmul.f32 %v4249_v7, %v4211_v12 }
 0x3a9   : > { %4322 = vst [vmem:[#allocation3 + $0x24] sm:$0xff] %v13050_v10  ;;  %v14826_v22 = vpack.c.bf16 %v14703_v13, %v14703_v13 }
 0x3aa   : > { %v13049_v42 = vpack.c.bf16 %v14705_v9, %v14703_v13  ;;  %v14814_v45 = vpack.c.bf16 %v14705_v9, %v14705_v9 }
 0x3ab   : > { %4630 = vrot.lane.b32.xlu1 %v14675_v52, %s13417_s28  ;;  %v4324_v47 = vld [vmem:[#allocation3 + $0x8] sm:$0xff]  ;;  %v4325_v15 = vld [vmem:[#allocation3 + $0x10] sm:$0xff] }
 0x3ac   : > { %4321 = vst [vmem:[#allocation3 + $0x1c] sm:$0xff] %v13049_v42  ;;  %v12646_v14 = vcombine.high %v4324_v47, %v4324_v47  ;;  %v12648_v32 = vcombine.high %v4325_v15, %v4325_v15  ;;  %v12645_v49 = vcombine.low %v4324_v47, %v4324_v47  ;;  %v12647_v23 = vcombine.low %v4325_v15, %v4325_v15 }
 0x3af   : > { %4366 = vrot.lane.b32.xlu1 %v12646_v14, %s13416_s24 }
 0x3b0   : > { %v13335_v16 = vld [vmem:[#allocation3 + $0x28] ss:$0 sps:$4 sm:$0xff]  }
 0x3b1   : > { %4380 = vrot.lane.b32.xlu0 %v13335_v16, %s13416_s24 }
 0x3b3   : > { %4370 = vrot.lane.b32.xlu1 %v12648_v32, %s13416_s24  ;;  %v4326_v21 = vld [vmem:[#allocation3 + $0x18] sm:$0xff]  ;;  %v4327_v24 = vld [vmem:[#allocation3 + $0x20] sm:$0xff] }
 0x3b4   : > { %v12650_v36 = vcombine.high %v4326_v21, %v4326_v21  ;;  %v12649_v25 = vcombine.low %v4326_v21, %v4326_v21  ;;  %v12652_v26 = vcombine.high %v4327_v24, %v4327_v24  ;;  %v12651_v34 = vcombine.low %v4327_v24, %v4327_v24 }
 0x3b5   : > { %4364 = vrot.lane.b32.xlu0 %v12645_v49, %s13416_s24 }
 0x3b7   : > { %4634 = vrot.lane.b32.xlu1 %v12645_v49, %s13417_s28 }
 0x3b9   : > { %4368 = vrot.lane.b32.xlu0 %v12647_v23, %s13416_s24 }
 0x3bb   : > { %4374 = vrot.lane.b32.xlu1 %v12650_v36, %s13416_s24 }
 0x3bd   : > { %4372 = vrot.lane.b32.xlu0 %v12649_v25, %s13416_s24 }
 0x3bf   : > { %4378 = vrot.lane.b32.xlu1 %v12652_v26, %s13416_s24 }
 0x3c1   : > { %4632 = vrot.lane.b32.xlu0 %v12644_v5, %s13417_s28 }
 0x3c3   : > { %4638 = vrot.lane.b32.xlu1 %v12647_v23, %s13417_s28 }
 0x3c5   : > { %4376 = vrot.lane.b32.xlu0 %v12651_v34, %s13416_s24 }
 0x3c7   : > { %4650 = vrot.lane.b32.xlu1 %v13335_v16, %s13417_s28 }
 0x3c9   : > { %4636 = vrot.lane.b32.xlu0 %v12646_v14, %s13417_s28 }
 0x3cb   : > { %4642 = vrot.lane.b32.xlu1 %v12649_v25, %s13417_s28 }
 0x3cd   : > { %4640 = vrot.lane.b32.xlu0 %v12648_v32, %s13417_s28 }
 0x3cf   : > { %4646 = vrot.lane.b32.xlu1 %v12651_v34, %s13417_s28 }
 0x3d1   : > { %4902 = vrot.lane.b32.xlu0 %v14675_v52, %s13418_s29 }
 0x3d3   : > { %4904 = vrot.lane.b32.xlu1 %v12644_v5, %s13418_s29 }
 0x3d5   : > { %4644 = vrot.lane.b32.xlu0 %v12650_v36, %s13417_s28 }
 0x3d7   : > { %4908 = vrot.lane.b32.xlu1 %v12646_v14, %s13418_s29 }
 0x3d9   : > { %4906 = vrot.lane.b32.xlu0 %v12645_v49, %s13418_s29 }
 0x3db   : > { %4912 = vrot.lane.b32.xlu1 %v12648_v32, %s13418_s29 }
 0x3dd   : > { %4648 = vrot.lane.b32.xlu0 %v12652_v26, %s13417_s28 }
 0x3df   : > { %5184 = vrot.lane.b32.xlu1 %v14675_v52, %s13419_s30 }
 0x3e1   : > { %4910 = vrot.lane.b32.xlu0 %v12647_v23, %s13418_s29 }
 0x3e3   : > { %4916 = vrot.lane.b32.xlu1 %v12650_v36, %s13418_s29 }
 0x3e5   : > { %4914 = vrot.lane.b32.xlu0 %v12649_v25, %s13418_s29 }
 0x3e7   : > { %4920 = vrot.lane.b32.xlu1 %v12652_v26, %s13418_s29 }
 0x3e9   : > { %4922 = vrot.lane.b32.xlu0 %v13335_v16, %s13418_s29 }
 0x3eb   : > { %5188 = vrot.lane.b32.xlu1 %v12645_v49, %s13419_s30 }
 0x3ed   : > { %4918 = vrot.lane.b32.xlu0 %v12651_v34, %s13418_s29 }
 0x3ef   : > { %5192 = vrot.lane.b32.xlu1 %v12647_v23, %s13419_s30 }
 0x3f1   : > { %5186 = vrot.lane.b32.xlu0 %v12644_v5, %s13419_s30 }
 0x3f3   : > { %5196 = vrot.lane.b32.xlu1 %v12649_v25, %s13419_s30 }
 0x3f5   : > { %5190 = vrot.lane.b32.xlu0 %v12646_v14, %s13419_s30 }
 0x3f7   : > { %5200 = vrot.lane.b32.xlu1 %v12651_v34, %s13419_s30 }
 0x3f9   : > { %5194 = vrot.lane.b32.xlu0 %v12648_v32, %s13419_s30 }
 0x3fb   : > { %5204 = vrot.lane.b32.xlu1 %v13335_v16, %s13419_s30 }
 0x3fd   : > { %5198 = vrot.lane.b32.xlu0 %v12650_v36, %s13419_s30 }
 0x3ff   : > { %5782 = vrot.lane.b32.xlu1 %v14754_v27, %s13420_s11 }
 0x401   : > { %5202 = vrot.lane.b32.xlu0 %v12652_v26, %s13419_s30 }
 0x403   : > { %5786 = vrot.lane.b32.xlu1 %v14761_v37, %s13420_s11 }
 0x405   : > { %5780 = vrot.lane.b32.xlu0 %v14768_v20, %s13420_s11 }
 0x407   : > { %5790 = vrot.lane.b32.xlu1 %v14772_v3, %s13420_s11 }
 0x409   : > { %5784 = vrot.lane.b32.xlu0 %v14780_v41, %s13420_s11 }
 0x40b   : > { %5798 = vrot.lane.b32.xlu1 %v14784_v28, %s13420_s11 }
 0x40d   : > { %5788 = vrot.lane.b32.xlu0 %v14792_v63, %s13420_s11 }
 0x40f   : > { %6062 = vrot.lane.b32.xlu1 %v14768_v20, %s13421_s12 }
 0x411   : > { %5796 = vrot.lane.b32.xlu0 %v14800_v33, %s13420_s11 }
 0x413   : > { %6066 = vrot.lane.b32.xlu1 %v14780_v41, %s13421_s12 }
 0x415   : > { %v4361_v18 = vpop.permute.xlu1 %4360  ;;  %5800 = vrot.lane.b32.xlu0 %v14804_v43, %s13420_s11 }
 0x417   : > { %6070 = vrot.lane.b32.xlu1 %v14792_v63, %s13421_s12 }
 0x419   : > { %v4363_v44 = vpop.permute.xlu1 %4362  ;;  %6064 = vrot.lane.b32.xlu0 %v14754_v27, %s13421_s12 }
 0x41a   : > { %v4382_v50 = vsel %vm1664_vm0, %v4361_v18, %v4363_v44  ;;  %v4329_v18 = vld [vmem:[%s16556_s5] sm:$0xf] }
 0x41b   : > { %5794 = vrot.lane.b32.xlu1 %v14814_v45, %s13420_s11  ;;  %v4396_v55 = vsel %vm1679_vm1, %v4382_v50, 0 }
 0x41d   : > { %v4631_v46 = vpop.permute.xlu1 %4630  ;;  %6068 = vrot.lane.b32.xlu0 %v14761_v37, %s13421_s12 }
 0x41f   : > { %6078 = vrot.lane.b32.xlu1 %v14800_v33, %s13421_s12 }
 0x421   : > { %v4367_v4 = vpop.permute.xlu1 %4366  ;;  %5792 = vrot.lane.b32.xlu0 %v14826_v22, %s13420_s11 }
 0x423   : > { %6082 = vrot.lane.b32.xlu1 %v14804_v43, %s13421_s12  ;;  %v4381_v40 = vpop.permute.xlu0 %4380 }
 0x425   : > { %v4371_v29 = vpop.permute.xlu1 %4370  ;;  %6072 = vrot.lane.b32.xlu0 %v14772_v3, %s13421_s12 }
 0x427   : > { %6346 = vrot.lane.b32.xlu1 %v14754_v27, %s13422_s16  ;;  %v4365_v52 = vpop.permute.xlu0 %4364 }
 0x428   : > { %v4383_v53 = vsel %vm1664_vm0, %v4363_v44, %v4365_v52  ;;  %v4384_v56 = vsel %vm1664_vm0, %v4365_v52, %v4367_v4 }
 0x429   : > { %v4635_v38 = vpop.permute.xlu1 %4634  ;;  %12654 = vmatprep.subr.msk.bf16.mxu1 %vm1679_vm1, %v4383_v53  ;;  %6080 = vrot.lane.b32.xlu0 %v14784_v28, %s13421_s12  ;;  %v4402_v0 = vsel %vm1679_vm1, %v4384_v56, 0 }
 0x42a   : > { %4426 = vmatpush1.bf16.msra.mxu1 %v4396_v55 }
 0x42b   : > { %6074 = vrot.lane.b32.xlu1 %v14826_v22, %s13421_s12  ;;  %v4369_v58 = vpop.permute.xlu0 %4368 }
 0x42c   : > { %v4385_v59 = vsel %vm1664_vm0, %v4367_v4, %v4369_v58  ;;  %v4386_v1 = vsel %vm1664_vm0, %v4369_v58, %v4371_v29 }
 0x42d   : > { %v4375_v60 = vpop.permute.xlu1 %4374  ;;  %12655 = vmatmul.mubr.msk.bf16.vlgmr.msra.gmra.mrb[112].mxu1 %vm1675_vm2, %v12642_v57  ;;  %12656 = vmatprep.subr.msk.bf16.mxu0 %vm1679_vm1, %v4385_v59  ;;  %v4408_v7 = vsel %vm1679_vm1, %v4386_v1, 0 }
 0x42e   : > { %6344 = vrot.lane.b32.xlu0 %v14768_v20, %s13422_s16  ;;  %4467 = vmatpush1.bf16.msra.mxu0 %v4402_v0 }
 0x42f   : > { %6350 = vrot.lane.b32.xlu1 %v14761_v37, %s13422_s16  ;;  %v4373_v2 = vpop.permute.xlu0 %4372  ;;  %4539 = vmatprep.mubr.bf16.mxu1 %v13415_v19 }
 0x430   : > { %v4387_v5 = vsel %vm1664_vm0, %v4371_v29, %v4373_v2  ;;  %v4388_v35 = vsel %vm1664_vm0, %v4373_v2, %v4375_v60 }
 0x431   : > { %v4379_v6 = vpop.permute.xlu1 %4378  ;;  %12658 = vmatprep.subr.msk.bf16.mxu1 %vm1679_vm1, %v4387_v5  ;;  %12657 = vmatmul.mubr.msk.bf16.vlgmr.msra.gmra.mrb[88].mxu0 %vm1675_vm2, %v12642_v57  ;;  %v4414_v47 = vsel %vm1679_vm1, %v4388_v35, 0 }
 0x432   : > { %6348 = vrot.lane.b32.xlu0 %v14780_v41, %s13422_s16  ;;  %4508 = vmatpush1.bf16.msra.mxu1 %v4408_v7  ;;  %v4391_v8 = vsel %vm1664_vm0, %v4379_v6, %v4381_v40  ;;  %v14957_v7 = vld [vmem:[%s16556_s5 + $0x8] sm:$0xf] }
 0x433   : > { %6354 = vrot.lane.b32.xlu1 %v14772_v3, %s13422_s16  ;;  %12662 = vmatprep.subr.msk.bf16.mxu1 %vm1679_vm1, %v4391_v8  ;;  %v4633_v10 = vpop.permute.xlu0 %4632  ;;  %v6906_v8 = vld [vmem:[%s13841_s26] sm:$0xff] }
 0x434   : > { %4580 = vmatprep.mubr.bf16.mxu0 %v13415_v19  ;;  %v4652_v15 = vsel %vm1937_vm3, %v4631_v46, %v4633_v10  ;;  %v4653_v16 = vsel %vm1937_vm3, %v4633_v10, %v4635_v38 }
 0x435   : > { %v4639_v48 = vpop.permute.xlu1 %4638  ;;  %12659 = vmatmul.mubr.msk.bf16.vlgmr.msra.gmra.mrb[116].mxu1 %vm1675_vm2, %v12642_v57  ;;  %v4666_v24 = vsel %vm1679_vm1, %v4652_v15, 0 }
 0x436   : > { %6352 = vrot.lane.b32.xlu0 %v14792_v63, %s13422_s16  ;;  %4621 = vmatprep.mubr.bf16.mxu1 %v13415_v19 }
 0x437   : > { %6362 = vrot.lane.b32.xlu1 %v14784_v28, %s13422_s16  ;;  %v4377_v12 = vpop.permute.xlu0 %4376 }
 0x438   : > { %v4390_v13 = vsel %vm1664_vm0, %v4377_v12, %v4379_v6  ;;  %v4389_v9 = vsel %vm1664_vm0, %v4375_v60, %v4377_v12 }
 0x439   : > { %v14878_v42 = vpop.permute.xlu1 %4650  ;;  %12660 = vmatprep.subr.msk.bf16.mxu0 %vm1679_vm1, %v4389_v9  ;;  %v4420_v14 = vsel %vm1679_vm1, %v4390_v13, 0  ;;  %v14971_v9 = vcombine.low %v6906_v8, %v6906_v8 }
 0x43a   : > { %6076 = vrot.lane.b32.xlu0 %v14814_v45, %s13421_s12  ;;  %4549 = vmatpush1.bf16.msra.mxu0 %v4414_v47  ;;  %v6907_v47 = vld [vmem:[%s13841_s26 + $0x8] sm:$0xff] }
 0x43b   : > { %6626 = vrot.lane.b32.xlu1 %v14768_v20, %s13423_s17  ;;  %4590 = vmatpush1.bf16.msra.mxu1 %v4420_v14  ;;  %v4637_v32 = vpop.permute.xlu0 %4636  ;;  %v14979_v15 = vcombine.high %v6907_v47, %v6907_v47 }
 0x43c   : > { %12664 = vmatprep.subr.msk.bf16.mxu0 %vm1679_vm1, %v4653_v16  ;;  %v4654_v49 = vsel %vm1937_vm3, %v4635_v38, %v4637_v32  ;;  %v4655_v21 = vsel %vm1937_vm3, %v4637_v32, %v4639_v48 }
 0x43d   : > { %v4643_v23 = vpop.permute.xlu1 %4642  ;;  %12661 = vmatmul.mubr.msk.bf16.vlgmr.msra.gmra.mrb[92].mxu0 %vm1675_vm2, %v12642_v57  ;;  %12666 = vmatprep.subr.msk.bf16.mxu1 %vm1679_vm1, %v4655_v21  ;;  %v4672_v36 = vsel %vm1679_vm1, %v4654_v49, 0  ;;  %v14985_v49 = vcombine.low %v6907_v47, %v6907_v47 }
 0x43e   : > { %6360 = vrot.lane.b32.xlu0 %v14800_v33, %s13422_s16  ;;  %12663 = vmatmul.mubr.msk.bf16.vlgmr.msra.gmra.mrb[120].mxu1 %vm1675_vm2, %v12642_v57 }
 0x43f   : > { %6630 = vrot.lane.b32.xlu1 %v14780_v41, %s13423_s17  ;;  %4696 = vmatpush1.bf16.msra.mxu0 %v4666_v24  ;;  %v4641_v25 = vpop.permute.xlu0 %4640 }
 0x440   : > { %4737 = vmatpush1.bf16.msra.mxu1 %v4672_v36  ;;  %v4657_v26 = vsel %vm1937_vm3, %v4641_v25, %v4643_v23  ;;  %4727 = vmatprep.mubr.bf16.mxu0 %v13415_v19  ;;  %v4656_v44 = vsel %vm1937_vm3, %v4639_v48, %v4641_v25  ;;  %v14961_v48 = vcombine.high %v6906_v8, %v6906_v8 }
 0x441   : > { %v4647_v34 = vpop.permute.xlu1 %4646  ;;  %12668 = vmatprep.subr.msk.bf16.mxu0 %vm1679_vm1, %v4657_v26  ;;  %4768 = vmatprep.mubr.bf16.mxu1 %v13415_v19  ;;  %v4678_v40 = vsel %vm1679_vm1, %v4656_v44, 0 }
 0x442   : > { %6364 = vrot.lane.b32.xlu0 %v14804_v43, %s13422_s16 }
 0x443   : > { %6358 = vrot.lane.b32.xlu1 %v14814_v45, %s13422_s16  ;;  %v4903_v46 = vpop.permute.xlu0 %4902 }
 0x445   : > { %v4905_v4 = vpop.permute.xlu1 %4904  ;;  %12665 = vmatmul.mubr.msk.bf16.vlgmr.msra.gmra.mrb[96].mxu0 %vm1675_vm2, %v4329_v18 }
 0x446   : > { %6628 = vrot.lane.b32.xlu0 %v14754_v27, %s13423_s17  ;;  %12667 = vmatmul.mubr.msk.bf16.vlgmr.msra.gmra.mrb[124].mxu1 %vm1675_vm2, %v4329_v18  ;;  %v4924_v55 = vsel %vm2210_vm4, %v4903_v46, %v4905_v4 }
 0x447   : > { %6634 = vrot.lane.b32.xlu1 %v14792_v63, %s13423_s17  ;;  %4778 = vmatpush1.bf16.msra.mxu0 %v4678_v40  ;;  %v4645_v29 = vpop.permute.xlu0 %4644  ;;  %v4938_v59 = vsel %vm1679_vm1, %v4924_v55, 0 }
 0x448   : > { %v4658_v50 = vsel %vm1937_vm3, %v4643_v23, %v4645_v29  ;;  %v4659_v52 = vsel %vm1937_vm3, %v4645_v29, %v4647_v34  ;;  %4809 = vmatprep.mubr.bf16.mxu0 %v13415_v19  ;;  %4850 = vmatprep.mubr.bf16.mxu1 %v13415_v19  ;;  %v6908_v23 = vld [vmem:[%s13841_s26 + $0x10] sm:$0xff] }
 0x449   : > { %v4909_v53 = vpop.permute.xlu1 %4908  ;;  %12670 = vmatprep.subr.msk.bf16.mxu1 %vm1679_vm1, %v4659_v52  ;;  %v4684_v38 = vsel %vm1679_vm1, %v4658_v50, 0  ;;  %v14991_v24 = vcombine.high %v6908_v23, %v6908_v23  ;;  %v15015_v52 = vcombine.low %v6908_v23, %v6908_v23 }
 0x44a   : > { %6356 = vrot.lane.b32.xlu0 %v14826_v22, %s13422_s16  ;;  %4819 = vmatpush1.bf16.msra.mxu1 %v4684_v38  ;;  %v6910_v38 = vld [vmem:[%s13841_s26 + $0x20] sm:$0xff] }
 0x44b   : > { %6642 = vrot.lane.b32.xlu1 %v14800_v33, %s13423_s17  ;;  %v4907_v56 = vpop.permute.xlu0 %4906 }
 0x44c   : > { %v4925_v57 = vsel %vm2210_vm4, %v4905_v4, %v4907_v56 }
 0x44d   : > { %v4913_v58 = vpop.permute.xlu1 %4912  ;;  %12669 = vmatmul.mubr.msk.bf16.vlgmr.msra.gmra.mrb[100].mxu0 %vm1675_vm2, %v4329_v18  ;;  %12675 = vmatprep.subr.msk.bf16.mxu1 %vm1679_vm1, %v4925_v57  ;;  %v15023_v57 = vcombine.high %v6910_v38, %v6910_v38 }
 0x44e   : > { %6632 = vrot.lane.b32.xlu0 %v14761_v37, %s13423_s17  ;;  %12671 = vmatmul.mubr.msk.bf16.vlgmr.msra.gmra.mrb[128].mxu1 %vm1675_vm2, %v4329_v18 }
 0x44f   : > { %6646 = vrot.lane.b32.xlu1 %v14804_v43, %s13423_s17  ;;  %4968 = vmatpush1.bf16.msra.mxu1 %v4938_v59  ;;  %v4649_v60 = vpop.permute.xlu0 %4648  ;;  %v4926_v43 = vsel %vm2210_vm4, %v4907_v56, %v4909_v53 }
 0x450   : > { %v4660_v0 = vsel %vm1937_vm3, %v4647_v34, %v4649_v60  ;;  %v4661_v1 = vsel %vm1937_vm3, %v4649_v60, %v14878_v42  ;;  %4891 = vmatprep.mubr.bf16.mxu0 %v13415_v19  ;;  %4999 = vmatprep.mubr.bf16.mxu1 %v13415_v19  ;;  %v4944_v13 = vsel %vm1679_vm1, %v4926_v43, 0 }
 0x451   : > { %v14945_v2 = vpop.permute.xlu1 %5184  ;;  %12672 = vmatprep.subr.msk.bf16.mxu0 %vm1679_vm1, %v4661_v1  ;;  %v4690_v5 = vsel %vm1679_vm1, %v4660_v0, 0 }
 0x452   : > { %6636 = vrot.lane.b32.xlu0 %v14772_v3, %s13423_s17  ;;  %4860 = vmatpush1.bf16.msra.mxu0 %v4690_v5 }
 0x453   : > { %6638 = vrot.lane.b32.xlu1 %v14826_v22, %s13423_s17  ;;  %v4911_v6 = vpop.permute.xlu0 %4910 }
 0x454   : > { %v4927_v10 = vsel %vm2210_vm4, %v4909_v53, %v4911_v6  ;;  %v4928_v12 = vsel %vm2210_vm4, %v4911_v6, %v4913_v58  ;;  %v15045_v6 = vcombine.low %v6910_v38, %v6910_v38 }
 0x455   : > { %v4917_v35 = vpop.permute.xlu1 %4916  ;;  %12673 = vmatmul.mubr.msk.bf16.vlgmr.msra.gmra.mrb[104].mxu0 %vm1675_vm2, %v4329_v18  ;;  %12677 = vmatprep.subr.msk.bf16.mxu0 %vm1679_vm1, %v4927_v10  ;;  %v4950_v32 = vsel %vm1679_vm1, %v4928_v12, 0  ;;  %v6909_v18 = vld [vmem:[%s13841_s26 + $0x18] sm:$0xff] }
 0x456   : > { %6644 = vrot.lane.b32.xlu0 %v14784_v28, %s13423_s17  ;;  %12676 = vmatmul.mubr.msk.bf16.vlgmr.msra.gmra.mrb[132].mxu1 %vm1675_vm2, %v14957_v7  ;;  %v15008_v4 = vcombine.high %v6909_v18, %v6909_v18  ;;  %v15033_v60 = vcombine.low %v6909_v18, %v6909_v18 }
 0x457   : > { %5009 = vmatpush1.bf16.msra.mxu0 %v4944_v13  ;;  %v4915_v42 = vpop.permute.xlu0 %4914  ;;  %5040 = vmatprep.mubr.bf16.mxu0 %v13415_v19 }
 0x458   : > { %v4929_v14 = vsel %vm2210_vm4, %v4913_v58, %v4915_v42  ;;  %5081 = vmatprep.mubr.bf16.mxu1 %v13415_v19  ;;  %6944 = vrot.lane.b32.xlu1 %v14961_v48, %s13417_s28  ;;  %v4930_v26 = vsel %vm2210_vm4, %v4915_v42, %v4917_v35  ;;  %v15061_v42 = vld [vmem:[%s13841_s26 + $0x28] ss:$0 sps:$4 sm:$0xff]  }
 0x459   : > { %v4921_v16 = vpop.permute.xlu1 %4920  ;;  %12679 = vmatprep.subr.msk.bf16.mxu1 %vm1679_vm1, %v4929_v14  ;;  %v4956_v29 = vsel %vm1679_vm1, %v4930_v26, 0 }
 0x45a   : > { %6942 = vrot.lane.b32.xlu0 %v14971_v9, %s13417_s28  ;;  %5050 = vmatpush1.bf16.msra.mxu1 %v4950_v32 }
 0x45b   : > { %v4923_v21 = vpop.permute.xlu0 %4922 }
 0x45c   : > { %v4933_v36 = vsel %vm2210_vm4, %v4921_v16, %v4923_v21  ;;  %6948 = vrot.lane.b32.xlu1 %v14979_v15, %s13417_s28 }
 0x45d   : > { %v5189_v25 = vpop.permute.xlu1 %5188  ;;  %12678 = vmatmul.mubr.msk.bf16.vlgmr.msra.gmra.mrb[108].mxu0 %vm1675_vm2, %v14957_v7  ;;  %12683 = vmatprep.subr.msk.bf16.mxu1 %vm1679_vm1, %v4933_v36 }
 0x45e   : > { %6946 = vrot.lane.b32.xlu0 %v14985_v49, %s13417_s28  ;;  %12680 = vmatmul.mubr.msk.bf16.vlgmr.msra.gmra.mrb[136].mxu1 %vm1675_vm2, %v14957_v7 }
 0x45f   : > { %v4919_v34 = vpop.permute.xlu0 %4918  ;;  %5122 = vmatprep.mubr.bf16.mxu0 %v13415_v19  ;;  %5163 = vmatprep.mubr.bf16.mxu1 %v13415_v19 }
 0x460   : > { %v4932_v44 = vsel %vm2210_vm4, %v4919_v34, %v4921_v16  ;;  %v4931_v46 = vsel %vm2210_vm4, %v4917_v35, %v4919_v34  ;;  %6952 = vrot.lane.b32.xlu1 %v14991_v24, %s13417_s28 }
 0x461   : > { %v5193_v40 = vpop.permute.xlu1 %5192  ;;  %12681 = vmatprep.subr.msk.bf16.mxu0 %vm1679_vm1, %v4931_v46  ;;  %v4962_v50 = vsel %vm1679_vm1, %v4932_v44, 0 }
 0x462   : > { %6640 = vrot.lane.b32.xlu0 %v14814_v45, %s13423_s17  ;;  %5091 = vmatpush1.bf16.msra.mxu0 %v4956_v29 }
 0x463   : > { %5132 = vmatpush1.bf16.msra.mxu1 %v4962_v50  ;;  %v5187_v53 = vpop.permute.xlu0 %5186 }
 0x464   : > { %v5206_v55 = vsel %vm2493_vm5, %v14945_v2, %v5187_v53  ;;  %v5207_v56 = vsel %vm2493_vm5, %v5187_v53, %v5189_v25  ;;  %6956 = vrot.lane.b32.xlu1 %v15008_v4, %s13417_s28 }
 0x465   : > { %v5197_v58 = vpop.permute.xlu1 %5196  ;;  %12682 = vmatmul.mubr.msk.bf16.vlgmr.msra.gmra.mrb[112].mxu0 %vm1675_vm2, %v14957_v7  ;;  %12686 = vmatprep.subr.msk.bf16.mxu0 %vm1679_vm1, %v5207_v56  ;;  %v5220_v59 = vsel %vm1679_vm1, %v5206_v55, 0 }
 0x466   : > { %6950 = vrot.lane.b32.xlu0 %v15015_v52, %s13417_s28  ;;  %12684 = vmatmul.mubr.msk.bf16.vlgmr.msra.gmra.mrb[140].mxu1 %vm1675_vm2, %v14957_v7  ;;  %v12685_v7 = vld [vmem:[%s16556_s5 + $0xc] sm:$0xf] }
 0x467   : > { %5250 = vmatpush1.bf16.msra.mxu0 %v5220_v59  ;;  %v5191_v0 = vpop.permute.xlu0 %5190  ;;  %5281 = vmatprep.mubr.bf16.mxu0 %v13415_v19 }
 0x468   : > { %v5208_v1 = vsel %vm2493_vm5, %v5189_v25, %v5191_v0  ;;  %v5209_v2 = vsel %vm2493_vm5, %v5191_v0, %v5193_v40  ;;  %5322 = vmatprep.mubr.bf16.mxu1 %v13415_v19  ;;  %6960 = vrot.lane.b32.xlu1 %v15023_v57, %s13417_s28 }
 0x469   : > { %v5201_v5 = vpop.permute.xlu1 %5200  ;;  %12688 = vmatprep.subr.msk.bf16.mxu1 %vm1679_vm1, %v5209_v2  ;;  %v5226_v43 = vsel %vm1679_vm1, %v5208_v1, 0 }
 0x46a   : > { %6954 = vrot.lane.b32.xlu0 %v15033_v60, %s13417_s28  ;;  %5291 = vmatpush1.bf16.msra.mxu1 %v5226_v43 }
 0x46b   : > { %v5195_v8 = vpop.permute.xlu0 %5194 }
 0x46c   : > { %v5210_v10 = vsel %vm2493_vm5, %v5193_v40, %v5195_v8  ;;  %v5211_v35 = vsel %vm2493_vm5, %v5195_v8, %v5197_v58  ;;  %7224 = vrot.lane.b32.xlu1 %v14971_v9, %s13416_s24  ;;  %v5512_v40 = vsel %vm1679_vm1, %v14792_v63, 0 }
 0x46d   : > { %v5205_v12 = vpop.permute.xlu1 %5204  ;;  %12687 = vmatmul.mubr.msk.bf16.vlgmr.msra.gmra.mrb[116].mxu0 %vm1675_vm2, %v12685_v7  ;;  %12690 = vmatprep.subr.msk.bf16.mxu0 %vm1679_vm1, %v5211_v35  ;;  %v5232_v13 = vsel %vm1679_vm1, %v5210_v10, 0 }
 0x46e   : > { %6958 = vrot.lane.b32.xlu0 %v15045_v6, %s13417_s28  ;;  %12689 = vmatmul.mubr.msk.bf16.vlgmr.msra.gmra.mrb[144].mxu1 %vm1675_vm2, %v12685_v7 }
 0x46f   : > { %5332 = vmatpush1.bf16.msra.mxu0 %v5232_v13  ;;  %v5199_v47 = vpop.permute.xlu0 %5198  ;;  %5363 = vmatprep.mubr.bf16.mxu0 %v13415_v19 }
 0x470   : > { %v5212_v14 = vsel %vm2493_vm5, %v5197_v58, %v5199_v47  ;;  %v5213_v16 = vsel %vm2493_vm5, %v5199_v47, %v5201_v5  ;;  %5404 = vmatprep.mubr.bf16.mxu1 %v13415_v19  ;;  %7228 = vrot.lane.b32.xlu1 %v14985_v49, %s13416_s24 }
 0x471   : > { %v15069_v32 = vpop.permute.xlu1 %5782  ;;  %12692 = vmatprep.subr.msk.bf16.mxu1 %vm1679_vm1, %v5213_v16  ;;  %v5238_v21 = vsel %vm1679_vm1, %v5212_v14, 0 }
 0x472   : > { %6962 = vrot.lane.b32.xlu0 %v15061_v42, %s13417_s28  ;;  %5373 = vmatpush1.bf16.msra.mxu1 %v5238_v21 }
 0x473   : > { %12707 = vmatprep.subr.msk.bf16.mxu1 %vm1679_vm1, %v14754_v27  ;;  %v5203_v23 = vpop.permute.xlu0 %5202  ;;  %v5500_v27 = vsel %vm1679_vm1, %v14768_v20, 0 }
 0x474   : > { %v5214_v36 = vsel %vm2493_vm5, %v5201_v5, %v5203_v23  ;;  %v5215_v25 = vsel %vm2493_vm5, %v5203_v23, %v5205_v12  ;;  %7232 = vrot.lane.b32.xlu1 %v15015_v52, %s13416_s24 }
 0x475   : > { %v5787_v26 = vpop.permute.xlu1 %5786  ;;  %12691 = vmatmul.mubr.msk.bf16.vlgmr.msra.gmra.mrb[120].mxu0 %vm1675_vm2, %v12685_v7  ;;  %12694 = vmatprep.subr.msk.bf16.mxu0 %vm1679_vm1, %v5215_v25  ;;  %v5244_v34 = vsel %vm1679_vm1, %v5214_v36, 0 }
 0x476   : > { %7226 = vrot.lane.b32.xlu0 %v14961_v48, %s13416_s24  ;;  %12693 = vmatmul.mubr.msk.bf16.vlgmr.msra.gmra.mrb[148].mxu1 %vm1675_vm2, %v12685_v7 }
 0x477   : > { %5414 = vmatpush1.bf16.msra.mxu0 %v5244_v34  ;;  %5530 = vmatpush1.bf16.msra.mxu1 %v5500_v27  ;;  %v5781_v18 = vpop.permute.xlu0 %5780 }
 0x478   : > { %12709 = vmatprep.subr.msk.bf16.mxu0 %vm1679_vm1, %v14761_v37  ;;  %12711 = vmatprep.subr.msk.bf16.mxu1 %vm1679_vm1, %v14772_v3  ;;  %v12696_v37 = vld [vmem:[%s16556_s5 + $0x10] sm:$0xf]  ;;  %v5506_v3 = vsel %vm1679_vm1, %v14780_v41, 0 }
 0x479   : > { %v15093_v44 = vpop.permute.xlu1 %5790  ;;  %5445 = vmatprep.mubr.bf16.mxu0 %v13415_v19  ;;  %5561 = vmatprep.mubr.bf16.mxu1 %v13415_v19 }
 0x47a   : > { %7230 = vrot.lane.b32.xlu0 %v14979_v15, %s13416_s24  ;;  %7236 = vrot.lane.b32.xlu1 %v15033_v60, %s13416_s24 }
 0x47b   : > { %v5785_v20 = vpop.permute.xlu0 %5784 }
 0x47c   : > { %v5803_v53 = vsel %vm3090_vm6, %v15069_v32, %v5785_v20 }
 0x47d   : > { %v15104_v46 = vpop.permute.xlu1 %5798  ;;  %12695 = vmatmul.mubr.msk.bf16.vlgmr.msra.gmra.mrb[124].mxu0 %vm1675_vm2, %v12685_v7  ;;  %v12717_v7 = vld [vmem:[%s16556_s5 + $0x14] sm:$0xf] }
 0x47e   : > { %7234 = vrot.lane.b32.xlu0 %v14991_v24, %s13416_s24  ;;  %12708 = vmatmul.mubr.msk.bf16.vlgmr.msra.gmra.mrb[152].mxu1 %vm1675_vm2, %v12696_v37 }
 0x47f   : > { %5571 = vmatpush1.bf16.msra.mxu0 %v5506_v3  ;;  %5612 = vmatpush1.bf16.msra.mxu1 %v5512_v40  ;;  %v5789_v29 = vpop.permute.xlu0 %5788 }
 0x480   : > { %12713 = vmatprep.subr.msk.bf16.mxu0 %vm1679_vm1, %v14814_v45  ;;  %12715 = vmatprep.subr.msk.bf16.mxu1 %vm1679_vm1, %v14784_v28  ;;  %v5518_v28 = vsel %vm1679_vm1, %v14826_v22, 0  ;;  %v5524_v45 = vsel %vm1679_vm1, %v14800_v33, 0  ;;  %v5805_v38 = vsel %vm3090_vm6, %v5787_v26, %v5789_v29  ;;  %v5802_v33 = vsel %vm3090_vm6, %v5781_v18, %v15069_v32 }
 0x481   : > { %v15118_v50 = vpop.permute.xlu1 %6062  ;;  %5602 = vmatprep.mubr.bf16.mxu0 %v13415_v19  ;;  %5643 = vmatprep.mubr.bf16.mxu1 %v13415_v19  ;;  %v5804_v22 = vsel %vm3090_vm6, %v5785_v20, %v5787_v26  ;;  %v5816_v0 = vsel %vm1679_vm1, %v5802_v33, 0  ;;  %v5806_v10 = vsel %vm3090_vm6, %v5789_v29, %v15093_v44  ;;  %v12739_v29 = vld [vmem:[%s16556_s5 + $0x18] sm:$0xf] }
 0x482   : > { %7238 = vrot.lane.b32.xlu0 %v15008_v4, %s13416_s24  ;;  %7240 = vrot.lane.b32.xlu1 %v15045_v6, %s13416_s24  ;;  %v5822_v1 = vsel %vm1679_vm1, %v5804_v22, 0  ;;  %v5828_v14 = vsel %vm1679_vm1, %v5806_v10, 0 }
 0x483   : > { %v15126_v41 = vpop.permute.xlu0 %5796 }
 0x484   : > { %v5810_v36 = vsel %vm3090_vm6, %v15126_v41, %v15104_v46 }
 0x485   : > { %v15128_v63 = vpop.permute.xlu1 %6066  ;;  %12710 = vmatmul.mubr.msk.bf16.vlgmr.msra.gmra.mrb[128].mxu0 %vm1675_vm2, %v12696_v37  ;;  %v5840_v27 = vsel %vm1679_vm1, %v5810_v36, 0 }
 0x486   : > { %7242 = vrot.lane.b32.xlu0 %v15023_v57, %s13416_s24  ;;  %12712 = vmatmul.mubr.msk.bf16.vlgmr.msra.gmra.mrb[156].mxu1 %vm1675_vm2, %v12696_v37 }
 0x487   : > { %5653 = vmatpush1.bf16.msra.mxu0 %v5518_v28  ;;  %5694 = vmatpush1.bf16.msra.mxu1 %v5524_v45  ;;  %v5801_v55 = vpop.permute.xlu0 %5800 }
 0x488   : > { %12729 = vmatprep.subr.msk.bf16.mxu0 %vm1679_vm1, %v5803_v53  ;;  %12731 = vmatprep.subr.msk.bf16.mxu1 %vm1679_vm1, %v5805_v38  ;;  %v5811_v21 = vsel %vm3090_vm6, %v15104_v46, %v5801_v55 }
 0x489   : > { %v15143_v56 = vpop.permute.xlu1 %6070  ;;  %7244 = vrot.lane.b32.xlu1 %v15061_v42, %s13416_s24  ;;  %5684 = vmatprep.mubr.bf16.mxu0 %v13415_v19 }
 0x48a   : > { %7506 = vrot.lane.b32.xlu0 %v14971_v9, %s13418_s29  ;;  %5725 = vmatprep.mubr.bf16.mxu1 %v13415_v19 }
 0x48b   : > { %v6065_v58 = vpop.permute.xlu0 %6064 }
 0x48c   : > { %v6085_v16 = vsel %vm3373_vm7, %v6065_v58, %v15128_v63  ;;  %v6084_v25 = vsel %vm3373_vm7, %v15118_v50, %v6065_v58 }
 0x48d   : > { %v5795_v59 = vpop.permute.xlu1 %5794  ;;  %7508 = vrot.lane.b32.xlu1 %v14961_v48, %s13418_s29  ;;  %12714 = vmatmul.mubr.msk.bf16.vlgmr.msra.gmra.mrb[132].mxu0 %vm1675_vm2, %v12696_v37  ;;  %v6098_v18 = vsel %vm1679_vm1, %v6084_v25, 0 }
 0x48e   : > { %7510 = vrot.lane.b32.xlu0 %v14985_v49, %s13418_s29  ;;  %12716 = vmatmul.mubr.msk.bf16.vlgmr.msra.gmra.mrb[160].mxu1 %vm1675_vm2, %v12696_v37  ;;  %v5809_v2 = vsel %vm3090_vm6, %v5795_v59, %v15126_v41 }
 0x48f   : > { %5846 = vmatpush1.bf16.msra.mxu0 %v5816_v0  ;;  %5887 = vmatpush1.bf16.msra.mxu1 %v5822_v1  ;;  %v6069_v5 = vpop.permute.xlu0 %6068  ;;  %v8349_v1 = vld [vmem:[%s13841_s26 + $0xc] sm:$0xff] }
 0x490   : > { %12735 = vmatprep.subr.msk.bf16.mxu1 %vm1679_vm1, %v5809_v2  ;;  %5877 = vmatprep.mubr.bf16.mxu0 %v13415_v19  ;;  %v6087_v20 = vsel %vm3373_vm7, %v6069_v5, %v15143_v56  ;;  %v6086_v3 = vsel %vm3373_vm7, %v15128_v63, %v6069_v5 }
 0x491   : > { %v15166_v43 = vpop.permute.xlu1 %6078  ;;  %7512 = vrot.lane.b32.xlu1 %v14979_v15, %s13418_s29  ;;  %5918 = vmatprep.mubr.bf16.mxu1 %v13415_v19 }
 0x492   : > { %7514 = vrot.lane.b32.xlu0 %v15015_v52, %s13418_s29 }
 0x493   : > { %v5793_v8 = vpop.permute.xlu0 %5792 }
 0x494   : > { %v5808_v35 = vsel %vm3090_vm6, %v5793_v8, %v5795_v59  ;;  %v5807_v12 = vsel %vm3090_vm6, %v15093_v44, %v5793_v8  ;;  %v15305_v8 = vcombine.low %v8349_v1, %v8349_v1 }
 0x495   : > { %v6083_v13 = vpop.permute.xlu1 %6082  ;;  %7516 = vrot.lane.b32.xlu1 %v14991_v24, %s13418_s29  ;;  %12730 = vmatmul.mubr.msk.bf16.vlgmr.msra.gmra.mrb[136].mxu0 %vm1675_vm2, %v12717_v7  ;;  %v5834_v47 = vsel %vm1679_vm1, %v5808_v35, 0 }
 0x496   : > { %7518 = vrot.lane.b32.xlu0 %v15033_v60, %s13418_s29  ;;  %12732 = vmatmul.mubr.msk.bf16.vlgmr.msra.gmra.mrb[164].mxu1 %vm1675_vm2, %v12717_v7 }
 0x497   : > { %12733 = vmatprep.subr.msk.bf16.mxu0 %vm1679_vm1, %v5807_v12  ;;  %5969 = vmatpush1.bf16.msra.mxu1 %v5834_v47  ;;  %v6073_v32 = vpop.permute.xlu0 %6072  ;;  %v15313_v12 = vcombine.high %v8349_v1, %v8349_v1  ;;  %v12750_v47 = vld [vmem:[%s16556_s5 + $0x1c] sm:$0xf] }
 0x498   : > { %5928 = vmatpush1.bf16.msra.mxu0 %v5828_v14  ;;  %12740 = vmatprep.subr.msk.bf16.mxu1 %vm1679_vm1, %v6085_v16  ;;  %v6088_v40 = vsel %vm3373_vm7, %v15143_v56, %v6073_v32  ;;  %v8348_v56 = vld [vmem:[%s13841_s26 + $0x4] sm:$0xff]  ;;  %v8351_v14 = vld [vmem:[%s13841_s26 + $0x1c] sm:$0xff] }
 0x499   : > { %v15195_v23 = vpop.permute.xlu1 %6346  ;;  %12737 = vmatprep.subr.msk.bf16.mxu0 %vm1679_vm1, %v5811_v21  ;;  %7520 = vrot.lane.b32.xlu1 %v15008_v4, %s13418_s29  ;;  %v15286_v58 = vcombine.low %v8348_v56, %v8348_v56 }
 0x49a   : > { %7522 = vrot.lane.b32.xlu0 %v15045_v6, %s13418_s29  ;;  %5959 = vmatprep.mubr.bf16.mxu0 %v13415_v19 }
 0x49b   : > { %v6081_v26 = vpop.permute.xlu0 %6080  ;;  %6000 = vmatprep.mubr.bf16.mxu1 %v13415_v19 }
 0x49c   : > { %v6093_v63 = vsel %vm3373_vm7, %v6081_v26, %v6083_v13 }
 0x49d   : > { %v6075_v34 = vpop.permute.xlu1 %6074  ;;  %7524 = vrot.lane.b32.xlu1 %v15023_v57, %s13418_s29  ;;  %12734 = vmatmul.mubr.msk.bf16.vlgmr.msra.gmra.mrb[140].mxu0 %vm1675_vm2, %v12717_v7 }
 0x49e   : > { %7526 = vrot.lane.b32.xlu0 %v15061_v42, %s13418_s29  ;;  %12736 = vmatmul.mubr.msk.bf16.vlgmr.msra.gmra.mrb[168].mxu1 %vm1675_vm2, %v12717_v7  ;;  %v6089_v44 = vsel %vm3373_vm7, %v6073_v32, %v6075_v34 }
 0x49f   : > { %6010 = vmatpush1.bf16.msra.mxu0 %v5840_v27  ;;  %6128 = vmatpush1.bf16.msra.mxu1 %v6098_v18  ;;  %v8352_v18 = vld [vmem:[%s13841_s26 + $0x24] sm:$0xff] }
 0x4a0   : > { %12742 = vmatprep.subr.msk.bf16.mxu0 %vm1679_vm1, %v6087_v20  ;;  %12744 = vmatprep.subr.msk.bf16.mxu1 %vm1679_vm1, %v6089_v44  ;;  %v6345_v37 = vpop.permute.xlu0 %6344 }
 0x4a1   : > { %v6351_v46 = vpop.permute.xlu1 %6350  ;;  %7788 = vrot.lane.b32.xlu1 %v14971_v9, %s13419_s30  ;;  %6041 = vmatprep.mubr.bf16.mxu0 %v13415_v19  ;;  %v6110_v9 = vsel %vm1679_vm1, %v6088_v40, 0  ;;  %v6366_v59 = vsel %vm3656_vm8, %v6345_v37, %v15195_v23 }
 0x4a2   : > { %7790 = vrot.lane.b32.xlu0 %v14961_v48, %s13419_s30  ;;  %6159 = vmatprep.mubr.bf16.mxu1 %v13415_v19  ;;  %v6104_v48 = vsel %vm1679_vm1, %v6086_v3, 0  ;;  %v15354_v3 = vcombine.low %v8352_v18, %v8352_v18 }
 0x4a4   : > { %v6349_v50 = vpop.permute.xlu0 %6348 }
 0x4a5   : > { %v15235_v41 = vpop.permute.xlu1 %6354  ;;  %7792 = vrot.lane.b32.xlu1 %v14985_v49, %s13419_s30  ;;  %12738 = vmatmul.mubr.msk.bf16.vlgmr.msra.gmra.mrb[144].mxu0 %vm1675_vm2, %v12717_v7  ;;  %v6367_v33 = vsel %vm3656_vm8, %v15195_v23, %v6349_v50  ;;  %v6368_v0 = vsel %vm3656_vm8, %v6349_v50, %v6351_v46 }
 0x4a6   : > { %7794 = vrot.lane.b32.xlu0 %v14979_v15, %s13419_s30  ;;  %12741 = vmatmul.mubr.msk.bf16.vlgmr.msra.gmra.mrb[172].mxu1 %vm1675_vm2, %v12739_v29  ;;  %v6092_v15 = vsel %vm3373_vm7, %v15166_v43, %v6081_v26  ;;  %v15337_v26 = vcombine.low %v8351_v14, %v8351_v14 }
 0x4a7   : > { %6169 = vmatpush1.bf16.msra.mxu0 %v6104_v48  ;;  %6210 = vmatpush1.bf16.msra.mxu1 %v6110_v9 }
 0x4a8   : > { %12748 = vmatprep.subr.msk.bf16.mxu1 %vm1679_vm1, %v6093_v63  ;;  %v6353_v28 = vpop.permute.xlu0 %6352  ;;  %6200 = vmatprep.mubr.bf16.mxu0 %v13415_v19 }
 0x4a9   : > { %v15248_v49 = vpop.permute.xlu1 %6362  ;;  %7796 = vrot.lane.b32.xlu1 %v15015_v52, %s13419_s30  ;;  %6241 = vmatprep.mubr.bf16.mxu1 %v13415_v19  ;;  %v6370_v16 = vsel %vm3656_vm8, %v6353_v28, %v15235_v41 }
 0x4aa   : > { %7798 = vrot.lane.b32.xlu0 %v14991_v24, %s13419_s30  ;;  %v6122_v24 = vsel %vm1679_vm1, %v6092_v15, 0 }
 0x4ac   : > { %v6077_v45 = vpop.permute.xlu0 %6076 }
 0x4ad   : > { %v15257_v53 = vpop.permute.xlu1 %6626  ;;  %v6090_v38 = vsel %vm3373_vm7, %v6075_v34, %v6077_v45  ;;  %7800 = vrot.lane.b32.xlu1 %v15033_v60, %s13419_s30  ;;  %12743 = vmatmul.mubr.msk.bf16.vlgmr.msra.gmra.mrb[148].mxu0 %vm1675_vm2, %v12739_v29  ;;  %v6091_v52 = vsel %vm3373_vm7, %v6077_v45, %v15166_v43  ;;  %v6369_v60 = vsel %vm3656_vm8, %v6351_v46, %v6353_v28  ;;  %v6386_v43 = vsel %vm1679_vm1, %v6368_v0, 0  ;;  %v15371_v28 = vld [vmem:[%s13841_s26 + $0x2c] ss:$0 sps:$4 sm:$0xff]  }
 0x4ae   : > { %7802 = vrot.lane.b32.xlu0 %v15008_v4, %s13419_s30  ;;  %12745 = vmatmul.mubr.msk.bf16.vlgmr.msra.gmra.mrb[176].mxu1 %vm1675_vm2, %v12739_v29  ;;  %v6116_v55 = vsel %vm1679_vm1, %v6090_v38, 0  ;;  %v6392_v34 = vsel %vm1679_vm1, %v6370_v16, 0 }
 0x4af   : > { %12746 = vmatprep.subr.msk.bf16.mxu0 %vm1679_vm1, %v6091_v52  ;;  %6292 = vmatpush1.bf16.msra.mxu1 %v6122_v24  ;;  %v12761_v24 = vld [vmem:[%s16556_s5 + $0x20] sm:$0xf] }
 0x4b0   : > { %6251 = vmatpush1.bf16.msra.mxu0 %v6116_v55  ;;  %12753 = vmatprep.subr.msk.bf16.mxu1 %vm1679_vm1, %v6369_v60  ;;  %v15276_v4 = vpop.permute.xlu0 %6360  ;;  %v15391_v60 = vcombine.high %v8352_v18, %v8352_v18 }
 0x4b1   : > { %v15278_v22 = vpop.permute.xlu1 %6630  ;;  %12751 = vmatprep.subr.msk.bf16.mxu0 %vm1679_vm1, %v6367_v33  ;;  %7804 = vrot.lane.b32.xlu1 %v15045_v6, %s13419_s30  ;;  %v6380_v6 = vsel %vm1679_vm1, %v6366_v59, 0  ;;  %v6374_v40 = vsel %vm3656_vm8, %v15276_v4, %v15248_v49 }
 0x4b2   : > { %7806 = vrot.lane.b32.xlu0 %v15023_v57, %s13419_s30  ;;  %6282 = vmatprep.mubr.bf16.mxu0 %v13415_v19  ;;  %v15296_v57 = vcombine.high %v8348_v56, %v8348_v56  ;;  %v6404_v48 = vsel %vm1679_vm1, %v6374_v40, 0 }
 0x4b3   : > { %6323 = vmatprep.mubr.bf16.mxu1 %v13415_v19 }
 0x4b4   : > { %v6365_v2 = vpop.permute.xlu0 %6364 }
 0x4b5   : > { %v6359_v5 = vpop.permute.xlu1 %6358  ;;  %7808 = vrot.lane.b32.xlu1 %v15061_v42, %s13419_s30  ;;  %12747 = vmatmul.mubr.msk.bf16.vlgmr.msra.gmra.mrb[152].mxu0 %vm1675_vm2, %v12739_v29  ;;  %v8350_v42 = vld [vmem:[%s13841_s26 + $0x14] sm:$0xff]  ;;  %v6375_v20 = vsel %vm3656_vm8, %v15248_v49, %v6365_v2  ;;  %v15373_v49 = vcombine.high %v8351_v14, %v8351_v14 }
 0x4b6   : > { %8384 = vrot.lane.b32.xlu0 %v15286_v58, %s13420_s11  ;;  %12749 = vmatmul.mubr.msk.bf16.vlgmr.msra.gmra.mrb[180].mxu1 %vm1675_vm2, %v12739_v29  ;;  %v6373_v7 = vsel %vm3656_vm8, %v6359_v5, %v15276_v4  ;;  %v15317_v13 = vcombine.low %v8350_v42, %v8350_v42  ;;  %v15344_v44 = vcombine.high %v8350_v42, %v8350_v42 }
 0x4b7   : > { %6410 = vmatpush1.bf16.msra.mxu0 %v6380_v6  ;;  %6451 = vmatpush1.bf16.msra.mxu1 %v6386_v43 }
 0x4b8   : > { %12757 = vmatprep.subr.msk.bf16.mxu1 %vm1679_vm1, %v6373_v7  ;;  %v6629_v10 = vpop.permute.xlu0 %6628  ;;  %6441 = vmatprep.mubr.bf16.mxu0 %v13415_v19 }
 0x4b9   : > { %v6635_v35 = vpop.permute.xlu1 %6634  ;;  %6482 = vmatprep.mubr.bf16.mxu1 %v13415_v19  ;;  %8386 = vrot.lane.b32.xlu1 %v15296_v57, %s13420_s11  ;;  %v6649_v27 = vsel %vm3939_vm9, %v6629_v10, %v15278_v22  ;;  %v6648_v29 = vsel %vm3939_vm9, %v15257_v53, %v6629_v10 }
 0x4ba   : > { %8388 = vrot.lane.b32.xlu0 %v15305_v8, %s13420_s11  ;;  %v6662_v9 = vsel %vm1679_vm1, %v6648_v29, 0 }
 0x4bc   : > { %v6357_v32 = vpop.permute.xlu0 %6356 }
 0x4bd   : > { %v15325_v21 = vpop.permute.xlu1 %6642  ;;  %v6372_v23 = vsel %vm3656_vm8, %v6357_v32, %v6359_v5  ;;  %12752 = vmatmul.mubr.msk.bf16.vlgmr.msra.gmra.mrb[156].mxu0 %vm1675_vm2, %v12750_v47  ;;  %v6371_v36 = vsel %vm3656_vm8, %v15235_v41, %v6357_v32  ;;  %8390 = vrot.lane.b32.xlu1 %v15313_v12, %s13420_s11 }
 0x4be   : > { %8392 = vrot.lane.b32.xlu0 %v15317_v13, %s13420_s11  ;;  %12754 = vmatmul.mubr.msk.bf16.vlgmr.msra.gmra.mrb[184].mxu1 %vm1675_vm2, %v12750_v47  ;;  %v6398_v25 = vsel %vm1679_vm1, %v6372_v23, 0 }
 0x4bf   : > { %12755 = vmatprep.subr.msk.bf16.mxu0 %vm1679_vm1, %v6371_v36  ;;  %6533 = vmatpush1.bf16.msra.mxu1 %v6398_v25 }
 0x4c0   : > { %6492 = vmatpush1.bf16.msra.mxu0 %v6392_v34  ;;  %12762 = vmatprep.subr.msk.bf16.mxu1 %vm1679_vm1, %v6649_v27  ;;  %v6633_v37 = vpop.permute.xlu0 %6632 }
 0x4c1   : > { %v6647_v46 = vpop.permute.xlu1 %6646  ;;  %12759 = vmatprep.subr.msk.bf16.mxu0 %vm1679_vm1, %v6375_v20  ;;  %6523 = vmatprep.mubr.bf16.mxu0 %v13415_v19  ;;  %v6651_v15 = vsel %vm3939_vm9, %v6633_v37, %v6635_v35  ;;  %v6650_v38 = vsel %vm3939_vm9, %v15278_v22, %v6633_v37  ;;  %v12772_v37 = vld [vmem:[%s16556_s5 + $0x24] sm:$0xf] }
 0x4c2   : > { %8396 = vrot.lane.b32.xlu0 %v15337_v26, %s13420_s11  ;;  %6564 = vmatprep.mubr.bf16.mxu1 %v13415_v19  ;;  %v6668_v56 = vsel %vm1679_vm1, %v6650_v38, 0 }
 0x4c3   : > { %8394 = vrot.lane.b32.xlu1 %v15344_v44, %s13420_s11 }
 0x4c4   : > { %v6637_v50 = vpop.permute.xlu0 %6636 }
 0x4c5   : > { %v6639_v41 = vpop.permute.xlu1 %6638  ;;  %12756 = vmatmul.mubr.msk.bf16.vlgmr.msra.gmra.mrb[160].mxu0 %vm1675_vm2, %v12750_v47  ;;  %v6652_v52 = vsel %vm3939_vm9, %v6635_v35, %v6637_v50 }
 0x4c6   : > { %8400 = vrot.lane.b32.xlu0 %v15354_v3, %s13420_s11  ;;  %12758 = vmatmul.mubr.msk.bf16.vlgmr.msra.gmra.mrb[188].mxu1 %vm1675_vm2, %v12750_v47  ;;  %v6653_v63 = vsel %vm3939_vm9, %v6637_v50, %v6639_v41  ;;  %v6674_v33 = vsel %vm1679_vm1, %v6652_v52, 0 }
 0x4c7   : > { %6574 = vmatpush1.bf16.msra.mxu0 %v6404_v48  ;;  %6692 = vmatpush1.bf16.msra.mxu1 %v6662_v9 }
 0x4c8   : > { %12764 = vmatprep.subr.msk.bf16.mxu0 %vm1679_vm1, %v6651_v15  ;;  %12766 = vmatprep.subr.msk.bf16.mxu1 %vm1679_vm1, %v6653_v63  ;;  %v6645_v45 = vpop.permute.xlu0 %6644 }
 0x4c9   : > { %6605 = vmatprep.mubr.bf16.mxu0 %v13415_v19  ;;  %6723 = vmatprep.mubr.bf16.mxu1 %v13415_v19  ;;  %v6657_v22 = vsel %vm3939_vm9, %v6645_v45, %v6647_v46  ;;  %v6656_v1 = vsel %vm3939_vm9, %v15325_v21, %v6645_v45 }
 0x4ca   : > { %8404 = vrot.lane.b32.xlu0 %v15371_v28, %s13420_s11  ;;  %v6945_v53 = vpop.permute.xlu1 %6944  ;;  %8398 = vrot.lane.b32.xlu1 %v15373_v49, %s13420_s11  ;;  %v6686_v43 = vsel %vm1679_vm1, %v6656_v1, 0 }
 0x4cc   : > { %v6943_v55 = vpop.permute.xlu0 %6942 }
 0x4cd   : > { %12760 = vmatmul.mubr.msk.bf16.vlgmr.msra.gmra.mrb[164].mxu0 %vm1675_vm2, %v12750_v47  ;;  %v6964_v16 = vsel %vm1937_vm3, %v6943_v55, %v6945_v53 }
 0x4ce   : > { %8668 = vrot.lane.b32.xlu0 %v15296_v57, %s13421_s12  ;;  %12763 = vmatmul.mubr.msk.bf16.vlgmr.msra.gmra.mrb[192].mxu1 %vm1675_vm2, %v12761_v24  ;;  %v6949_v4 = vpop.permute.xlu1 %6948  ;;  %v6978_v36 = vsel %vm1679_vm1, %v6964_v16, 0 }
 0x4cf   : > { %6733 = vmatpush1.bf16.msra.mxu0 %v6668_v56  ;;  %6774 = vmatpush1.bf16.msra.mxu1 %v6674_v33 }
 0x4d0   : > { %12770 = vmatprep.subr.msk.bf16.mxu1 %vm1679_vm1, %v6657_v22  ;;  %v6947_v59 = vpop.permute.xlu0 %6946  ;;  %6764 = vmatprep.mubr.bf16.mxu0 %v13415_v19 }
 0x4d1   : > { %6805 = vmatprep.mubr.bf16.mxu1 %v13415_v19  ;;  %8402 = vrot.lane.b32.xlu1 %v15391_v60, %s13420_s11  ;;  %v6965_v10 = vsel %vm1937_vm3, %v6945_v53, %v6947_v59  ;;  %v6966_v32 = vsel %vm1937_vm3, %v6947_v59, %v6949_v4 }
 0x4d2   : > { %8672 = vrot.lane.b32.xlu0 %v15313_v12, %s13421_s12  ;;  %v6953_v0 = vpop.permute.xlu1 %6952  ;;  %v6984_v25 = vsel %vm1679_vm1, %v6966_v32, 0 }
 0x4d4   : > { %v6641_v2 = vpop.permute.xlu0 %6640 }
 0x4d5   : > { %v6654_v5 = vsel %vm3939_vm9, %v6639_v41, %v6641_v2  ;;  %12765 = vmatmul.mubr.msk.bf16.vlgmr.msra.gmra.mrb[168].mxu0 %vm1675_vm2, %v12761_v24  ;;  %v6655_v6 = vsel %vm3939_vm9, %v6641_v2, %v15325_v21  ;;  %8666 = vrot.lane.b32.xlu1 %v15286_v58, %s13421_s12 }
 0x4d6   : > { %8676 = vrot.lane.b32.xlu0 %v15344_v44, %s13421_s12  ;;  %12767 = vmatmul.mubr.msk.bf16.vlgmr.msra.gmra.mrb[196].mxu1 %vm1675_vm2, %v12761_v24  ;;  %v6680_v7 = vsel %vm1679_vm1, %v6654_v5, 0  ;;  %v6957_v42 = vpop.permute.xlu1 %6956 }
 0x4d7   : > { %12768 = vmatprep.subr.msk.bf16.mxu0 %vm1679_vm1, %v6655_v6  ;;  %6856 = vmatpush1.bf16.msra.mxu1 %v6686_v43 }
 0x4d8   : > { %6815 = vmatpush1.bf16.msra.mxu0 %v6680_v7  ;;  %v6951_v35 = vpop.permute.xlu0 %6950  ;;  %6846 = vmatprep.mubr.bf16.mxu0 %v13415_v19 }
 0x4d9   : > { %12784 = vmatprep.subr.msk.bf16.mxu0 %vm1679_vm1, %v6965_v10  ;;  %6887 = vmatprep.mubr.bf16.mxu1 %v13415_v19  ;;  %v6967_v47 = vsel %vm1937_vm3, %v6949_v4, %v6951_v35  ;;  %v6968_v40 = vsel %vm1937_vm3, %v6951_v35, %v6953_v0 }
 0x4da   : > { %8680 = vrot.lane.b32.xlu0 %v15373_v49, %s13421_s12  ;;  %12786 = vmatprep.subr.msk.bf16.mxu1 %vm1679_vm1, %v6967_v47  ;;  %v6961_v14 = vpop.permute.xlu1 %6960  ;;  %v6990_v48 = vsel %vm1679_vm1, %v6968_v40, 0 }
 0x4db   : > { %8670 = vrot.lane.b32.xlu1 %v15305_v8, %s13421_s12 }
 0x4dc   : > { %v6955_v21 = vpop.permute.xlu0 %6954 }
 0x4dd   : > { %12769 = vmatmul.mubr.msk.bf16.vlgmr.msra.gmra.mrb[172].mxu0 %vm1675_vm2, %v12761_v24  ;;  %v6969_v23 = vsel %vm1937_vm3, %v6953_v0, %v6955_v21  ;;  %v6970_v18 = vsel %vm1937_vm3, %v6955_v21, %v6957_v42  ;;  %v12794_v0 = vld [vmem:[%s16556_s5 + $0x28] sm:$0xf] }
 0x4de   : > { %8684 = vrot.lane.b32.xlu0 %v15391_v60, %s13421_s12  ;;  %12771 = vmatmul.mubr.msk.bf16.vlgmr.msra.gmra.mrb[200].mxu1 %vm1675_vm2, %v12761_v24  ;;  %v7225_v34 = vpop.permute.xlu1 %7224  ;;  %v6996_v29 = vsel %vm1679_vm1, %v6970_v18, 0 }
 0x4df   : > { %7008 = vmatpush1.bf16.msra.mxu0 %v6978_v36  ;;  %7049 = vmatpush1.bf16.msra.mxu1 %v6984_v25 }
 0x4e0   : > { %8674 = vrot.lane.b32.xlu1 %v15317_v13, %s13421_s12  ;;  %12788 = vmatprep.subr.msk.bf16.mxu0 %vm1679_vm1, %v6969_v23  ;;  %v6959_v27 = vpop.permute.xlu0 %6958 }
 0x4e1   : > { %7039 = vmatprep.mubr.bf16.mxu0 %v13415_v19  ;;  %7080 = vmatprep.mubr.bf16.mxu1 %v13415_v19  ;;  %v6971_v20 = vsel %vm1937_vm3, %v6957_v42, %v6959_v27  ;;  %v6972_v53 = vsel %vm1937_vm3, %v6959_v27, %v6961_v14 }
 0x4e2   : > { %8948 = vrot.lane.b32.xlu0 %v15286_v58, %s13422_s16  ;;  %12790 = vmatprep.subr.msk.bf16.mxu1 %vm1679_vm1, %v6971_v20  ;;  %v7229_v46 = vpop.permute.xlu1 %7228  ;;  %v7002_v24 = vsel %vm1679_vm1, %v6972_v53, 0 }
 0x4e4   : > { %8678 = vrot.lane.b32.xlu1 %v15337_v26, %s13421_s12  ;;  %v6963_v50 = vpop.permute.xlu0 %6962 }
 0x4e5   : > { %12785 = vmatmul.mubr.msk.bf16.vlgmr.msra.gmra.mrb[176].mxu0 %vm1675_vm2, %v12772_v37  ;;  %v6973_v41 = vsel %vm1937_vm3, %v6961_v14, %v6963_v50 }
 0x4e6   : > { %8952 = vrot.lane.b32.xlu0 %v15305_v8, %s13422_s16  ;;  %12787 = vmatmul.mubr.msk.bf16.vlgmr.msra.gmra.mrb[204].mxu1 %vm1675_vm2, %v12772_v37  ;;  %v7233_v63 = vpop.permute.xlu1 %7232 }
 0x4e7   : > { %7090 = vmatpush1.bf16.msra.mxu0 %v6990_v48  ;;  %7131 = vmatpush1.bf16.msra.mxu1 %v6996_v29 }
 0x4e8   : > { %8682 = vrot.lane.b32.xlu1 %v15354_v3, %s13421_s12  ;;  %12792 = vmatprep.subr.msk.bf16.mxu0 %vm1679_vm1, %v6973_v41  ;;  %v7227_v9 = vpop.permute.xlu0 %7226 }
 0x4e9   : > { %v7246_v15 = vsel %vm1664_vm0, %v7225_v34, %v7227_v9  ;;  %7121 = vmatprep.mubr.bf16.mxu0 %v13415_v19  ;;  %7162 = vmatprep.mubr.bf16.mxu1 %v13415_v19  ;;  %v7247_v45 = vsel %vm1664_vm0, %v7227_v9, %v7229_v46 }
 0x4ea   : > { %8956 = vrot.lane.b32.xlu0 %v15317_v13, %s13422_s16  ;;  %12795 = vmatprep.subr.msk.bf16.mxu1 %vm1679_vm1, %v7247_v45  ;;  %v7260_v38 = vsel %vm1679_vm1, %v7246_v15, 0 }
 0x4ec   : > { %8686 = vrot.lane.b32.xlu1 %v15371_v28, %s13421_s12  ;;  %v7231_v52 = vpop.permute.xlu0 %7230  ;;  %v7237_v55 = vpop.permute.xlu1 %7236 }
 0x4ed   : > { %12789 = vmatmul.mubr.msk.bf16.vlgmr.msra.gmra.mrb[180].mxu0 %vm1675_vm2, %v12772_v37  ;;  %v7249_v56 = vsel %vm1664_vm0, %v7231_v52, %v7233_v63  ;;  %v7248_v59 = vsel %vm1664_vm0, %v7229_v46, %v7231_v52 }
 0x4ee   : > { %8960 = vrot.lane.b32.xlu0 %v15337_v26, %s13422_s16  ;;  %12791 = vmatmul.mubr.msk.bf16.vlgmr.msra.gmra.mrb[208].mxu1 %vm1675_vm2, %v12772_v37  ;;  %v7266_v6 = vsel %vm1679_vm1, %v7248_v59, 0 }
 0x4ef   : > { %7172 = vmatpush1.bf16.msra.mxu0 %v7002_v24  ;;  %7290 = vmatpush1.bf16.msra.mxu1 %v7260_v38 }
 0x4f0   : > { %8950 = vrot.lane.b32.xlu1 %v15296_v57, %s13422_s16  ;;  %v7235_v33 = vpop.permute.xlu0 %7234  ;;  %7203 = vmatprep.mubr.bf16.mxu0 %v13415_v19 }
 0x4f1   : > { %v7250_v4 = vsel %vm1664_vm0, %v7233_v63, %v7235_v33  ;;  %7321 = vmatprep.mubr.bf16.mxu1 %v13415_v19  ;;  %12797 = vmatprep.subr.msk.bf16.mxu0 %vm1679_vm1, %v7249_v56  ;;  %v7251_v22 = vsel %vm1664_vm0, %v7235_v33, %v7237_v55  ;;  %v15567_v56 = vld [vmem:[%s16556_s5 + $0x2c] sm:$0xf] }
 0x4f2   : > { %8964 = vrot.lane.b32.xlu0 %v15354_v3, %s13422_s16  ;;  %12799 = vmatprep.subr.msk.bf16.mxu1 %vm1679_vm1, %v7251_v22  ;;  %v7272_v1 = vsel %vm1679_vm1, %v7250_v4, 0  ;;  %v9510_v22 = vld [vmem:[%s16557_s6] sm:$0xff] }
 0x4f4   : > { %8954 = vrot.lane.b32.xlu1 %v15313_v12, %s13422_s16  ;;  %v7239_v2 = vpop.permute.xlu0 %7238  ;;  %v7241_v5 = vpop.permute.xlu1 %7240 }
 0x4f5   : > { %12793 = vmatmul.mubr.msk.bf16.vlgmr.msra.gmra.mrb[184].mxu0 %vm1675_vm2, %v12772_v37  ;;  %v7253_v43 = vsel %vm1664_vm0, %v7239_v2, %v7241_v5  ;;  %v7252_v10 = vsel %vm1664_vm0, %v7237_v55, %v7239_v2 }
 0x4f6   : > { %8968 = vrot.lane.b32.xlu0 %v15371_v28, %s13422_s16  ;;  %12796 = vmatmul.mubr.msk.bf16.vlgmr.msra.gmra.mrb[212].mxu1 %vm1675_vm2, %v12794_v0  ;;  %v7278_v32 = vsel %vm1679_vm1, %v7252_v10, 0 }
 0x4f7   : > { %7331 = vmatpush1.bf16.msra.mxu0 %v7266_v6  ;;  %7372 = vmatpush1.bf16.msra.mxu1 %v7272_v1 }
 0x4f8   : > { %8958 = vrot.lane.b32.xlu1 %v15344_v44, %s13422_s16  ;;  %v7243_v7 = vpop.permute.xlu0 %7242  ;;  %7362 = vmatprep.mubr.bf16.mxu0 %v13415_v19 }
 0x4f9   : > { %v7254_v42 = vsel %vm1664_vm0, %v7241_v5, %v7243_v7  ;;  %7403 = vmatprep.mubr.bf16.mxu1 %v13415_v19  ;;  %12801 = vmatprep.subr.msk.bf16.mxu0 %vm1679_vm1, %v7253_v43 }
 0x4fa   : > { %9232 = vrot.lane.b32.xlu0 %v15296_v57, %s13423_s17  ;;  %v7284_v14 = vsel %vm1679_vm1, %v7254_v42, 0 }
 0x4fb   : > { %v7245_v35 = vpop.permute.xlu1 %7244 }
 0x4fc   : > { %8962 = vrot.lane.b32.xlu1 %v15373_v49, %s13422_s16  ;;  %v7255_v47 = vsel %vm1664_vm0, %v7243_v7, %v7245_v35  ;;  %v7507_v16 = vpop.permute.xlu0 %7506 }
 0x4fd   : > { %12798 = vmatmul.mubr.msk.bf16.vlgmr.msra.gmra.mrb[188].mxu0 %vm1675_vm2, %v12794_v0  ;;  %12803 = vmatprep.subr.msk.bf16.mxu1 %vm1679_vm1, %v7255_v47 }
 0x4fe   : > { %9236 = vrot.lane.b32.xlu0 %v15313_v12, %s13423_s17  ;;  %12800 = vmatmul.mubr.msk.bf16.vlgmr.msra.gmra.mrb[216].mxu1 %vm1675_vm2, %v12794_v0 }
 0x4ff   : > { %7413 = vmatpush1.bf16.msra.mxu0 %v7278_v32  ;;  %7454 = vmatpush1.bf16.msra.mxu1 %v7284_v14  ;;  %v7509_v21 = vpop.permute.xlu1 %7508 }
 0x500   : > { %8966 = vrot.lane.b32.xlu1 %v15391_v60, %s13422_s16  ;;  %v7511_v23 = vpop.permute.xlu0 %7510  ;;  %7444 = vmatprep.mubr.bf16.mxu0 %v13415_v19  ;;  %v15527_v36 = vpop.f32.mrb[112].mxu1  ;;  %v7528_v25 = vsel %vm2210_vm4, %v7507_v16, %v7509_v21 }
 0x501   : > { %7485 = vmatprep.mubr.bf16.mxu1 %v13415_v19  ;;  %v7529_v34 = vsel %vm2210_vm4, %v7509_v21, %v7511_v23  ;;  %v15532_v27 = vpop.f32.mrb[113].mxu1  ;;  %v7542_v46 = vsel %vm1679_vm1, %v7528_v25, 0 }
 0x502   : > { %9240 = vrot.lane.b32.xlu0 %v15344_v44, %s13423_s17  ;;  %12806 = vmatprep.subr.msk.bf16.mxu0 %vm1679_vm1, %v7529_v34  ;;  %v4463_v18 = vpop.f32.mrb[114].mxu1 }
 0x503   : > { %v7513_v20 = vpop.permute.xlu1 %7512  ;;  %v4464_v37 = vpop.f32.mrb[115].mxu1 }
 0x504   : > { %v7530_v40 = vsel %vm2210_vm4, %v7511_v23, %v7513_v20  ;;  %v15539_v29 = vpop.f32.mrb[88].mxu0  ;;  %9230 = vrot.lane.b32.xlu1 %v15286_v58, %s13423_s17  ;;  %v7515_v50 = vpop.permute.xlu0 %7514 }
 0x505   : > { %12802 = vmatmul.mubr.msk.bf16.vlgmr.msra.gmra.mrb[192].mxu0 %vm1675_vm2, %v12794_v0  ;;  %v15544_v41 = vpop.f32.mrb[89].mxu0  ;;  %v7531_v48 = vsel %vm2210_vm4, %v7513_v20, %v7515_v50  ;;  %v7548_v9 = vsel %vm1679_vm1, %v7530_v40, 0 }
 0x506   : > { %9244 = vrot.lane.b32.xlu0 %v15373_v49, %s13423_s17  ;;  %12804 = vmatmul.mubr.msk.bf16.vlgmr.msra.gmra.mrb[220].mxu1 %vm1675_vm2, %v12794_v0  ;;  %v4504_v63 = vpop.f32.mrb[90].mxu0 }
 0x507   : > { %7572 = vmatpush1.bf16.msra.mxu0 %v7542_v46  ;;  %v7517_v15 = vpop.permute.xlu1 %7516  ;;  %v4505_v45 = vpop.f32.mrb[91].mxu0  ;;  %12808 = vmatprep.subr.msk.bf16.mxu1 %vm1679_vm1, %v7531_v48 }
 0x508   : > { %9234 = vrot.lane.b32.xlu1 %v15305_v8, %s13423_s17  ;;  %7613 = vmatpush1.bf16.msra.mxu1 %v7548_v9  ;;  %v7519_v53 = vpop.permute.xlu0 %7518  ;;  %v15554_v38 = vpop.f32.mrb[116].mxu1  ;;  %v7532_v52 = vsel %vm2210_vm4, %v7515_v50, %v7517_v15 }
 0x509   : > { %7603 = vmatprep.mubr.bf16.mxu0 %v13415_v19  ;;  %7644 = vmatprep.mubr.bf16.mxu1 %v13415_v19  ;;  %v7533_v24 = vsel %vm2210_vm4, %v7517_v15, %v7519_v53  ;;  %v15560_v55 = vpop.f32.mrb[117].mxu1  ;;  %v7554_v1 = vsel %vm1679_vm1, %v7532_v52, 0 }
 0x50a   : > { %9248 = vrot.lane.b32.xlu0 %v15391_v60, %s13423_s17  ;;  %12810 = vmatprep.subr.msk.bf16.mxu0 %vm1679_vm1, %v7533_v24  ;;  %v4545_v33 = vpop.f32.mrb[118].mxu1 }
 0x50b   : > { %v7521_v4 = vpop.permute.xlu1 %7520  ;;  %v4546_v59 = vpop.f32.mrb[119].mxu1 }
 0x50c   : > { %v7534_v0 = vsel %vm2210_vm4, %v7519_v53, %v7521_v4  ;;  %9238 = vrot.lane.b32.xlu1 %v15317_v13, %s13423_s17  ;;  %v7523_v2 = vpop.permute.xlu0 %7522 }
 0x50d   : > { %12807 = vmatmul.mubr.msk.bf16.vlgmr.msra.gmra.mrb[196].mxu0 %vm1675_vm2, %v15567_v56  ;;  %v7535_v5 = vsel %vm2210_vm4, %v7521_v4, %v7523_v2  ;;  %v7560_v6 = vsel %vm1679_vm1, %v7534_v0, 0 }
 0x50e   : > { %9513 = vperm.xlu0 %13075, %v9510_v22   ;;  %12809 = vmatmul.mubr.msk.bf16.vlgmr.msra.gmra.mrb[224].mxu1 %vm1675_vm2, %v15567_v56 }
 0x50f   : > { %7654 = vmatpush1.bf16.msra.mxu0 %v7554_v1  ;;  %v7525_v43 = vpop.permute.xlu1 %7524  ;;  %12812 = vmatprep.subr.msk.bf16.mxu1 %vm1679_vm1, %v7535_v5 }
 0x510   : > { %v7536_v7 = vsel %vm2210_vm4, %v7523_v2, %v7525_v43  ;;  %v15585_v42 = vpop.f32.mrb[92].mxu0  ;;  %9242 = vrot.lane.b32.xlu1 %v15337_v26, %s13423_s17  ;;  %7695 = vmatpush1.bf16.msra.mxu1 %v7560_v6  ;;  %v7527_v10 = vpop.permute.xlu0 %7526 }
 0x511   : > { %v15589_v35 = vpop.f32.mrb[93].mxu0  ;;  %v7537_v47 = vsel %vm2210_vm4, %v7525_v43, %v7527_v10  ;;  %v15592_v14 = vpop.f32.mrb[120].mxu1  ;;  %7685 = vmatprep.mubr.bf16.mxu0 %v13415_v19  ;;  %7726 = vmatprep.mubr.bf16.mxu1 %v13415_v19  ;;  %v7566_v25 = vsel %vm1679_vm1, %v7536_v7, 0 }
 0x512   : > { %v4586_v16 = vpop.f32.mrb[94].mxu0  ;;  %v15596_v32 = vpop.f32.mrb[121].mxu1  ;;  %12814 = vmatprep.subr.msk.bf16.mxu0 %vm1679_vm1, %v7537_v47 }
 0x513   : > { %v7789_v21 = vpop.permute.xlu1 %7788  ;;  %v4587_v23 = vpop.f32.mrb[95].mxu0 }
 0x514   : > { %9246 = vrot.lane.b32.xlu1 %v15354_v3, %s13423_s17  ;;  %v4627_v34 = vpop.f32.mrb[122].mxu1  ;;  %v7791_v18 = vpop.permute.xlu0 %7790 }
 0x515   : > { %12811 = vmatmul.mubr.msk.bf16.vlgmr.msra.gmra.mrb[200].mxu0 %vm1675_vm2, %v15567_v56  ;;  %v4628_v20 = vpop.f32.mrb[123].mxu1  ;;  %v7810_v37 = vsel %vm2493_vm5, %v7789_v21, %v7791_v18 }
 0x516   : > { %12813 = vmatmul.mubr.msk.bf16.vlgmr.msra.gmra.mrb[228].mxu1 %vm1675_vm2, %v15567_v56  ;;  %7736 = vmatpush1.bf16.msra.mxu0 %v7566_v25  ;;  %v7824_v40 = vsel %vm1679_vm1, %v7810_v37, 0 }
 0x517   : > { %v7793_v46 = vpop.permute.xlu1 %7792  ;;  %7767 = vmatprep.mubr.bf16.mxu0 %v13415_v19  ;;  %7885 = vmatprep.mubr.bf16.mxu1 %v13415_v19 }
 0x518   : > { %v4729_v50 = vpop.f32.mrb[96].mxu0  ;;  %v7811_v48 = vsel %vm2493_vm5, %v7791_v18, %v7793_v46  ;;  %v7795_v9 = vpop.permute.xlu0 %7794  ;;  %9250 = vrot.lane.b32.xlu1 %v15371_v28, %s13423_s17  ;;  %v15625_v28 = vld [vmem:[%s16556_s5 + $0x30] sm:$0xf] }
 0x519   : > { %v4770_v63 = vpop.f32.mrb[124].mxu1  ;;  %v4731_v15 = vpop.f32.mrb[97].mxu0  ;;  %12817 = vmatprep.subr.msk.bf16.mxu1 %vm1679_vm1, %v7811_v48  ;;  %v7812_v45 = vsel %vm2493_vm5, %v7793_v46, %v7795_v9  ;;  %v4730_v53 = vadd.f32 %v4729_v50, %v15527_v36 }
 0x51a   : > { %v4772_v52 = vpop.f32.mrb[125].mxu1  ;;  %v4733_v24 = vpop.f32.mrb[98].mxu0  ;;  %7854 = vmatpush1.bf16.msra.mxu1 %v7824_v40  ;;  %v15617_v33 = vadd.f32 %v4731_v15, %v15532_v27  ;;  %v15620_v4 = vadd.f32 %v4770_v63, %v15539_v29  ;;  %v7830_v0 = vsel %vm1679_vm1, %v7812_v45, 0 }
 0x51b   : > { %v7797_v22 = vpop.permute.xlu1 %7796  ;;  %v4734_v59 = vpop.f32.mrb[99].mxu0  ;;  %v15629_v36 = vadd.f32 %v4772_v52, %v15544_v41 }
 0x51c   : > { %v7813_v1 = vsel %vm2493_vm5, %v7795_v9, %v7797_v22  ;;  %v4774_v2 = vpop.f32.mrb[126].mxu1  ;;  %v7799_v27 = vpop.permute.xlu0 %7798 }
 0x51d   : > { %12815 = vmatmul.mubr.msk.bf16.vlgmr.msra.gmra.mrb[204].mxu0 %vm1675_vm2, %v15567_v56  ;;  %12819 = vmatprep.subr.msk.bf16.mxu0 %vm1679_vm1, %v7813_v1  ;;  %v4775_v29 = vpop.f32.mrb[127].mxu1  ;;  %v7814_v5 = vsel %vm2493_vm5, %v7797_v22, %v7799_v27 }
 0x51e   : > { %12818 = vmatmul.mubr.msk.bf16.vlgmr.msra.gmra.mrb[232].mxu1 %vm1675_vm2, %v15625_v28  ;;  %7895 = vmatpush1.bf16.msra.mxu0 %v7830_v0  ;;  %v7836_v41 = vsel %vm1679_vm1, %v7814_v5, 0 }
 0x51f   : > { %v7801_v6 = vpop.permute.xlu1 %7800  ;;  %7926 = vmatprep.mubr.bf16.mxu0 %v13415_v19  ;;  %7967 = vmatprep.mubr.bf16.mxu1 %v13415_v19 }
 0x520   : > { %v4811_v43 = vpop.f32.mrb[100].mxu0  ;;  %v7815_v7 = vsel %vm2493_vm5, %v7799_v27, %v7801_v6  ;;  %v7803_v56 = vpop.permute.xlu0 %7802 }
 0x521   : > { %v4812_v10 = vadd.f32 %v4811_v43, %v15554_v38  ;;  %v4852_v47 = vpop.f32.mrb[128].mxu1  ;;  %v4813_v16 = vpop.f32.mrb[101].mxu0  ;;  %12821 = vmatprep.subr.msk.bf16.mxu1 %vm1679_vm1, %v7815_v7  ;;  %v7816_v21 = vsel %vm2493_vm5, %v7801_v6, %v7803_v56 }
 0x522   : > { %v15646_v23 = vadd.f32 %v4852_v47, %v15585_v42  ;;  %v4814_v25 = vadd.f32 %v4813_v16, %v15560_v55  ;;  %v4854_v34 = vpop.f32.mrb[129].mxu1  ;;  %v4815_v18 = vpop.f32.mrb[102].mxu0  ;;  %7936 = vmatpush1.bf16.msra.mxu1 %v7836_v41  ;;  %v7842_v38 = vsel %vm1679_vm1, %v7816_v21, 0  ;;  %v15699_v47 = vld [vmem:[%s16556_s5 + $0x34] sm:$0xf]  ;;  %v8116_v21 = vsel %vm1679_vm1, %v15317_v13, 0 }
 0x523   : > { %v15650_v20 = vadd.f32 %v4854_v34, %v15589_v35  ;;  %v7805_v37 = vpop.permute.xlu1 %7804  ;;  %v4816_v46 = vpop.f32.mrb[103].mxu0 }
 0x524   : > { %v7817_v40 = vsel %vm2493_vm5, %v7803_v56, %v7805_v37  ;;  %v4856_v50 = vpop.f32.mrb[130].mxu1  ;;  %v7807_v48 = vpop.permute.xlu0 %7806 }
 0x525   : > { %12820 = vmatmul.mubr.msk.bf16.vlgmr.msra.gmra.mrb[208].mxu0 %vm1675_vm2, %v15625_v28  ;;  %12823 = vmatprep.subr.msk.bf16.mxu0 %vm1679_vm1, %v7817_v40  ;;  %v4857_v55 = vpop.f32.mrb[131].mxu1  ;;  %v7818_v42 = vsel %vm2493_vm5, %v7805_v37, %v7807_v48 }
 0x526   : > { %12822 = vmatmul.mubr.msk.bf16.vlgmr.msra.gmra.mrb[236].mxu1 %vm1675_vm2, %v15625_v28  ;;  %7977 = vmatpush1.bf16.msra.mxu0 %v7842_v38  ;;  %v7848_v9 = vsel %vm1679_vm1, %v7818_v42, 0 }
 0x527   : > { %v7809_v35 = vpop.permute.xlu1 %7808  ;;  %8008 = vmatprep.mubr.bf16.mxu0 %v13415_v19  ;;  %8049 = vmatprep.mubr.bf16.mxu1 %v13415_v19 }
 0x528   : > { %v4893_v63 = vpop.f32.mrb[104].mxu0  ;;  %v7819_v15 = vsel %vm2493_vm5, %v7807_v48, %v7809_v35  ;;  %12838 = vmatprep.subr.msk.bf16.mxu0 %vm1679_vm1, %v15296_v57  ;;  %v8385_v45 = vpop.permute.xlu0 %8384  ;;  %v8104_v57 = vsel %vm1679_vm1, %v15286_v58, 0 }
 0x529   : > { %v4894_v52 = vadd.f32 %v4893_v63, %v15592_v14  ;;  %v5001_v24 = vpop.f32.mrb[132].mxu1  ;;  %v4895_v22 = vpop.f32.mrb[105].mxu0  ;;  %12825 = vmatprep.subr.msk.bf16.mxu1 %vm1679_vm1, %v7819_v15  ;;  %v8128_v63 = vsel %vm1679_vm1, %v15354_v3, 0 }
 0x52a   : > { %v15668_v59 = vadd.f32 %v5001_v24, %v4730_v53  ;;  %v4896_v0 = vadd.f32 %v4895_v22, %v15596_v32  ;;  %v5003_v1 = vpop.f32.mrb[133].mxu1  ;;  %v4897_v2 = vpop.f32.mrb[106].mxu0  ;;  %8018 = vmatpush1.bf16.msra.mxu1 %v7848_v9  ;;  %v8110_v53 = vsel %vm1679_vm1, %v15305_v8, 0 }
 0x52b   : > { %v15672_v27 = vadd.f32 %v5003_v1, %v15617_v33  ;;  %v4898_v29 = vpop.f32.mrb[107].mxu0  ;;  %v5005_v5 = vpop.f32.mrb[134].mxu1  ;;  %12840 = vmatprep.subr.msk.bf16.mxu1 %vm1679_vm1, %v15313_v12 }
 0x52c   : > { %v5006_v14 = vpop.f32.mrb[135].mxu1  ;;  %v8387_v6 = vpop.permute.xlu1 %8386 }
 0x52d   : > { %12824 = vmatmul.mubr.msk.bf16.vlgmr.msra.gmra.mrb[212].mxu0 %vm1675_vm2, %v15625_v28  ;;  %v15684_v32 = vpop.permute.xlu0 %8388  ;;  %v8406_v18 = vsel %vm3090_vm6, %v8385_v45, %v8387_v6 }
 0x52e   : > { %12826 = vmatmul.mubr.msk.bf16.vlgmr.msra.gmra.mrb[240].mxu1 %vm1675_vm2, %v15625_v28  ;;  %8134 = vmatpush1.bf16.msra.mxu0 %v8104_v57 }
 0x52f   : > { %8175 = vmatpush1.bf16.msra.mxu1 %v8110_v53  ;;  %8165 = vmatprep.mubr.bf16.mxu0 %v13415_v19 }
 0x530   : > { %v5042_v12 = vpop.f32.mrb[108].mxu0  ;;  %8206 = vmatprep.mubr.bf16.mxu1 %v13415_v19  ;;  %12842 = vmatprep.subr.msk.bf16.mxu0 %vm1679_vm1, %v15344_v44  ;;  %v8391_v58 = vpop.permute.xlu1 %8390 }
 0x531   : > { %v5174_v8 = vadd.f32 %v5042_v12, %v15620_v4  ;;  %v5083_v33 = vpop.f32.mrb[136].mxu1  ;;  %v5044_v41 = vpop.f32.mrb[109].mxu0  ;;  %12844 = vmatprep.subr.msk.bf16.mxu1 %vm1679_vm1, %v15373_v49  ;;  %v8122_v49 = vsel %vm1679_vm1, %v15337_v26, 0  ;;  %v8408_v2 = vsel %vm3090_vm6, %v15684_v32, %v8391_v58 }
 0x532   : > { %v15693_v28 = vadd.f32 %v5083_v33, %v4812_v10  ;;  %v5175_v43 = vadd.f32 %v5044_v41, %v15629_v36  ;;  %v5085_v7 = vpop.f32.mrb[137].mxu1  ;;  %v5046_v56 = vpop.f32.mrb[110].mxu0  ;;  %v8407_v36 = vsel %vm3090_vm6, %v8387_v6, %v15684_v32 }
 0x533   : > { %v15701_v44 = vadd.f32 %v5085_v7, %v4814_v25  ;;  %v5047_v16 = vpop.f32.mrb[111].mxu0  ;;  %v5087_v4 = vpop.f32.mrb[138].mxu1 }
 0x534   : > { %v5088_v34 = vpop.f32.mrb[139].mxu1  ;;  %v8393_v10 = vpop.permute.xlu0 %8392 }
 0x535   : > { %12839 = vmatmul.mubr.msk.bf16.vlgmr.msra.gmra.mrb[216].mxu0 %vm1675_vm2, %v15699_v47  ;;  %v8395_v25 = vpop.permute.xlu1 %8394  ;;  %v8409_v45 = vsel %vm3090_vm6, %v8391_v58, %v8393_v10 }
 0x536   : > { %12841 = vmatmul.mubr.msk.bf16.vlgmr.msra.gmra.mrb[244].mxu1 %vm1675_vm2, %v15699_v47  ;;  %8216 = vmatpush1.bf16.msra.mxu0 %v8116_v21  ;;  %v8410_v24 = vsel %vm3090_vm6, %v8393_v10, %v8395_v25 }
 0x537   : > { %8257 = vmatpush1.bf16.msra.mxu1 %v8122_v49  ;;  %8247 = vmatprep.mubr.bf16.mxu0 %v13415_v19  ;;  %v8432_v33 = vsel %vm1679_vm1, %v8410_v24, 0 }
 0x538   : > { %v5124_v13 = vpop.f32.mrb[112].mxu0  ;;  %8288 = vmatprep.mubr.bf16.mxu1 %v13415_v19  ;;  %12860 = vmatprep.subr.msk.bf16.mxu1 %vm1679_vm1, %v8407_v36  ;;  %v15716_v26 = vpop.permute.xlu0 %8396 }
 0x539   : > { %v15720_v37 = vadd.f32 %v5124_v13, %v15646_v23  ;;  %v5165_v46 = vpop.f32.mrb[140].mxu1  ;;  %v5126_v38 = vpop.f32.mrb[113].mxu0  ;;  %12846 = vmatprep.subr.msk.bf16.mxu0 %vm1679_vm1, %v15391_v60  ;;  %v8420_v23 = vsel %vm1679_vm1, %v8406_v18, 0 }
 0x53a   : > { %v15724_v40 = vadd.f32 %v5165_v46, %v4894_v52  ;;  %v5179_v50 = vadd.f32 %v5126_v38, %v15650_v20  ;;  %v5167_v48 = vpop.f32.mrb[141].mxu1  ;;  %v5128_v55 = vpop.f32.mrb[114].mxu0  ;;  %v8411_v20 = vsel %vm3090_vm6, %v8395_v25, %v15716_v26 }
 0x53b   : > { %v15727_v42 = vadd.f32 %v5167_v48, %v4896_v0  ;;  %v5129_v35 = vpop.f32.mrb[115].mxu0  ;;  %v5169_v9 = vpop.f32.mrb[142].mxu1 }
 0x53c   : > { %v5170_v15 = vpop.f32.mrb[143].mxu1  ;;  %v8399_v60 = vpop.permute.xlu1 %8398 }
 0x53d   : > { %12843 = vmatmul.mubr.msk.bf16.vlgmr.msra.gmra.mrb[220].mxu0 %vm1675_vm2, %v15699_v47  ;;  %v8401_v3 = vpop.permute.xlu0 %8400  ;;  %v8412_v34 = vsel %vm3090_vm6, %v15716_v26, %v8399_v60 }
 0x53e   : > { %12845 = vmatmul.mubr.msk.bf16.vlgmr.msra.gmra.mrb[248].mxu1 %vm1675_vm2, %v15699_v47  ;;  %8298 = vmatpush1.bf16.msra.mxu0 %v8128_v63  ;;  %v8413_v32 = vsel %vm3090_vm6, %v8399_v60, %v8401_v3  ;;  %v8438_v48 = vsel %vm1679_vm1, %v8412_v34, 0 }
 0x53f   : > { %8450 = vmatpush1.bf16.msra.mxu1 %v8420_v23  ;;  %12862 = vmatprep.subr.msk.bf16.mxu0 %vm1679_vm1, %v8409_v45 }
 0x540   : > { %v5283_v52 = vpop.f32.mrb[116].mxu0  ;;  %8329 = vmatprep.mubr.bf16.mxu0 %v13415_v19  ;;  %8481 = vmatprep.mubr.bf16.mxu1 %v13415_v19 }
 0x541   : > { %v15744_v22 = vadd.f32 %v5283_v52, %v15668_v59  ;;  %v5324_v0 = vpop.f32.mrb[144].mxu1  ;;  %v5285_v1 = vpop.f32.mrb[117].mxu0  ;;  %12864 = vmatprep.subr.msk.bf16.mxu1 %vm1679_vm1, %v8411_v20  ;;  %v15757_v59 = vld [vmem:[%s16556_s5 + $0x38] sm:$0xf] }
 0x542   : > { %v15749_v29 = vadd.f32 %v5324_v0, %v5174_v8  ;;  %v5455_v5 = vadd.f32 %v5285_v1, %v15672_v27  ;;  %v5326_v57 = vpop.f32.mrb[145].mxu1  ;;  %v5287_v14 = vpop.f32.mrb[118].mxu0  ;;  %v8426_v27 = vsel %vm1679_vm1, %v8408_v2, 0 }
 0x543   : > { %v15752_v53 = vadd.f32 %v5326_v57, %v5175_v43  ;;  %v5288_v6 = vpop.f32.mrb[119].mxu0  ;;  %v5328_v12 = vpop.f32.mrb[146].mxu1 }
 0x544   : > { %v8403_v41 = vpop.permute.xlu1 %8402  ;;  %v5329_v7 = vpop.f32.mrb[147].mxu1 }
 0x545   : > { %12847 = vmatmul.mubr.msk.bf16.vlgmr.msra.gmra.mrb[224].mxu0 %vm1675_vm2, %v15699_v47  ;;  %v8405_v58 = vpop.permute.xlu0 %8404  ;;  %v8414_v47 = vsel %vm3090_vm6, %v8401_v3, %v8403_v41 }
 0x546   : > { %12861 = vmatmul.mubr.msk.bf16.vlgmr.msra.gmra.mrb[252].mxu1 %vm1675_vm2, %v15757_v59  ;;  %8491 = vmatpush1.bf16.msra.mxu0 %v8426_v27  ;;  %v8415_v8 = vsel %vm3090_vm6, %v8403_v41, %v8405_v58  ;;  %v8444_v38 = vsel %vm1679_vm1, %v8414_v47, 0 }
 0x547   : > { %8532 = vmatpush1.bf16.msra.mxu1 %v8432_v33  ;;  %12866 = vmatprep.subr.msk.bf16.mxu0 %vm1679_vm1, %v8413_v32 }
 0x548   : > { %v5365_v43 = vpop.f32.mrb[120].mxu0  ;;  %v8667_v56 = vpop.permute.xlu1 %8666  ;;  %8522 = vmatprep.mubr.bf16.mxu0 %v13415_v19  ;;  %8563 = vmatprep.mubr.bf16.mxu1 %v13415_v19 }
 0x549   : > { %v15772_v16 = vadd.f32 %v5365_v43, %v15693_v28  ;;  %v5406_v4 = vpop.f32.mrb[148].mxu1  ;;  %v5367_v21 = vpop.f32.mrb[121].mxu0  ;;  %12868 = vmatprep.subr.msk.bf16.mxu1 %vm1679_vm1, %v8415_v8 }
 0x54a   : > { %v15778_v49 = vadd.f32 %v5406_v4, %v15720_v37  ;;  %v5459_v10 = vadd.f32 %v5367_v21, %v15701_v44  ;;  %v5408_v36 = vpop.f32.mrb[149].mxu1  ;;  %v5369_v25 = vpop.f32.mrb[122].mxu0 }
 0x54b   : > { %v15781_v13 = vadd.f32 %v5408_v36, %v5179_v50  ;;  %v5370_v18 = vpop.f32.mrb[123].mxu0  ;;  %v8669_v46 = vpop.permute.xlu0 %8668 }
 0x54c   : > { %v5410_v28 = vpop.f32.mrb[150].mxu1  ;;  %v8688_v15 = vsel %vm3373_vm7, %v8667_v56, %v8669_v46 }
 0x54d   : > { %12863 = vmatmul.mubr.msk.bf16.vlgmr.msra.gmra.mrb[228].mxu0 %vm1675_vm2, %v15757_v59  ;;  %v8671_v26 = vpop.permute.xlu1 %8670  ;;  %v5411_v55 = vpop.f32.mrb[151].mxu1 }
 0x54e   : > { %12865 = vmatmul.mubr.msk.bf16.vlgmr.msra.gmra.mrb[0].mxu1 %vm1675_vm2, %v15757_v59  ;;  %8573 = vmatpush1.bf16.msra.mxu0 %v8438_v48  ;;  %v8689_v44 = vsel %vm3373_vm7, %v8669_v46, %v8671_v26 }
 0x54f   : > { %8614 = vmatpush1.bf16.msra.mxu1 %v8444_v38  ;;  %v8673_v37 = vpop.permute.xlu0 %8672  ;;  %8604 = vmatprep.mubr.bf16.mxu0 %v13415_v19 }
 0x550   : > { %v5447_v50 = vpop.f32.mrb[124].mxu0  ;;  %8645 = vmatprep.mubr.bf16.mxu1 %v13415_v19  ;;  %12871 = vmatprep.subr.msk.bf16.mxu0 %vm1679_vm1, %v8689_v44  ;;  %v8690_v63 = vsel %vm3373_vm7, %v8671_v26, %v8673_v37 }
 0x551   : > { %v15794_v35 = vadd.f32 %v5447_v50, %v15724_v40  ;;  %v5563_v9 = vpop.f32.mrb[152].mxu1  ;;  %v5449_v23 = vpop.f32.mrb[125].mxu0  ;;  %v8708_v57 = vsel %vm1679_vm1, %v8690_v63, 0 }
 0x552   : > { %v15799_v45 = vadd.f32 %v5563_v9, %v15744_v22  ;;  %v15802_v60 = vadd.f32 %v5449_v23, %v15727_v42  ;;  %v5565_v20 = vpop.f32.mrb[153].mxu1  ;;  %v5451_v3 = vpop.f32.mrb[126].mxu0  ;;  %v8702_v22 = vsel %vm1679_vm1, %v8688_v15, 0 }
 0x553   : > { %v15804_v52 = vadd.f32 %v5565_v20, %v5455_v5  ;;  %v8675_v24 = vpop.permute.xlu1 %8674  ;;  %v5452_v0 = vpop.f32.mrb[127].mxu0 }
 0x554   : > { %v8677_v40 = vpop.permute.xlu0 %8676  ;;  %v8691_v1 = vsel %vm3373_vm7, %v8673_v37, %v8675_v24  ;;  %v5567_v2 = vpop.f32.mrb[154].mxu1 }
 0x555   : > { %12867 = vmatmul.mubr.msk.bf16.vlgmr.msra.gmra.mrb[232].mxu0 %vm1675_vm2, %v15757_v59  ;;  %12873 = vmatprep.subr.msk.bf16.mxu1 %vm1679_vm1, %v8691_v1  ;;  %v5568_v42 = vpop.f32.mrb[155].mxu1 }
 0x556   : > { %12869 = vmatmul.mubr.msk.bf16.vlgmr.msra.gmra.mrb[4].mxu1 %vm1675_vm2, %v15757_v59  ;;  %8732 = vmatpush1.bf16.msra.mxu0 %v8702_v22  ;;  %v8692_v59 = vsel %vm3373_vm7, %v8675_v24, %v8677_v40 }
 0x557   : > { %8773 = vmatpush1.bf16.msra.mxu1 %v8708_v57  ;;  %v8679_v5 = vpop.permute.xlu1 %8678  ;;  %8763 = vmatprep.mubr.bf16.mxu0 %v13415_v19 }
 0x558   : > { %v5604_v14 = vpop.f32.mrb[128].mxu0  ;;  %v8681_v6 = vpop.permute.xlu0 %8680  ;;  %8804 = vmatprep.mubr.bf16.mxu1 %v13415_v19  ;;  %v8693_v12 = vsel %vm3373_vm7, %v8677_v40, %v8679_v5 }
 0x559   : > { %v15818_v33 = vadd.f32 %v5604_v14, %v15749_v29  ;;  %v5645_v41 = vpop.f32.mrb[156].mxu1  ;;  %v8694_v7 = vsel %vm3373_vm7, %v8679_v5, %v8681_v6  ;;  %v5606_v32 = vpop.f32.mrb[129].mxu0  ;;  %12875 = vmatprep.subr.msk.bf16.mxu0 %vm1679_vm1, %v8693_v12  ;;  %v15832_v29 = vld [vmem:[%s16556_s5 + $0x3c] sm:$0xf] }
 0x55a   : > { %v15824_v27 = vadd.f32 %v5645_v41, %v15772_v16  ;;  %v15827_v58 = vadd.f32 %v5606_v32, %v15752_v53  ;;  %v5647_v8 = vpop.f32.mrb[157].mxu1  ;;  %v5608_v43 = vpop.f32.mrb[130].mxu0  ;;  %v8720_v16 = vsel %vm1679_vm1, %v8694_v7, 0  ;;  %v8714_v53 = vsel %vm1679_vm1, %v8692_v59, 0  ;;  %v15890_v59 = vld [vmem:[%s16556_s5 + $0x40] sm:$0xf] }
 0x55b   : > { %v15834_v56 = vadd.f32 %v5647_v8, %v5459_v10  ;;  %v8683_v47 = vpop.permute.xlu1 %8682  ;;  %v5609_v4 = vpop.f32.mrb[131].mxu0 }
 0x55c   : > { %v8685_v21 = vpop.permute.xlu0 %8684  ;;  %v8695_v34 = vsel %vm3373_vm7, %v8681_v6, %v8683_v47  ;;  %v5649_v36 = vpop.f32.mrb[158].mxu1 }
 0x55d   : > { %12872 = vmatmul.mubr.msk.bf16.vlgmr.msra.gmra.mrb[236].mxu0 %vm1675_vm2, %v15832_v29  ;;  %12877 = vmatprep.subr.msk.bf16.mxu1 %vm1679_vm1, %v8695_v34  ;;  %v5650_v25 = vpop.f32.mrb[159].mxu1  ;;  %v8696_v55 = vsel %vm3373_vm7, %v8683_v47, %v8685_v21 }
 0x55e   : > { %12874 = vmatmul.mubr.msk.bf16.vlgmr.msra.gmra.mrb[8].mxu1 %vm1675_vm2, %v15832_v29  ;;  %8814 = vmatpush1.bf16.msra.mxu0 %v8714_v53 }
 0x55f   : > { %8855 = vmatpush1.bf16.msra.mxu1 %v8720_v16  ;;  %v8687_v10 = vpop.permute.xlu1 %8686  ;;  %8845 = vmatprep.mubr.bf16.mxu0 %v13415_v19 }
 0x560   : > { %v8697_v18 = vsel %vm3373_vm7, %v8685_v21, %v8687_v10  ;;  %v5686_v46 = vpop.f32.mrb[132].mxu0  ;;  %v8949_v28 = vpop.permute.xlu0 %8948  ;;  %8886 = vmatprep.mubr.bf16.mxu1 %v13415_v19 }
 0x561   : > { %v15848_v38 = vadd.f32 %v5686_v46, %v15778_v49  ;;  %v5727_v48 = vpop.f32.mrb[160].mxu1  ;;  %v5688_v26 = vpop.f32.mrb[133].mxu0  ;;  %12879 = vmatprep.subr.msk.bf16.mxu0 %vm1679_vm1, %v8697_v18 }
 0x562   : > { %v15853_v44 = vadd.f32 %v5727_v48, %v15794_v35  ;;  %v15856_v37 = vadd.f32 %v5688_v26, %v15781_v13  ;;  %v5729_v50 = vpop.f32.mrb[161].mxu1  ;;  %v5690_v9 = vpop.f32.mrb[134].mxu0  ;;  %v8726_v35 = vsel %vm1679_vm1, %v8696_v55, 0 }
 0x563   : > { %v15859_v63 = vadd.f32 %v5729_v50, %v15802_v60  ;;  %v8951_v23 = vpop.permute.xlu1 %8950  ;;  %v5691_v49 = vpop.f32.mrb[135].mxu0 }
 0x564   : > { %v8970_v15 = vsel %vm3656_vm8, %v8949_v28, %v8951_v23  ;;  %v8953_v20 = vpop.permute.xlu0 %8952  ;;  %v5731_v3 = vpop.f32.mrb[162].mxu1 }
 0x565   : > { %12876 = vmatmul.mubr.msk.bf16.vlgmr.msra.gmra.mrb[240].mxu0 %vm1675_vm2, %v15832_v29  ;;  %v5732_v24 = vpop.f32.mrb[163].mxu1  ;;  %v8971_v13 = vsel %vm3656_vm8, %v8951_v23, %v8953_v20  ;;  %v8984_v0 = vsel %vm1679_vm1, %v8970_v15, 0 }
 0x566   : > { %12878 = vmatmul.mubr.msk.bf16.vlgmr.msra.gmra.mrb[12].mxu1 %vm1675_vm2, %v15832_v29  ;;  %8896 = vmatpush1.bf16.msra.mxu0 %v8726_v35 }
 0x567   : > { %v8955_v60 = vpop.permute.xlu1 %8954  ;;  %12882 = vmatprep.subr.msk.bf16.mxu1 %vm1679_vm1, %v8971_v13  ;;  %8927 = vmatprep.mubr.bf16.mxu0 %v13415_v19 }
 0x568   : > { %v8972_v40 = vsel %vm3656_vm8, %v8953_v20, %v8955_v60  ;;  %v5879_v1 = vpop.f32.mrb[136].mxu0  ;;  %v8957_v2 = vpop.permute.xlu0 %8956  ;;  %9014 = vmatpush1.bf16.msra.mxu1 %v8984_v0  ;;  %9045 = vmatprep.mubr.bf16.mxu1 %v13415_v19 }
 0x569   : > { %v15874_v57 = vadd.f32 %v5879_v1, %v15799_v45  ;;  %v5920_v22 = vpop.f32.mrb[164].mxu1  ;;  %v5881_v42 = vpop.f32.mrb[137].mxu0  ;;  %v8973_v5 = vsel %vm3656_vm8, %v8955_v60, %v8957_v2 }
 0x56a   : > { %v15878_v14 = vadd.f32 %v5920_v22, %v15818_v33  ;;  %v15881_v6 = vadd.f32 %v5881_v42, %v15804_v52  ;;  %v5922_v12 = vpop.f32.mrb[165].mxu1  ;;  %v5883_v41 = vpop.f32.mrb[138].mxu0  ;;  %12884 = vmatprep.subr.msk.bf16.mxu0 %vm1679_vm1, %v8973_v5  ;;  %v8990_v33 = vsel %vm1679_vm1, %v8972_v40, 0 }
 0x56b   : > { %v15885_v7 = vadd.f32 %v5922_v12, %v15827_v58  ;;  %v8959_v32 = vpop.permute.xlu1 %8958  ;;  %v5884_v45 = vpop.f32.mrb[139].mxu0 }
 0x56c   : > { %v8974_v8 = vsel %vm3656_vm8, %v8957_v2, %v8959_v32  ;;  %v8961_v52 = vpop.permute.xlu0 %8960  ;;  %v5924_v43 = vpop.f32.mrb[166].mxu1 }
 0x56d   : > { %12880 = vmatmul.mubr.msk.bf16.vlgmr.msra.gmra.mrb[244].mxu0 %vm1675_vm2, %v15832_v29  ;;  %v5925_v47 = vpop.f32.mrb[167].mxu1  ;;  %v8975_v58 = vsel %vm3656_vm8, %v8959_v32, %v8961_v52  ;;  %v8996_v4 = vsel %vm1679_vm1, %v8974_v8, 0 }
 0x56e   : > { %12883 = vmatmul.mubr.msk.bf16.vlgmr.msra.gmra.mrb[16].mxu1 %vm1675_vm2, %v15890_v59  ;;  %9055 = vmatpush1.bf16.msra.mxu0 %v8990_v33 }
 0x56f   : > { %v8963_v21 = vpop.permute.xlu1 %8962  ;;  %12886 = vmatprep.subr.msk.bf16.mxu1 %vm1679_vm1, %v8975_v58  ;;  %9086 = vmatprep.mubr.bf16.mxu0 %v13415_v19 }
 0x570   : > { %v8976_v34 = vsel %vm3656_vm8, %v8961_v52, %v8963_v21  ;;  %v5961_v36 = vpop.f32.mrb[140].mxu0  ;;  %v8965_v16 = vpop.permute.xlu0 %8964  ;;  %9096 = vmatpush1.bf16.msra.mxu1 %v8996_v4  ;;  %9127 = vmatprep.mubr.bf16.mxu1 %v13415_v19 }
 0x571   : > { %v6054_v29 = vadd.f32 %v5961_v36, %v15824_v27  ;;  %v6002_v53 = vpop.f32.mrb[168].mxu1  ;;  %v5963_v25 = vpop.f32.mrb[141].mxu0  ;;  %v8977_v10 = vsel %vm3656_vm8, %v8963_v21, %v8965_v16  ;;  %v9002_v27 = vsel %vm1679_vm1, %v8976_v34, 0 }
 0x572   : > { %v15907_v18 = vadd.f32 %v6002_v53, %v15848_v38  ;;  %v15910_v46 = vadd.f32 %v5963_v25, %v15834_v56  ;;  %v6004_v28 = vpop.f32.mrb[169].mxu1  ;;  %v5965_v48 = vpop.f32.mrb[142].mxu0  ;;  %12888 = vmatprep.subr.msk.bf16.mxu0 %vm1679_vm1, %v8977_v10 }
 0x573   : > { %v15914_v26 = vadd.f32 %v6004_v28, %v15856_v37  ;;  %v8967_v55 = vpop.permute.xlu1 %8966  ;;  %v5966_v50 = vpop.f32.mrb[143].mxu0 }
 0x574   : > { %v8978_v9 = vsel %vm3656_vm8, %v8965_v16, %v8967_v55  ;;  %v8969_v23 = vpop.permute.xlu0 %8968  ;;  %v6006_v49 = vpop.f32.mrb[170].mxu1  ;;  %v12892_v16 = vld [vmem:[%s16556_s5 + $0x44] sm:$0xf] }
 0x575   : > { %v8979_v38 = vsel %vm3656_vm8, %v8967_v55, %v8969_v23  ;;  %12885 = vmatmul.mubr.msk.bf16.vlgmr.msra.gmra.mrb[248].mxu0 %vm1675_vm2, %v15890_v59  ;;  %v6007_v56 = vpop.f32.mrb[171].mxu1  ;;  %v9008_v15 = vsel %vm1679_vm1, %v8978_v9, 0 }
 0x576   : > { %12887 = vmatmul.mubr.msk.bf16.vlgmr.msra.gmra.mrb[20].mxu1 %vm1675_vm2, %v15890_v59  ;;  %9137 = vmatpush1.bf16.msra.mxu0 %v9002_v27 }
 0x577   : > { %v9231_v37 = vpop.permute.xlu1 %9230  ;;  %12890 = vmatprep.subr.msk.bf16.mxu1 %vm1679_vm1, %v8979_v38  ;;  %9168 = vmatprep.mubr.bf16.mxu0 %v13415_v19 }
 0x578   : > { %v6043_v20 = vpop.f32.mrb[144].mxu0  ;;  %v9233_v3 = vpop.permute.xlu0 %9232  ;;  %9178 = vmatpush1.bf16.msra.mxu1 %v9008_v15  ;;  %9209 = vmatprep.mubr.bf16.mxu1 %v13415_v19 }
 0x579   : > { %v15928_v35 = vadd.f32 %v6043_v20, %v15853_v44  ;;  %v6161_v24 = vpop.f32.mrb[172].mxu1  ;;  %v9252_v13 = vsel %vm3939_vm9, %v9231_v37, %v9233_v3  ;;  %v6045_v0 = vpop.f32.mrb[145].mxu0 }
 0x57a   : > { %v15932_v60 = vadd.f32 %v6161_v24, %v15874_v57  ;;  %v15935_v40 = vadd.f32 %v6045_v0, %v15859_v63  ;;  %v6163_v1 = vpop.f32.mrb[173].mxu1  ;;  %v6047_v2 = vpop.f32.mrb[146].mxu0  ;;  %v9266_v44 = vsel %vm1679_vm1, %v9252_v13, 0 }
 0x57b   : > { %v15938_v22 = vadd.f32 %v6163_v1, %v15881_v6  ;;  %v9235_v42 = vpop.permute.xlu1 %9234  ;;  %v6048_v5 = vpop.f32.mrb[147].mxu0 }
 0x57c   : > { %v9237_v12 = vpop.permute.xlu0 %9236  ;;  %v9253_v41 = vsel %vm3939_vm9, %v9233_v3, %v9235_v42  ;;  %v6165_v32 = vpop.f32.mrb[174].mxu1 }
 0x57d   : > { %v9254_v45 = vsel %vm3939_vm9, %v9235_v42, %v9237_v12  ;;  %12889 = vmatmul.mubr.msk.bf16.vlgmr.msra.gmra.mrb[252].mxu0 %vm1675_vm2, %v15890_v59  ;;  %12893 = vmatprep.subr.msk.bf16.mxu0 %vm1679_vm1, %v9253_v41  ;;  %v6166_v63 = vpop.f32.mrb[175].mxu1 }
 0x57e   : > { %12891 = vmatmul.mubr.msk.bf16.vlgmr.msra.gmra.mrb[24].mxu1 %vm1675_vm2, %v15890_v59  ;;  %9296 = vmatpush1.bf16.msra.mxu0 %v9266_v44  ;;  %v9272_v57 = vsel %vm1679_vm1, %v9254_v45, 0 }
 0x57f   : > { %v9239_v6 = vpop.permute.xlu1 %9238  ;;  %9327 = vmatprep.mubr.bf16.mxu0 %v13415_v19  ;;  %9368 = vmatprep.mubr.bf16.mxu1 %v13415_v19 }
 0x580   : > { %v9255_v33 = vsel %vm3939_vm9, %v9237_v12, %v9239_v6  ;;  %v6202_v8 = vpop.f32.mrb[148].mxu0  ;;  %v9241_v52 = vpop.permute.xlu0 %9240 }
 0x581   : > { %v6334_v43 = vadd.f32 %v6202_v8, %v15878_v14  ;;  %v6243_v47 = vpop.f32.mrb[176].mxu1  ;;  %v9256_v58 = vsel %vm3939_vm9, %v9239_v6, %v9241_v52  ;;  %v6204_v4 = vpop.f32.mrb[149].mxu0  ;;  %12895 = vmatprep.subr.msk.bf16.mxu1 %vm1679_vm1, %v9255_v33 }
 0x582   : > { %v15955_v59 = vadd.f32 %v6243_v47, %v6054_v29  ;;  %v6335_v21 = vadd.f32 %v6204_v4, %v15885_v7  ;;  %v6245_v34 = vpop.f32.mrb[177].mxu1  ;;  %v6206_v36 = vpop.f32.mrb[150].mxu0  ;;  %9337 = vmatpush1.bf16.msra.mxu1 %v9272_v57  ;;  %v9278_v53 = vsel %vm1679_vm1, %v9256_v58, 0 }
 0x583   : > { %v6337_v14 = vadd.f32 %v6245_v34, %v15910_v46  ;;  %v9243_v25 = vpop.permute.xlu1 %9242  ;;  %v6207_v10 = vpop.f32.mrb[151].mxu0 }
 0x584   : > { %v9257_v28 = vsel %vm3939_vm9, %v9241_v52, %v9243_v25  ;;  %v9245_v48 = vpop.permute.xlu0 %9244  ;;  %v6247_v29 = vpop.f32.mrb[178].mxu1 }
 0x585   : > { %v9258_v55 = vsel %vm3939_vm9, %v9243_v25, %v9245_v48  ;;  %12894 = vmatmul.mubr.msk.bf16.vlgmr.msra.gmra.mrb[0].mxu0 %vm1675_vm2, %v12892_v16  ;;  %v6248_v7 = vpop.f32.mrb[179].mxu1  ;;  %12897 = vmatprep.subr.msk.bf16.mxu0 %vm1679_vm1, %v9257_v28 }
 0x586   : > { %12896 = vmatmul.mubr.msk.bf16.vlgmr.msra.gmra.mrb[28].mxu1 %vm1675_vm2, %v12892_v16  ;;  %9378 = vmatpush1.bf16.msra.mxu0 %v9278_v53  ;;  %v9284_v50 = vsel %vm1679_vm1, %v9258_v55, 0 }
 0x587   : > { %v9247_v27 = vpop.permute.xlu1 %9246  ;;  %9409 = vmatprep.mubr.bf16.mxu0 %v13415_v19  ;;  %9450 = vmatprep.mubr.bf16.mxu1 %v13415_v19 }
 0x588   : > { %v9259_v46 = vsel %vm3939_vm9, %v9245_v48, %v9247_v27  ;;  %v6284_v9 = vpop.f32.mrb[152].mxu0  ;;  %v9249_v23 = vpop.permute.xlu0 %9248 }
 0x589   : > { %v6338_v49 = vadd.f32 %v6284_v9, %v15907_v18  ;;  %v6325_v38 = vpop.f32.mrb[180].mxu1  ;;  %v9260_v56 = vsel %vm3939_vm9, %v9247_v27, %v9249_v23  ;;  %v6286_v15 = vpop.f32.mrb[153].mxu0  ;;  %12899 = vmatprep.subr.msk.bf16.mxu1 %vm1679_vm1, %v9259_v46 }
 0x58a   : > { %v6340_v37 = vadd.f32 %v6325_v38, %v15928_v35  ;;  %v6339_v20 = vadd.f32 %v6286_v15, %v15914_v26  ;;  %v6327_v3 = vpop.f32.mrb[181].mxu1  ;;  %v6288_v24 = vpop.f32.mrb[154].mxu0  ;;  %9419 = vmatpush1.bf16.msra.mxu1 %v9284_v50  ;;  %v9290_v2 = vsel %vm1679_vm1, %v9260_v56, 0 }
 0x58b   : > { %v6341_v13 = vadd.f32 %v6327_v3, %v15935_v40  ;;  %v6289_v0 = vpop.f32.mrb[155].mxu0  ;;  %v6329_v1 = vpop.f32.mrb[182].mxu1 }
 0x58c   : > { %v9251_v18 = vpop.permute.xlu1 %9250  ;;  %v6330_v42 = vpop.f32.mrb[183].mxu1 }
 0x58d   : > { %12898 = vmatmul.mubr.msk.bf16.vlgmr.msra.gmra.mrb[4].mxu0 %vm1675_vm2, %v12892_v16  ;;  %v9261_v5 = vsel %vm3939_vm9, %v9249_v23, %v9251_v18 }
 0x58e   : > { %12900 = vmatmul.mubr.msk.bf16.vlgmr.msra.gmra.mrb[32].mxu1 %vm1675_vm2, %v12892_v16  ;;  %12901 = vmatprep.subr.msk.bf16.mxu0 %vm1679_vm1, %v9261_v5 }
 0x58f   : > { %9460 = vmatpush1.bf16.msra.mxu0 %v9290_v2  ;;  %9491 = vmatprep.mubr.bf16.mxu0 %v13415_v19 }
 0x590   : > { %v6443_v26 = vpop.f32.mrb[156].mxu0  ;;  %9779 = vmatprep.mubr.bf16.mxu1 %v13415_v19 }
 0x591   : > { %v6614_v35 = vadd.f32 %v6443_v26, %v15932_v60  ;;  %v6484_v40 = vpop.f32.mrb[184].mxu1  ;;  %v6445_v44 = vpop.f32.mrb[157].mxu0 }
 0x592   : > { %v6616_v12 = vadd.f32 %v6484_v40, %v6334_v43  ;;  %v6615_v41 = vadd.f32 %v6445_v44, %v15938_v22  ;;  %v6486_v32 = vpop.f32.mrb[185].mxu1  ;;  %v6447_v45 = vpop.f32.mrb[158].mxu0 }
 0x593   : > { %v6617_v63 = vadd.f32 %v6486_v32, %v6335_v21  ;;  %v6448_v57 = vpop.f32.mrb[159].mxu0  ;;  %v6488_v6 = vpop.f32.mrb[186].mxu1 }
 0x594   : > { %v6489_v33 = vpop.f32.mrb[187].mxu1 }
 0x595   : > { %12902 = vmatmul.mubr.msk.bf16.vlgmr.msra.gmra.mrb[8].mxu0 %vm1675_vm2, %v12892_v16 }
 0x596   : > { %9820 = vmatprep.mubr.bf16.mxu0 %v13415_v19 }
 0x598   : > { %v6525_v8 = vpop.f32.mrb[160].mxu0 }
 0x599   : > { %v6618_v52 = vadd.f32 %v6525_v8, %v15955_v59  ;;  %v6566_v47 = vpop.f32.mrb[188].mxu1  ;;  %v6527_v60 = vpop.f32.mrb[161].mxu0 }
 0x59a   : > { %v6620_v58 = vadd.f32 %v6566_v47, %v6338_v49  ;;  %v6619_v4 = vadd.f32 %v6527_v60, %v6337_v14  ;;  %v6568_v43 = vpop.f32.mrb[189].mxu1  ;;  %v6529_v34 = vpop.f32.mrb[162].mxu0 }
 0x59b   : > { %v6621_v22 = vadd.f32 %v6568_v43, %v6339_v20  ;;  %v6530_v36 = vpop.f32.mrb[163].mxu0  ;;  %v6570_v53 = vpop.f32.mrb[190].mxu1 }
 0x59c   : > { %v6571_v21 = vpop.f32.mrb[191].mxu1 }
 0x5a0   : > { %v6607_v25 = vpop.f32.mrb[164].mxu0 }
 0x5a1   : > { %v6622_v10 = vadd.f32 %v6607_v25, %v6340_v37  ;;  %v6725_v28 = vpop.f32.mrb[192].mxu1  ;;  %v6609_v48 = vpop.f32.mrb[165].mxu0 }
 0x5a2   : > { %v6896_v16 = vadd.f32 %v6725_v28, %v6614_v35  ;;  %v6623_v29 = vadd.f32 %v6609_v48, %v6341_v13  ;;  %v6727_v55 = vpop.f32.mrb[193].mxu1  ;;  %v6611_v7 = vpop.f32.mrb[166].mxu0 }
 0x5a3   : > { %v6897_v50 = vadd.f32 %v6727_v55, %v6615_v41  ;;  %v6612_v59 = vpop.f32.mrb[167].mxu0  ;;  %v6729_v27 = vpop.f32.mrb[194].mxu1 }
 0x5a4   : > { %v6730_v46 = vpop.f32.mrb[195].mxu1 }
 0x5a8   : > { %v6766_v9 = vpop.f32.mrb[168].mxu0 }
 0x5a9   : > { %v6898_v14 = vadd.f32 %v6766_v9, %v6616_v12  ;;  %v6807_v23 = vpop.f32.mrb[196].mxu1  ;;  %v6768_v49 = vpop.f32.mrb[169].mxu0 }
 0x5aa   : > { %v6900_v38 = vadd.f32 %v6807_v23, %v6618_v52  ;;  %v6899_v56 = vadd.f32 %v6768_v49, %v6617_v63  ;;  %v6809_v15 = vpop.f32.mrb[197].mxu1  ;;  %v6770_v20 = vpop.f32.mrb[170].mxu0 }
 0x5ab   : > { %v6901_v3 = vadd.f32 %v6809_v15, %v6619_v4  ;;  %v6771_v37 = vpop.f32.mrb[171].mxu0  ;;  %v6811_v24 = vpop.f32.mrb[198].mxu1 }
 0x5ac   : > { %v6812_v0 = vpop.f32.mrb[199].mxu1 }
 0x5b0   : > { %v6848_v1 = vpop.f32.mrb[172].mxu0 }
 0x5b1   : > { %v6902_v13 = vadd.f32 %v6848_v1, %v6620_v58  ;;  %v6889_v2 = vpop.f32.mrb[200].mxu1  ;;  %v6850_v18 = vpop.f32.mrb[173].mxu0 }
 0x5b2   : > { %v6904_v42 = vadd.f32 %v6889_v2, %v6622_v10  ;;  %v6903_v5 = vadd.f32 %v6850_v18, %v6621_v22  ;;  %v6891_v26 = vpop.f32.mrb[201].mxu1  ;;  %v6852_v35 = vpop.f32.mrb[174].mxu0 }
 0x5b3   : > { %v6905_v40 = vadd.f32 %v6891_v26, %v6623_v29  ;;  %v6853_v44 = vpop.f32.mrb[175].mxu0  ;;  %v6893_v12 = vpop.f32.mrb[202].mxu1 }
 0x5b4   : > { %v6894_v41 = vpop.f32.mrb[203].mxu1 }
 0x5b8   : > { %v7041_v32 = vpop.f32.mrb[176].mxu0 }
 0x5b9   : > { %v7212_v45 = vadd.f32 %v7041_v32, %v6896_v16  ;;  %v7082_v63 = vpop.f32.mrb[204].mxu1  ;;  %v7043_v57 = vpop.f32.mrb[177].mxu0 }
 0x5ba   : > { %v7214_v6 = vadd.f32 %v7082_v63, %v6898_v14  ;;  %v7213_v33 = vadd.f32 %v7043_v57, %v6897_v50  ;;  %v7084_v8 = vpop.f32.mrb[205].mxu1  ;;  %v7045_v52 = vpop.f32.mrb[178].mxu0 }
 0x5bb   : > { %v7215_v47 = vadd.f32 %v7084_v8, %v6899_v56  ;;  %v7046_v60 = vpop.f32.mrb[179].mxu0  ;;  %v7086_v58 = vpop.f32.mrb[206].mxu1 }
 0x5bc   : > { %v7087_v4 = vpop.f32.mrb[207].mxu1 }
 0x5c0   : > { %v7123_v43 = vpop.f32.mrb[180].mxu0 }
 0x5c1   : > { %v7216_v34 = vadd.f32 %v7123_v43, %v6900_v38  ;;  %v7164_v22 = vpop.f32.mrb[208].mxu1  ;;  %v7125_v36 = vpop.f32.mrb[181].mxu0 }
 0x5c2   : > { %v7218_v53 = vadd.f32 %v7164_v22, %v6902_v13  ;;  %v7217_v21 = vadd.f32 %v7125_v36, %v6901_v3  ;;  %v7166_v25 = vpop.f32.mrb[209].mxu1  ;;  %v7127_v10 = vpop.f32.mrb[182].mxu0 }
 0x5c3   : > { %v7219_v28 = vadd.f32 %v7166_v25, %v6903_v5  ;;  %v7128_v48 = vpop.f32.mrb[183].mxu0  ;;  %v7168_v16 = vpop.f32.mrb[210].mxu1 }
 0x5c4   : > { %v7169_v29 = vpop.f32.mrb[211].mxu1 }
 0x5c8   : > { %v7205_v55 = vpop.f32.mrb[184].mxu0 }
 0x5c9   : > { %v7220_v7 = vadd.f32 %v7205_v55, %v6904_v42  ;;  %v7323_v50 = vpop.f32.mrb[212].mxu1  ;;  %v7207_v59 = vpop.f32.mrb[185].mxu0 }
 0x5ca   : > { %v7494_v27 = vadd.f32 %v7323_v50, %v7212_v45  ;;  %v7221_v46 = vadd.f32 %v7207_v59, %v6905_v40  ;;  %v7325_v9 = vpop.f32.mrb[213].mxu1  ;;  %v7209_v14 = vpop.f32.mrb[186].mxu0 }
 0x5cb   : > { %v7495_v23 = vadd.f32 %v7325_v9, %v7213_v33  ;;  %v7210_v49 = vpop.f32.mrb[187].mxu0  ;;  %v7327_v38 = vpop.f32.mrb[214].mxu1 }
 0x5cc   : > { %v7328_v56 = vpop.f32.mrb[215].mxu1 }
 0x5d0   : > { %v7364_v15 = vpop.f32.mrb[188].mxu0 }
 0x5d1   : > { %v7496_v20 = vadd.f32 %v7364_v15, %v7214_v6  ;;  %v7405_v3 = vpop.f32.mrb[216].mxu1  ;;  %v7366_v37 = vpop.f32.mrb[189].mxu0 }
 0x5d2   : > { %v7498_v24 = vadd.f32 %v7405_v3, %v7216_v34  ;;  %v7497_v0 = vadd.f32 %v7366_v37, %v7215_v47  ;;  %v7407_v1 = vpop.f32.mrb[217].mxu1  ;;  %v7368_v13 = vpop.f32.mrb[190].mxu0 }
 0x5d3   : > { %v7499_v2 = vadd.f32 %v7407_v1, %v7217_v21  ;;  %v7369_v18 = vpop.f32.mrb[191].mxu0  ;;  %v7409_v42 = vpop.f32.mrb[218].mxu1 }
 0x5d4   : > { %v7410_v5 = vpop.f32.mrb[219].mxu1 }
 0x5d8   : > { %v7446_v26 = vpop.f32.mrb[192].mxu0 }
 0x5d9   : > { %v7500_v35 = vadd.f32 %v7446_v26, %v7218_v53  ;;  %v7487_v40 = vpop.f32.mrb[220].mxu1  ;;  %v7448_v44 = vpop.f32.mrb[193].mxu0 }
 0x5da   : > { %v7502_v12 = vadd.f32 %v7487_v40, %v7220_v7  ;;  %v7501_v41 = vadd.f32 %v7448_v44, %v7219_v28  ;;  %v7489_v32 = vpop.f32.mrb[221].mxu1  ;;  %v7450_v45 = vpop.f32.mrb[194].mxu0 }
 0x5db   : > { %v7503_v63 = vadd.f32 %v7489_v32, %v7221_v46  ;;  %v7451_v57 = vpop.f32.mrb[195].mxu0  ;;  %v7491_v6 = vpop.f32.mrb[222].mxu1 }
 0x5dc   : > { %v7492_v33 = vpop.f32.mrb[223].mxu1 }
 0x5e0   : > { %v7605_v8 = vpop.f32.mrb[196].mxu0 }
 0x5e1   : > { %v7776_v52 = vadd.f32 %v7605_v8, %v7494_v27  ;;  %v7646_v47 = vpop.f32.mrb[224].mxu1  ;;  %v7607_v60 = vpop.f32.mrb[197].mxu0 }
 0x5e2   : > { %v7778_v58 = vadd.f32 %v7646_v47, %v7496_v20  ;;  %v7777_v4 = vadd.f32 %v7607_v60, %v7495_v23  ;;  %v7648_v43 = vpop.f32.mrb[225].mxu1  ;;  %v7609_v34 = vpop.f32.mrb[198].mxu0 }
 0x5e3   : > { %v7779_v22 = vadd.f32 %v7648_v43, %v7497_v0  ;;  %v7610_v36 = vpop.f32.mrb[199].mxu0  ;;  %v7650_v53 = vpop.f32.mrb[226].mxu1 }
 0x5e4   : > { %v7651_v21 = vpop.f32.mrb[227].mxu1 }
 0x5e8   : > { %v7687_v25 = vpop.f32.mrb[200].mxu0 }
 0x5e9   : > { %v7780_v10 = vadd.f32 %v7687_v25, %v7498_v24  ;;  %v7728_v28 = vpop.f32.mrb[228].mxu1  ;;  %v7689_v48 = vpop.f32.mrb[201].mxu0 }
 0x5ea   : > { %v7782_v16 = vadd.f32 %v7728_v28, %v7500_v35  ;;  %v7781_v29 = vadd.f32 %v7689_v48, %v7499_v2  ;;  %v7730_v55 = vpop.f32.mrb[229].mxu1  ;;  %v7691_v7 = vpop.f32.mrb[202].mxu0 }
 0x5eb   : > { %v7783_v50 = vadd.f32 %v7730_v55, %v7501_v41  ;;  %v7692_v59 = vpop.f32.mrb[203].mxu0  ;;  %v7732_v27 = vpop.f32.mrb[230].mxu1 }
 0x5ec   : > { %v7733_v46 = vpop.f32.mrb[231].mxu1 }
 0x5f0   : > { %v7769_v9 = vpop.f32.mrb[204].mxu0 }
 0x5f1   : > { %v7784_v14 = vadd.f32 %v7769_v9, %v7502_v12  ;;  %v7887_v23 = vpop.f32.mrb[232].mxu1  ;;  %v7771_v49 = vpop.f32.mrb[205].mxu0 }
 0x5f2   : > { %v8058_v38 = vadd.f32 %v7887_v23, %v7776_v52  ;;  %v7785_v56 = vadd.f32 %v7771_v49, %v7503_v63  ;;  %v7889_v15 = vpop.f32.mrb[233].mxu1  ;;  %v7773_v20 = vpop.f32.mrb[206].mxu0 }
 0x5f3   : > { %v8059_v3 = vadd.f32 %v7889_v15, %v7777_v4  ;;  %v7774_v37 = vpop.f32.mrb[207].mxu0  ;;  %v7891_v24 = vpop.f32.mrb[234].mxu1 }
 0x5f4   : > { %v7892_v0 = vpop.f32.mrb[235].mxu1 }
 0x5f8   : > { %v7928_v1 = vpop.f32.mrb[208].mxu0 }
 0x5f9   : > { %v8060_v13 = vadd.f32 %v7928_v1, %v7778_v58  ;;  %v7969_v2 = vpop.f32.mrb[236].mxu1  ;;  %v7930_v18 = vpop.f32.mrb[209].mxu0 }
 0x5fa   : > { %v8062_v42 = vadd.f32 %v7969_v2, %v7780_v10  ;;  %v8061_v5 = vadd.f32 %v7930_v18, %v7779_v22  ;;  %v7971_v26 = vpop.f32.mrb[237].mxu1  ;;  %v7932_v35 = vpop.f32.mrb[210].mxu0 }
 0x5fb   : > { %v8063_v40 = vadd.f32 %v7971_v26, %v7781_v29  ;;  %v7933_v44 = vpop.f32.mrb[211].mxu0  ;;  %v7973_v12 = vpop.f32.mrb[238].mxu1 }
 0x5fc   : > { %v7974_v41 = vpop.f32.mrb[239].mxu1 }
 0x600   : > { %v8010_v32 = vpop.f32.mrb[212].mxu0 }
 0x601   : > { %v8064_v45 = vadd.f32 %v8010_v32, %v7782_v16  ;;  %v8051_v63 = vpop.f32.mrb[240].mxu1  ;;  %v8012_v57 = vpop.f32.mrb[213].mxu0 }
 0x602   : > { %v8066_v6 = vadd.f32 %v8051_v63, %v7784_v14  ;;  %v8065_v33 = vadd.f32 %v8012_v57, %v7783_v50  ;;  %v8053_v8 = vpop.f32.mrb[241].mxu1  ;;  %v8014_v52 = vpop.f32.mrb[214].mxu0 }
 0x603   : > { %v8067_v47 = vadd.f32 %v8053_v8, %v7785_v56  ;;  %v8015_v60 = vpop.f32.mrb[215].mxu0  ;;  %v8055_v58 = vpop.f32.mrb[242].mxu1 }
 0x604   : > { %v8056_v4 = vpop.f32.mrb[243].mxu1 }
 0x608   : > { %v8167_v43 = vpop.f32.mrb[216].mxu0 }
 0x609   : > { %v8338_v34 = vadd.f32 %v8167_v43, %v8058_v38  ;;  %v8208_v22 = vpop.f32.mrb[244].mxu1  ;;  %v8169_v36 = vpop.f32.mrb[217].mxu0 }
 0x60a   : > { %v8340_v53 = vadd.f32 %v8208_v22, %v8060_v13  ;;  %v8339_v21 = vadd.f32 %v8169_v36, %v8059_v3  ;;  %v8210_v25 = vpop.f32.mrb[245].mxu1  ;;  %v8171_v10 = vpop.f32.mrb[218].mxu0 }
 0x60b   : > { %v8341_v28 = vadd.f32 %v8210_v25, %v8061_v5  ;;  %v8172_v48 = vpop.f32.mrb[219].mxu0  ;;  %v8212_v16 = vpop.f32.mrb[246].mxu1 }
 0x60c   : > { %v8213_v29 = vpop.f32.mrb[247].mxu1 }
 0x610   : > { %v8249_v55 = vpop.f32.mrb[220].mxu0 }
 0x611   : > { %v8342_v7 = vadd.f32 %v8249_v55, %v8062_v42  ;;  %v8290_v50 = vpop.f32.mrb[248].mxu1  ;;  %v8251_v59 = vpop.f32.mrb[221].mxu0 }
 0x612   : > { %v8344_v27 = vadd.f32 %v8290_v50, %v8064_v45  ;;  %v8343_v46 = vadd.f32 %v8251_v59, %v8063_v40  ;;  %v8292_v9 = vpop.f32.mrb[249].mxu1  ;;  %v8253_v14 = vpop.f32.mrb[222].mxu0 }
 0x613   : > { %v8345_v23 = vadd.f32 %v8292_v9, %v8065_v33  ;;  %v8254_v49 = vpop.f32.mrb[223].mxu0  ;;  %v8294_v38 = vpop.f32.mrb[250].mxu1 }
 0x614   : > { %v8295_v56 = vpop.f32.mrb[251].mxu1 }
 0x618   : > { %v8331_v15 = vpop.f32.mrb[224].mxu0 }
 0x619   : > { %v8346_v20 = vadd.f32 %v8331_v15, %v8066_v6  ;;  %v8483_v3 = vpop.f32.mrb[252].mxu1  ;;  %v8333_v37 = vpop.f32.mrb[225].mxu0 }
 0x61a   : > { %v8654_v24 = vadd.f32 %v8483_v3, %v8338_v34  ;;  %v8347_v0 = vadd.f32 %v8333_v37, %v8067_v47  ;;  %v8485_v1 = vpop.f32.mrb[253].mxu1  ;;  %v8335_v13 = vpop.f32.mrb[226].mxu0 }
 0x61b   : > { %v8655_v2 = vadd.f32 %v8485_v1, %v8339_v21  ;;  %v8336_v18 = vpop.f32.mrb[227].mxu0  ;;  %v8487_v42 = vpop.f32.mrb[254].mxu1 }
 0x61c   : > { %v8488_v5 = vpop.f32.mrb[255].mxu1 }
 0x620   : > { %v8524_v26 = vpop.f32.mrb[228].mxu0 }
 0x621   : > { %v8656_v35 = vadd.f32 %v8524_v26, %v8340_v53  ;;  %v8565_v40 = vpop.f32.mrb[0].mxu1  ;;  %v8526_v44 = vpop.f32.mrb[229].mxu0 }
 0x622   : > { %v8658_v12 = vadd.f32 %v8565_v40, %v8342_v7  ;;  %v8657_v41 = vadd.f32 %v8526_v44, %v8341_v28  ;;  %v8567_v32 = vpop.f32.mrb[1].mxu1  ;;  %v8528_v45 = vpop.f32.mrb[230].mxu0 }
 0x623   : > { %v8659_v63 = vadd.f32 %v8567_v32, %v8343_v46  ;;  %v8529_v57 = vpop.f32.mrb[231].mxu0  ;;  %v8569_v6 = vpop.f32.mrb[2].mxu1 }
 0x624   : > { %v8570_v33 = vpop.f32.mrb[3].mxu1 }
 0x628   : > { %v8606_v8 = vpop.f32.mrb[232].mxu0 }
 0x629   : > { %v8660_v52 = vadd.f32 %v8606_v8, %v8344_v27  ;;  %v8647_v47 = vpop.f32.mrb[4].mxu1  ;;  %v8608_v60 = vpop.f32.mrb[233].mxu0 }
 0x62a   : > { %v8662_v58 = vadd.f32 %v8647_v47, %v8346_v20  ;;  %v8661_v4 = vadd.f32 %v8608_v60, %v8345_v23  ;;  %v8649_v43 = vpop.f32.mrb[5].mxu1  ;;  %v8610_v34 = vpop.f32.mrb[234].mxu0 }
 0x62b   : > { %v8663_v22 = vadd.f32 %v8649_v43, %v8347_v0  ;;  %v8611_v36 = vpop.f32.mrb[235].mxu0  ;;  %v8651_v53 = vpop.f32.mrb[6].mxu1 }
 0x62c   : > { %v8652_v21 = vpop.f32.mrb[7].mxu1 }
 0x630   : > { %v8765_v25 = vpop.f32.mrb[236].mxu0 }
 0x631   : > { %v8936_v10 = vadd.f32 %v8765_v25, %v8654_v24  ;;  %v8806_v28 = vpop.f32.mrb[8].mxu1  ;;  %v8767_v48 = vpop.f32.mrb[237].mxu0 }
 0x632   : > { %v8938_v16 = vadd.f32 %v8806_v28, %v8656_v35  ;;  %v8937_v29 = vadd.f32 %v8767_v48, %v8655_v2  ;;  %v8808_v55 = vpop.f32.mrb[9].mxu1  ;;  %v8769_v7 = vpop.f32.mrb[238].mxu0 }
 0x633   : > { %v8939_v50 = vadd.f32 %v8808_v55, %v8657_v41  ;;  %v8770_v59 = vpop.f32.mrb[239].mxu0  ;;  %v8810_v27 = vpop.f32.mrb[10].mxu1 }
 0x634   : > { %v8811_v46 = vpop.f32.mrb[11].mxu1  ;;  %v15994_v55 = vpop.permute.xlu0 %9513 }
 0x638   : > { %v8847_v9 = vpop.f32.mrb[240].mxu0 }
 0x639   : > { %v8940_v14 = vadd.f32 %v8847_v9, %v8658_v12  ;;  %v8888_v23 = vpop.f32.mrb[12].mxu1  ;;  %v8849_v49 = vpop.f32.mrb[241].mxu0 }
 0x63a   : > { %v8942_v38 = vadd.f32 %v8888_v23, %v8660_v52  ;;  %v8941_v56 = vadd.f32 %v8849_v49, %v8659_v63  ;;  %v8890_v15 = vpop.f32.mrb[13].mxu1  ;;  %v8851_v20 = vpop.f32.mrb[242].mxu0 }
 0x63b   : > { %v8943_v3 = vadd.f32 %v8890_v15, %v8661_v4  ;;  %v8852_v37 = vpop.f32.mrb[243].mxu0  ;;  %v8892_v24 = vpop.f32.mrb[14].mxu1 }
 0x63c   : > { %v8893_v0 = vpop.f32.mrb[15].mxu1 }
 0x640   : > { %v8929_v1 = vpop.f32.mrb[244].mxu0 }
 0x641   : > { %v8944_v13 = vadd.f32 %v8929_v1, %v8662_v58  ;;  %v9047_v2 = vpop.f32.mrb[16].mxu1  ;;  %v8931_v18 = vpop.f32.mrb[245].mxu0 }
 0x642   : > { %v9218_v42 = vadd.f32 %v9047_v2, %v8936_v10  ;;  %v8945_v5 = vadd.f32 %v8931_v18, %v8663_v22  ;;  %v9049_v26 = vpop.f32.mrb[17].mxu1  ;;  %v8933_v35 = vpop.f32.mrb[246].mxu0 }
 0x643   : > { %v9219_v40 = vadd.f32 %v9049_v26, %v8937_v29  ;;  %v8934_v44 = vpop.f32.mrb[247].mxu0  ;;  %v9051_v12 = vpop.f32.mrb[18].mxu1 }
 0x644   : > { %v9052_v41 = vpop.f32.mrb[19].mxu1 }
 0x648   : > { %v9088_v32 = vpop.f32.mrb[248].mxu0 }
 0x649   : > { %v9220_v45 = vadd.f32 %v9088_v32, %v8938_v16  ;;  %v9129_v63 = vpop.f32.mrb[20].mxu1  ;;  %v9090_v57 = vpop.f32.mrb[249].mxu0 }
 0x64a   : > { %v9222_v6 = vadd.f32 %v9129_v63, %v8940_v14  ;;  %v9221_v33 = vadd.f32 %v9090_v57, %v8939_v50  ;;  %v9131_v8 = vpop.f32.mrb[21].mxu1  ;;  %v9092_v52 = vpop.f32.mrb[250].mxu0  ;;  %v9536_v50 = vld [vmem:[%s16560_s9] sm:$0xff] }
 0x64b   : > { %v9223_v47 = vadd.f32 %v9131_v8, %v8941_v56  ;;  %v9093_v60 = vpop.f32.mrb[251].mxu0  ;;  %v9133_v58 = vpop.f32.mrb[22].mxu1  ;;  %v9543_v56 = vrot.slane %v9536_v50, %v14615_v31  ;;  %v9551_v24 = vrot.slane %v9536_v50, %v4228_v11  ;;  %v9547_v1 = vrot.slane %v9536_v50, %v14623_v39 }
 0x64c   : > { %v9134_v4 = vpop.f32.mrb[23].mxu1 }
 0x64d   : > { %v9559_v4 = vrot.slane %v9536_v50, %v4236_v61  ;;  %v9571_v61 = vrot.slane %v9536_v50, %v4248_v54 }
 0x650   : > { %v9170_v43 = vpop.f32.mrb[252].mxu0 }
 0x651   : > { %v9224_v34 = vadd.f32 %v9170_v43, %v8942_v38  ;;  %v9211_v22 = vpop.f32.mrb[24].mxu1  ;;  %v9172_v36 = vpop.f32.mrb[253].mxu0 }
 0x652   : > { %v15990_v53 = vadd.f32 %v9211_v22, %v8944_v13  ;;  %v9225_v21 = vadd.f32 %v9172_v36, %v8943_v3  ;;  %v9213_v25 = vpop.f32.mrb[25].mxu1  ;;  %v9174_v10 = vpop.f32.mrb[254].mxu0 }
 0x653   : > { %v15992_v28 = vadd.f32 %v9213_v25, %v8945_v5  ;;  %v9175_v48 = vpop.f32.mrb[255].mxu0  ;;  %v9215_v16 = vpop.f32.mrb[26].mxu1  ;;  %v9563_v25 = vrot.slane %v9536_v50, %v4240_v62  ;;  %v9537_v62 = vld [vmem:[%s16560_s9 + $0x8] sm:$0x3] }
 0x654   : > { %v9216_v29 = vpop.f32.mrb[27].mxu1 }
 0x658   : > { %v9329_v7 = vpop.f32.mrb[0].mxu0 }
 0x659   : > { %v9500_v59 = vadd.f32 %v9329_v7, %v9218_v42  ;;  %v9370_v27 = vpop.f32.mrb[28].mxu1  ;;  %v9331_v46 = vpop.f32.mrb[1].mxu0  ;;  %v9555_v42 = vrot.slane %v9536_v50, %v4232_v17 }
 0x65a   : > { %v9502_v9 = vadd.f32 %v9370_v27, %v9220_v45  ;;  %v9501_v14 = vadd.f32 %v9331_v46, %v9219_v40  ;;  %v9372_v23 = vpop.f32.mrb[29].mxu1  ;;  %v9333_v49 = vpop.f32.mrb[2].mxu0 }
 0x65b   : > { %v9516_v38 = vadd.f32 %v15994_v55, %v9500_v59  ;;  %v9503_v15 = vadd.f32 %v9372_v23, %v9221_v33  ;;  %v9334_v20 = vpop.f32.mrb[3].mxu0  ;;  %v9374_v3 = vpop.f32.mrb[30].mxu1 }
 0x65c   : > { %v9518_v37 = vadd.f32 %v15994_v55, %v9502_v9  ;;  %v9517_v0 = vadd.f32 %v15994_v55, %v9501_v14  ;;  %v9375_v13 = vpop.f32.mrb[31].mxu1 }
 0x65d   : > { %v9526_v2 = vmax.f32 %v9516_v38, 0.0  ;;  %v9519_v18 = vadd.f32 %v15994_v55, %v9503_v15 }
 0x65e   : > { %v9528_v5 = vmax.f32 %v9518_v37, 0.0  ;;  %v9527_v26 = vmax.f32 %v9517_v0, 0.0 }
 0x65f   : > { %v16009_v35 = vmul.f32 %v9543_v56, %v9526_v2  ;;  %v9529_v40 = vmax.f32 %v9519_v18, 0.0  ;;  %v9575_v56 = vrot.slane %v9537_v62, %v14615_v31 }
 0x660   : > { %v16011_v44 = vmul.f32 %v9551_v24, %v9528_v5  ;;  %v16013_v12 = vmul.f32 %v9547_v1, %v9527_v26  ;;  %v9411_v11 = vpop.f32.mrb[4].mxu0 }
 0x661   : > { %v16015_v41 = vmul.f32 %v9555_v42, %v9529_v40  ;;  %v9504_v32 = vadd.f32 %v9411_v11, %v9222_v6  ;;  %v9452_v45 = vpop.f32.mrb[32].mxu1  ;;  %v9413_v63 = vpop.f32.mrb[5].mxu0 }
 0x662   : > { %v13051_v57 = vpack.c.bf16 %v16013_v12, %v16009_v35  ;;  %v9506_v33 = vadd.f32 %v9452_v45, %v9224_v34  ;;  %v9505_v17 = vadd.f32 %v9413_v63, %v9223_v47  ;;  %v9454_v8 = vpop.f32.mrb[33].mxu1  ;;  %v9415_v52 = vpop.f32.mrb[6].mxu0  ;;  %v9567_v34 = vrot.slane %v9536_v50, %v4244_v51 }
 0x663   : > { %v13052_v60 = vpack.c.bf16 %v16015_v41, %v16011_v44  ;;  %v9520_v58 = vadd.f32 %v15994_v55, %v9504_v32  ;;  %v9507_v43 = vadd.f32 %v9454_v8, %v9225_v21  ;;  %v9416_v22 = vpop.f32.mrb[7].mxu0  ;;  %v9456_v6 = vpop.f32.mrb[34].mxu1  ;;  %v16118_v8 = vpack.c.bf16 %v16015_v41, %v16015_v41 }
 0x664   : > { %9640 = vst [vmem:[#allocation4 + $0x4] sm:$0xff] %v13051_v57  ;;  %v9522_v36 = vadd.f32 %v15994_v55, %v9506_v33  ;;  %v9521_v47 = vadd.f32 %v15994_v55, %v9505_v17  ;;  %v9457_v10 = vpop.f32.mrb[35].mxu1  ;;  %v16106_v33 = vpack.c.bf16 %v16013_v12, %v16013_v12  ;;  %v16110_v17 = vpack.c.bf16 %v16009_v35, %v16009_v35 }
 0x665   : > { %9641 = vst [vmem:[#allocation4 + $0xc] sm:$0xff] %v13052_v60  ;;  %v9530_v48 = vmax.f32 %v9520_v58, 0.0  ;;  %v9523_v16 = vadd.f32 %v15994_v55, %v9507_v43  ;;  %v16122_v52 = vpack.c.bf16 %v16011_v44, %v16011_v44  ;;  %v16140_v44 = vld [vmem:[#allocation4 + $0x2c] ss:$0 sps:$4 sm:$0xff]  }
 0x666   : > { %v9532_v21 = vmax.f32 %v9522_v36, 0.0  ;;  %v9531_v29 = vmax.f32 %v9521_v47, 0.0 }
 0x667   : > { %v16033_v7 = vmul.f32 %v9559_v4, %v9530_v48  ;;  %v9533_v59 = vmax.f32 %v9523_v16, 0.0 }
 0x668   : > { %v16035_v27 = vmul.f32 %v9567_v34, %v9532_v21  ;;  %v16037_v51 = vmul.f32 %v9563_v25, %v9531_v29  ;;  %v9493_v46 = vpop.f32.mrb[8].mxu0  ;;  %v12908_v29 = vld [vmem:[%s16558_s7 + $0x4] sm:$0xf] }
 0x669   : > { %v16042_v9 = vmul.f32 %v9571_v61, %v9533_v59  ;;  %v9508_v14 = vadd.f32 %v9493_v46, %v15990_v53  ;;  %v9495_v30 = vpop.f32.mrb[9].mxu0  ;;  %v9579_v53 = vrot.slane %v9537_v62, %v14623_v39  ;;  %v16134_v12 = vpack.c.bf16 %v16033_v7, %v16033_v7 }
 0x66a   : > { %v13053_v54 = vpack.c.bf16 %v16037_v51, %v16033_v7  ;;  %v9509_v50 = vadd.f32 %v9495_v30, %v15992_v28  ;;  %v9497_v23 = vpop.f32.mrb[10].mxu0  ;;  %v16130_v35 = vpack.c.bf16 %v16037_v51, %v16037_v51  ;;  %v16152_v60 = vpack.c.bf16 %v16035_v27, %v16035_v27 }
 0x66b   : > { %v13054_v49 = vpack.c.bf16 %v16042_v9, %v16035_v27  ;;  %v9524_v38 = vadd.f32 %v15994_v55, %v9508_v14  ;;  %v9498_v15 = vpop.f32.mrb[11].mxu0  ;;  %v9645_v20 = vld [vmem:[#allocation4] sm:$0xff]  ;;  %v16148_v41 = vpack.c.bf16 %v16042_v9, %v16042_v9 }
 0x66c   : > { %9642 = vst [vmem:[#allocation4 + $0x14] sm:$0xff] %v13053_v54  ;;  %v9525_v3 = vadd.f32 %v15994_v55, %v9509_v50  ;;  %v12910_v37 = vcombine.high %v9645_v20, %v9645_v20  ;;  %v12909_v24 = vcombine.low %v9645_v20, %v9645_v20  ;;  %v9646_v31 = vld [vmem:[#allocation4 + $0x8] sm:$0xff] }
 0x66d   : > { %9643 = vst [vmem:[#allocation4 + $0x1c] sm:$0xff] %v13054_v49  ;;  %v9534_v0 = vmax.f32 %v9524_v38, 0.0  ;;  %v12912_v39 = vcombine.high %v9646_v31, %v9646_v31  ;;  %v12911_v55 = vcombine.low %v9646_v31, %v9646_v31 }
 0x66e   : > { %v9535_v28 = vmax.f32 %v9525_v3, 0.0  ;;  %9684 = vrot.lane.b32.xlu0 %v12910_v37, %s13416_s24  ;;  %9682 = vrot.lane.b32.xlu1 %v12909_v24, %s13416_s24 }
 0x66f   : > { %v16056_v1 = vmul.f32 %v9575_v56, %v9534_v0 }
 0x670   : > { %v16058_v13 = vmul.f32 %v9579_v53, %v9535_v28 }
 0x671   : > { %v16160_v58 = vpack.c.bf16 %v16056_v1, %v16056_v1 }
 0x672   : > { %v13055_v2 = vpack.c.bf16 %v16058_v13, %v16056_v1  ;;  %9952 = vrot.lane.b32.xlu0 %v12909_v24, %s13417_s28  ;;  %9954 = vrot.lane.b32.xlu1 %v12910_v37, %s13417_s28  ;;  %v16172_v22 = vpack.c.bf16 %v16058_v13, %v16058_v13 }
 0x673   : > { %v9647_v18 = vld [vmem:[#allocation4 + $0x10] sm:$0xff] }
 0x674   : > { %9644 = vst [vmem:[#allocation4 + $0x24] sm:$0xff] %v13055_v2  ;;  %v12914_v42 = vcombine.high %v9647_v18, %v9647_v18  ;;  %v12913_v5 = vcombine.low %v9647_v18, %v9647_v18  ;;  %v9648_v26 = vld [vmem:[#allocation4 + $0x18] sm:$0xff] }
 0x675   : > { %v12915_v40 = vcombine.low %v9648_v26, %v9648_v26  ;;  %v12916_v32 = vcombine.high %v9648_v26, %v9648_v26 }
 0x676   : > { %9688 = vrot.lane.b32.xlu0 %v12912_v39, %s13416_s24  ;;  %9686 = vrot.lane.b32.xlu1 %v12911_v55, %s13416_s24 }
 0x67a   : > { %9692 = vrot.lane.b32.xlu0 %v12914_v42, %s13416_s24  ;;  %9690 = vrot.lane.b32.xlu1 %v12913_v5, %s13416_s24 }
 0x67b   : > { %v9649_v11 = vld [vmem:[#allocation4 + $0x20] sm:$0xff]  ;;  %v13375_v57 = vld [vmem:[#allocation4 + $0x28] ss:$0 sps:$4 sm:$0xff]  }
 0x67c   : > { %v12917_v45 = vcombine.low %v9649_v11, %v9649_v11  ;;  %v12918_v63 = vcombine.high %v9649_v11, %v9649_v11 }
 0x67e   : > { %9956 = vrot.lane.b32.xlu0 %v12911_v55, %s13417_s28  ;;  %9694 = vrot.lane.b32.xlu1 %v12915_v40, %s13416_s24 }
 0x682   : > { %9696 = vrot.lane.b32.xlu0 %v12916_v32, %s13416_s24  ;;  %9698 = vrot.lane.b32.xlu1 %v12917_v45, %s13416_s24 }
 0x686   : > { %9700 = vrot.lane.b32.xlu0 %v12918_v63, %s13416_s24  ;;  %9702 = vrot.lane.b32.xlu1 %v13375_v57, %s13416_s24 }
 0x68a   : > { %9960 = vrot.lane.b32.xlu0 %v12913_v5, %s13417_s28  ;;  %9958 = vrot.lane.b32.xlu1 %v12912_v39, %s13417_s28 }
 0x68e   : > { %10226 = vrot.lane.b32.xlu0 %v12910_v37, %s13418_s29  ;;  %9962 = vrot.lane.b32.xlu1 %v12914_v42, %s13417_s28 }
 0x692   : > { %9964 = vrot.lane.b32.xlu0 %v12915_v40, %s13417_s28  ;;  %10224 = vrot.lane.b32.xlu1 %v12909_v24, %s13418_s29 }
 0x696   : > { %9968 = vrot.lane.b32.xlu0 %v12917_v45, %s13417_s28  ;;  %9966 = vrot.lane.b32.xlu1 %v12916_v32, %s13417_s28 }
 0x69a   : > { %10230 = vrot.lane.b32.xlu0 %v12912_v39, %s13418_s29  ;;  %10228 = vrot.lane.b32.xlu1 %v12911_v55, %s13418_s29 }
 0x69e   : > { %9972 = vrot.lane.b32.xlu0 %v13375_v57, %s13417_s28  ;;  %9970 = vrot.lane.b32.xlu1 %v12918_v63, %s13417_s28 }
 0x6a2   : > { %10234 = vrot.lane.b32.xlu0 %v12914_v42, %s13418_s29  ;;  %10232 = vrot.lane.b32.xlu1 %v12913_v5, %s13418_s29 }
 0x6a6   : > { %10506 = vrot.lane.b32.xlu0 %v12909_v24, %s13419_s30  ;;  %10236 = vrot.lane.b32.xlu1 %v12915_v40, %s13418_s29 }
 0x6aa   : > { %10238 = vrot.lane.b32.xlu0 %v12916_v32, %s13418_s29  ;;  %10240 = vrot.lane.b32.xlu1 %v12917_v45, %s13418_s29 }
 0x6ae   : > { %10242 = vrot.lane.b32.xlu0 %v12918_v63, %s13418_s29  ;;  %10244 = vrot.lane.b32.xlu1 %v13375_v57, %s13418_s29  ;;  %s13057_s29 = smul.u32 80, %s16563_s14 }
 0x6b2   : > { %10510 = vrot.lane.b32.xlu0 %v12911_v55, %s13419_s30  ;;  %10508 = vrot.lane.b32.xlu1 %v12910_v37, %s13419_s30 }
 0x6b6   : > { %10514 = vrot.lane.b32.xlu0 %v12913_v5, %s13419_s30  ;;  %10512 = vrot.lane.b32.xlu1 %v12912_v39, %s13419_s30  ;;  %v9651_v39 = vld [vmem:[%s16558_s7] sm:$0xf] }
 0x6ba   : > { %10518 = vrot.lane.b32.xlu0 %v12915_v40, %s13419_s30  ;;  %10516 = vrot.lane.b32.xlu1 %v12914_v42, %s13419_s30 }
 0x6be   : > { %10522 = vrot.lane.b32.xlu0 %v12917_v45, %s13419_s30  ;;  %10520 = vrot.lane.b32.xlu1 %v12916_v32, %s13419_s30 }
 0x6c2   : > { %10526 = vrot.lane.b32.xlu0 %v13375_v57, %s13419_s30  ;;  %10524 = vrot.lane.b32.xlu1 %v12918_v63, %s13419_s30 }
 0x6c6   : > { %11104 = vrot.lane.b32.xlu0 %v16106_v33, %s13420_s11  ;;  %11102 = vrot.lane.b32.xlu1 %v16110_v17, %s13420_s11 }
 0x6ca   : > { %11108 = vrot.lane.b32.xlu0 %v16118_v8, %s13420_s11  ;;  %11106 = vrot.lane.b32.xlu1 %v16122_v52, %s13420_s11 }
 0x6ce   : > { %11112 = vrot.lane.b32.xlu0 %v16130_v35, %s13420_s11  ;;  %11110 = vrot.lane.b32.xlu1 %v16134_v12, %s13420_s11 }
 0x6d2   : > { %11384 = vrot.lane.b32.xlu0 %v16110_v17, %s13421_s12  ;;  %11122 = vrot.lane.b32.xlu1 %v16140_v44, %s13420_s11 }
 0x6d6   : > { %11116 = vrot.lane.b32.xlu0 %v16148_v41, %s13420_s11  ;;  %11114 = vrot.lane.b32.xlu1 %v16152_v60, %s13420_s11 }
 0x6da   : > { %11388 = vrot.lane.b32.xlu0 %v16122_v52, %s13421_s12  ;;  %11118 = vrot.lane.b32.xlu1 %v16160_v58, %s13420_s11 }
 0x6de   : > { %11392 = vrot.lane.b32.xlu0 %v16134_v12, %s13421_s12  ;;  %11386 = vrot.lane.b32.xlu1 %v16106_v33, %s13421_s12 }
 0x6e0   : > { %v9685_v4 = vpop.permute.xlu0 %9684  ;;  %v9683_v43 = vpop.permute.xlu1 %9682 }
 0x6e1   : > { %v9704_v34 = vsel %vm1664_vm0, %v9683_v43, %v9685_v4 }
 0x6e2   : > { %11120 = vrot.lane.b32.xlu0 %v16172_v22, %s13420_s11  ;;  %11390 = vrot.lane.b32.xlu1 %v16118_v8, %s13421_s12  ;;  %v9718_v48 = vsel %vm1679_vm1, %v9704_v34, 0 }
 0x6e4   : > { %v9953_v6 = vpop.permute.xlu0 %9952  ;;  %v9955_v36 = vpop.permute.xlu1 %9954 }
 0x6e5   : > { %v9974_v49 = vsel %vm1937_vm3, %v9953_v6, %v9955_v36 }
 0x6e6   : > { %11404 = vrot.lane.b32.xlu0 %v16140_v44, %s13421_s12  ;;  %11394 = vrot.lane.b32.xlu1 %v16130_v35, %s13421_s12  ;;  %v9988_v37 = vsel %vm1679_vm1, %v9974_v49, 0 }
 0x6e8   : > { %v9689_v47 = vpop.permute.xlu0 %9688  ;;  %v9687_v25 = vpop.permute.xlu1 %9686 }
 0x6e9   : > { %v9705_v10 = vsel %vm1664_vm0, %v9685_v4, %v9687_v25  ;;  %v9706_v16 = vsel %vm1664_vm0, %v9687_v25, %v9689_v47 }
 0x6ea   : > { %11396 = vrot.lane.b32.xlu0 %v16152_v60, %s13421_s12  ;;  %11666 = vrot.lane.b32.xlu1 %v16110_v17, %s13422_s16  ;;  %v9724_v59 = vsel %vm1679_vm1, %v9706_v16, 0 }
 0x6eb   : > { %12920 = vmatprep.subr.msk.bf16.mxu1 %vm1679_vm1, %v9705_v10 }
 0x6ec   : > { %9748 = vmatpush1.bf16.msra.mxu1 %v9718_v48  ;;  %v9693_v61 = vpop.permute.xlu0 %9692  ;;  %v9691_v21 = vpop.permute.xlu1 %9690 }
 0x6ed   : > { %v9707_v7 = vsel %vm1664_vm0, %v9689_v47, %v9691_v21  ;;  %v9708_v27 = vsel %vm1664_vm0, %v9691_v21, %v9693_v61  ;;  %v12940_v21 = vld [vmem:[%s16558_s7 + $0x8] sm:$0xf] }
 0x6ee   : > { %11668 = vrot.lane.b32.xlu0 %v16106_v33, %s13422_s16  ;;  %11398 = vrot.lane.b32.xlu1 %v16148_v41, %s13421_s12  ;;  %v9730_v9 = vsel %vm1679_vm1, %v9708_v27, 0 }
 0x6ef   : > { %12921 = vmatmul.mubr.msk.bf16.vlgmr.msra.gmra.mrb[36].mxu1 %vm1675_vm2, %v12908_v29  ;;  %12922 = vmatprep.subr.msk.bf16.mxu0 %vm1679_vm1, %v9707_v7 }
 0x6f0   : > { %9789 = vmatpush1.bf16.msra.mxu0 %v9724_v59  ;;  %v9957_v51 = vpop.permute.xlu0 %9956  ;;  %v9695_v46 = vpop.permute.xlu1 %9694  ;;  %9861 = vmatprep.mubr.bf16.mxu1 %v13415_v19 }
 0x6f1   : > { %v9709_v62 = vsel %vm1664_vm0, %v9693_v61, %v9695_v46  ;;  %v9975_v38 = vsel %vm1937_vm3, %v9955_v36, %v9957_v51 }
 0x6f2   : > { %11400 = vrot.lane.b32.xlu0 %v16160_v58, %s13421_s12  ;;  %11402 = vrot.lane.b32.xlu1 %v16172_v22, %s13421_s12  ;;  %s16536_s12 = scalar_lea.vmem %s16561_s10, %s13057_s29 }
 0x6f3   : > { %12923 = vmatmul.mubr.msk.bf16.vlgmr.msra.gmra.mrb[12].mxu0 %vm1675_vm2, %v12908_v29  ;;  %12924 = vmatprep.subr.msk.bf16.mxu1 %vm1679_vm1, %v9709_v62 }
 0x6f4   : > { %9830 = vmatpush1.bf16.msra.mxu1 %v9730_v9  ;;  %v9697_v14 = vpop.permute.xlu0 %9696  ;;  %v9699_v30 = vpop.permute.xlu1 %9698  ;;  %9902 = vmatprep.mubr.bf16.mxu0 %v13415_v19 }
 0x6f5   : > { %v9710_v54 = vsel %vm1664_vm0, %v9695_v46, %v9697_v14  ;;  %v9711_v50 = vsel %vm1664_vm0, %v9697_v14, %v9699_v30 }
 0x6f6   : > { %v9736_v23 = vsel %vm1679_vm1, %v9710_v54, 0  ;;  %11672 = vrot.lane.b32.xlu0 %v16118_v8, %s13422_s16  ;;  %11670 = vrot.lane.b32.xlu1 %v16122_v52, %s13422_s16 }
 0x6f7   : > { %12925 = vmatmul.mubr.msk.bf16.vlgmr.msra.gmra.mrb[40].mxu1 %vm1675_vm2, %v12908_v29  ;;  %12926 = vmatprep.subr.msk.bf16.mxu0 %vm1679_vm1, %v9711_v50 }
 0x6f8   : > { %9871 = vmatpush1.bf16.msra.mxu0 %v9736_v23  ;;  %v9701_v56 = vpop.permute.xlu0 %9700  ;;  %v9703_v15 = vpop.permute.xlu1 %9702  ;;  %9943 = vmatprep.mubr.bf16.mxu1 %v13415_v19 }
 0x6f9   : > { %v9712_v20 = vsel %vm1664_vm0, %v9699_v30, %v9701_v56  ;;  %12930 = vmatprep.subr.msk.bf16.mxu0 %vm1679_vm1, %v9975_v38  ;;  %v9713_v3 = vsel %vm1664_vm0, %v9701_v56, %v9703_v15 }
 0x6fa   : > { %v9742_v53 = vsel %vm1679_vm1, %v9712_v20, 0  ;;  %11676 = vrot.lane.b32.xlu0 %v16130_v35, %s13422_s16  ;;  %11674 = vrot.lane.b32.xlu1 %v16134_v12, %s13422_s16 }
 0x6fb   : > { %12927 = vmatmul.mubr.msk.bf16.vlgmr.msra.gmra.mrb[16].mxu0 %vm1675_vm2, %v12908_v29  ;;  %12928 = vmatprep.subr.msk.bf16.mxu1 %vm1679_vm1, %v9713_v3 }
 0x6fc   : > { %9912 = vmatpush1.bf16.msra.mxu1 %v9742_v53  ;;  %10018 = vmatpush1.bf16.msra.mxu0 %v9988_v37  ;;  %v9961_v24 = vpop.permute.xlu0 %9960  ;;  %v9959_v0 = vpop.permute.xlu1 %9958 }
 0x6fd   : > { %v9976_v28 = vsel %vm1937_vm3, %v9957_v51, %v9959_v0  ;;  %v9977_v1 = vsel %vm1937_vm3, %v9959_v0, %v9961_v24  ;;  %10049 = vmatprep.mubr.bf16.mxu0 %v13415_v19 }
 0x6fe   : > { %v9994_v13 = vsel %vm1679_vm1, %v9976_v28, 0  ;;  %11680 = vrot.lane.b32.xlu0 %v16148_v41, %s13422_s16  ;;  %11678 = vrot.lane.b32.xlu1 %v16152_v60, %s13422_s16 }
 0x6ff   : > { %12929 = vmatmul.mubr.msk.bf16.vlgmr.msra.gmra.mrb[44].mxu1 %vm1675_vm2, %v12908_v29  ;;  %12932 = vmatprep.subr.msk.bf16.mxu1 %vm1679_vm1, %v9977_v1 }
 0x700   : > { %10059 = vmatpush1.bf16.msra.mxu1 %v9994_v13  ;;  %v10227_v31 = vpop.permute.xlu0 %10226  ;;  %v9963_v2 = vpop.permute.xlu1 %9962  ;;  %10090 = vmatprep.mubr.bf16.mxu1 %v13415_v19 }
 0x701   : > { %v9978_v55 = vsel %vm1937_vm3, %v9961_v24, %v9963_v2 }
 0x702   : > { %11948 = vrot.lane.b32.xlu0 %v16110_v17, %s13423_s17  ;;  %11682 = vrot.lane.b32.xlu1 %v16160_v58, %s13422_s16  ;;  %v10000_v26 = vsel %vm1679_vm1, %v9978_v55, 0  ;;  %v12951_v55 = vld [vmem:[%s16558_s7 + $0xc] sm:$0xf] }
 0x703   : > { %12931 = vmatmul.mubr.msk.bf16.vlgmr.msra.gmra.mrb[20].mxu0 %vm1675_vm2, %v9651_v39 }
 0x704   : > { %v9965_v18 = vpop.permute.xlu0 %9964  ;;  %v10225_v42 = vpop.permute.xlu1 %10224  ;;  %10131 = vmatprep.mubr.bf16.mxu0 %v13415_v19 }
 0x705   : > { %v9979_v5 = vsel %vm1937_vm3, %v9963_v2, %v9965_v18  ;;  %v10246_v57 = vsel %vm2210_vm4, %v10225_v42, %v10227_v31 }
 0x706   : > { %11952 = vrot.lane.b32.xlu0 %v16122_v52, %s13423_s17  ;;  %11686 = vrot.lane.b32.xlu1 %v16140_v44, %s13422_s16  ;;  %v10260_v36 = vsel %vm1679_vm1, %v10246_v57, 0 }
 0x707   : > { %12933 = vmatmul.mubr.msk.bf16.vlgmr.msra.gmra.mrb[48].mxu1 %vm1675_vm2, %v9651_v39  ;;  %12934 = vmatprep.subr.msk.bf16.mxu0 %vm1679_vm1, %v9979_v5 }
 0x708   : > { %10100 = vmatpush1.bf16.msra.mxu0 %v10000_v26  ;;  %v9969_v40 = vpop.permute.xlu0 %9968  ;;  %v9967_v11 = vpop.permute.xlu1 %9966  ;;  %10172 = vmatprep.mubr.bf16.mxu1 %v13415_v19 }
 0x709   : > { %v9980_v32 = vsel %vm1937_vm3, %v9965_v18, %v9967_v11  ;;  %v9981_v45 = vsel %vm1937_vm3, %v9967_v11, %v9969_v40 }
 0x70a   : > { %v10006_v63 = vsel %vm1679_vm1, %v9980_v32, 0  ;;  %11684 = vrot.lane.b32.xlu0 %v16172_v22, %s13422_s16  ;;  %11950 = vrot.lane.b32.xlu1 %v16106_v33, %s13423_s17 }
 0x70b   : > { %12935 = vmatmul.mubr.msk.bf16.vlgmr.msra.gmra.mrb[24].mxu0 %vm1675_vm2, %v9651_v39  ;;  %12936 = vmatprep.subr.msk.bf16.mxu1 %vm1679_vm1, %v9981_v45 }
 0x70c   : > { %10141 = vmatpush1.bf16.msra.mxu1 %v10006_v63  ;;  %v10231_v4 = vpop.permute.xlu0 %10230  ;;  %v10229_v43 = vpop.permute.xlu1 %10228  ;;  %10213 = vmatprep.mubr.bf16.mxu0 %v13415_v19 }
 0x70d   : > { %v10247_v6 = vsel %vm2210_vm4, %v10227_v31, %v10229_v43  ;;  %v10248_v29 = vsel %vm2210_vm4, %v10229_v43, %v10231_v4 }
 0x70e   : > { %11956 = vrot.lane.b32.xlu0 %v16134_v12, %s13423_s17  ;;  %11954 = vrot.lane.b32.xlu1 %v16118_v8, %s13423_s17  ;;  %v10266_v59 = vsel %vm1679_vm1, %v10248_v29, 0 }
 0x70f   : > { %12937 = vmatmul.mubr.msk.bf16.vlgmr.msra.gmra.mrb[52].mxu1 %vm1675_vm2, %v9651_v39  ;;  %12941 = vmatprep.subr.msk.bf16.mxu1 %vm1679_vm1, %v10247_v6 }
 0x710   : > { %10290 = vmatpush1.bf16.msra.mxu1 %v10260_v36  ;;  %v9973_v34 = vpop.permute.xlu0 %9972  ;;  %v9971_v47 = vpop.permute.xlu1 %9970  ;;  %10321 = vmatprep.mubr.bf16.mxu1 %v13415_v19  ;;  %v10822_v36 = vsel %vm1679_vm1, %v16110_v17, 0  ;;  %v12962_v17 = vld [vmem:[%s16558_s7 + $0x10] sm:$0xf] }
 0x711   : > { %v9982_v25 = vsel %vm1937_vm3, %v9969_v40, %v9971_v47  ;;  %v9983_v10 = vsel %vm1937_vm3, %v9971_v47, %v9973_v34 }
 0x712   : > { %v10012_v48 = vsel %vm1679_vm1, %v9982_v25, 0  ;;  %11960 = vrot.lane.b32.xlu0 %v16152_v60, %s13423_s17  ;;  %11958 = vrot.lane.b32.xlu1 %v16130_v35, %s13423_s17 }
 0x713   : > { %12938 = vmatprep.subr.msk.bf16.mxu0 %vm1679_vm1, %v9983_v10 }
 0x714   : > { %10182 = vmatpush1.bf16.msra.mxu0 %v10012_v48  ;;  %v10235_v16 = vpop.permute.xlu0 %10234  ;;  %v10233_v61 = vpop.permute.xlu1 %10232 }
 0x715   : > { %v10249_v7 = vsel %vm2210_vm4, %v10231_v4, %v10233_v61  ;;  %v10250_v27 = vsel %vm2210_vm4, %v10233_v61, %v10235_v16 }
 0x716   : > { %11964 = vrot.lane.b32.xlu0 %v16160_v58, %s13423_s17  ;;  %11962 = vrot.lane.b32.xlu1 %v16148_v41, %s13423_s17  ;;  %v10272_v9 = vsel %vm1679_vm1, %v10250_v27, 0 }
 0x717   : > { %12939 = vmatmul.mubr.msk.bf16.vlgmr.msra.gmra.mrb[28].mxu0 %vm1675_vm2, %v9651_v39  ;;  %12942 = vmatmul.mubr.msk.bf16.vlgmr.msra.gmra.mrb[56].mxu1 %vm1675_vm2, %v12940_v21 }
 0x718   : > { %12943 = vmatprep.subr.msk.bf16.mxu0 %vm1679_vm1, %v10249_v7  ;;  %v10507_v51 = vpop.permute.xlu0 %10506  ;;  %v10237_v46 = vpop.permute.xlu1 %10236  ;;  %10362 = vmatprep.mubr.bf16.mxu0 %v13415_v19 }
 0x719   : > { %10331 = vmatpush1.bf16.msra.mxu0 %v10266_v59  ;;  %v10251_v62 = vsel %vm2210_vm4, %v10235_v16, %v10237_v46  ;;  %10403 = vmatprep.mubr.bf16.mxu1 %v13415_v19 }
 0x71a   : > { %11968 = vrot.lane.b32.xlu0 %v16140_v44, %s13423_s17  ;;  %11966 = vrot.lane.b32.xlu1 %v16172_v22, %s13423_s17 }
 0x71b   : > { %12945 = vmatprep.subr.msk.bf16.mxu1 %vm1679_vm1, %v10251_v62 }
 0x71c   : > { %10372 = vmatpush1.bf16.msra.mxu1 %v10272_v9  ;;  %v10239_v14 = vpop.permute.xlu0 %10238  ;;  %v10241_v30 = vpop.permute.xlu1 %10240 }
 0x71d   : > { %v10252_v54 = vsel %vm2210_vm4, %v10237_v46, %v10239_v14  ;;  %v10253_v50 = vsel %vm2210_vm4, %v10239_v14, %v10241_v30 }
 0x71e   : > { %v10278_v23 = vsel %vm1679_vm1, %v10252_v54, 0  ;;  %12947 = vmatprep.subr.msk.bf16.mxu0 %vm1679_vm1, %v10253_v50 }
 0x71f   : > { %12944 = vmatmul.mubr.msk.bf16.vlgmr.msra.gmra.mrb[32].mxu0 %vm1675_vm2, %v12940_v21  ;;  %12946 = vmatmul.mubr.msk.bf16.vlgmr.msra.gmra.mrb[60].mxu1 %vm1675_vm2, %v12940_v21 }
 0x720   : > { %10413 = vmatpush1.bf16.msra.mxu0 %v10278_v23  ;;  %v10243_v44 = vpop.permute.xlu0 %10242  ;;  %v10245_v49 = vpop.permute.xlu1 %10244  ;;  %10444 = vmatprep.mubr.bf16.mxu0 %v13415_v19 }
 0x721   : > { %v10254_v38 = vsel %vm2210_vm4, %v10241_v30, %v10243_v44  ;;  %v10255_v56 = vsel %vm2210_vm4, %v10243_v44, %v10245_v49  ;;  %10485 = vmatprep.mubr.bf16.mxu1 %v13415_v19  ;;  %v12983_v44 = vld [vmem:[%s16558_s7 + $0x14] sm:$0xf] }
 0x722   : > { %v10284_v15 = vsel %vm1679_vm1, %v10254_v38, 0  ;;  %12949 = vmatprep.subr.msk.bf16.mxu1 %vm1679_vm1, %v10255_v56 }
 0x723   : > { %10454 = vmatpush1.bf16.msra.mxu1 %v10284_v15 }
 0x724   : > { %v10511_v20 = vpop.permute.xlu0 %10510  ;;  %v10509_v3 = vpop.permute.xlu1 %10508 }
 0x725   : > { %v10528_v53 = vsel %vm2493_vm5, %v10507_v51, %v10509_v3  ;;  %v10529_v37 = vsel %vm2493_vm5, %v10509_v3, %v10511_v20 }
 0x726   : > { %v10542_v24 = vsel %vm1679_vm1, %v10528_v53, 0  ;;  %12952 = vmatprep.subr.msk.bf16.mxu0 %vm1679_vm1, %v10529_v37 }
 0x727   : > { %12948 = vmatmul.mubr.msk.bf16.vlgmr.msra.gmra.mrb[36].mxu0 %vm1675_vm2, %v12940_v21  ;;  %12950 = vmatmul.mubr.msk.bf16.vlgmr.msra.gmra.mrb[64].mxu1 %vm1675_vm2, %v12940_v21 }
 0x728   : > { %10572 = vmatpush1.bf16.msra.mxu0 %v10542_v24  ;;  %v10515_v0 = vpop.permute.xlu0 %10514  ;;  %v10513_v28 = vpop.permute.xlu1 %10512  ;;  %10603 = vmatprep.mubr.bf16.mxu0 %v13415_v19 }
 0x729   : > { %v10530_v1 = vsel %vm2493_vm5, %v10511_v20, %v10513_v28  ;;  %v10531_v13 = vsel %vm2493_vm5, %v10513_v28, %v10515_v0  ;;  %10644 = vmatprep.mubr.bf16.mxu1 %v13415_v19 }
 0x72a   : > { %v10548_v31 = vsel %vm1679_vm1, %v10530_v1, 0  ;;  %12954 = vmatprep.subr.msk.bf16.mxu1 %vm1679_vm1, %v10531_v13 }
 0x72b   : > { %10613 = vmatpush1.bf16.msra.mxu1 %v10548_v31 }
 0x72c   : > { %v10519_v2 = vpop.permute.xlu0 %10518  ;;  %v10517_v39 = vpop.permute.xlu1 %10516 }
 0x72d   : > { %v10532_v18 = vsel %vm2493_vm5, %v10515_v0, %v10517_v39  ;;  %v10533_v42 = vsel %vm2493_vm5, %v10517_v39, %v10519_v2 }
 0x72e   : > { %v10554_v5 = vsel %vm1679_vm1, %v10532_v18, 0  ;;  %12956 = vmatprep.subr.msk.bf16.mxu0 %vm1679_vm1, %v10533_v42 }
 0x72f   : > { %12953 = vmatmul.mubr.msk.bf16.vlgmr.msra.gmra.mrb[40].mxu0 %vm1675_vm2, %v12951_v55  ;;  %12955 = vmatmul.mubr.msk.bf16.vlgmr.msra.gmra.mrb[68].mxu1 %vm1675_vm2, %v12951_v55 }
 0x730   : > { %10654 = vmatpush1.bf16.msra.mxu0 %v10554_v5  ;;  %v10523_v26 = vpop.permute.xlu0 %10522  ;;  %v10521_v40 = vpop.permute.xlu1 %10520  ;;  %10685 = vmatprep.mubr.bf16.mxu0 %v13415_v19 }
 0x731   : > { %v10534_v11 = vsel %vm2493_vm5, %v10519_v2, %v10521_v40  ;;  %v10535_v32 = vsel %vm2493_vm5, %v10521_v40, %v10523_v26  ;;  %10726 = vmatprep.mubr.bf16.mxu1 %v13415_v19  ;;  %v12228_v40 = vld [vmem:[%s16559_s8] sm:$0xff] }
 0x732   : > { %v10560_v45 = vsel %vm1679_vm1, %v10534_v11, 0  ;;  %12958 = vmatprep.subr.msk.bf16.mxu1 %vm1679_vm1, %v10535_v32  ;;  %12231 = vperm.xlu1 %13076, %v12228_v40  }
 0x733   : > { %10695 = vmatpush1.bf16.msra.mxu1 %v10560_v45 }
 0x734   : > { %v10527_v63 = vpop.permute.xlu0 %10526  ;;  %12973 = vmatprep.subr.msk.bf16.mxu1 %vm1679_vm1, %v16106_v33  ;;  %v10525_v57 = vpop.permute.xlu1 %10524 }
 0x735   : > { %v10536_v4 = vsel %vm2493_vm5, %v10523_v26, %v10525_v57  ;;  %v10537_v43 = vsel %vm2493_vm5, %v10525_v57, %v10527_v63  ;;  %v13005_v26 = vld [vmem:[%s16558_s7 + $0x18] sm:$0xf] }
 0x736   : > { %v10566_v6 = vsel %vm1679_vm1, %v10536_v4, 0  ;;  %12960 = vmatprep.subr.msk.bf16.mxu0 %vm1679_vm1, %v10537_v43 }
 0x737   : > { %12957 = vmatmul.mubr.msk.bf16.vlgmr.msra.gmra.mrb[44].mxu0 %vm1675_vm2, %v12951_v55  ;;  %12959 = vmatmul.mubr.msk.bf16.vlgmr.msra.gmra.mrb[72].mxu1 %vm1675_vm2, %v12951_v55 }
 0x738   : > { %10736 = vmatpush1.bf16.msra.mxu0 %v10566_v6  ;;  %10852 = vmatpush1.bf16.msra.mxu1 %v10822_v36  ;;  %v11105_v34 = vpop.permute.xlu0 %11104  ;;  %v11103_v33 = vpop.permute.xlu1 %11102 }
 0x739   : > { %12975 = vmatprep.subr.msk.bf16.mxu0 %vm1679_vm1, %v16118_v8  ;;  %12977 = vmatprep.subr.msk.bf16.mxu1 %vm1679_vm1, %v16130_v35  ;;  %v10828_v8 = vsel %vm1679_vm1, %v16122_v52, 0  ;;  %v10834_v35 = vsel %vm1679_vm1, %v16134_v12, 0  ;;  %v10840_v52 = vsel %vm1679_vm1, %v16152_v60, 0  ;;  %v10846_v12 = vsel %vm1679_vm1, %v16160_v58, 0 }
 0x73a   : > { %10767 = vmatprep.mubr.bf16.mxu0 %v13415_v19  ;;  %10883 = vmatprep.mubr.bf16.mxu1 %v13415_v19  ;;  %v11124_v60 = vsel %vm3090_vm6, %v11103_v33, %v11105_v34 }
 0x73b   : > { %v11138_v51 = vsel %vm1679_vm1, %v11124_v60, 0 }
 0x73c   : > { %v11109_v47 = vpop.permute.xlu0 %11108  ;;  %v11107_v25 = vpop.permute.xlu1 %11106 }
 0x73d   : > { %v11126_v58 = vsel %vm3090_vm6, %v11107_v25, %v11109_v47 }
 0x73e   : > { %v11144_v46 = vsel %vm1679_vm1, %v11126_v58, 0 }
 0x73f   : > { %12961 = vmatmul.mubr.msk.bf16.vlgmr.msra.gmra.mrb[48].mxu0 %vm1675_vm2, %v12951_v55  ;;  %12974 = vmatmul.mubr.msk.bf16.vlgmr.msra.gmra.mrb[76].mxu1 %vm1675_vm2, %v12962_v17 }
 0x740   : > { %10893 = vmatpush1.bf16.msra.mxu0 %v10828_v8  ;;  %10934 = vmatpush1.bf16.msra.mxu1 %v10834_v35  ;;  %v11113_v10 = vpop.permute.xlu0 %11112  ;;  %v11111_v48 = vpop.permute.xlu1 %11110 }
 0x741   : > { %12979 = vmatprep.subr.msk.bf16.mxu0 %vm1679_vm1, %v16148_v41  ;;  %12981 = vmatprep.subr.msk.bf16.mxu1 %vm1679_vm1, %v16172_v22  ;;  %v11125_v41 = vsel %vm3090_vm6, %v11105_v34, %v11107_v25  ;;  %v11127_v22 = vsel %vm3090_vm6, %v11109_v47, %v11111_v48  ;;  %v11128_v30 = vsel %vm3090_vm6, %v11111_v48, %v11113_v10 }
 0x742   : > { %10924 = vmatprep.mubr.bf16.mxu0 %v13415_v19  ;;  %10965 = vmatprep.mubr.bf16.mxu1 %v13415_v19  ;;  %v11150_v38 = vsel %vm1679_vm1, %v11128_v30, 0 }
 0x744   : > { %v11385_v16 = vpop.permute.xlu0 %11384  ;;  %v11123_v61 = vpop.permute.xlu1 %11122 }
 0x747   : > { %12976 = vmatmul.mubr.msk.bf16.vlgmr.msra.gmra.mrb[52].mxu0 %vm1675_vm2, %v12962_v17  ;;  %12978 = vmatmul.mubr.msk.bf16.vlgmr.msra.gmra.mrb[80].mxu1 %vm1675_vm2, %v12962_v17 }
 0x748   : > { %10975 = vmatpush1.bf16.msra.mxu0 %v10840_v52  ;;  %11016 = vmatpush1.bf16.msra.mxu1 %v10846_v12  ;;  %v11117_v21 = vpop.permute.xlu0 %11116  ;;  %v11115_v29 = vpop.permute.xlu1 %11114 }
 0x749   : > { %12995 = vmatprep.subr.msk.bf16.mxu0 %vm1679_vm1, %v11125_v41  ;;  %12997 = vmatprep.subr.msk.bf16.mxu1 %vm1679_vm1, %v11127_v22  ;;  %v11129_v62 = vsel %vm3090_vm6, %v11113_v10, %v11115_v29  ;;  %v11130_v54 = vsel %vm3090_vm6, %v11115_v29, %v11117_v21 }
 0x74a   : > { %11006 = vmatprep.mubr.bf16.mxu0 %v13415_v19  ;;  %11047 = vmatprep.mubr.bf16.mxu1 %v13415_v19  ;;  %v11156_v56 = vsel %vm1679_vm1, %v11130_v54, 0 }
 0x74c   : > { %v11389_v7 = vpop.permute.xlu0 %11388  ;;  %v11119_v59 = vpop.permute.xlu1 %11118 }
 0x74d   : > { %v11131_v27 = vsel %vm3090_vm6, %v11117_v21, %v11119_v59 }
 0x74f   : > { %12980 = vmatmul.mubr.msk.bf16.vlgmr.msra.gmra.mrb[56].mxu0 %vm1675_vm2, %v12962_v17  ;;  %12982 = vmatmul.mubr.msk.bf16.vlgmr.msra.gmra.mrb[84].mxu1 %vm1675_vm2, %v12962_v17 }
 0x750   : > { %11168 = vmatpush1.bf16.msra.mxu0 %v11138_v51  ;;  %11209 = vmatpush1.bf16.msra.mxu1 %v11144_v46  ;;  %v11393_v9 = vpop.permute.xlu0 %11392  ;;  %v11387_v14 = vpop.permute.xlu1 %11386 }
 0x751   : > { %12999 = vmatprep.subr.msk.bf16.mxu0 %vm1679_vm1, %v11129_v62  ;;  %13001 = vmatprep.subr.msk.bf16.mxu1 %vm1679_vm1, %v11131_v27  ;;  %v11407_v15 = vsel %vm3373_vm7, %v11387_v14, %v11389_v7  ;;  %v11406_v53 = vsel %vm3373_vm7, %v11385_v16, %v11387_v14  ;;  %v13016_v27 = vld [vmem:[%s16558_s7 + $0x1c] sm:$0xf] }
 0x752   : > { %11199 = vmatprep.mubr.bf16.mxu0 %v13415_v19  ;;  %11240 = vmatprep.mubr.bf16.mxu1 %v13415_v19  ;;  %v11420_v1 = vsel %vm1679_vm1, %v11406_v53, 0 }
 0x754   : > { %v11121_v50 = vpop.permute.xlu0 %11120  ;;  %v11391_v23 = vpop.permute.xlu1 %11390 }
 0x755   : > { %v11133_v49 = vsel %vm3090_vm6, %v11121_v50, %v11123_v61  ;;  %v11132_v37 = vsel %vm3090_vm6, %v11119_v59, %v11121_v50  ;;  %v11409_v31 = vsel %vm3373_vm7, %v11391_v23, %v11393_v9  ;;  %v11408_v55 = vsel %vm3373_vm7, %v11389_v7, %v11391_v23 }
 0x756   : > { %v11162_v13 = vsel %vm1679_vm1, %v11132_v37, 0  ;;  %v11426_v45 = vsel %vm1679_vm1, %v11408_v55, 0 }
 0x757   : > { %12996 = vmatmul.mubr.msk.bf16.vlgmr.msra.gmra.mrb[60].mxu0 %vm1675_vm2, %v12983_v44  ;;  %12998 = vmatmul.mubr.msk.bf16.vlgmr.msra.gmra.mrb[88].mxu1 %vm1675_vm2, %v12983_v44 }
 0x758   : > { %11250 = vmatpush1.bf16.msra.mxu0 %v11150_v38  ;;  %11291 = vmatpush1.bf16.msra.mxu1 %v11156_v56  ;;  %v11405_v20 = vpop.permute.xlu0 %11404  ;;  %v11395_v3 = vpop.permute.xlu1 %11394 }
 0x759   : > { %13003 = vmatprep.subr.msk.bf16.mxu0 %vm1679_vm1, %v11133_v49  ;;  %13006 = vmatprep.subr.msk.bf16.mxu1 %vm1679_vm1, %v11407_v15  ;;  %v11410_v18 = vsel %vm3373_vm7, %v11393_v9, %v11395_v3 }
 0x75a   : > { %11281 = vmatprep.mubr.bf16.mxu0 %v13415_v19  ;;  %11322 = vmatprep.mubr.bf16.mxu1 %v13415_v19  ;;  %v11432_v63 = vsel %vm1679_vm1, %v11410_v18, 0 }
 0x75c   : > { %v11397_v24 = vpop.permute.xlu0 %11396  ;;  %v11667_v0 = vpop.permute.xlu1 %11666 }
 0x75d   : > { %v11411_v28 = vsel %vm3373_vm7, %v11395_v3, %v11397_v24 }
 0x75f   : > { %13000 = vmatmul.mubr.msk.bf16.vlgmr.msra.gmra.mrb[64].mxu0 %vm1675_vm2, %v12983_v44  ;;  %13002 = vmatmul.mubr.msk.bf16.vlgmr.msra.gmra.mrb[92].mxu1 %vm1675_vm2, %v12983_v44 }
 0x760   : > { %11332 = vmatpush1.bf16.msra.mxu0 %v11162_v13  ;;  %11450 = vmatpush1.bf16.msra.mxu1 %v11420_v1  ;;  %v11669_v2 = vpop.permute.xlu0 %11668  ;;  %v11399_v39 = vpop.permute.xlu1 %11398 }
 0x761   : > { %13008 = vmatprep.subr.msk.bf16.mxu0 %vm1679_vm1, %v11409_v31  ;;  %13010 = vmatprep.subr.msk.bf16.mxu1 %vm1679_vm1, %v11411_v28  ;;  %v11412_v43 = vsel %vm3373_vm7, %v11397_v24, %v11399_v39  ;;  %v11688_v10 = vsel %vm3656_vm8, %v11667_v0, %v11669_v2  ;;  %v13027_v28 = vld [vmem:[%s16558_s7 + $0x20] sm:$0xf] }
 0x762   : > { %11363 = vmatprep.mubr.bf16.mxu0 %v13415_v19  ;;  %11481 = vmatprep.mubr.bf16.mxu1 %v13415_v19  ;;  %v11438_v47 = vsel %vm1679_vm1, %v11412_v43, 0  ;;  %v11702_v12 = vsel %vm1679_vm1, %v11688_v10, 0 }
 0x764   : > { %v11401_v42 = vpop.permute.xlu0 %11400  ;;  %v11403_v5 = vpop.permute.xlu1 %11402 }
 0x765   : > { %v11413_v11 = vsel %vm3373_vm7, %v11399_v39, %v11401_v42  ;;  %v11415_v32 = vsel %vm3373_vm7, %v11403_v5, %v11405_v20  ;;  %v11414_v6 = vsel %vm3373_vm7, %v11401_v42, %v11403_v5 }
 0x766   : > { %v11444_v25 = vsel %vm1679_vm1, %v11414_v6, 0 }
 0x767   : > { %13004 = vmatmul.mubr.msk.bf16.vlgmr.msra.gmra.mrb[68].mxu0 %vm1675_vm2, %v12983_v44  ;;  %13007 = vmatmul.mubr.msk.bf16.vlgmr.msra.gmra.mrb[96].mxu1 %vm1675_vm2, %v13005_v26 }
 0x768   : > { %11491 = vmatpush1.bf16.msra.mxu0 %v11426_v45  ;;  %11532 = vmatpush1.bf16.msra.mxu1 %v11432_v63  ;;  %v11673_v57 = vpop.permute.xlu0 %11672  ;;  %v11671_v4 = vpop.permute.xlu1 %11670 }
 0x769   : > { %13012 = vmatprep.subr.msk.bf16.mxu0 %vm1679_vm1, %v11413_v11  ;;  %13014 = vmatprep.subr.msk.bf16.mxu1 %vm1679_vm1, %v11415_v32  ;;  %v11689_v17 = vsel %vm3656_vm8, %v11669_v2, %v11671_v4  ;;  %v11690_v48 = vsel %vm3656_vm8, %v11671_v4, %v11673_v57 }
 0x76a   : > { %11522 = vmatprep.mubr.bf16.mxu0 %v13415_v19  ;;  %11563 = vmatprep.mubr.bf16.mxu1 %v13415_v19  ;;  %v11708_v41 = vsel %vm1679_vm1, %v11690_v48, 0 }
 0x76c   : > { %v11677_v36 = vpop.permute.xlu0 %11676  ;;  %v11675_v34 = vpop.permute.xlu1 %11674 }
 0x76d   : > { %v11691_v33 = vsel %vm3656_vm8, %v11673_v57, %v11675_v34  ;;  %v11692_v60 = vsel %vm3656_vm8, %v11675_v34, %v11677_v36 }
 0x76e   : > { %v11714_v62 = vsel %vm1679_vm1, %v11692_v60, 0 }
 0x76f   : > { %13009 = vmatmul.mubr.msk.bf16.vlgmr.msra.gmra.mrb[72].mxu0 %vm1675_vm2, %v13005_v26  ;;  %13011 = vmatmul.mubr.msk.bf16.vlgmr.msra.gmra.mrb[100].mxu1 %vm1675_vm2, %v13005_v26 }
 0x770   : > { %11573 = vmatpush1.bf16.msra.mxu0 %v11438_v47  ;;  %11614 = vmatpush1.bf16.msra.mxu1 %v11444_v25  ;;  %v11681_v8 = vpop.permute.xlu0 %11680  ;;  %v11679_v35 = vpop.permute.xlu1 %11678 }
 0x771   : > { %13017 = vmatprep.subr.msk.bf16.mxu0 %vm1679_vm1, %v11689_v17  ;;  %13019 = vmatprep.subr.msk.bf16.mxu1 %vm1679_vm1, %v11691_v33  ;;  %v11693_v22 = vsel %vm3656_vm8, %v11677_v36, %v11679_v35  ;;  %v11694_v58 = vsel %vm3656_vm8, %v11679_v35, %v11681_v8 }
 0x772   : > { %11604 = vmatprep.mubr.bf16.mxu0 %v13415_v19  ;;  %11645 = vmatprep.mubr.bf16.mxu1 %v13415_v19  ;;  %v11720_v9 = vsel %vm1679_vm1, %v11694_v58, 0 }
 0x774   : > { %v11949_v16 = vpop.permute.xlu0 %11948  ;;  %v11683_v61 = vpop.permute.xlu1 %11682 }
 0x775   : > { %v11695_v52 = vsel %vm3656_vm8, %v11681_v8, %v11683_v61 }
 0x777   : > { %13013 = vmatmul.mubr.msk.bf16.vlgmr.msra.gmra.mrb[76].mxu0 %vm1675_vm2, %v13005_v26  ;;  %13015 = vmatmul.mubr.msk.bf16.vlgmr.msra.gmra.mrb[104].mxu1 %vm1675_vm2, %v13005_v26 }
 0x778   : > { %11732 = vmatpush1.bf16.msra.mxu0 %v11702_v12  ;;  %11773 = vmatpush1.bf16.msra.mxu1 %v11708_v41  ;;  %v11953_v21 = vpop.permute.xlu0 %11952  ;;  %v11687_v29 = vpop.permute.xlu1 %11686 }
 0x779   : > { %13021 = vmatprep.subr.msk.bf16.mxu0 %vm1679_vm1, %v11693_v22  ;;  %13023 = vmatprep.subr.msk.bf16.mxu1 %vm1679_vm1, %v11695_v52 }
 0x77a   : > { %11763 = vmatprep.mubr.bf16.mxu0 %v13415_v19  ;;  %11804 = vmatprep.mubr.bf16.mxu1 %v13415_v19 }
 0x77c   : > { %v11685_v7 = vpop.permute.xlu0 %11684  ;;  %v11951_v59 = vpop.permute.xlu1 %11950 }
 0x77d   : > { %v11697_v51 = vsel %vm3656_vm8, %v11685_v7, %v11687_v29  ;;  %v11971_v46 = vsel %vm3939_vm9, %v11951_v59, %v11953_v21  ;;  %v11696_v54 = vsel %vm3656_vm8, %v11683_v61, %v11685_v7  ;;  %v11970_v50 = vsel %vm3939_vm9, %v11949_v16, %v11951_v59 }
 0x77e   : > { %v11726_v38 = vsel %vm1679_vm1, %v11696_v54, 0  ;;  %v11984_v56 = vsel %vm1679_vm1, %v11970_v50, 0 }
 0x77f   : > { %13018 = vmatmul.mubr.msk.bf16.vlgmr.msra.gmra.mrb[80].mxu0 %vm1675_vm2, %v13016_v27  ;;  %13020 = vmatmul.mubr.msk.bf16.vlgmr.msra.gmra.mrb[108].mxu1 %vm1675_vm2, %v13016_v27 }
 0x780   : > { %11814 = vmatpush1.bf16.msra.mxu0 %v11714_v62  ;;  %11855 = vmatpush1.bf16.msra.mxu1 %v11720_v9  ;;  %v11957_v14 = vpop.permute.xlu0 %11956  ;;  %v11955_v30 = vpop.permute.xlu1 %11954 }
 0x781   : > { %13025 = vmatprep.subr.msk.bf16.mxu0 %vm1679_vm1, %v11697_v51  ;;  %13028 = vmatprep.subr.msk.bf16.mxu1 %vm1679_vm1, %v11971_v46  ;;  %v11973_v15 = vsel %vm3939_vm9, %v11955_v30, %v11957_v14  ;;  %v11972_v53 = vsel %vm3939_vm9, %v11953_v21, %v11955_v30 }
 0x782   : > { %11845 = vmatprep.mubr.bf16.mxu0 %v13415_v19  ;;  %11886 = vmatprep.mubr.bf16.mxu1 %v13415_v19  ;;  %v11990_v13 = vsel %vm1679_vm1, %v11972_v53, 0 }
 0x784   : > { %v11961_v23 = vpop.permute.xlu0 %11960  ;;  %v11959_v44 = vpop.permute.xlu1 %11958 }
 0x785   : > { %v11975_v49 = vsel %vm3939_vm9, %v11959_v44, %v11961_v23  ;;  %v11974_v37 = vsel %vm3939_vm9, %v11957_v14, %v11959_v44 }
 0x786   : > { %v11996_v31 = vsel %vm1679_vm1, %v11974_v37, 0 }
 0x787   : > { %13022 = vmatmul.mubr.msk.bf16.vlgmr.msra.gmra.mrb[84].mxu0 %vm1675_vm2, %v13016_v27  ;;  %13024 = vmatmul.mubr.msk.bf16.vlgmr.msra.gmra.mrb[112].mxu1 %vm1675_vm2, %v13016_v27 }
 0x788   : > { %11896 = vmatpush1.bf16.msra.mxu0 %v11726_v38  ;;  %12014 = vmatpush1.bf16.msra.mxu1 %v11984_v56  ;;  %v11965_v20 = vpop.permute.xlu0 %11964  ;;  %v11963_v3 = vpop.permute.xlu1 %11962 }
 0x789   : > { %13030 = vmatprep.subr.msk.bf16.mxu0 %vm1679_vm1, %v11973_v15  ;;  %13032 = vmatprep.subr.msk.bf16.mxu1 %vm1679_vm1, %v11975_v49  ;;  %v11977_v2 = vsel %vm3939_vm9, %v11963_v3, %v11965_v20  ;;  %v11976_v39 = vsel %vm3939_vm9, %v11961_v23, %v11963_v3 }
 0x78a   : > { %11927 = vmatprep.mubr.bf16.mxu0 %v13415_v19  ;;  %12045 = vmatprep.mubr.bf16.mxu1 %v13415_v19  ;;  %v12002_v18 = vsel %vm1679_vm1, %v11976_v39, 0 }
 0x78c   : > { %v11969_v24 = vpop.permute.xlu0 %11968  ;;  %v11967_v0 = vpop.permute.xlu1 %11966 }
 0x78d   : > { %v11979_v1 = vsel %vm3939_vm9, %v11967_v0, %v11969_v24  ;;  %v11978_v55 = vsel %vm3939_vm9, %v11965_v20, %v11967_v0 }
 0x78e   : > { %v12008_v42 = vsel %vm1679_vm1, %v11978_v55, 0 }
 0x78f   : > { %13026 = vmatmul.mubr.msk.bf16.vlgmr.msra.gmra.mrb[88].mxu0 %vm1675_vm2, %v13016_v27  ;;  %13029 = vmatmul.mubr.msk.bf16.vlgmr.msra.gmra.mrb[116].mxu1 %vm1675_vm2, %v13027_v28 }
 0x790   : > { %12055 = vmatpush1.bf16.msra.mxu0 %v11990_v13  ;;  %12096 = vmatpush1.bf16.msra.mxu1 %v11996_v31 }
 0x791   : > { %13034 = vmatprep.subr.msk.bf16.mxu0 %vm1679_vm1, %v11977_v2  ;;  %13036 = vmatprep.subr.msk.bf16.mxu1 %vm1679_vm1, %v11979_v1 }
 0x792   : > { %12086 = vmatprep.mubr.bf16.mxu0 %v13415_v19  ;;  %12127 = vmatprep.mubr.bf16.mxu1 %v13415_v19 }
 0x797   : > { %13031 = vmatmul.mubr.msk.bf16.vlgmr.msra.gmra.mrb[92].mxu0 %vm1675_vm2, %v13027_v28  ;;  %13033 = vmatmul.mubr.msk.bf16.vlgmr.msra.gmra.mrb[120].mxu1 %vm1675_vm2, %v13027_v28 }
 0x798   : > { %12137 = vmatpush1.bf16.msra.mxu0 %v12002_v18  ;;  %12178 = vmatpush1.bf16.msra.mxu1 %v12008_v42 }
 0x799   : > { %12168 = vmatprep.mubr.bf16.mxu0 %v13415_v19  ;;  %12209 = vmatprep.mubr.bf16.mxu1 %v13415_v19 }
 0x79f   : > { %13035 = vmatmul.mubr.msk.bf16.vlgmr.msra.gmra.mrb[96].mxu0 %vm1675_vm2, %v13027_v28  ;;  %13037 = vmatmul.mubr.msk.bf16.vlgmr.msra.gmra.mrb[124].mxu1 %vm1675_vm2, %v13027_v28 }
 0x7c2   : > { %v9781_v5 = vpop.f32.mrb[36].mxu1 }
 0x7c3   : > { %v9783_v26 = vpop.f32.mrb[37].mxu1 }
 0x7c4   : > { %v9785_v40 = vpop.f32.mrb[38].mxu1 }
 0x7c5   : > { %v9786_v11 = vpop.f32.mrb[39].mxu1 }
 0x7c6   : > { %v9822_v32 = vpop.f32.mrb[12].mxu0 }
 0x7c7   : > { %v9824_v45 = vpop.f32.mrb[13].mxu0 }
 0x7c8   : > { %v9826_v63 = vpop.f32.mrb[14].mxu0 }
 0x7c9   : > { %v9827_v57 = vpop.f32.mrb[15].mxu0 }
 0x7ca   : > { %v9863_v4 = vpop.f32.mrb[40].mxu1 }
 0x7cb   : > { %v9865_v43 = vpop.f32.mrb[41].mxu1 }
 0x7cc   : > { %v9867_v6 = vpop.f32.mrb[42].mxu1 }
 0x7cd   : > { %v9868_v36 = vpop.f32.mrb[43].mxu1 }
 0x7ce   : > { %v9904_v34 = vpop.f32.mrb[16].mxu0 }
 0x7cf   : > { %v9906_v33 = vpop.f32.mrb[17].mxu0 }
 0x7d0   : > { %v9908_v47 = vpop.f32.mrb[18].mxu0 }
 0x7d1   : > { %v9909_v19 = vpop.f32.mrb[19].mxu0 }
 0x7d2   : > { %v9945_v25 = vpop.f32.mrb[44].mxu1 }
 0x7d3   : > { %v9947_v17 = vpop.f32.mrb[45].mxu1 }
 0x7d4   : > { %v9949_v8 = vpop.f32.mrb[46].mxu1 }
 0x7d5   : > { %v9950_v35 = vpop.f32.mrb[47].mxu1 }
 0x7d6   : > { %v10051_v10 = vpop.f32.mrb[20].mxu0 }
 0x7d7   : > { %v10052_v48 = vadd.f32 %v10051_v10, %v9781_v5  ;;  %v10053_v16 = vpop.f32.mrb[21].mxu0 }
 0x7d8   : > { %v10054_v61 = vadd.f32 %v10053_v16, %v9783_v26  ;;  %v10055_v52 = vpop.f32.mrb[22].mxu0 }
 0x7d9   : > { %v10056_v12 = vpop.f32.mrb[23].mxu0 }
 0x7da   : > { %v10092_v41 = vpop.f32.mrb[48].mxu1 }
 0x7db   : > { %v10093_v22 = vadd.f32 %v10092_v41, %v9822_v32  ;;  %v10094_v21 = vpop.f32.mrb[49].mxu1 }
 0x7dc   : > { %v10095_v29 = vadd.f32 %v10094_v21, %v9824_v45  ;;  %v10096_v60 = vpop.f32.mrb[50].mxu1 }
 0x7dd   : > { %v10097_v58 = vpop.f32.mrb[51].mxu1 }
 0x7de   : > { %v10133_v7 = vpop.f32.mrb[24].mxu0 }
 0x7df   : > { %v10134_v59 = vadd.f32 %v10133_v7, %v9863_v4  ;;  %v10135_v27 = vpop.f32.mrb[25].mxu0 }
 0x7e0   : > { %v10136_v51 = vadd.f32 %v10135_v27, %v9865_v43  ;;  %v10137_v46 = vpop.f32.mrb[26].mxu0 }
 0x7e1   : > { %v10138_v62 = vpop.f32.mrb[27].mxu0 }
 0x7e2   : > { %v10174_v9 = vpop.f32.mrb[52].mxu1 }
 0x7e3   : > { %v10175_v14 = vadd.f32 %v10174_v9, %v9904_v34  ;;  %v10176_v30 = vpop.f32.mrb[53].mxu1 }
 0x7e4   : > { %v10177_v54 = vadd.f32 %v10176_v30, %v9906_v33  ;;  %v10178_v50 = vpop.f32.mrb[54].mxu1 }
 0x7e5   : > { %v10179_v23 = vpop.f32.mrb[55].mxu1 }
 0x7ea   : > { %v10215_v44 = vpop.f32.mrb[28].mxu0  ;;  %v10323_v49 = vpop.f32.mrb[56].mxu1 }
 0x7eb   : > { %v10216_v38 = vadd.f32 %v10215_v44, %v9945_v25  ;;  %v10494_v56 = vadd.f32 %v10323_v49, %v10052_v48  ;;  %v10217_v15 = vpop.f32.mrb[29].mxu0  ;;  %v10325_v20 = vpop.f32.mrb[57].mxu1 }
 0x7ec   : > { %v10218_v3 = vadd.f32 %v10217_v15, %v9947_v17  ;;  %v10495_v53 = vadd.f32 %v10325_v20, %v10054_v61  ;;  %v10219_v37 = vpop.f32.mrb[30].mxu0  ;;  %v10327_v24 = vpop.f32.mrb[58].mxu1 }
 0x7ed   : > { %v10220_v0 = vpop.f32.mrb[31].mxu0  ;;  %v10328_v28 = vpop.f32.mrb[59].mxu1 }
 0x7f2   : > { %v10364_v1 = vpop.f32.mrb[32].mxu0  ;;  %v10405_v13 = vpop.f32.mrb[60].mxu1 }
 0x7f3   : > { %v10496_v31 = vadd.f32 %v10364_v1, %v10093_v22  ;;  %v10498_v2 = vadd.f32 %v10405_v13, %v10134_v59  ;;  %v10366_v39 = vpop.f32.mrb[33].mxu0  ;;  %v10407_v55 = vpop.f32.mrb[61].mxu1 }
 0x7f4   : > { %v10497_v18 = vadd.f32 %v10366_v39, %v10095_v29  ;;  %v10499_v42 = vadd.f32 %v10407_v55, %v10136_v51  ;;  %v10368_v5 = vpop.f32.mrb[34].mxu0  ;;  %v10409_v26 = vpop.f32.mrb[62].mxu1 }
 0x7f5   : > { %v10369_v40 = vpop.f32.mrb[35].mxu0  ;;  %v10410_v11 = vpop.f32.mrb[63].mxu1 }
 0x7fa   : > { %v10446_v32 = vpop.f32.mrb[36].mxu0  ;;  %v10487_v45 = vpop.f32.mrb[64].mxu1 }
 0x7fb   : > { %v10500_v63 = vadd.f32 %v10446_v32, %v10175_v14  ;;  %v10502_v57 = vadd.f32 %v10487_v45, %v10216_v38  ;;  %v10448_v4 = vpop.f32.mrb[37].mxu0  ;;  %v10489_v43 = vpop.f32.mrb[65].mxu1 }
 0x7fc   : > { %v10501_v6 = vadd.f32 %v10448_v4, %v10177_v54  ;;  %v10503_v36 = vadd.f32 %v10489_v43, %v10218_v3  ;;  %v10450_v34 = vpop.f32.mrb[38].mxu0  ;;  %v10491_v33 = vpop.f32.mrb[66].mxu1 }
 0x7fd   : > { %v10451_v47 = vpop.f32.mrb[39].mxu0  ;;  %v10492_v19 = vpop.f32.mrb[67].mxu1 }
 0x802   : > { %v10605_v25 = vpop.f32.mrb[40].mxu0  ;;  %v10646_v17 = vpop.f32.mrb[68].mxu1 }
 0x803   : > { %v10776_v8 = vadd.f32 %v10605_v25, %v10494_v56  ;;  %v10778_v35 = vadd.f32 %v10646_v17, %v10496_v31  ;;  %v10607_v10 = vpop.f32.mrb[41].mxu0  ;;  %v10648_v48 = vpop.f32.mrb[69].mxu1 }
 0x804   : > { %v10777_v16 = vadd.f32 %v10607_v10, %v10495_v53  ;;  %v10779_v61 = vadd.f32 %v10648_v48, %v10497_v18  ;;  %v10609_v52 = vpop.f32.mrb[42].mxu0  ;;  %v10650_v12 = vpop.f32.mrb[70].mxu1 }
 0x805   : > { %v10610_v41 = vpop.f32.mrb[43].mxu0  ;;  %v10651_v22 = vpop.f32.mrb[71].mxu1 }
 0x80a   : > { %v10687_v21 = vpop.f32.mrb[44].mxu0  ;;  %v10728_v29 = vpop.f32.mrb[72].mxu1 }
 0x80b   : > { %v10780_v60 = vadd.f32 %v10687_v21, %v10498_v2  ;;  %v10782_v58 = vadd.f32 %v10728_v29, %v10500_v63  ;;  %v10689_v7 = vpop.f32.mrb[45].mxu0  ;;  %v10730_v59 = vpop.f32.mrb[73].mxu1 }
 0x80c   : > { %v10781_v27 = vadd.f32 %v10689_v7, %v10499_v42  ;;  %v10783_v51 = vadd.f32 %v10730_v59, %v10501_v6  ;;  %v10691_v46 = vpop.f32.mrb[46].mxu0  ;;  %v10732_v62 = vpop.f32.mrb[74].mxu1 }
 0x80d   : > { %v10692_v9 = vpop.f32.mrb[47].mxu0  ;;  %v10733_v14 = vpop.f32.mrb[75].mxu1 }
 0x812   : > { %v10769_v30 = vpop.f32.mrb[48].mxu0  ;;  %v10885_v54 = vpop.f32.mrb[76].mxu1 }
 0x813   : > { %v10784_v50 = vadd.f32 %v10769_v30, %v10502_v57  ;;  %v11056_v23 = vadd.f32 %v10885_v54, %v10776_v8  ;;  %v10771_v44 = vpop.f32.mrb[49].mxu0  ;;  %v10887_v49 = vpop.f32.mrb[77].mxu1 }
 0x814   : > { %v10785_v38 = vadd.f32 %v10771_v44, %v10503_v36  ;;  %v11057_v56 = vadd.f32 %v10887_v49, %v10777_v16  ;;  %v10773_v15 = vpop.f32.mrb[50].mxu0  ;;  %v10889_v20 = vpop.f32.mrb[78].mxu1 }
 0x815   : > { %v10774_v3 = vpop.f32.mrb[51].mxu0  ;;  %v10890_v53 = vpop.f32.mrb[79].mxu1 }
 0x81a   : > { %v10926_v37 = vpop.f32.mrb[52].mxu0  ;;  %v10967_v24 = vpop.f32.mrb[80].mxu1 }
 0x81b   : > { %v11058_v0 = vadd.f32 %v10926_v37, %v10778_v35  ;;  %v11060_v28 = vadd.f32 %v10967_v24, %v10780_v60  ;;  %v10928_v1 = vpop.f32.mrb[53].mxu0  ;;  %v10969_v13 = vpop.f32.mrb[81].mxu1 }
 0x81c   : > { %v11059_v31 = vadd.f32 %v10928_v1, %v10779_v61  ;;  %v11061_v2 = vadd.f32 %v10969_v13, %v10781_v27  ;;  %v10930_v39 = vpop.f32.mrb[54].mxu0  ;;  %v10971_v55 = vpop.f32.mrb[82].mxu1 }
 0x81d   : > { %v10931_v18 = vpop.f32.mrb[55].mxu0  ;;  %v10972_v42 = vpop.f32.mrb[83].mxu1 }
 0x822   : > { %v11008_v5 = vpop.f32.mrb[56].mxu0  ;;  %v11049_v26 = vpop.f32.mrb[84].mxu1 }
 0x823   : > { %v11062_v40 = vadd.f32 %v11008_v5, %v10782_v58  ;;  %v11064_v11 = vadd.f32 %v11049_v26, %v10784_v50  ;;  %v11010_v32 = vpop.f32.mrb[57].mxu0  ;;  %v11051_v45 = vpop.f32.mrb[85].mxu1 }
 0x824   : > { %v11063_v63 = vadd.f32 %v11010_v32, %v10783_v51  ;;  %v11065_v57 = vadd.f32 %v11051_v45, %v10785_v38  ;;  %v11012_v4 = vpop.f32.mrb[58].mxu0  ;;  %v11053_v43 = vpop.f32.mrb[86].mxu1 }
 0x825   : > { %v11013_v6 = vpop.f32.mrb[59].mxu0  ;;  %v11054_v36 = vpop.f32.mrb[87].mxu1 }
 0x82a   : > { %v11201_v34 = vpop.f32.mrb[60].mxu0  ;;  %v11242_v33 = vpop.f32.mrb[88].mxu1 }
 0x82b   : > { %v11372_v47 = vadd.f32 %v11201_v34, %v11056_v23  ;;  %v11374_v19 = vadd.f32 %v11242_v33, %v11058_v0  ;;  %v11203_v25 = vpop.f32.mrb[61].mxu0  ;;  %v11244_v17 = vpop.f32.mrb[89].mxu1 }
 0x82c   : > { %v11373_v8 = vadd.f32 %v11203_v25, %v11057_v56  ;;  %v11375_v35 = vadd.f32 %v11244_v17, %v11059_v31  ;;  %v11205_v10 = vpop.f32.mrb[62].mxu0  ;;  %v11246_v48 = vpop.f32.mrb[90].mxu1 }
 0x82d   : > { %v11206_v16 = vpop.f32.mrb[63].mxu0  ;;  %v11247_v61 = vpop.f32.mrb[91].mxu1 }
 0x832   : > { %v11283_v52 = vpop.f32.mrb[64].mxu0  ;;  %v11324_v12 = vpop.f32.mrb[92].mxu1 }
 0x833   : > { %v11376_v41 = vadd.f32 %v11283_v52, %v11060_v28  ;;  %v11378_v22 = vadd.f32 %v11324_v12, %v11062_v40  ;;  %v11285_v21 = vpop.f32.mrb[65].mxu0  ;;  %v11326_v29 = vpop.f32.mrb[93].mxu1 }
 0x834   : > { %v11377_v60 = vadd.f32 %v11285_v21, %v11061_v2  ;;  %v11379_v58 = vadd.f32 %v11326_v29, %v11063_v63  ;;  %v11287_v7 = vpop.f32.mrb[66].mxu0  ;;  %v11328_v59 = vpop.f32.mrb[94].mxu1 }
 0x835   : > { %v11288_v27 = vpop.f32.mrb[67].mxu0  ;;  %v11329_v51 = vpop.f32.mrb[95].mxu1 }
 0x836   : > { %v12232_v7 = vpop.permute.xlu1 %12231 }
 0x83a   : > { %v11365_v46 = vpop.f32.mrb[68].mxu0  ;;  %v11483_v62 = vpop.f32.mrb[96].mxu1 }
 0x83b   : > { %v11380_v9 = vadd.f32 %v11365_v46, %v11064_v11  ;;  %v11654_v14 = vadd.f32 %v11483_v62, %v11372_v47  ;;  %v11367_v30 = vpop.f32.mrb[69].mxu0  ;;  %v11485_v54 = vpop.f32.mrb[97].mxu1 }
 0x83c   : > { %v11381_v50 = vadd.f32 %v11367_v30, %v11065_v57  ;;  %v11655_v23 = vadd.f32 %v11485_v54, %v11373_v8  ;;  %v11369_v44 = vpop.f32.mrb[70].mxu0  ;;  %v11487_v49 = vpop.f32.mrb[98].mxu1 }
 0x83d   : > { %v11370_v38 = vpop.f32.mrb[71].mxu0  ;;  %v11488_v56 = vpop.f32.mrb[99].mxu1 }
 0x842   : > { %v11524_v15 = vpop.f32.mrb[72].mxu0  ;;  %v11565_v20 = vpop.f32.mrb[100].mxu1 }
 0x843   : > { %v11656_v3 = vadd.f32 %v11524_v15, %v11374_v19  ;;  %v11658_v53 = vadd.f32 %v11565_v20, %v11376_v41  ;;  %v11526_v37 = vpop.f32.mrb[73].mxu0  ;;  %v11567_v24 = vpop.f32.mrb[101].mxu1 }
 0x844   : > { %v11657_v0 = vadd.f32 %v11526_v37, %v11375_v35  ;;  %v11659_v28 = vadd.f32 %v11567_v24, %v11377_v60  ;;  %v11528_v1 = vpop.f32.mrb[74].mxu0  ;;  %v11569_v13 = vpop.f32.mrb[102].mxu1 }
 0x845   : > { %v11529_v31 = vpop.f32.mrb[75].mxu0  ;;  %v11570_v2 = vpop.f32.mrb[103].mxu1 }
 0x84a   : > { %v11606_v39 = vpop.f32.mrb[76].mxu0  ;;  %v11647_v55 = vpop.f32.mrb[104].mxu1 }
 0x84b   : > { %v11660_v18 = vadd.f32 %v11606_v39, %v11378_v22  ;;  %v11662_v42 = vadd.f32 %v11647_v55, %v11380_v9  ;;  %v11608_v5 = vpop.f32.mrb[77].mxu0  ;;  %v11649_v26 = vpop.f32.mrb[105].mxu1 }
 0x84c   : > { %v11661_v40 = vadd.f32 %v11608_v5, %v11379_v58  ;;  %v11663_v11 = vadd.f32 %v11649_v26, %v11381_v50  ;;  %v11610_v32 = vpop.f32.mrb[78].mxu0  ;;  %v11651_v45 = vpop.f32.mrb[106].mxu1 }
 0x84d   : > { %v11611_v63 = vpop.f32.mrb[79].mxu0  ;;  %v11652_v57 = vpop.f32.mrb[107].mxu1 }
 0x852   : > { %v11765_v4 = vpop.f32.mrb[80].mxu0  ;;  %v11806_v43 = vpop.f32.mrb[108].mxu1 }
 0x853   : > { %v11936_v6 = vadd.f32 %v11765_v4, %v11654_v14  ;;  %v11938_v36 = vadd.f32 %v11806_v43, %v11656_v3  ;;  %v11767_v34 = vpop.f32.mrb[81].mxu0  ;;  %v11808_v33 = vpop.f32.mrb[109].mxu1 }
 0x854   : > { %v11937_v47 = vadd.f32 %v11767_v34, %v11655_v23  ;;  %v11939_v19 = vadd.f32 %v11808_v33, %v11657_v0  ;;  %v11769_v25 = vpop.f32.mrb[82].mxu0  ;;  %v11810_v17 = vpop.f32.mrb[110].mxu1 }
 0x855   : > { %v11770_v8 = vpop.f32.mrb[83].mxu0  ;;  %v11811_v35 = vpop.f32.mrb[111].mxu1 }
 0x85a   : > { %v11847_v10 = vpop.f32.mrb[84].mxu0  ;;  %v11888_v48 = vpop.f32.mrb[112].mxu1 }
 0x85b   : > { %v11940_v16 = vadd.f32 %v11847_v10, %v11658_v53  ;;  %v11942_v61 = vadd.f32 %v11888_v48, %v11660_v18  ;;  %v11849_v52 = vpop.f32.mrb[85].mxu0  ;;  %v11890_v12 = vpop.f32.mrb[113].mxu1 }
 0x85c   : > { %v11941_v41 = vadd.f32 %v11849_v52, %v11659_v28  ;;  %v11943_v22 = vadd.f32 %v11890_v12, %v11661_v40  ;;  %v11851_v21 = vpop.f32.mrb[86].mxu0  ;;  %v11892_v29 = vpop.f32.mrb[114].mxu1 }
 0x85d   : > { %v11852_v60 = vpop.f32.mrb[87].mxu0  ;;  %v11893_v58 = vpop.f32.mrb[115].mxu1 }
 0x862   : > { %v11929_v59 = vpop.f32.mrb[88].mxu0  ;;  %v12047_v27 = vpop.f32.mrb[116].mxu1 }
 0x863   : > { %v11944_v51 = vadd.f32 %v11929_v59, %v11662_v42  ;;  %v12218_v46 = vadd.f32 %v12047_v27, %v11936_v6  ;;  %v11931_v62 = vpop.f32.mrb[89].mxu0  ;;  %v12049_v9 = vpop.f32.mrb[117].mxu1 }
 0x864   : > { %v11945_v14 = vadd.f32 %v11931_v62, %v11663_v11  ;;  %v12219_v30 = vadd.f32 %v12049_v9, %v11937_v47  ;;  %v11933_v54 = vpop.f32.mrb[90].mxu0  ;;  %v12051_v50 = vpop.f32.mrb[118].mxu1 }
 0x865   : > { %v12234_v23 = vadd.f32 %v12232_v7, %v12218_v46  ;;  %v11934_v44 = vpop.f32.mrb[91].mxu0  ;;  %v12052_v49 = vpop.f32.mrb[119].mxu1 }
 0x866   : > { %v12235_v38 = vadd.f32 %v12232_v7, %v12219_v30 }
 0x867   : > { %v12244_v56 = vmax.f32 %v12234_v23, 0.0 }
 0x868   : > { %v12245_v15 = vmax.f32 %v12235_v38, 0.0 }
 0x869   : > { %12254 = vst [vmem:[%s16536_s12] sm:$0xff] %v12244_v56 }
 0x86a   : > { %12255 = vst [vmem:[%s16536_s12 + $0x8] sm:$0xff] %v12245_v15  ;;  %v12088_v20 = vpop.f32.mrb[92].mxu0  ;;  %v12129_v3 = vpop.f32.mrb[120].mxu1 }
 0x86b   : > { %v12220_v53 = vadd.f32 %v12088_v20, %v11938_v36  ;;  %v12222_v37 = vadd.f32 %v12129_v3, %v11940_v16  ;;  %v12090_v24 = vpop.f32.mrb[93].mxu0  ;;  %v12131_v0 = vpop.f32.mrb[121].mxu1 }
 0x86c   : > { %v12221_v28 = vadd.f32 %v12090_v24, %v11939_v19  ;;  %v12223_v1 = vadd.f32 %v12131_v0, %v11941_v41  ;;  %v12092_v13 = vpop.f32.mrb[94].mxu0  ;;  %v12133_v31 = vpop.f32.mrb[122].mxu1 }
 0x86d   : > { %v12236_v2 = vadd.f32 %v12232_v7, %v12220_v53  ;;  %v12238_v39 = vadd.f32 %v12232_v7, %v12222_v37  ;;  %v12093_v55 = vpop.f32.mrb[95].mxu0  ;;  %v12134_v18 = vpop.f32.mrb[123].mxu1 }
 0x86e   : > { %v12237_v42 = vadd.f32 %v12232_v7, %v12221_v28  ;;  %v12239_v5 = vadd.f32 %v12232_v7, %v12223_v1 }
 0x86f   : > { %v12246_v26 = vmax.f32 %v12236_v2, 0.0  ;;  %v12248_v40 = vmax.f32 %v12238_v39, 0.0 }
 0x870   : > { %v12247_v11 = vmax.f32 %v12237_v42, 0.0  ;;  %v12249_v32 = vmax.f32 %v12239_v5, 0.0 }
 0x871   : > { %12256 = vst [vmem:[%s16536_s12 + $0x10] sm:$0xff] %v12246_v26  ;;  %12258 = vst [vmem:[%s16536_s12 + $0x20] sm:$0xff] %v12248_v40 }
 0x872   : > { %12257 = vst [vmem:[%s16536_s12 + $0x18] sm:$0xff] %v12247_v11  ;;  %12259 = vst [vmem:[%s16536_s12 + $0x28] sm:$0xff] %v12249_v32  ;;  %v12170_v45 = vpop.f32.mrb[96].mxu0  ;;  %v12211_v63 = vpop.f32.mrb[124].mxu1 }
 0x873   : > { %v12224_v57 = vadd.f32 %v12170_v45, %v11942_v61  ;;  %v12226_v4 = vadd.f32 %v12211_v63, %v11944_v51  ;;  %v12172_v43 = vpop.f32.mrb[97].mxu0  ;;  %v12213_v6 = vpop.f32.mrb[125].mxu1 }
 0x874   : > { %v12225_v36 = vadd.f32 %v12172_v43, %v11943_v22  ;;  %v12227_v34 = vadd.f32 %v12213_v6, %v11945_v14  ;;  %v12174_v33 = vpop.f32.mrb[98].mxu0  ;;  %v12215_v47 = vpop.f32.mrb[126].mxu1 }
 0x875   : > { %v12240_v19 = vadd.f32 %v12232_v7, %v12224_v57  ;;  %v12242_v25 = vadd.f32 %v12232_v7, %v12226_v4  ;;  %v12175_v17 = vpop.f32.mrb[99].mxu0  ;;  %v12216_v8 = vpop.f32.mrb[127].mxu1 }
 0x876   : > { %v12241_v35 = vadd.f32 %v12232_v7, %v12225_v36  ;;  %v12243_v10 = vadd.f32 %v12232_v7, %v12227_v34 }
 0x877   : > { %v12250_v48 = vmax.f32 %v12240_v19, 0.0  ;;  %v12252_v16 = vmax.f32 %v12242_v25, 0.0 }
 0x878   : > { %v12251_v61 = vmax.f32 %v12241_v35, 0.0  ;;  %v12253_v52 = vmax.f32 %v12243_v10, 0.0 }
 0x879   : > { %12260 = vst [vmem:[%s16536_s12 + $0x30] sm:$0xff] %v12250_v48  ;;  %12262 = vst [vmem:[%s16536_s12 + $0x40] sm:$0xff] %v12252_v16 }
 0x87a   : > { %12261 = vst [vmem:[%s16536_s12 + $0x38] sm:$0xff] %v12251_v61  ;;  %12263 = vst [vmem:[%s16536_s12 + $0x48] sm:$0xff] %v12253_v52 }
 0x87b PF: > { %s20_s13 = sadd.s32 1, %s13413_s13  }
 0x87c   : > { %p17_p4 = scmp.ge.s32.totalorder %s20_s13, 4  }
 0x87e   :  { %19 = sbr.rel (!%p17_p4) target bundleno = 1 (0x1), region = 126 }

</bundles_post_ra>
